<compile_context>
chip_gen: v7x
topology: tpu7x:2x2x1
jax: 0.10.0
libtpu: 0.0.40
codegen_flags: <defaults>
</compile_context>

<pallas_src>
import functools

import jax
import jax.numpy as jnp
from jax.experimental import pallas as pl
from jax.experimental.pallas import tpu as pltpu

_EPS = 1e-5


# ----------------------------------------------------------------------------
# In-kernel building blocks
# ----------------------------------------------------------------------------
def _conv3x3_in_relu(a, w_flat, H, W):
    """Reflection-pad 3x3 conv + InstanceNorm2d(affine=False) + ReLU.

    a      : (Cin,  H*W) float32   pixels flattened row-major on the lane axis
    w_flat : (Cout, 9*Cin) bfloat16 tap-major (ky, kx, cin) columns
    returns: (Cout, H*W) float32
    """
    HW = H * W

    # ReflectionPad2d(1) along H in the flattened layout: rows [1, 0..H-1, H-2].
    top = a[:, W:2 * W]                      # row 1
    bot = a[:, (H - 2) * W:(H - 1) * W]      # row H-2
    ah = jnp.concatenate([top, a, bot], axis=1)               # (Cin, (H+2)*W)

    # Column neighbours (x+1 / x-1) with reflection at x == 0 / W-1.
    nxt = jnp.concatenate([ah[:, 1:], ah[:, :1]], axis=1)     # value at p+1
    prv = jnp.concatenate([ah[:, -1:], ah[:, :-1]], axis=1)   # value at p-1
    idx = jax.lax.broadcasted_iota(jnp.int32, ah.shape, 1)
    if (W & (W - 1)) == 0:
        colx = idx & (W - 1)                 # x within each row (W power of 2)
    else:
        colx = jax.lax.rem(idx, W)           # generic fallback
    a_xm1 = jnp.where(colx == 0, nxt, prv)        # column x-1 (reflected at x=0)
    a_xp1 = jnp.where(colx == W - 1, prv, nxt)    # column x+1 (reflected at x=W-1)
    shifted = (a_xm1, ah, a_xp1)                  # kx = 0, 1, 2

    # im2col: (9*Cin, H*W); row-block order (ky, kx, cin) matches w_flat columns.
    patches = [shifted[kx][:, ky * W: ky * W + HW]
               for ky in range(3) for kx in range(3)]
    p = jnp.concatenate(patches, axis=0).astype(jnp.bfloat16)

    # Single MXU matmul, bf16 inputs, f32 accumulation.  Conv bias omitted:
    # InstanceNorm's per-channel mean subtraction cancels it exactly.
    acc = jnp.dot(w_flat, p, preferred_element_type=jnp.float32)   # (Cout, H*W)

    # InstanceNorm2d(affine=False, eps=1e-5): single-pass stats on the lane axis.
    inv_n = 1.0 / HW
    mean = jnp.sum(acc, axis=1, keepdims=True) * inv_n
    ex2 = jnp.sum(acc * acc, axis=1, keepdims=True) * inv_n
    var = ex2 - mean * mean
    y = (acc - mean) * jax.lax.rsqrt(var + _EPS)

    return jnp.maximum(y, 0.0)                    # ReLU


def jnet_kernel(x_ref, w1_ref, w2_ref, w3_ref, w4_ref, wf_ref, bf_ref, o_ref,
                *, H, W):
    """Whole JNet forward for one image, fully VMEM resident.

    x_ref : (1, 3,  H*W)  float32   NCHW input, spatially flattened
    wK_ref: (num, 9*CinK) bfloat16  conv weights, tap-major
    wf_ref: (3, num)      bfloat16  final 1x1 conv weight
    bf_ref: (3, 1)        float32   final 1x1 conv bias
    o_ref : (1, 3,  H*W)  float32   NCHW output, spatially flattened
    """
    a = x_ref[0]                                        # (3, H*W)
    a = _conv3x3_in_relu(a, w1_ref[...], H, W)
    a = _conv3x3_in_relu(a, w2_ref[...], H, W)
    a = _conv3x3_in_relu(a, w3_ref[...], H, W)
    a = _conv3x3_in_relu(a, w4_ref[...], H, W)

    # Final 1x1 conv + bias + sigmoid, emitted channels-first (lane-dense H*W).
    z = jnp.dot(wf_ref[...], a.astype(jnp.bfloat16),
                preferred_element_type=jnp.float32) + bf_ref[...]
    o_ref[0] = 1.0 / (1.0 + jnp.exp(-z))          # sigmoid (EUP exp)


# ----------------------------------------------------------------------------
# Host wrapper
# ----------------------------------------------------------------------------
@jax.jit
def jnet_forward(x_nchw, params):
    N, C, H, W = x_nchw.shape
    assert C == 3
    HW = H * W
    x_flat = x_nchw.reshape(N, C, HW)          # free: NCHW is already contiguous

    # Kernel-side weight layout: (Cout, 9*Cin) tap-major, bf16 for the MXU.
    conv_ws = []
    for (w_hwio, _b) in params["blocks"]:      # conv biases dropped (cancel in IN)
        kh, kw, cin, cout = w_hwio.shape
        conv_ws.append(
            jnp.transpose(w_hwio.reshape(kh * kw * cin, cout)).astype(jnp.bfloat16))
    wf, bf = params["final"]
    wf_k = wf.astype(jnp.bfloat16)                 # (3, num)
    bf_k = bf.reshape(-1, 1).astype(jnp.float32)   # (3, 1)
    num = wf.shape[1]

    def weight_spec(shape):
        return pl.BlockSpec(shape, lambda n: (0, 0))

    out_flat = pl.pallas_call(
        functools.partial(jnet_kernel, H=H, W=W),
        out_shape=jax.ShapeDtypeStruct((N, 3, HW), jnp.float32),
        grid=(N,),
        in_specs=[
            pl.BlockSpec((1, 3, HW), lambda n: (n, 0, 0)),
            weight_spec((num, 9 * 3)),
            weight_spec((num, 9 * num)),
            weight_spec((num, 9 * num)),
            weight_spec((num, 9 * num)),
            weight_spec((3, num)),
            weight_spec((3, 1)),
        ],
        out_specs=pl.BlockSpec((1, 3, HW), lambda n: (n, 0, 0)),
        compiler_params=pltpu.CompilerParams(
            dimension_semantics=("parallel",)),   # one image per TensorCore
    )(x_flat, *conv_ws, wf_k, bf_k)

    return out_flat.reshape(N, 3, H, W)


# ----------------------------------------------------------------------------
# Deterministic parameter init (shapes follow JNet.__init__)
# ----------------------------------------------------------------------------
def init_params(key, num=64):
    blocks = []
    cins = [3, num, num, num]
    for i, cin in enumerate(cins):
        kw, kb = jax.random.split(jax.random.fold_in(key, i))
        w = 0.1 * jax.random.normal(kw, (3, 3, cin, num), jnp.float32)   # HWIO
        b = 0.05 * jax.random.normal(kb, (num,), jnp.float32)
        blocks.append((w, b))
    kw, kb = jax.random.split(jax.random.fold_in(key, 100))
    wf = 0.1 * jax.random.normal(kw, (3, num), jnp.float32)   # 1x1 conv (Cout, Cin)
    bf = 0.05 * jax.random.normal(kb, (3,), jnp.float32)
    return {"blocks": blocks, "final": (wf, bf)}


# ----------------------------------------------------------------------------
# Pure-JAX f32 reference (PyTorch semantics, includes the conv biases)
# ----------------------------------------------------------------------------
def jnet_reference(x_nchw, params):
    d = jnp.transpose(x_nchw, (0, 2, 3, 1))                    # NHWC
    for (w_hwio, b) in params["blocks"]:
        dp = jnp.pad(d, ((0, 0), (1, 1), (1, 1), (0, 0)), mode="reflect")
        y = jax.lax.conv_general_dilated(
            dp, w_hwio, (1, 1), "VALID",
            dimension_numbers=("NHWC", "HWIO", "NHWC")) + b[None, None, None, :]
        mean = jnp.mean(y, axis=(1, 2), keepdims=True)
        var = jnp.mean((y - mean) ** 2, axis=(1, 2), keepdims=True)
        d = jnp.maximum((y - mean) * jax.lax.rsqrt(var + _EPS), 0.0)
    wf, bf = params["final"]
    y = jnp.einsum("nhwc,oc->nhwo", d, wf) + bf[None, None, None, :]
    y = jax.nn.sigmoid(y)
    return jnp.transpose(y, (0, 3, 1, 2))


# ----------------------------------------------------------------------------
if __name__ == "__main__":
    key = jax.random.PRNGKey(0)
    N, C, H, W = 2, 3, 16, 16
    NUM = 64   # module default

    kx, kp = jax.random.split(key)
    x = jax.random.normal(kx, (N, C, H, W), jnp.float32)
    params = init_params(kp, num=NUM)

    out = jax.block_until_ready(jnet_forward(x, params))
    assert out.shape == (N, 3, H, W), out.shape

    ref = jax.block_until_ready(jnet_reference(x, params))
    # Kernel uses bf16 MXU inputs (f32 accumulation); compare against the pure
    # f32 reference with a correspondingly relaxed tolerance (outputs in (0,1)).
    max_err = float(jnp.max(jnp.abs(out - ref)))
    assert max_err < 5e-2, max_err

    print("KERNEL_OK")
</pallas_src>

<mosaic_0001>
module attributes {stable_mosaic.version = 11 : i64} {
  func.func @jnet_kernel(%arg0: i32, %arg1: memref<1x3x256xf32, #tpu.memory_space<vmem>>, %arg2: memref<64x27xbf16, #tpu.memory_space<vmem>>, %arg3: memref<64x576xbf16, #tpu.memory_space<vmem>>, %arg4: memref<64x576xbf16, #tpu.memory_space<vmem>>, %arg5: memref<64x576xbf16, #tpu.memory_space<vmem>>, %arg6: memref<3x64xbf16, #tpu.memory_space<vmem>>, %arg7: memref<3x1xf32, #tpu.memory_space<vmem>>, %arg8: memref<1x3x256xf32, #tpu.memory_space<vmem>>) attributes {dimension_semantics = [#tpu.dimension_semantics<parallel>], iteration_bounds = array<i64: 2>, scalar_prefetch = 0 : i64, scratch_operands = 0 : i64, tpu.core_type = #tpu.core_type<tc>, window_params = [{transform_indices = @transform_0, window_bounds = array<i64: 1, 3, 256>}, {pipeline_mode = #tpu.pipeline_mode<synchronous>, transform_indices = @transform_1, window_bounds = array<i64: 64, 27>}, {pipeline_mode = #tpu.pipeline_mode<synchronous>, transform_indices = @transform_2, window_bounds = array<i64: 64, 576>}, {pipeline_mode = #tpu.pipeline_mode<synchronous>, transform_indices = @transform_3, window_bounds = array<i64: 64, 576>}, {pipeline_mode = #tpu.pipeline_mode<synchronous>, transform_indices = @transform_4, window_bounds = array<i64: 64, 576>}, {pipeline_mode = #tpu.pipeline_mode<synchronous>, transform_indices = @transform_5, window_bounds = array<i64: 3, 64>}, {pipeline_mode = #tpu.pipeline_mode<synchronous>, transform_indices = @transform_6, window_bounds = array<i64: 3, 1>}, {transform_indices = @transform_7, window_bounds = array<i64: 1, 3, 256>}]} {
    %c0 = arith.constant 0 : index
    %c0_0 = arith.constant 0 : index
    %c0_1 = arith.constant 0 : index
    %0 = vector.load %arg1[%c0, %c0_0, %c0_1] : memref<1x3x256xf32, #tpu.memory_space<vmem>>, vector<1x3x256xf32>
    %1 = vector.shape_cast %0 : vector<1x3x256xf32> to vector<3x256xf32>
    %c0_2 = arith.constant 0 : index
    %c0_3 = arith.constant 0 : index
    %2 = vector.load %arg2[%c0_2, %c0_3] : memref<64x27xbf16, #tpu.memory_space<vmem>>, vector<64x27xbf16>
    %3 = vector.extract_strided_slice %1 {offsets = [0, 16], sizes = [3, 16], strides = [1, 1]} : vector<3x256xf32> to vector<3x16xf32>
    %4 = vector.extract_strided_slice %1 {offsets = [0, 224], sizes = [3, 16], strides = [1, 1]} : vector<3x256xf32> to vector<3x16xf32>
    %5 = tpu.concatenate %3, %1, %4 in 1 : vector<3x16xf32>, vector<3x256xf32>, vector<3x16xf32> -> vector<3x288xf32>
    %6 = vector.extract_strided_slice %5 {offsets = [0, 1], sizes = [3, 287], strides = [1, 1]} : vector<3x288xf32> to vector<3x287xf32>
    %7 = vector.extract_strided_slice %5 {offsets = [0, 0], sizes = [3, 1], strides = [1, 1]} : vector<3x288xf32> to vector<3x1xf32>
    %8 = tpu.concatenate %6, %7 in 1 : vector<3x287xf32>, vector<3x1xf32> -> vector<3x288xf32>
    %9 = vector.extract_strided_slice %5 {offsets = [0, 287], sizes = [3, 1], strides = [1, 1]} : vector<3x288xf32> to vector<3x1xf32>
    %10 = vector.extract_strided_slice %5 {offsets = [0, 0], sizes = [3, 287], strides = [1, 1]} : vector<3x288xf32> to vector<3x287xf32>
    %11 = tpu.concatenate %9, %10 in 1 : vector<3x1xf32>, vector<3x287xf32> -> vector<3x288xf32>
    %12 = tpu.iota {dimensions = array<i32: 1>} : vector<3x288xi32>
    %c15_i32 = arith.constant 15 : i32
    %13 = vector.broadcast %c15_i32 : i32 to vector<3x288xi32>
    %14 = arith.andi %12, %13 : vector<3x288xi32>
    %c0_i32 = arith.constant 0 : i32
    %15 = vector.broadcast %c0_i32 : i32 to vector<3x288xi32>
    %16 = arith.cmpi eq, %14, %15 : vector<3x288xi32>
    %17 = arith.select %16, %8, %11 : vector<3x288xi1>, vector<3x288xf32>
    %c15_i32_4 = arith.constant 15 : i32
    %18 = vector.broadcast %c15_i32_4 : i32 to vector<3x288xi32>
    %19 = arith.cmpi eq, %14, %18 : vector<3x288xi32>
    %20 = arith.select %19, %11, %8 : vector<3x288xi1>, vector<3x288xf32>
    %21 = vector.extract_strided_slice %17 {offsets = [0, 0], sizes = [3, 256], strides = [1, 1]} : vector<3x288xf32> to vector<3x256xf32>
    %22 = vector.extract_strided_slice %5 {offsets = [0, 0], sizes = [3, 256], strides = [1, 1]} : vector<3x288xf32> to vector<3x256xf32>
    %23 = vector.extract_strided_slice %20 {offsets = [0, 0], sizes = [3, 256], strides = [1, 1]} : vector<3x288xf32> to vector<3x256xf32>
    %24 = vector.extract_strided_slice %17 {offsets = [0, 16], sizes = [3, 256], strides = [1, 1]} : vector<3x288xf32> to vector<3x256xf32>
    %25 = vector.extract_strided_slice %5 {offsets = [0, 16], sizes = [3, 256], strides = [1, 1]} : vector<3x288xf32> to vector<3x256xf32>
    %26 = vector.extract_strided_slice %20 {offsets = [0, 16], sizes = [3, 256], strides = [1, 1]} : vector<3x288xf32> to vector<3x256xf32>
    %27 = vector.extract_strided_slice %17 {offsets = [0, 32], sizes = [3, 256], strides = [1, 1]} : vector<3x288xf32> to vector<3x256xf32>
    %28 = vector.extract_strided_slice %5 {offsets = [0, 32], sizes = [3, 256], strides = [1, 1]} : vector<3x288xf32> to vector<3x256xf32>
    %29 = vector.extract_strided_slice %20 {offsets = [0, 32], sizes = [3, 256], strides = [1, 1]} : vector<3x288xf32> to vector<3x256xf32>
    %30 = tpu.concatenate %21, %22, %23, %24, %25, %26, %27, %28, %29 in 0 : vector<3x256xf32>, vector<3x256xf32>, vector<3x256xf32>, vector<3x256xf32>, vector<3x256xf32>, vector<3x256xf32>, vector<3x256xf32>, vector<3x256xf32>, vector<3x256xf32> -> vector<27x256xf32>
    %31 = arith.truncf %30 : vector<27x256xf32> to vector<27x256xbf16>
    %cst = arith.constant dense<0.000000e+00> : vector<64x256xf32>
    %32 = tpu.matmul %2, %31, %cst {dimension_numbers = #tpu.dot_dimension_numbers<[1], [0], [0], [1], [0, 0, 1, 1], [], []>} : vector<64x27xbf16>, vector<27x256xbf16>, vector<64x256xf32> -> vector<64x256xf32>
    %cst_5 = arith.constant dense<0.000000e+00> : vector<64xf32>
    %33 = vector.multi_reduction <add>, %32, %cst_5 [1] : vector<64x256xf32> to vector<64xf32>
    %34 = vector.shape_cast %33 : vector<64xf32> to vector<64x1xf32>
    %cst_6 = arith.constant 3.906250e-03 : f32
    %35 = vector.broadcast %cst_6 : f32 to vector<64x1xf32>
    %36 = arith.mulf %34, %35 : vector<64x1xf32>
    %37 = arith.mulf %32, %32 : vector<64x256xf32>
    %cst_7 = arith.constant dense<0.000000e+00> : vector<64xf32>
    %38 = vector.multi_reduction <add>, %37, %cst_7 [1] : vector<64x256xf32> to vector<64xf32>
    %39 = vector.shape_cast %38 : vector<64xf32> to vector<64x1xf32>
    %cst_8 = arith.constant 3.906250e-03 : f32
    %40 = vector.broadcast %cst_8 : f32 to vector<64x1xf32>
    %41 = arith.mulf %39, %40 : vector<64x1xf32>
    %42 = arith.mulf %36, %36 : vector<64x1xf32>
    %43 = arith.subf %41, %42 : vector<64x1xf32>
    %44 = vector.broadcast %36 : vector<64x1xf32> to vector<64x256xf32>
    %45 = arith.subf %32, %44 : vector<64x256xf32>
    %cst_9 = arith.constant 9.99999974E-6 : f32
    %46 = vector.broadcast %cst_9 : f32 to vector<64x1xf32>
    %47 = arith.addf %43, %46 : vector<64x1xf32>
    %48 = math.rsqrt %47 : vector<64x1xf32>
    %49 = vector.broadcast %48 : vector<64x1xf32> to vector<64x256xf32>
    %50 = arith.mulf %45, %49 : vector<64x256xf32>
    %cst_10 = arith.constant 0.000000e+00 : f32
    %51 = vector.broadcast %cst_10 : f32 to vector<64x256xf32>
    %52 = arith.maximumf %50, %51 : vector<64x256xf32>
    %c0_11 = arith.constant 0 : index
    %c0_12 = arith.constant 0 : index
    %53 = vector.load %arg3[%c0_11, %c0_12] : memref<64x576xbf16, #tpu.memory_space<vmem>>, vector<64x576xbf16>
    %54 = vector.extract_strided_slice %52 {offsets = [0, 16], sizes = [64, 16], strides = [1, 1]} : vector<64x256xf32> to vector<64x16xf32>
    %55 = vector.extract_strided_slice %52 {offsets = [0, 224], sizes = [64, 16], strides = [1, 1]} : vector<64x256xf32> to vector<64x16xf32>
    %56 = tpu.concatenate %54, %52, %55 in 1 : vector<64x16xf32>, vector<64x256xf32>, vector<64x16xf32> -> vector<64x288xf32>
    %57 = vector.extract_strided_slice %56 {offsets = [0, 1], sizes = [64, 287], strides = [1, 1]} : vector<64x288xf32> to vector<64x287xf32>
    %58 = vector.extract_strided_slice %56 {offsets = [0, 0], sizes = [64, 1], strides = [1, 1]} : vector<64x288xf32> to vector<64x1xf32>
    %59 = tpu.concatenate %57, %58 in 1 : vector<64x287xf32>, vector<64x1xf32> -> vector<64x288xf32>
    %60 = vector.extract_strided_slice %56 {offsets = [0, 287], sizes = [64, 1], strides = [1, 1]} : vector<64x288xf32> to vector<64x1xf32>
    %61 = vector.extract_strided_slice %56 {offsets = [0, 0], sizes = [64, 287], strides = [1, 1]} : vector<64x288xf32> to vector<64x287xf32>
    %62 = tpu.concatenate %60, %61 in 1 : vector<64x1xf32>, vector<64x287xf32> -> vector<64x288xf32>
    %63 = tpu.iota {dimensions = array<i32: 1>} : vector<64x288xi32>
    %c15_i32_13 = arith.constant 15 : i32
    %64 = vector.broadcast %c15_i32_13 : i32 to vector<64x288xi32>
    %65 = arith.andi %63, %64 : vector<64x288xi32>
    %c0_i32_14 = arith.constant 0 : i32
    %66 = vector.broadcast %c0_i32_14 : i32 to vector<64x288xi32>
    %67 = arith.cmpi eq, %65, %66 : vector<64x288xi32>
    %68 = arith.select %67, %59, %62 : vector<64x288xi1>, vector<64x288xf32>
    %c15_i32_15 = arith.constant 15 : i32
    %69 = vector.broadcast %c15_i32_15 : i32 to vector<64x288xi32>
    %70 = arith.cmpi eq, %65, %69 : vector<64x288xi32>
    %71 = arith.select %70, %62, %59 : vector<64x288xi1>, vector<64x288xf32>
    %72 = vector.extract_strided_slice %68 {offsets = [0, 0], sizes = [64, 256], strides = [1, 1]} : vector<64x288xf32> to vector<64x256xf32>
    %73 = vector.extract_strided_slice %56 {offsets = [0, 0], sizes = [64, 256], strides = [1, 1]} : vector<64x288xf32> to vector<64x256xf32>
    %74 = vector.extract_strided_slice %71 {offsets = [0, 0], sizes = [64, 256], strides = [1, 1]} : vector<64x288xf32> to vector<64x256xf32>
    %75 = vector.extract_strided_slice %68 {offsets = [0, 16], sizes = [64, 256], strides = [1, 1]} : vector<64x288xf32> to vector<64x256xf32>
    %76 = vector.extract_strided_slice %56 {offsets = [0, 16], sizes = [64, 256], strides = [1, 1]} : vector<64x288xf32> to vector<64x256xf32>
    %77 = vector.extract_strided_slice %71 {offsets = [0, 16], sizes = [64, 256], strides = [1, 1]} : vector<64x288xf32> to vector<64x256xf32>
    %78 = vector.extract_strided_slice %68 {offsets = [0, 32], sizes = [64, 256], strides = [1, 1]} : vector<64x288xf32> to vector<64x256xf32>
    %79 = vector.extract_strided_slice %56 {offsets = [0, 32], sizes = [64, 256], strides = [1, 1]} : vector<64x288xf32> to vector<64x256xf32>
    %80 = vector.extract_strided_slice %71 {offsets = [0, 32], sizes = [64, 256], strides = [1, 1]} : vector<64x288xf32> to vector<64x256xf32>
    %81 = tpu.concatenate %72, %73, %74, %75, %76, %77, %78, %79, %80 in 0 : vector<64x256xf32>, vector<64x256xf32>, vector<64x256xf32>, vector<64x256xf32>, vector<64x256xf32>, vector<64x256xf32>, vector<64x256xf32>, vector<64x256xf32>, vector<64x256xf32> -> vector<576x256xf32>
    %82 = arith.truncf %81 : vector<576x256xf32> to vector<576x256xbf16>
    %cst_16 = arith.constant dense<0.000000e+00> : vector<64x256xf32>
    %83 = tpu.matmul %53, %82, %cst_16 {dimension_numbers = #tpu.dot_dimension_numbers<[1], [0], [0], [1], [0, 0, 1, 1], [], []>} : vector<64x576xbf16>, vector<576x256xbf16>, vector<64x256xf32> -> vector<64x256xf32>
    %cst_17 = arith.constant dense<0.000000e+00> : vector<64xf32>
    %84 = vector.multi_reduction <add>, %83, %cst_17 [1] : vector<64x256xf32> to vector<64xf32>
    %85 = vector.shape_cast %84 : vector<64xf32> to vector<64x1xf32>
    %cst_18 = arith.constant 3.906250e-03 : f32
    %86 = vector.broadcast %cst_18 : f32 to vector<64x1xf32>
    %87 = arith.mulf %85, %86 : vector<64x1xf32>
    %88 = arith.mulf %83, %83 : vector<64x256xf32>
    %cst_19 = arith.constant dense<0.000000e+00> : vector<64xf32>
    %89 = vector.multi_reduction <add>, %88, %cst_19 [1] : vector<64x256xf32> to vector<64xf32>
    %90 = vector.shape_cast %89 : vector<64xf32> to vector<64x1xf32>
    %cst_20 = arith.constant 3.906250e-03 : f32
    %91 = vector.broadcast %cst_20 : f32 to vector<64x1xf32>
    %92 = arith.mulf %90, %91 : vector<64x1xf32>
    %93 = arith.mulf %87, %87 : vector<64x1xf32>
    %94 = arith.subf %92, %93 : vector<64x1xf32>
    %95 = vector.broadcast %87 : vector<64x1xf32> to vector<64x256xf32>
    %96 = arith.subf %83, %95 : vector<64x256xf32>
    %cst_21 = arith.constant 9.99999974E-6 : f32
    %97 = vector.broadcast %cst_21 : f32 to vector<64x1xf32>
    %98 = arith.addf %94, %97 : vector<64x1xf32>
    %99 = math.rsqrt %98 : vector<64x1xf32>
    %100 = vector.broadcast %99 : vector<64x1xf32> to vector<64x256xf32>
    %101 = arith.mulf %96, %100 : vector<64x256xf32>
    %cst_22 = arith.constant 0.000000e+00 : f32
    %102 = vector.broadcast %cst_22 : f32 to vector<64x256xf32>
    %103 = arith.maximumf %101, %102 : vector<64x256xf32>
    %c0_23 = arith.constant 0 : index
    %c0_24 = arith.constant 0 : index
    %104 = vector.load %arg4[%c0_23, %c0_24] : memref<64x576xbf16, #tpu.memory_space<vmem>>, vector<64x576xbf16>
    %105 = vector.extract_strided_slice %103 {offsets = [0, 16], sizes = [64, 16], strides = [1, 1]} : vector<64x256xf32> to vector<64x16xf32>
    %106 = vector.extract_strided_slice %103 {offsets = [0, 224], sizes = [64, 16], strides = [1, 1]} : vector<64x256xf32> to vector<64x16xf32>
    %107 = tpu.concatenate %105, %103, %106 in 1 : vector<64x16xf32>, vector<64x256xf32>, vector<64x16xf32> -> vector<64x288xf32>
    %108 = vector.extract_strided_slice %107 {offsets = [0, 1], sizes = [64, 287], strides = [1, 1]} : vector<64x288xf32> to vector<64x287xf32>
    %109 = vector.extract_strided_slice %107 {offsets = [0, 0], sizes = [64, 1], strides = [1, 1]} : vector<64x288xf32> to vector<64x1xf32>
    %110 = tpu.concatenate %108, %109 in 1 : vector<64x287xf32>, vector<64x1xf32> -> vector<64x288xf32>
    %111 = vector.extract_strided_slice %107 {offsets = [0, 287], sizes = [64, 1], strides = [1, 1]} : vector<64x288xf32> to vector<64x1xf32>
    %112 = vector.extract_strided_slice %107 {offsets = [0, 0], sizes = [64, 287], strides = [1, 1]} : vector<64x288xf32> to vector<64x287xf32>
    %113 = tpu.concatenate %111, %112 in 1 : vector<64x1xf32>, vector<64x287xf32> -> vector<64x288xf32>
    %114 = tpu.iota {dimensions = array<i32: 1>} : vector<64x288xi32>
    %c15_i32_25 = arith.constant 15 : i32
    %115 = vector.broadcast %c15_i32_25 : i32 to vector<64x288xi32>
    %116 = arith.andi %114, %115 : vector<64x288xi32>
    %c0_i32_26 = arith.constant 0 : i32
    %117 = vector.broadcast %c0_i32_26 : i32 to vector<64x288xi32>
    %118 = arith.cmpi eq, %116, %117 : vector<64x288xi32>
    %119 = arith.select %118, %110, %113 : vector<64x288xi1>, vector<64x288xf32>
    %c15_i32_27 = arith.constant 15 : i32
    %120 = vector.broadcast %c15_i32_27 : i32 to vector<64x288xi32>
    %121 = arith.cmpi eq, %116, %120 : vector<64x288xi32>
    %122 = arith.select %121, %113, %110 : vector<64x288xi1>, vector<64x288xf32>
    %123 = vector.extract_strided_slice %119 {offsets = [0, 0], sizes = [64, 256], strides = [1, 1]} : vector<64x288xf32> to vector<64x256xf32>
    %124 = vector.extract_strided_slice %107 {offsets = [0, 0], sizes = [64, 256], strides = [1, 1]} : vector<64x288xf32> to vector<64x256xf32>
    %125 = vector.extract_strided_slice %122 {offsets = [0, 0], sizes = [64, 256], strides = [1, 1]} : vector<64x288xf32> to vector<64x256xf32>
    %126 = vector.extract_strided_slice %119 {offsets = [0, 16], sizes = [64, 256], strides = [1, 1]} : vector<64x288xf32> to vector<64x256xf32>
    %127 = vector.extract_strided_slice %107 {offsets = [0, 16], sizes = [64, 256], strides = [1, 1]} : vector<64x288xf32> to vector<64x256xf32>
    %128 = vector.extract_strided_slice %122 {offsets = [0, 16], sizes = [64, 256], strides = [1, 1]} : vector<64x288xf32> to vector<64x256xf32>
    %129 = vector.extract_strided_slice %119 {offsets = [0, 32], sizes = [64, 256], strides = [1, 1]} : vector<64x288xf32> to vector<64x256xf32>
    %130 = vector.extract_strided_slice %107 {offsets = [0, 32], sizes = [64, 256], strides = [1, 1]} : vector<64x288xf32> to vector<64x256xf32>
    %131 = vector.extract_strided_slice %122 {offsets = [0, 32], sizes = [64, 256], strides = [1, 1]} : vector<64x288xf32> to vector<64x256xf32>
    %132 = tpu.concatenate %123, %124, %125, %126, %127, %128, %129, %130, %131 in 0 : vector<64x256xf32>, vector<64x256xf32>, vector<64x256xf32>, vector<64x256xf32>, vector<64x256xf32>, vector<64x256xf32>, vector<64x256xf32>, vector<64x256xf32>, vector<64x256xf32> -> vector<576x256xf32>
    %133 = arith.truncf %132 : vector<576x256xf32> to vector<576x256xbf16>
    %cst_28 = arith.constant dense<0.000000e+00> : vector<64x256xf32>
    %134 = tpu.matmul %104, %133, %cst_28 {dimension_numbers = #tpu.dot_dimension_numbers<[1], [0], [0], [1], [0, 0, 1, 1], [], []>} : vector<64x576xbf16>, vector<576x256xbf16>, vector<64x256xf32> -> vector<64x256xf32>
    %cst_29 = arith.constant dense<0.000000e+00> : vector<64xf32>
    %135 = vector.multi_reduction <add>, %134, %cst_29 [1] : vector<64x256xf32> to vector<64xf32>
    %136 = vector.shape_cast %135 : vector<64xf32> to vector<64x1xf32>
    %cst_30 = arith.constant 3.906250e-03 : f32
    %137 = vector.broadcast %cst_30 : f32 to vector<64x1xf32>
    %138 = arith.mulf %136, %137 : vector<64x1xf32>
    %139 = arith.mulf %134, %134 : vector<64x256xf32>
    %cst_31 = arith.constant dense<0.000000e+00> : vector<64xf32>
    %140 = vector.multi_reduction <add>, %139, %cst_31 [1] : vector<64x256xf32> to vector<64xf32>
    %141 = vector.shape_cast %140 : vector<64xf32> to vector<64x1xf32>
    %cst_32 = arith.constant 3.906250e-03 : f32
    %142 = vector.broadcast %cst_32 : f32 to vector<64x1xf32>
    %143 = arith.mulf %141, %142 : vector<64x1xf32>
    %144 = arith.mulf %138, %138 : vector<64x1xf32>
    %145 = arith.subf %143, %144 : vector<64x1xf32>
    %146 = vector.broadcast %138 : vector<64x1xf32> to vector<64x256xf32>
    %147 = arith.subf %134, %146 : vector<64x256xf32>
    %cst_33 = arith.constant 9.99999974E-6 : f32
    %148 = vector.broadcast %cst_33 : f32 to vector<64x1xf32>
    %149 = arith.addf %145, %148 : vector<64x1xf32>
    %150 = math.rsqrt %149 : vector<64x1xf32>
    %151 = vector.broadcast %150 : vector<64x1xf32> to vector<64x256xf32>
    %152 = arith.mulf %147, %151 : vector<64x256xf32>
    %cst_34 = arith.constant 0.000000e+00 : f32
    %153 = vector.broadcast %cst_34 : f32 to vector<64x256xf32>
    %154 = arith.maximumf %152, %153 : vector<64x256xf32>
    %c0_35 = arith.constant 0 : index
    %c0_36 = arith.constant 0 : index
    %155 = vector.load %arg5[%c0_35, %c0_36] : memref<64x576xbf16, #tpu.memory_space<vmem>>, vector<64x576xbf16>
    %156 = vector.extract_strided_slice %154 {offsets = [0, 16], sizes = [64, 16], strides = [1, 1]} : vector<64x256xf32> to vector<64x16xf32>
    %157 = vector.extract_strided_slice %154 {offsets = [0, 224], sizes = [64, 16], strides = [1, 1]} : vector<64x256xf32> to vector<64x16xf32>
    %158 = tpu.concatenate %156, %154, %157 in 1 : vector<64x16xf32>, vector<64x256xf32>, vector<64x16xf32> -> vector<64x288xf32>
    %159 = vector.extract_strided_slice %158 {offsets = [0, 1], sizes = [64, 287], strides = [1, 1]} : vector<64x288xf32> to vector<64x287xf32>
    %160 = vector.extract_strided_slice %158 {offsets = [0, 0], sizes = [64, 1], strides = [1, 1]} : vector<64x288xf32> to vector<64x1xf32>
    %161 = tpu.concatenate %159, %160 in 1 : vector<64x287xf32>, vector<64x1xf32> -> vector<64x288xf32>
    %162 = vector.extract_strided_slice %158 {offsets = [0, 287], sizes = [64, 1], strides = [1, 1]} : vector<64x288xf32> to vector<64x1xf32>
    %163 = vector.extract_strided_slice %158 {offsets = [0, 0], sizes = [64, 287], strides = [1, 1]} : vector<64x288xf32> to vector<64x287xf32>
    %164 = tpu.concatenate %162, %163 in 1 : vector<64x1xf32>, vector<64x287xf32> -> vector<64x288xf32>
    %165 = tpu.iota {dimensions = array<i32: 1>} : vector<64x288xi32>
    %c15_i32_37 = arith.constant 15 : i32
    %166 = vector.broadcast %c15_i32_37 : i32 to vector<64x288xi32>
    %167 = arith.andi %165, %166 : vector<64x288xi32>
    %c0_i32_38 = arith.constant 0 : i32
    %168 = vector.broadcast %c0_i32_38 : i32 to vector<64x288xi32>
    %169 = arith.cmpi eq, %167, %168 : vector<64x288xi32>
    %170 = arith.select %169, %161, %164 : vector<64x288xi1>, vector<64x288xf32>
    %c15_i32_39 = arith.constant 15 : i32
    %171 = vector.broadcast %c15_i32_39 : i32 to vector<64x288xi32>
    %172 = arith.cmpi eq, %167, %171 : vector<64x288xi32>
    %173 = arith.select %172, %164, %161 : vector<64x288xi1>, vector<64x288xf32>
    %174 = vector.extract_strided_slice %170 {offsets = [0, 0], sizes = [64, 256], strides = [1, 1]} : vector<64x288xf32> to vector<64x256xf32>
    %175 = vector.extract_strided_slice %158 {offsets = [0, 0], sizes = [64, 256], strides = [1, 1]} : vector<64x288xf32> to vector<64x256xf32>
    %176 = vector.extract_strided_slice %173 {offsets = [0, 0], sizes = [64, 256], strides = [1, 1]} : vector<64x288xf32> to vector<64x256xf32>
    %177 = vector.extract_strided_slice %170 {offsets = [0, 16], sizes = [64, 256], strides = [1, 1]} : vector<64x288xf32> to vector<64x256xf32>
    %178 = vector.extract_strided_slice %158 {offsets = [0, 16], sizes = [64, 256], strides = [1, 1]} : vector<64x288xf32> to vector<64x256xf32>
    %179 = vector.extract_strided_slice %173 {offsets = [0, 16], sizes = [64, 256], strides = [1, 1]} : vector<64x288xf32> to vector<64x256xf32>
    %180 = vector.extract_strided_slice %170 {offsets = [0, 32], sizes = [64, 256], strides = [1, 1]} : vector<64x288xf32> to vector<64x256xf32>
    %181 = vector.extract_strided_slice %158 {offsets = [0, 32], sizes = [64, 256], strides = [1, 1]} : vector<64x288xf32> to vector<64x256xf32>
    %182 = vector.extract_strided_slice %173 {offsets = [0, 32], sizes = [64, 256], strides = [1, 1]} : vector<64x288xf32> to vector<64x256xf32>
    %183 = tpu.concatenate %174, %175, %176, %177, %178, %179, %180, %181, %182 in 0 : vector<64x256xf32>, vector<64x256xf32>, vector<64x256xf32>, vector<64x256xf32>, vector<64x256xf32>, vector<64x256xf32>, vector<64x256xf32>, vector<64x256xf32>, vector<64x256xf32> -> vector<576x256xf32>
    %184 = arith.truncf %183 : vector<576x256xf32> to vector<576x256xbf16>
    %cst_40 = arith.constant dense<0.000000e+00> : vector<64x256xf32>
    %185 = tpu.matmul %155, %184, %cst_40 {dimension_numbers = #tpu.dot_dimension_numbers<[1], [0], [0], [1], [0, 0, 1, 1], [], []>} : vector<64x576xbf16>, vector<576x256xbf16>, vector<64x256xf32> -> vector<64x256xf32>
    %cst_41 = arith.constant dense<0.000000e+00> : vector<64xf32>
    %186 = vector.multi_reduction <add>, %185, %cst_41 [1] : vector<64x256xf32> to vector<64xf32>
    %187 = vector.shape_cast %186 : vector<64xf32> to vector<64x1xf32>
    %cst_42 = arith.constant 3.906250e-03 : f32
    %188 = vector.broadcast %cst_42 : f32 to vector<64x1xf32>
    %189 = arith.mulf %187, %188 : vector<64x1xf32>
    %190 = arith.mulf %185, %185 : vector<64x256xf32>
    %cst_43 = arith.constant dense<0.000000e+00> : vector<64xf32>
    %191 = vector.multi_reduction <add>, %190, %cst_43 [1] : vector<64x256xf32> to vector<64xf32>
    %192 = vector.shape_cast %191 : vector<64xf32> to vector<64x1xf32>
    %cst_44 = arith.constant 3.906250e-03 : f32
    %193 = vector.broadcast %cst_44 : f32 to vector<64x1xf32>
    %194 = arith.mulf %192, %193 : vector<64x1xf32>
    %195 = arith.mulf %189, %189 : vector<64x1xf32>
    %196 = arith.subf %194, %195 : vector<64x1xf32>
    %197 = vector.broadcast %189 : vector<64x1xf32> to vector<64x256xf32>
    %198 = arith.subf %185, %197 : vector<64x256xf32>
    %cst_45 = arith.constant 9.99999974E-6 : f32
    %199 = vector.broadcast %cst_45 : f32 to vector<64x1xf32>
    %200 = arith.addf %196, %199 : vector<64x1xf32>
    %201 = math.rsqrt %200 : vector<64x1xf32>
    %202 = vector.broadcast %201 : vector<64x1xf32> to vector<64x256xf32>
    %203 = arith.mulf %198, %202 : vector<64x256xf32>
    %cst_46 = arith.constant 0.000000e+00 : f32
    %204 = vector.broadcast %cst_46 : f32 to vector<64x256xf32>
    %205 = arith.maximumf %203, %204 : vector<64x256xf32>
    %c0_47 = arith.constant 0 : index
    %c0_48 = arith.constant 0 : index
    %206 = vector.load %arg6[%c0_47, %c0_48] : memref<3x64xbf16, #tpu.memory_space<vmem>>, vector<3x64xbf16>
    %207 = arith.truncf %205 : vector<64x256xf32> to vector<64x256xbf16>
    %cst_49 = arith.constant dense<0.000000e+00> : vector<3x256xf32>
    %208 = tpu.matmul %206, %207, %cst_49 {dimension_numbers = #tpu.dot_dimension_numbers<[1], [0], [0], [1], [0, 0, 1, 1], [], []>} : vector<3x64xbf16>, vector<64x256xbf16>, vector<3x256xf32> -> vector<3x256xf32>
    %c0_50 = arith.constant 0 : index
    %c0_51 = arith.constant 0 : index
    %209 = vector.load %arg7[%c0_50, %c0_51] : memref<3x1xf32, #tpu.memory_space<vmem>>, vector<3x1xf32>
    %210 = vector.broadcast %209 : vector<3x1xf32> to vector<3x256xf32>
    %211 = arith.addf %208, %210 : vector<3x256xf32>
    %cst_52 = arith.constant 0.000000e+00 : f32
    %212 = vector.broadcast %cst_52 : f32 to vector<3x256xf32>
    %213 = arith.subf %212, %211 : vector<3x256xf32>
    %214 = math.exp %213 : vector<3x256xf32>
    %cst_53 = arith.constant 1.000000e+00 : f32
    %215 = vector.broadcast %cst_53 : f32 to vector<3x256xf32>
    %216 = arith.addf %215, %214 : vector<3x256xf32>
    %cst_54 = arith.constant 1.000000e+00 : f32
    %217 = vector.broadcast %cst_54 : f32 to vector<3x256xf32>
    %218 = arith.divf %217, %216 : vector<3x256xf32>
    %c0_55 = arith.constant 0 : index
    %c0_56 = arith.constant 0 : index
    %c0_57 = arith.constant 0 : index
    %219 = vector.load %arg8[%c0_55, %c0_56, %c0_57] : memref<1x3x256xf32, #tpu.memory_space<vmem>>, vector<1x3x256xf32>
    %220 = vector.shape_cast %219 : vector<1x3x256xf32> to vector<3x256xf32>
    %221 = vector.shape_cast %218 : vector<3x256xf32> to vector<1x3x256xf32>
    tpu.vector_store %arg8[%c0_55, %c0_56, %c0_57], %221 {strides = array<i32>} : memref<1x3x256xf32, #tpu.memory_space<vmem>>, vector<1x3x256xf32>,
    return
  }
  func.func @transform_0(%arg0: i32) -> (i32, i32, i32) {
    %c0_i32 = arith.constant 0 : i32
    %c0_i32_0 = arith.constant 0 : i32
    %c0_i32_1 = arith.constant 0 : i32
    return %arg0, %c0_i32, %c0_i32_0 : i32, i32, i32
  }
  func.func @transform_1(%arg0: i32) -> (i32, i32) {
    %c0_i32 = arith.constant 0 : i32
    %c0_i32_0 = arith.constant 0 : i32
    %c0_i32_1 = arith.constant 0 : i32
    return %c0_i32, %c0_i32_0 : i32, i32
  }
  func.func @transform_2(%arg0: i32) -> (i32, i32) {
    %c0_i32 = arith.constant 0 : i32
    %c0_i32_0 = arith.constant 0 : i32
    %c0_i32_1 = arith.constant 0 : i32
    return %c0_i32, %c0_i32_0 : i32, i32
  }
  func.func @transform_3(%arg0: i32) -> (i32, i32) {
    %c0_i32 = arith.constant 0 : i32
    %c0_i32_0 = arith.constant 0 : i32
    %c0_i32_1 = arith.constant 0 : i32
    return %c0_i32, %c0_i32_0 : i32, i32
  }
  func.func @transform_4(%arg0: i32) -> (i32, i32) {
    %c0_i32 = arith.constant 0 : i32
    %c0_i32_0 = arith.constant 0 : i32
    %c0_i32_1 = arith.constant 0 : i32
    return %c0_i32, %c0_i32_0 : i32, i32
  }
  func.func @transform_5(%arg0: i32) -> (i32, i32) {
    %c0_i32 = arith.constant 0 : i32
    %c0_i32_0 = arith.constant 0 : i32
    %c0_i32_1 = arith.constant 0 : i32
    return %c0_i32, %c0_i32_0 : i32, i32
  }
  func.func @transform_6(%arg0: i32) -> (i32, i32) {
    %c0_i32 = arith.constant 0 : i32
    %c0_i32_0 = arith.constant 0 : i32
    %c0_i32_1 = arith.constant 0 : i32
    return %c0_i32, %c0_i32_0 : i32, i32
  }
  func.func @transform_7(%arg0: i32) -> (i32, i32, i32) {
    %c0_i32 = arith.constant 0 : i32
    %c0_i32_0 = arith.constant 0 : i32
    %c0_i32_1 = arith.constant 0 : i32
    return %arg0, %c0_i32, %c0_i32_0 : i32, i32, i32
  }
}

</mosaic_0001>

<bundles_post_ra>
// kernel: jnet_forward.1
= control target key start
LH: loop header
LB: loop body
LE: loop exit
PB: predicated region body
PF: predicated region fallthrough
CT: control target
= control target key end

     0   :  { %s7855_s24 = smov 0   ;;  %s11350_s0 = inlined_call_operand.vmem [shape: f32[2,3,256], index: 0, kind: input, shape index: {}]   ;;  %s11351_s1 = inlined_call_operand.vmem [shape: bf16[64,27], index: 1, kind: input, shape index: {}]   ;;  %s11352_s2 = inlined_call_operand.vmem [shape: bf16[64,576], index: 2, kind: input, shape index: {}]   ;;  %s11353_s3 = inlined_call_operand.vmem [shape: bf16[64,576], index: 3, kind: input, shape index: {}]   ;;  %s11354_s4 = inlined_call_operand.vmem [shape: bf16[64,576], index: 4, kind: input, shape index: {}]   ;;  %s11355_s5 = inlined_call_operand.vmem [shape: bf16[3,64], index: 5, kind: input, shape index: {}]   ;;  %s11356_s6 = inlined_call_operand.vmem [shape: f32[3,1], index: 6, kind: input, shape index: {}]   ;;  %s11357_s7 = inlined_call_operand.vmem [shape: f32[2,3,256], index: 7, kind: output, shape index: {}]  }
   0x1 LB: > { %s5572_s25 = sadd.s32 4294967295, %s7803_s24   ;;  %p5576_p0 = scmp.ge.s32.totalorder %s7803_s24, 1  ;;  %s7803_s24 = sphi %s7855_s24, %s17_s24  }
   0x2   : > { %p237_p1 = scmp.lt.s32.totalorder %s7803_s24, 3 }
   0x4   : > { %p238_p2 = pnand %p5576_p0, %p237_p1 }
   0x6   : > { %241 = sbr.rel (%p238_p2) target bundleno = 3797 (0xed5), region = 48 }
   0xd   : > { %p269_p3 = scmp.lt.s32.totalorder %s5572_s25, 1  ;;  %s7805_s30 = smov 112   ;;  %vm11390_vm0 = vcmask 130048   ;;  %v342_v19 = vlaneseq  ;;  %vm315_vm1 = vcmask 1039360   ;;  %vm11358_vm2 = vcmask 252928  }
   0xe   : > { %s7806_s8 = smov 48   ;;  %s7807_s9 = smov 16   ;;  %vm11359_vm3 = vcmask 7168   ;;  %v11455_v38 = vmov 0  ;;  %v11458_v43 = vmov 0  ;;  %v11461_v47 = vmov 0 }
   0xf   : > { %s11759_s25 = smov (!%p269_p3, %s5572_s25), 1  ;;  %s7808_s10 = smov 31   ;;  %v343_v20 = vand.u32 127, %v342_v19  ;;  %vm452_vm10 = vcmask 1042432   ;;  %vm455_vm11 = vcmask 1045504   ;;  %vm383_vm12 = vcmask 916480  }
  0x10   : > { %s5664_s26 = sshll.u32 %s11759_s25, 3  ;;  %s7809_s11 = smov 127   ;;  %vm458_vm13 = vcmask 1040384   ;;  %vm461_vm14 = vcmask 1043456   ;;  %vm464_vm15 = vcmask 1046528  }
  0x11   : > { %s273_s29 = scalar_lea.vmem %s11350_s0, %s5664_s26  ;;  %s7810_s12 = smov 1   ;;  %v344_v21 = vadd.s32 128, %v343_v20  ;;  %v345_v22 = vadd.s32 256, %v343_v20  ;;  %v346_v28 = vand.u32 15, %v343_v20 }
  0x12   : > { %v280_v0 = vld [vmem:[%s273_s29] sm:$0x77]  ;;  %s7811_s13 = smov 97   ;;  %s7812_s14 = smov 96  }
  0x13   : > { %290 = vrot.lane.b32.xlu0 %v280_v0, %s7805_s30  ;;  %v293_v1 = vcombine.high %v280_v0, %v280_v0  ;;  %v347_v25 = vand.u32 15, %v344_v21  ;;  %v348_v26 = vand.u32 15, %v345_v22  ;;  %vm7904_vm6 = vcmp.eq.s32.totalorder %v346_v28, 0 }
  0x14   : > { %vm7916_vm8 = vcmp.eq.s32.totalorder %v346_v28, 15 }
  0x15   : > { %v5780_v2 = vpack.i.bf16 %v293_v1, %v280_v0  ;;  %302 = vrot.lane.b32.xlu1 %v293_v1, %s7806_s8  ;;  %vm7896_vm4 = vcmp.eq.s32.totalorder %v347_v25, 0  ;;  %vm7900_vm5 = vcmp.eq.s32.totalorder %v348_v26, 0  ;;  %vm7908_vm7 = vcmp.eq.s32.totalorder %v347_v25, 15 }
  0x16   : > { %v11456_v38 = vsel %vm7908_vm7, 4294967295, %v11455_v38  ;;  %v11459_v43 = vsel %vm7916_vm8, 4294967295, %v11458_v43  ;;  %vm7924_vm9 = vcmp.eq.s32.totalorder %v348_v26, 15 }
  0x17   : > { %5781 = vrot.lane.b32.xlu0 %v5780_v2, %s7807_s9  ;;  %11457 = vst [vmem:[#allocation2_spill] sm:$0xff] %v11456_v38  ;;  %11460 = vst [vmem:[#allocation3_spill] sm:$0xff] %v11459_v43  ;;  %v11462_v47 = vsel %vm7924_vm9, 4294967295, %v11461_v47 }
  0x18   : > { %11463 = vst [vmem:[#allocation4_spill] sm:$0xff] %v11462_v47 }
  0x85   : > { %v291_v3 = vpop.permute.xlu0 %290 }
  0x87   : > { %v303_v5 = vpop.permute.xlu1 %302 }
  0x89   : > { %v5782_v4 = vpop.permute.xlu0 %5781 }
  0x8a   : > { %v5784_v6 = vunpack.i.h.bf16 %v5782_v4  ;;  %v5783_v7 = vunpack.i.l.bf16 %v5782_v4 }
  0x8c   : > { %v7875_v8 = vsel %vm11390_vm0, %v5783_v7, %v5784_v6  ;;  %v7878_v9 = vsel %vm11390_vm0, %v291_v3, %v5783_v7  ;;  %v306_v10 = vsel %vm11390_vm0, %v5784_v6, %v303_v5 }
  0x8d   : > { %321 = vrot.lane.b32.xlu0 %v7878_v9, %s7808_s10  ;;  %v5785_v11 = vpack.i.bf16 %v306_v10, %v7875_v8  ;;  %v5790_v12 = vpack.i.bf16 %v7875_v8, %v7878_v9  ;;  %v429_v13 = vrot.slane %v7878_v9, 3  ;;  %v431_v14 = vrot.slane %v306_v10, 3 }
  0x8e   : > { %v388_v15 = vrot.slane %v7878_v9, 4  ;;  %v390_v16 = vrot.slane %v306_v10, 4  ;;  %v389_v58 = vrot.slane %v7875_v8, 4  ;;  %v362_v60 = vrot.slane %v7875_v8, 5 }
  0x8f   : > { %5786 = vrot.lane.b32.xlu1 %v5785_v11, %s7809_s11  ;;  %v5800_v17 = vpack.i.bf16 %v429_v13, %v431_v14  ;;  %v361_v4 = vrot.slane %v7878_v9, 5  ;;  %v430_v6 = vrot.slane %v7875_v8, 3 }
  0x90   : > { %v5795_v18 = vpack.i.bf16 %v388_v15, %v390_v16  ;;  %v11360_v15 = vmov 0  }
  0x91   : > { %333 = vrot.lane.b32.xlu0 %v306_v10, %s7810_s12  ;;  %550 = vmatprep.mubr.bf16.mxu0 %v11360_v15 }
  0x92   : > { %7635 = vset.pattern.permute.xlu0 %v11360_v15 }
  0x93   : > { %5791 = vrot.lane.b32.xlu1 %v5790_v12, %s7810_s12 }
  0x95   : > { %326 = vrot.lane.b32.xlu0 %v306_v10, %s7811_s13 }
  0x97   : > { %309 = vrot.lane.b32.xlu1 %v7878_v9, %s7809_s11 }
  0x99   : > { %5801 = vrot.lane.b32.xlu0 %v5800_v17, %s7812_s14 }
  0x9b   : > { %5796 = vrot.lane.b32.xlu1 %v5795_v18, %s7805_s30 }
  0xff   : > { %v322_v23 = vpop.permute.xlu0 %321 }
 0x101   : > { %v5787_v24 = vpop.permute.xlu1 %5786 }
 0x102   : > { %v5789_v29 = vunpack.i.h.bf16 %v5787_v24  ;;  %v5788_v30 = vunpack.i.l.bf16 %v5787_v24 }
 0x103   : > { %v334_v27 = vpop.permute.xlu0 %333 }
 0x104   : > { %v325_v39 = vsel %vm11358_vm2, %v5789_v29, %v322_v23  ;;  %v317_v40 = vsel %vm315_vm1, %v5788_v30, %v5789_v29  ;;  %vm470_vm2 = vcmask 1044480  }
 0x105   : > { %v5792_v31 = vpop.permute.xlu1 %5791 }
 0x106   : > { %v5794_v32 = vunpack.i.h.bf16 %v5792_v31  ;;  %v5793_v33 = vunpack.i.l.bf16 %v5792_v31 }
 0x107   : > { %v327_v36 = vpop.permute.xlu0 %326 }
 0x108   : > { %v337_v41 = vsel %vm11359_vm3, %v5794_v32, %v334_v27  ;;  %v336_v42 = vsel %vm11359_vm3, %v5793_v33, %v5794_v32  ;;  %v341_v48 = vsel %vm11359_vm3, %v327_v36, %v5793_v33  ;;  %vm467_vm3 = vcmask 1041408  }
 0x109   : > { %v310_v44 = vpop.permute.xlu1 %309  ;;  %v353_v45 = vsel %vm7896_vm4, %v317_v40, %v336_v42  ;;  %v354_v46 = vsel %vm7900_vm5, %v325_v39, %v337_v41  ;;  %v359_v53 = vsel %vm7908_vm7, %v336_v42, %v317_v40  ;;  %v360_v56 = vsel %vm7924_vm9, %v337_v41, %v325_v39 }
 0x10a   : > { %v316_v49 = vsel %vm315_vm1, %v310_v44, %v5788_v30  ;;  %v375_v50 = vrot.slane %v353_v45, 7  ;;  %v376_v51 = vrot.slane %v354_v46, 7  ;;  %v403_v59 = vrot.slane %v359_v53, 1 }
 0x10b   : > { %v352_v52 = vsel %vm7904_vm6, %v316_v49, %v341_v48  ;;  %v358_v54 = vsel %vm7916_vm8, %v341_v48, %v316_v49  ;;  %v404_v63 = vrot.slane %v360_v56, 1  ;;  %v368_v0 = vrot.slane %v359_v53, 2  ;;  %v5802_v17 = vpop.permute.xlu0 %5801 }
 0x10c   : > { %v5805_v55 = vpack.i.bf16 %v376_v51, %v375_v50  ;;  %v374_v57 = vrot.slane %v352_v52, 7  ;;  %v367_v61 = vrot.slane %v358_v54, 2  ;;  %v402_v1 = vrot.slane %v358_v54, 1 }
 0x10d   : > { %v415_v2 = vrot.slane %v352_v52, 6  ;;  %v454_v3 = vsel %vm452_vm10, %v353_v45, %v362_v60  ;;  %v453_v7 = vsel %vm452_vm10, %v352_v52, %v361_v4  ;;  %v5815_v10 = vpack.i.bf16 %v404_v63, %v403_v59  ;;  %v5797_v16 = vpop.permute.xlu1 %5796 }
 0x10e   : > { %5806 = vrot.lane.b32.xlu1 %v5805_v55, %s7805_s30  ;;  %v5810_v62 = vpack.i.bf16 %v389_v58, %v374_v57  ;;  %v7945_v5 = vsel %vm455_vm11, %v454_v3, %v368_v0  ;;  %v416_v11 = vrot.slane %v353_v45, 6  ;;  %v417_v12 = vrot.slane %v354_v46, 6 }
 0x10f   : > { %v7951_v13 = vsel %vm455_vm11, %v453_v7, %v367_v61  ;;  %v5825_v14 = vpack.i.bf16 %v430_v6, %v415_v2  ;;  %v5830_v8 = vpack.i.bf16 %v360_v56, %v359_v53  ;;  %v5798_v23 = vunpack.i.l.bf16 %v5797_v16 }
 0x110   : > { %5811 = vrot.lane.b32.xlu0 %v5810_v62, %s7805_s30  ;;  %v5820_v9 = vpack.i.bf16 %v417_v12, %v416_v11  ;;  %v5799_v27 = vunpack.i.h.bf16 %v5797_v16  ;;  %v5803_v36 = vunpack.i.l.bf16 %v5802_v17  ;;  %vm424_vm10 = vcmask 785408   ;;  %v7637_v16 = vld [vmem:[%s11351_s1] sm:$0xff]  }
 0x111   : > { %v5804_v58 = vunpack.i.h.bf16 %v5802_v17  ;;  %v7638_v17 = vld [vmem:[%s11351_s1 + $0x8] sm:$0xff]  }
 0x112   : > { %405 = vrot.lane.b32.xlu1 %v402_v1, %s7805_s30 }
 0x114   : > { %5816 = vrot.lane.b32.xlu0 %v5815_v10, %s7805_s30 }
 0x116   : > { %5826 = vrot.lane.b32.xlu1 %v5825_v14, %s7812_s14 }
 0x118   : > { %5821 = vrot.lane.b32.xlu0 %v5820_v9, %s7812_s14 }
 0x11a   : > { %5831 = vrot.lane.b32.xlu1 %v5830_v8, %s7812_s14 }
 0x11c   : > { %442 = vrot.lane.b32.xlu0 %v358_v54, %s7812_s14 }
 0x180   : > { %v5807_v18 = vpop.permute.xlu1 %5806 }
 0x181   : > { %v5809_v19 = vunpack.i.h.bf16 %v5807_v18  ;;  %v5808_v20 = vunpack.i.l.bf16 %v5807_v18  ;;  %v7639_v18 = vld [vmem:[%s11351_s1 + $0x10] sm:$0xff]  }
 0x182   : > { %v5812_v21 = vpop.permute.xlu0 %5811 }
 0x183   : > { %v385_v22 = vsel %vm383_vm12, %v5808_v20, %v5809_v19  ;;  %v5814_v24 = vunpack.i.h.bf16 %v5812_v21  ;;  %v5813_v25 = vunpack.i.l.bf16 %v5812_v21  ;;  %v7640_v19 = vld [vmem:[%s11351_s1 + $0x18] sm:$0xff]  }
 0x184   : > { %v406_v26 = vpop.permute.xlu1 %405  ;;  %v460_v30 = vsel %vm458_vm13, %v368_v0, %v385_v22 }
 0x185   : > { %v384_v28 = vsel %vm383_vm12, %v5813_v25, %v5808_v20  ;;  %v398_v29 = vsel %vm383_vm12, %v5814_v24, %v5798_v23  ;;  %v397_v32 = vsel %vm383_vm12, %v5799_v27, %v5814_v24 }
 0x186   : > { %v5817_v31 = vpop.permute.xlu0 %5816  ;;  %v459_v33 = vsel %vm458_vm13, %v367_v61, %v384_v28  ;;  %v463_v42 = vsel %vm461_vm14, %v460_v30, %v398_v29  ;;  %v7814_v61 = vmov 65535   ;;  %vm11466_vm13 = vcmask 252928  }
 0x187   : > { %v5819_v39 = vunpack.i.h.bf16 %v5817_v31  ;;  %v5818_v40 = vunpack.i.l.bf16 %v5817_v31  ;;  %v462_v48 = vsel %vm461_vm14, %v459_v33, %v397_v32  ;;  %v510_v62 = vsel %vm470_vm2, 4294967295, %v7814_v61  ;;  %vm11467_vm14 = vmmov %vm11466_vm13 }
 0x188   : > { %v5827_v41 = vpop.permute.xlu1 %5826  ;;  %v511_v12 = vsel %vm455_vm11, %v510_v62, 0 }
 0x189   : > { %v411_v44 = vsel %vm383_vm12, %v406_v26, %v5818_v40  ;;  %v5829_v45 = vunpack.i.h.bf16 %v5827_v41  ;;  %v412_v46 = vsel %vm383_vm12, %v5818_v40, %v5819_v39  ;;  %v5828_v49 = vunpack.i.l.bf16 %v5827_v41 }
 0x18a   : > { %v5822_v50 = vpop.permute.xlu0 %5821  ;;  %v466_v51 = vsel %vm464_vm15, %v463_v42, %v412_v46  ;;  %v465_v52 = vsel %vm464_vm15, %v462_v48, %v411_v44 }
 0x18b   : > { %v5824_v53 = vunpack.i.h.bf16 %v5822_v50  ;;  %v5823_v54 = vunpack.i.l.bf16 %v5822_v50  ;;  %v474_v56 = vpack.c.bf16 %v466_v51, %v7945_v5  ;;  %v473_v57 = vpack.c.bf16 %v465_v52, %v7951_v13 }
 0x18c   : > { %v5832_v55 = vpop.permute.xlu1 %5831  ;;  %v439_v63 = vsel %vm424_vm10, %v5829_v45, %v5803_v36  ;;  %v438_v3 = vsel %vm424_vm10, %v5804_v58, %v5829_v45 }
 0x18d   : > { %v5834_v59 = vunpack.i.h.bf16 %v5832_v55  ;;  %v5833_v60 = vunpack.i.l.bf16 %v5832_v55  ;;  %v425_v0 = vsel %vm424_vm10, %v5828_v49, %v5823_v54  ;;  %v426_v1 = vsel %vm424_vm10, %v5823_v54, %v5824_v53  ;;  %518 = vmatprep.subr.bf16.mxu0 %v474_v56 }
 0x18e   : > { %v469_v2 = vsel %vm467_vm3, %v412_v46, %v426_v1  ;;  %v443_v4 = vpop.permute.xlu0 %442  ;;  %v468_v5 = vsel %vm467_vm3, %v411_v44, %v425_v0  ;;  %519 = vmatpush1.bf16.msra.mxu0 %v473_v57  ;;  %vm497_vm3 = vcmask 220160  }
 0x18f   : > { %v449_v6 = vsel %vm424_vm10, %v5833_v60, %v5834_v59  ;;  %v448_v7 = vsel %vm424_vm10, %v443_v4, %v5833_v60  ;;  %v471_v10 = vsel %vm470_vm2, %v468_v5, %v438_v3  ;;  %v472_v11 = vsel %vm470_vm2, %v469_v2, %v439_v63 }
 0x190   : > { %v475_v13 = vpack.c.bf16 %v448_v7, %v471_v10  ;;  %v476_v14 = vpack.c.bf16 %v449_v6, %v472_v11  ;;  %vm11464_vm2 = vcmask 7168  }
 0x191   : > { %vm11465_vm11 = vmmov %vm11464_vm2 }
 0x192   : > { %v516_v9 = vand.u32 %v511_v12, %v476_v14  ;;  %v513_v8 = vand.u32 %v511_v12, %v475_v13  ;;  %vm11468_vm15 = vmmov %vm11464_vm2 }
 0x194   : > { %520 = vmatprep.subr.bf16.mxu0 %v516_v9 }
 0x195   : > { %521 = vmatpush1.bf16.msra.mxu0 %v513_v8 }
 0x198   : > { %5585 = vmatmul.mubr.msk.bf16.vlgmr.msra.gmra.mrb[0].mxu0 %vm497_vm3, %v7637_v16 }
 0x199   : > { %560 = vmatprep.mubr.bf16.mxu0 %v11360_v15 }
 0x1a0   : > { %5586 = vmatmul.mubr.msk.bf16.gmra.mrb[4].mxu0 %vm497_vm3, %v7638_v17 }
 0x1a1   : > { %570 = vmatprep.mubr.bf16.mxu0 %v11360_v15 }
 0x1a8   : > { %5587 = vmatmul.mubr.msk.bf16.gmra.mrb[8].mxu0 %vm497_vm3, %v7639_v18 }
 0x1a9   : > { %580 = vmatprep.mubr.bf16.mxu0 %v11360_v15 }
 0x1b0   : > { %5588 = vmatmul.mubr.msk.bf16.gmra.mrb[12].mxu0 %vm497_vm3, %v7640_v19  ;;  %vm11469_vm3 = vmmov %vm11464_vm2 }
 0x26b   : > { %v7995_v20 = vpop.f32.mrb[0].mxu0 }
 0x26c   : > { %v7997_v21 = vpop.f32.mrb[1].mxu0  ;;  %v623_v22 = vmul.f32 %v7995_v20, %v7995_v20 }
 0x26d   : > { %v8001_v23 = vpop.f32.mrb[2].mxu0  ;;  %v591_v24 = vadd.f32 %v7997_v21, %v7995_v20  ;;  %v624_v25 = vmul.f32 %v7997_v21, %v7997_v21 }
 0x26e   : > { %v8007_v26 = vpop.f32.mrb[3].mxu0  ;;  %v625_v27 = vmul.f32 %v8001_v23, %v8001_v23 }
 0x26f   : > { %592 = vadd.xlane.f32.xlu1 %v591_v24  ;;  %v594_v28 = vadd.f32 %v8007_v26, %v8001_v23  ;;  %v626_v29 = vmul.f32 %v8007_v26, %v8007_v26  ;;  %v639_v30 = vadd.f32 %v624_v25, %v623_v22 }
 0x271   : > { %595 = vadd.xlane.f32.xlu0 %v594_v28  ;;  %v642_v31 = vadd.f32 %v626_v29, %v625_v27 }
 0x273   : > { %643 = vadd.xlane.f32.xlu1 %v642_v31  ;;  %v8015_v32 = vpop.f32.mrb[4].mxu0 }
 0x274   : > { %v8017_v33 = vpop.f32.mrb[5].mxu0  ;;  %v627_v36 = vmul.f32 %v8015_v32, %v8015_v32 }
 0x275   : > { %640 = vadd.xlane.f32.xlu0 %v639_v30  ;;  %v8021_v39 = vpop.f32.mrb[6].mxu0  ;;  %v597_v40 = vadd.f32 %v8017_v33, %v8015_v32  ;;  %v628_v41 = vmul.f32 %v8017_v33, %v8017_v33 }
 0x276   : > { %v8027_v42 = vpop.f32.mrb[7].mxu0  ;;  %v629_v44 = vmul.f32 %v8021_v39, %v8021_v39 }
 0x277   : > { %v600_v45 = vadd.f32 %v8027_v42, %v8021_v39  ;;  %v645_v46 = vadd.f32 %v628_v41, %v627_v36  ;;  %v630_v48 = vmul.f32 %v8027_v42, %v8027_v42 }
 0x279   : > { %598 = vadd.xlane.f32.xlu0 %v597_v40  ;;  %601 = vadd.xlane.f32.xlu1 %v600_v45  ;;  %v648_v49 = vadd.f32 %v630_v48, %v629_v44 }
 0x27b   : > { %v8035_v50 = vpop.f32.mrb[8].mxu0 }
 0x27c   : > { %v8037_v51 = vpop.f32.mrb[9].mxu0  ;;  %v631_v52 = vmul.f32 %v8035_v50, %v8035_v50 }
 0x27d   : > { %646 = vadd.xlane.f32.xlu0 %v645_v46  ;;  %649 = vadd.xlane.f32.xlu1 %v648_v49  ;;  %v8041_v53 = vpop.f32.mrb[10].mxu0  ;;  %v603_v54 = vadd.f32 %v8037_v51, %v8035_v50  ;;  %v632_v55 = vmul.f32 %v8037_v51, %v8037_v51 }
 0x27e   : > { %v8047_v56 = vpop.f32.mrb[11].mxu0  ;;  %v633_v57 = vmul.f32 %v8041_v53, %v8041_v53 }
 0x27f   : > { %v606_v58 = vadd.f32 %v8047_v56, %v8041_v53  ;;  %v651_v59 = vadd.f32 %v632_v55, %v631_v52  ;;  %v634_v60 = vmul.f32 %v8047_v56, %v8047_v56 }
 0x281   : > { %604 = vadd.xlane.f32.xlu0 %v603_v54  ;;  %607 = vadd.xlane.f32.xlu1 %v606_v58  ;;  %v654_v61 = vadd.f32 %v634_v60, %v633_v57 }
 0x283   : > { %v8055_v62 = vpop.f32.mrb[12].mxu0 }
 0x284   : > { %v8057_v63 = vpop.f32.mrb[13].mxu0  ;;  %v635_v0 = vmul.f32 %v8055_v62, %v8055_v62 }
 0x285   : > { %652 = vadd.xlane.f32.xlu0 %v651_v59  ;;  %655 = vadd.xlane.f32.xlu1 %v654_v61  ;;  %v8061_v1 = vpop.f32.mrb[14].mxu0  ;;  %v609_v2 = vadd.f32 %v8057_v63, %v8055_v62  ;;  %v636_v3 = vmul.f32 %v8057_v63, %v8057_v63 }
 0x286   : > { %v8067_v4 = vpop.f32.mrb[15].mxu0  ;;  %v637_v5 = vmul.f32 %v8061_v1, %v8061_v1 }
 0x287   : > { %v612_v6 = vadd.f32 %v8067_v4, %v8061_v1  ;;  %v657_v7 = vadd.f32 %v636_v3, %v635_v0  ;;  %v638_v10 = vmul.f32 %v8067_v4, %v8067_v4 }
 0x289   : > { %610 = vadd.xlane.f32.xlu0 %v609_v2  ;;  %613 = vadd.xlane.f32.xlu1 %v612_v6  ;;  %v660_v11 = vadd.f32 %v638_v10, %v637_v5 }
 0x28d   : > { %658 = vadd.xlane.f32.xlu0 %v657_v7  ;;  %661 = vadd.xlane.f32.xlu1 %v660_v11 }
 0x2fc   : > { %v593_v12 = vpop.xlane.xlu1 %592 }
 0x2fd   : > { %v615_v14 = vmul.f32 0.00390625, %v593_v12 }
 0x2fe   : > { %v596_v13 = vpop.xlane.xlu0 %595 }
 0x2ff   : > { %v616_v9 = vmul.f32 0.00390625, %v596_v13  ;;  %v671_v22 = vmul.f32 %v615_v14, %v615_v14  ;;  %v687_v0 = vsub.f32 %v7995_v20, %v615_v14  ;;  %v688_v5 = vsub.f32 %v7997_v21, %v615_v14 }
 0x300   : > { %v644_v8 = vpop.xlane.xlu1 %643 }
 0x301   : > { %v664_v16 = vmul.f32 0.00390625, %v644_v8  ;;  %v672_v17 = vmul.f32 %v616_v9, %v616_v9  ;;  %v689_v2 = vsub.f32 %v8001_v23, %v616_v9  ;;  %v690_v3 = vsub.f32 %v8007_v26, %v616_v9 }
 0x302   : > { %v641_v18 = vpop.xlane.xlu0 %640 }
 0x303   : > { %v680_v19 = vsub.f32 %v664_v16, %v672_v17  ;;  %v663_v24 = vmul.f32 0.00390625, %v641_v18 }
 0x305   : > { %v704_v25 = vadd.f32 1e-05, %v680_v19  ;;  %v679_v27 = vsub.f32 %v663_v24, %v671_v22 }
 0x306   : > { %v599_v28 = vpop.xlane.xlu0 %598  ;;  %v602_v29 = vpop.xlane.xlu1 %601 }
 0x307   : > { %7725 = vrsqrt.f32 %v704_v25  ;;  %v703_v30 = vadd.f32 1e-05, %v679_v27  ;;  %v8075_v31 = vmul.f32 0.00390625, %v599_v28  ;;  %v8077_v36 = vmul.f32 0.00390625, %v602_v29 }
 0x309   : > { %7727 = vrsqrt.f32 %v703_v30  ;;  %v673_v40 = vmul.f32 %v8075_v31, %v8075_v31  ;;  %v674_v44 = vmul.f32 %v8077_v36, %v8077_v36 }
 0x30a   : > { %v647_v41 = vpop.xlane.xlu0 %646  ;;  %v650_v45 = vpop.xlane.xlu1 %649 }
 0x30b   : > { %v665_v46 = vmul.f32 0.00390625, %v647_v41  ;;  %v666_v48 = vmul.f32 0.00390625, %v650_v45  ;;  %v691_v45 = vsub.f32 %v8015_v32, %v8075_v31  ;;  %v693_v32 = vsub.f32 %v8021_v39, %v8077_v36 }
 0x30d   : > { %v681_v49 = vsub.f32 %v665_v46, %v673_v40  ;;  %v682_v52 = vsub.f32 %v666_v48, %v674_v44  ;;  %v692_v46 = vsub.f32 %v8017_v33, %v8075_v31  ;;  %v694_v33 = vsub.f32 %v8027_v42, %v8077_v36 }
 0x30e   : > { %v605_v54 = vpop.xlane.xlu0 %604  ;;  %v608_v55 = vpop.xlane.xlu1 %607 }
 0x30f   : > { %v705_v57 = vadd.f32 1e-05, %v681_v49  ;;  %v706_v58 = vadd.f32 1e-05, %v682_v52  ;;  %v8083_v59 = vmul.f32 0.00390625, %v605_v54  ;;  %v8085_v60 = vmul.f32 0.00390625, %v608_v55 }
 0x311   : > { %v7726_v61 = vpop.eup %7725  ;;  %7729 = vrsqrt.f32 %v705_v57  ;;  %v675_v6 = vmul.f32 %v8083_v59, %v8083_v59  ;;  %v676_v10 = vmul.f32 %v8085_v60, %v8085_v60 }
 0x312   : > { %7731 = vrsqrt.f32 %v706_v58  ;;  %v653_v7 = vpop.xlane.xlu0 %652  ;;  %v656_v11 = vpop.xlane.xlu1 %655  ;;  %v721_v20 = vmul.f32 %v7726_v61, %v689_v2  ;;  %v722_v16 = vmul.f32 %v7726_v61, %v690_v3 }
 0x313   : > { %v7728_v12 = vpop.eup %7727  ;;  %v667_v13 = vmul.f32 0.00390625, %v653_v7  ;;  %v668_v8 = vmul.f32 0.00390625, %v656_v11 }
 0x314   : > { %v719_v23 = vmul.f32 %v7728_v12, %v687_v0  ;;  %v720_v17 = vmul.f32 %v7728_v12, %v688_v5  ;;  %v737_v18 = vmax.f32 %v721_v20, 0.0  ;;  %v738_v21 = vmax.f32 %v722_v16, 0.0 }
 0x315   : > { %v683_v26 = vsub.f32 %v667_v13, %v675_v6  ;;  %v684_v9 = vsub.f32 %v668_v8, %v676_v10  ;;  %v695_v16 = vsub.f32 %v8035_v50, %v8083_v59 }
 0x316   : > { %v611_v14 = vpop.xlane.xlu0 %610  ;;  %v614_v19 = vpop.xlane.xlu1 %613  ;;  %v735_v22 = vmax.f32 %v719_v23, 0.0  ;;  %v736_v24 = vmax.f32 %v720_v17, 0.0  ;;  %v5845_v44 = vpack.i.bf16 %v738_v21, %v737_v18  ;;  %v696_v23 = vsub.f32 %v8037_v51, %v8083_v59 }
 0x317   : > { %v707_v25 = vadd.f32 1e-05, %v683_v26  ;;  %v708_v27 = vadd.f32 1e-05, %v684_v9  ;;  %v8095_v28 = vmul.f32 0.00390625, %v611_v14  ;;  %v8097_v29 = vmul.f32 0.00390625, %v614_v19 }
 0x318   : > { %v5840_v30 = vpack.i.bf16 %v737_v18, %v735_v22  ;;  %v5835_v40 = vpack.i.bf16 %v736_v24, %v735_v22  ;;  %v5850_v41 = vpack.i.bf16 %v738_v21, %v736_v24  ;;  %v697_v26 = vsub.f32 %v8041_v53, %v8085_v60 }
 0x319   : > { %7733 = vrsqrt.f32 %v707_v25  ;;  %v677_v48 = vmul.f32 %v8095_v28, %v8095_v28  ;;  %v678_v52 = vmul.f32 %v8097_v29, %v8097_v29  ;;  %v698_v9 = vsub.f32 %v8047_v56, %v8085_v60 }
 0x31a   : > { %7735 = vrsqrt.f32 %v708_v27  ;;  %5841 = vrot.lane.b32.xlu0 %v5840_v30, %s7805_s30  ;;  %v659_v49 = vpop.xlane.xlu0 %658  ;;  %5836 = vrot.lane.b32.xlu1 %v5835_v40, %s7807_s9  ;;  %v662_v54 = vpop.xlane.xlu1 %661  ;;  %v699_v56 = vsub.f32 %v8055_v62, %v8095_v28  ;;  %v700_v60 = vsub.f32 %v8057_v63, %v8095_v28 }
 0x31b   : > { %v7730_v55 = vpop.eup %7729  ;;  %v669_v31 = vmul.f32 0.00390625, %v659_v49  ;;  %v670_v57 = vmul.f32 0.00390625, %v662_v54 }
 0x31c   : > { %v7732_v58 = vpop.eup %7731  ;;  %v723_v61 = vmul.f32 %v7730_v55, %v691_v45  ;;  %v724_v0 = vmul.f32 %v7730_v55, %v692_v46 }
 0x31d   : > { %v685_v2 = vsub.f32 %v669_v31, %v677_v48  ;;  %v686_v3 = vsub.f32 %v670_v57, %v678_v52  ;;  %v725_v5 = vmul.f32 %v7732_v58, %v693_v32  ;;  %v726_v6 = vmul.f32 %v7732_v58, %v694_v33 }
 0x31e   : > { %5851 = vrot.lane.b32.xlu0 %v5850_v41, %s7806_s8  ;;  %5846 = vrot.lane.b32.xlu1 %v5845_v44, %s7807_s9  ;;  %v739_v7 = vmax.f32 %v723_v61, 0.0  ;;  %v740_v10 = vmax.f32 %v724_v0, 0.0  ;;  %v701_v41 = vsub.f32 %v8061_v1, %v8097_v29  ;;  %v702_v44 = vsub.f32 %v8067_v4, %v8097_v29 }
 0x31f   : > { %v709_v11 = vadd.f32 1e-05, %v685_v2  ;;  %v710_v39 = vadd.f32 1e-05, %v686_v3  ;;  %v741_v12 = vmax.f32 %v725_v5, 0.0  ;;  %v742_v13 = vmax.f32 %v726_v6, 0.0 }
 0x320   : > { %v5855_v42 = vpack.i.bf16 %v740_v10, %v739_v7 }
 0x321   : > { %7737 = vrsqrt.f32 %v709_v11  ;;  %v5860_v36 = vpack.i.bf16 %v741_v12, %v739_v7  ;;  %v5870_v8 = vpack.i.bf16 %v742_v13, %v740_v10  ;;  %v5865_v20 = vpack.i.bf16 %v742_v13, %v741_v12 }
 0x322   : > { %7739 = vrsqrt.f32 %v710_v39  ;;  %5856 = vrot.lane.b32.xlu0 %v5855_v42, %s7807_s9 }
 0x323   : > { %v7734_v17 = vpop.eup %7733  ;;  %5861 = vrot.lane.b32.xlu1 %v5860_v36, %s7805_s30 }
 0x324   : > { %v7736_v18 = vpop.eup %7735  ;;  %v727_v21 = vmul.f32 %v7734_v17, %v695_v16  ;;  %v728_v14 = vmul.f32 %v7734_v17, %v696_v23 }
 0x325   : > { %v729_v19 = vmul.f32 %v7736_v18, %v697_v26  ;;  %v730_v50 = vmul.f32 %v7736_v18, %v698_v9 }
 0x326   : > { %5871 = vrot.lane.b32.xlu0 %v5870_v8, %s7806_s8  ;;  %v743_v51 = vmax.f32 %v727_v21, 0.0  ;;  %v744_v59 = vmax.f32 %v728_v14, 0.0 }
 0x327   : > { %5866 = vrot.lane.b32.xlu1 %v5865_v20, %s7807_s9  ;;  %v745_v22 = vmax.f32 %v729_v19, 0.0  ;;  %v746_v24 = vmax.f32 %v730_v50, 0.0 }
 0x328   : > { %v5875_v25 = vpack.i.bf16 %v744_v59, %v743_v51 }
 0x329   : > { %v5880_v53 = vpack.i.bf16 %v745_v22, %v743_v51  ;;  %v5890_v27 = vpack.i.bf16 %v746_v24, %v744_v59  ;;  %v5885_v30 = vpack.i.bf16 %v746_v24, %v745_v22 }
 0x32a   : > { %5876 = vrot.lane.b32.xlu0 %v5875_v25, %s7807_s9 }
 0x32b   : > { %v7738_v40 = vpop.eup %7737  ;;  %5881 = vrot.lane.b32.xlu1 %v5880_v53, %s7805_s30 }
 0x32c   : > { %v7740_v45 = vpop.eup %7739  ;;  %v731_v46 = vmul.f32 %v7738_v40, %v699_v56  ;;  %v732_v48 = vmul.f32 %v7738_v40, %v700_v60 }
 0x32d   : > { %v733_v49 = vmul.f32 %v7740_v45, %v701_v41  ;;  %v734_v52 = vmul.f32 %v7740_v45, %v702_v44 }
 0x32e   : > { %5891 = vrot.lane.b32.xlu0 %v5890_v27, %s7806_s8  ;;  %v747_v62 = vmax.f32 %v731_v46, 0.0  ;;  %v748_v63 = vmax.f32 %v732_v48, 0.0 }
 0x32f   : > { %5886 = vrot.lane.b32.xlu1 %v5885_v30, %s7807_s9  ;;  %v749_v28 = vmax.f32 %v733_v49, 0.0  ;;  %v750_v54 = vmax.f32 %v734_v52, 0.0 }
 0x330   : > { %v5895_v55 = vpack.i.bf16 %v748_v63, %v747_v62 }
 0x331   : > { %v5900_v1 = vpack.i.bf16 %v749_v28, %v747_v62  ;;  %v5910_v32 = vpack.i.bf16 %v750_v54, %v748_v63  ;;  %v5905_v33 = vpack.i.bf16 %v750_v54, %v749_v28 }
 0x332   : > { %5896 = vrot.lane.b32.xlu0 %v5895_v55, %s7807_s9 }
 0x333   : > { %5901 = vrot.lane.b32.xlu1 %v5900_v1, %s7805_s30 }
 0x336   : > { %5911 = vrot.lane.b32.xlu0 %v5910_v32, %s7806_s8 }
 0x337   : > { %5906 = vrot.lane.b32.xlu1 %v5905_v33, %s7807_s9 }
 0x38c   : > { %v5842_v4 = vpop.permute.xlu0 %5841  ;;  %v5837_v29 = vpop.permute.xlu1 %5836 }
 0x38d   : > { %v5843_v31 = vunpack.i.l.bf16 %v5842_v4  ;;  %v5839_v57 = vunpack.i.h.bf16 %v5837_v29  ;;  %v5838_v58 = vunpack.i.l.bf16 %v5837_v29  ;;  %v5844_v39 = vunpack.i.h.bf16 %v5842_v4 }
 0x38f   : > { %v8144_v61 = vsel %vm11390_vm0, %v5838_v58, %v5839_v57  ;;  %v8147_v0 = vsel %vm11390_vm0, %v5843_v31, %v5838_v58 }
 0x390   : > { %v5852_v2 = vpop.permute.xlu0 %5851  ;;  %v5847_v3 = vpop.permute.xlu1 %5846  ;;  %v5920_v5 = vpack.i.bf16 %v8144_v61, %v8147_v0 }
 0x391   : > { %v5854_v6 = vunpack.i.h.bf16 %v5852_v2  ;;  %v5853_v7 = vunpack.i.l.bf16 %v5852_v2  ;;  %v5849_v10 = vunpack.i.h.bf16 %v5847_v3  ;;  %v5848_v11 = vunpack.i.l.bf16 %v5847_v3 }
 0x392   : > { %5921 = vrot.lane.b32.xlu0 %v5920_v5, %s7810_s12 }
 0x393   : > { %v911_v12 = vsel %vm11390_vm0, %v5839_v57, %v5853_v7  ;;  %v912_v13 = vsel %vm11390_vm0, %v5849_v10, %v5854_v6  ;;  %v8155_v42 = vsel %vm11390_vm0, %v5848_v11, %v5849_v10  ;;  %v8164_v16 = vsel %vm11390_vm0, %v5844_v39, %v5848_v11 }
 0x394   : > { %v5857_v36 = vpop.permute.xlu0 %5856  ;;  %v8158_v8 = vpack.i.bf16 %v912_v13, %v8155_v42  ;;  %v8161_v20 = vpack.i.bf16 %v911_v12, %v8144_v61  ;;  %v8172_v26 = vpack.i.bf16 %v8164_v16, %v8147_v0  ;;  %v5955_v25 = vpack.i.bf16 %v912_v13, %v911_v12 }
 0x395   : > { %v5862_v23 = vpop.permute.xlu1 %5861  ;;  %v5859_v59 = vunpack.i.h.bf16 %v5857_v36  ;;  %v5858_v22 = vunpack.i.l.bf16 %v5857_v36  ;;  %v5940_v46 = vpack.i.bf16 %v8164_v16, %v911_v12 }
 0x396   : > { %5931 = vrot.lane.b32.xlu0 %v8158_v8, %s7809_s11  ;;  %5916 = vrot.lane.b32.xlu1 %v8161_v20, %s7809_s11  ;;  %v5864_v53 = vunpack.i.h.bf16 %v5862_v23  ;;  %v5863_v27 = vunpack.i.l.bf16 %v5862_v23 }
 0x397   : > { %v8195_v41 = vsel %vm11390_vm0, %v5858_v22, %v5859_v59 }
 0x398   : > { %v5872_v17 = vpop.permute.xlu0 %5871  ;;  %v8206_v49 = vsel %vm11390_vm0, %v5863_v27, %v5858_v22 }
 0x399   : > { %v5873_v18 = vunpack.i.l.bf16 %v5872_v17  ;;  %v5867_v21 = vpop.permute.xlu1 %5866  ;;  %v5874_v19 = vunpack.i.h.bf16 %v5872_v17  ;;  %v5975_v2 = vpack.i.bf16 %v8195_v41, %v8206_v49 }
 0x39a   : > { %v5869_v50 = vunpack.i.h.bf16 %v5867_v21  ;;  %v5868_v51 = vunpack.i.l.bf16 %v5867_v21  ;;  %5946 = vrot.lane.b32.xlu0 %v8158_v8, %s7810_s12  ;;  %5926 = vrot.lane.b32.xlu1 %v8161_v20, %s7805_s30 }
 0x39b   : > { %v8183_v30 = vsel %vm11390_vm0, %v5859_v59, %v5873_v18 }
 0x39c   : > { %v5877_v24 = vpop.permute.xlu0 %5876  ;;  %v8186_v60 = vsel %vm11390_vm0, %v5869_v50, %v5874_v19  ;;  %v8189_v40 = vsel %vm11390_vm0, %v5868_v51, %v5869_v50  ;;  %v8198_v44 = vsel %vm11390_vm0, %v5864_v53, %v5868_v51  ;;  %v8203_v48 = vpack.i.bf16 %v8183_v30, %v8195_v41 }
 0x39d   : > { %v5882_v56 = vpop.permute.xlu1 %5881  ;;  %v8210_v63 = vpack.i.bf16 %v8186_v60, %v8189_v40  ;;  %v5879_v28 = vunpack.i.h.bf16 %v5877_v24  ;;  %v8217_v55 = vpack.i.bf16 %v8198_v44, %v8206_v49  ;;  %v5878_v32 = vunpack.i.l.bf16 %v5877_v24 }
 0x39e   : > { %5956 = vrot.lane.b32.xlu0 %v5955_v25, %s7811_s13  ;;  %5936 = vrot.lane.b32.xlu1 %v8172_v26, %s7808_s10  ;;  %v5884_v31 = vunpack.i.h.bf16 %v5882_v56  ;;  %v5883_v57 = vunpack.i.l.bf16 %v5882_v56 }
 0x39f   : > { %v8233_v7 = vsel %vm11390_vm0, %v5878_v32, %v5879_v28 }
 0x3a0   : > { %v5892_v45 = vpop.permute.xlu0 %5891  ;;  %v8240_v39 = vsel %vm11390_vm0, %v5883_v57, %v5878_v32  ;;  %v5995_v57 = vpack.i.bf16 %v8198_v44, %v8183_v30 }
 0x3a1   : > { %v5893_v52 = vunpack.i.l.bf16 %v5892_v45  ;;  %v5887_v62 = vpop.permute.xlu1 %5886  ;;  %v5894_v33 = vunpack.i.h.bf16 %v5892_v45 }
 0x3a2   : > { %v5888_v54 = vunpack.i.l.bf16 %v5887_v62  ;;  %5961 = vrot.lane.b32.xlu0 %v8158_v8, %s7805_s30  ;;  %5941 = vrot.lane.b32.xlu1 %v5940_v46, %s7810_s12  ;;  %v5889_v4 = vunpack.i.h.bf16 %v5887_v62 }
 0x3a3   : > { %v915_v3 = vsel %vm11390_vm0, %v5879_v28, %v5893_v52 }
 0x3a4   : > { %v5897_v58 = vpop.permute.xlu0 %5896  ;;  %v8227_v6 = vsel %vm11390_vm0, %v5884_v31, %v5888_v54  ;;  %v916_v10 = vsel %vm11390_vm0, %v5889_v4, %v5894_v33  ;;  %v8237_v11 = vsel %vm11390_vm0, %v5888_v54, %v5889_v4  ;;  %v8243_v36 = vpack.i.bf16 %v915_v3, %v8233_v7 }
 0x3a5   : > { %v5902_v5 = vpop.permute.xlu1 %5901  ;;  %v5899_v12 = vunpack.i.h.bf16 %v5897_v58  ;;  %v5898_v23 = vunpack.i.l.bf16 %v5897_v58  ;;  %v8247_v19 = vpack.i.bf16 %v8227_v6, %v8240_v39  ;;  %v8256_v22 = vpack.i.bf16 %v916_v10, %v8237_v11 }
 0x3a6   : > { %5976 = vrot.lane.b32.xlu0 %v5975_v2, %s7810_s12  ;;  %5951 = vrot.lane.b32.xlu1 %v8172_v26, %s7809_s11  ;;  %v5904_v24 = vunpack.i.h.bf16 %v5902_v5  ;;  %v5903_v25 = vunpack.i.l.bf16 %v5902_v5  ;;  %v6010_v31 = vpack.i.bf16 %v8186_v60, %v8183_v30  ;;  %v6030_v58 = vpack.i.bf16 %v8233_v7, %v8240_v39 }
 0x3a7   : > { %v8269_v52 = vsel %vm11390_vm0, %v5898_v23, %v5899_v12  ;;  %v6065_v30 = vpack.i.bf16 %v916_v10, %v915_v3  ;;  %v6050_v60 = vpack.i.bf16 %v8227_v6, %v915_v3 }
 0x3a8   : > { %v5912_v13 = vpop.permute.xlu0 %5911  ;;  %v8276_v62 = vsel %vm11390_vm0, %v5903_v25, %v5898_v23 }
 0x3a9   : > { %v5914_v17 = vunpack.i.h.bf16 %v5912_v13  ;;  %v5913_v18 = vunpack.i.l.bf16 %v5912_v13  ;;  %v5907_v21 = vpop.permute.xlu1 %5906  ;;  %v6085_v2 = vpack.i.bf16 %v8269_v52, %v8276_v62 }
 0x3aa   : > { %v5909_v50 = vunpack.i.h.bf16 %v5907_v21  ;;  %v5908_v51 = vunpack.i.l.bf16 %v5907_v21  ;;  %5981 = vrot.lane.b32.xlu0 %v8203_v48, %s7805_s30  ;;  %5966 = vrot.lane.b32.xlu1 %v8172_v26, %s7805_s30 }
 0x3ab   : > { %v917_v27 = vsel %vm11390_vm0, %v5899_v12, %v5913_v18 }
 0x3ac   : > { %v8262_v56 = vsel %vm11390_vm0, %v5908_v51, %v5909_v50  ;;  %v918_v45 = vsel %vm11390_vm0, %v5909_v50, %v5914_v17  ;;  %v8266_v46 = vsel %vm11390_vm0, %v5904_v24, %v5908_v51  ;;  %v8281_v54 = vpack.i.bf16 %v917_v27, %v8269_v52 }
 0x3ad   : > { %v8284_v32 = vpack.i.bf16 %v918_v45, %v8262_v56  ;;  %v8290_v4 = vpack.i.bf16 %v8266_v46, %v8276_v62  ;;  %v6125_v3 = vpack.i.bf16 %v918_v45, %v917_v27  ;;  %v6105_v5 = vpack.i.bf16 %v8266_v46, %v917_v27 }
 0x3ae   : > { %5986 = vrot.lane.b32.xlu0 %v8210_v63, %s7809_s11  ;;  %5971 = vrot.lane.b32.xlu1 %v8203_v48, %s7809_s11 }
 0x3b2   : > { %6001 = vrot.lane.b32.xlu0 %v8210_v63, %s7810_s12  ;;  %5991 = vrot.lane.b32.xlu1 %v8217_v55, %s7808_s10 }
 0x3b6   : > { %6011 = vrot.lane.b32.xlu0 %v6010_v31, %s7811_s13  ;;  %5996 = vrot.lane.b32.xlu1 %v5995_v57, %s7810_s12 }
 0x3ba   : > { %6021 = vrot.lane.b32.xlu0 %v8217_v55, %s7805_s30  ;;  %6006 = vrot.lane.b32.xlu1 %v8217_v55, %s7809_s11 }
 0x3be   : > { %6031 = vrot.lane.b32.xlu0 %v6030_v58, %s7810_s12  ;;  %6016 = vrot.lane.b32.xlu1 %v8210_v63, %s7805_s30 }
 0x3c2   : > { %6041 = vrot.lane.b32.xlu0 %v8256_v22, %s7809_s11  ;;  %6026 = vrot.lane.b32.xlu1 %v8243_v36, %s7809_s11 }
 0x3c6   : > { %6056 = vrot.lane.b32.xlu0 %v8256_v22, %s7810_s12  ;;  %6036 = vrot.lane.b32.xlu1 %v8243_v36, %s7805_s30 }
 0x3ca   : > { %6066 = vrot.lane.b32.xlu0 %v6065_v30, %s7811_s13  ;;  %6046 = vrot.lane.b32.xlu1 %v8247_v19, %s7808_s10 }
 0x3ce   : > { %6071 = vrot.lane.b32.xlu0 %v8256_v22, %s7805_s30  ;;  %6051 = vrot.lane.b32.xlu1 %v6050_v60, %s7810_s12 }
 0x3d2   : > { %6086 = vrot.lane.b32.xlu0 %v6085_v2, %s7810_s12  ;;  %6061 = vrot.lane.b32.xlu1 %v8247_v19, %s7809_s11 }
 0x3d6   : > { %6091 = vrot.lane.b32.xlu0 %v8281_v54, %s7805_s30  ;;  %6076 = vrot.lane.b32.xlu1 %v8247_v19, %s7805_s30 }
 0x3da   : > { %6096 = vrot.lane.b32.xlu0 %v8284_v32, %s7809_s11  ;;  %6081 = vrot.lane.b32.xlu1 %v8281_v54, %s7809_s11 }
 0x3de   : > { %6111 = vrot.lane.b32.xlu0 %v8284_v32, %s7810_s12  ;;  %6101 = vrot.lane.b32.xlu1 %v8290_v4, %s7808_s10 }
 0x3e2   : > { %6126 = vrot.lane.b32.xlu0 %v6125_v3, %s7811_s13  ;;  %6106 = vrot.lane.b32.xlu1 %v6105_v5, %s7810_s12 }
 0x3e6   : > { %6131 = vrot.lane.b32.xlu0 %v8158_v8, %s7812_s14  ;;  %6116 = vrot.lane.b32.xlu1 %v8290_v4, %s7809_s11 }
 0x3ea   : > { %6141 = vrot.lane.b32.xlu0 %v8203_v48, %s7812_s14  ;;  %6121 = vrot.lane.b32.xlu1 %v8161_v20, %s7812_s14 }
 0x3ee   : > { %6151 = vrot.lane.b32.xlu0 %v8290_v4, %s7805_s30  ;;  %6136 = vrot.lane.b32.xlu1 %v8172_v26, %s7812_s14 }
 0x3f2   : > { %6146 = vrot.lane.b32.xlu1 %v8284_v32, %s7805_s30 }
 0x404   : > { %v5922_v10 = vpop.permute.xlu0 %5921 }
 0x405   : > { %v5924_v18 = vunpack.i.h.bf16 %v5922_v10  ;;  %v5923_v21 = vunpack.i.l.bf16 %v5922_v10 }
 0x407   : > { %v1127_v58 = vsel %vm11464_vm2, %v5923_v21, %v5924_v18 }
 0x408   : > { %v5932_v8 = vpop.permute.xlu0 %5931  ;;  %v5917_v12 = vpop.permute.xlu1 %5916 }
 0x409   : > { %v5919_v17 = vunpack.i.h.bf16 %v5917_v12  ;;  %v5918_v48 = vunpack.i.l.bf16 %v5917_v12  ;;  %v5934_v20 = vunpack.i.h.bf16 %v5932_v8  ;;  %v5933_v50 = vunpack.i.l.bf16 %v5932_v8 }
 0x40b   : > { %v984_v25 = vsel %vm315_vm1, %v5918_v48, %v5919_v17  ;;  %v986_v60 = vsel %vm315_vm1, %v5933_v50, %v5934_v20 }
 0x40c   : > { %v5947_v13 = vpop.permute.xlu0 %5946  ;;  %v8360_v23 = vpop.permute.xlu1 %5926  ;;  %v8369_v5 = vsel %vm7908_vm7, %v1127_v58, %v984_v25  ;;  %v1176_v10 = vsel %vm7896_vm4, %v984_v25, %v1127_v58 }
 0x40d   : > { %v5949_v26 = vunpack.i.h.bf16 %v5947_v13  ;;  %v5948_v27 = vunpack.i.l.bf16 %v5947_v13  ;;  %v5929_v45 = vunpack.i.h.bf16 %v8360_v23  ;;  %v5928_v31 = vunpack.i.l.bf16 %v8360_v23 }
 0x40f   : > { %v1130_v23 = vsel %vm11465_vm11, %v5948_v27, %v5949_v26  ;;  %v1376_v28 = vsel %vm383_vm12, %v5928_v31, %v5929_v45  ;;  %vm11472_vm11 = vmmov %vm11464_vm2 }
 0x410   : > { %v5957_v51 = vpop.permute.xlu0 %5956  ;;  %v5937_v24 = vpop.permute.xlu1 %5936 }
 0x411   : > { %v5939_v57 = vunpack.i.h.bf16 %v5937_v24  ;;  %v5938_v30 = vunpack.i.l.bf16 %v5937_v24  ;;  %v5958_v33 = vunpack.i.l.bf16 %v5957_v51  ;;  %v5959_v45 = vunpack.i.h.bf16 %v5957_v51 }
 0x413   : > { %v1048_v24 = vsel %vm11466_vm13, %v5934_v20, %v5939_v57  ;;  %v1047_v53 = vsel %vm11467_vm14, %v5919_v17, %v5938_v30  ;;  %vm11479_vm13 = vmmov %vm11464_vm2 }
 0x414   : > { %v5962_v2 = vpop.permute.xlu0 %5961  ;;  %v5942_v3 = vpop.permute.xlu1 %5941  ;;  %vm11480_vm14 = vmmov %vm11464_vm2 }
 0x415   : > { %v5964_v8 = vunpack.i.h.bf16 %v5962_v2  ;;  %v5963_v12 = vunpack.i.l.bf16 %v5962_v2  ;;  %v5944_v13 = vunpack.i.h.bf16 %v5942_v3  ;;  %v5943_v15 = vunpack.i.l.bf16 %v5942_v3 }
 0x417   : > { %v1129_v59 = vsel %vm11468_vm15, %v5944_v13, %v5948_v27  ;;  %v1128_v29 = vsel %vm11469_vm3, %v5924_v18, %v5943_v15  ;;  %v1378_v1 = vsel %vm383_vm12, %v5963_v12, %v5964_v8  ;;  %v1204_v15 = vsel %vm7924_vm9, %v1130_v23, %v1048_v24 }
 0x418   : > { %v8380_v25 = vpop.permute.xlu0 %5976  ;;  %v5952_v58 = vpop.permute.xlu1 %5951  ;;  %v1784_v2 = vpack.c.bf16 %v1378_v1, %v1376_v28  ;;  %v8384_v26 = vsel %vm7908_vm7, %v1129_v59, %v986_v60  ;;  %v1201_v20 = vsel %vm7924_vm9, %v1128_v29, %v1047_v53  ;;  %v1179_v17 = vsel %vm7896_vm4, %v986_v60, %v1129_v59 }
 0x419   : > { %v5954_v27 = vunpack.i.h.bf16 %v5952_v58  ;;  %v5953_v57 = vunpack.i.l.bf16 %v5952_v58  ;;  %v1167_v18 = vsel %vm11464_vm2, %v5958_v33, %v5923_v21  ;;  %v8394_v1 = vpack.i.bf16 %v1204_v15, %v8384_v26 }
 0x41a   : > { %2009 = vmatprep.subr.bf16.mxu1 %v1784_v2  ;;  %v8397_v28 = vpack.i.bf16 %v1201_v20, %v8369_v5  ;;  %v1752_v30 = vpack.c.bf16 %v1179_v17, %v1176_v10  ;;  %v1168_v3 = vsel %vm11472_vm11, %v5959_v45, %v5944_v13  ;;  %v1177_v60 = vsel %vm7900_vm5, %v1047_v53, %v1128_v29  ;;  %vm11484_vm11 = vmmov %vm11464_vm2 }
 0x41b   : > { %11470 = vst [vmem:[#allocation5_spill] sm:$0xff] %v8394_v1  ;;  %v985_v59 = vsel %vm315_vm1, %v5954_v27, %v5933_v50  ;;  %v983_v51 = vsel %vm315_vm1, %v5953_v57, %v5918_v48  ;;  %6166 = vrot.lane.b32.xlu0 %v8394_v1, %s7805_s30  ;;  %v1180_v8 = vsel %vm7900_vm5, %v1048_v24, %v1130_v23  ;;  %vm11481_vm15 = vcmask 252928  }
 0x41c   : > { %11471 = vst [vmem:[#allocation6_spill] sm:$0xff] %v8397_v28  ;;  %6156 = vrot.lane.b32.xlu1 %v8397_v28, %s7805_s30  ;;  %v8408_v33 = vpop.permute.xlu0 %5981  ;;  %v5967_v21 = vpop.permute.xlu1 %5966  ;;  %v1175_v50 = vsel %vm7904_vm6, %v983_v51, %v1167_v18  ;;  %v1178_v48 = vsel %vm7904_vm6, %v985_v59, %v1168_v3  ;;  %1936 = vmatprep.subr.bf16.mxu0 %v1752_v30  ;;  %vm11483_vm3 = vmmov %vm11481_vm15 }
 0x41d   : > { %v5969_v29 = vunpack.i.h.bf16 %v5967_v21  ;;  %v5968_v53 = vunpack.i.l.bf16 %v5967_v21  ;;  %v8416_v13 = vpack.i.bf16 %v1180_v8, %v1179_v17  ;;  %v8418_v58 = vpack.i.bf16 %v1177_v60, %v1176_v10 }
 0x41e   : > { %v1751_v2 = vpack.c.bf16 %v1178_v48, %v1175_v50  ;;  %v8422_v20 = vsel %vm7916_vm8, %v1167_v18, %v983_v51  ;;  %v8426_v23 = vsel %vm7916_vm8, %v1168_v3, %v985_v59  ;;  %v5979_v3 = vunpack.i.h.bf16 %v8380_v25 }
 0x41f   : > { %11473 = vst [vmem:[#allocation7_spill] sm:$0xff] %v8416_v13  ;;  %11474 = vst [vmem:[#allocation8_spill] sm:$0xff] %v8418_v58  ;;  %v1375_v24 = vsel %vm383_vm12, %v5968_v53, %v5928_v31  ;;  %v1377_v45 = vsel %vm383_vm12, %v5969_v29, %v5963_v12  ;;  %6176 = vrot.lane.b32.xlu0 %v8416_v13, %s7812_s14  ;;  %v8438_v15 = vpack.i.bf16 %v8426_v23, %v8422_v20 }
 0x420   : > { %11475 = vst [vmem:[#allocation9_spill] sm:$0xff] %v8422_v20  ;;  %11476 = vst [vmem:[#allocation10_spill] sm:$0xff] %v8426_v23  ;;  %6161 = vrot.lane.b32.xlu1 %v8418_v58, %s7812_s14  ;;  %v5987_v10 = vpop.permute.xlu0 %5986  ;;  %v5972_v17 = vpop.permute.xlu1 %5971  ;;  %v1783_v27 = vpack.c.bf16 %v1377_v45, %v1375_v24  ;;  %1937 = vmatpush1.bf16.msra.mxu0 %v1751_v2  ;;  %v8442_v12 = vpack.i.bf16 %v1178_v48, %v1175_v50  ;;  %v5978_v59 = vunpack.i.l.bf16 %v8380_v25 }
 0x421   : > { %11477 = vst [vmem:[#allocation11_spill] sm:$0xff] %v8438_v15  ;;  %v5974_v18 = vunpack.i.h.bf16 %v5972_v17  ;;  %v5973_v30 = vunpack.i.l.bf16 %v5972_v17  ;;  %v5989_v21 = vunpack.i.h.bf16 %v5987_v10  ;;  %v5988_v8 = vunpack.i.l.bf16 %v5987_v10 }
 0x422   : > { %2010 = vmatpush1.bf16.msra.mxu1 %v1783_v27  ;;  %11478 = vst [vmem:[#allocation12_spill] sm:$0xff] %v8442_v12  ;;  %v1131_v48 = vsel %vm11479_vm13, %v5978_v59, %v5979_v3  ;;  %v5984_v45 = vunpack.i.h.bf16 %v8408_v33  ;;  %v5983_v27 = vunpack.i.l.bf16 %v8408_v33  ;;  %vm11486_vm13 = vmmov %vm11464_vm2 }
 0x423   : > { %v988_v24 = vsel %vm315_vm1, %v5973_v30, %v5974_v18 }
 0x424   : > { %6171 = vrot.lane.b32.xlu1 %v8438_v15, %s7805_s30  ;;  %v6002_v51 = vpop.permute.xlu0 %6001  ;;  %v5992_v60 = vpop.permute.xlu1 %5991  ;;  %v8459_v9 = vsel %vm7908_vm7, %v1131_v48, %v988_v24 }
 0x425   : > { %v6004_v29 = vunpack.i.h.bf16 %v6002_v51  ;;  %v6003_v53 = vunpack.i.l.bf16 %v6002_v51  ;;  %v5994_v2 = vunpack.i.h.bf16 %v5992_v60  ;;  %v5993_v50 = vunpack.i.l.bf16 %v5992_v60  ;;  %11482 = vst [vmem:[#allocation13_spill] sm:$0xff] %v8459_v9 }
 0x426   : > { %v990_v51 = vsel %vm315_vm1, %v5988_v8, %v5989_v21 }
 0x427   : > { %v1134_v14 = vsel %vm11480_vm14, %v6003_v53, %v6004_v29  ;;  %v1050_v60 = vsel %vm11481_vm15, %v5989_v21, %v5994_v2  ;;  %v1049_v15 = vsel %vm11483_vm3, %v5974_v18, %v5993_v50  ;;  %v1182_v21 = vsel %vm7896_vm4, %v988_v24, %v1131_v48  ;;  %vm11489_vm14 = vmmov %vm11464_vm2 }
 0x428   : > { %6181 = vrot.lane.b32.xlu1 %v8442_v12, %s7812_s14  ;;  %v6012_v25 = vpop.permute.xlu0 %6011  ;;  %v5997_v17 = vpop.permute.xlu1 %5996  ;;  %vm11496_vm15 = vmmov %vm11464_vm2 }
 0x429   : > { %v6013_v31 = vunpack.i.l.bf16 %v6012_v25  ;;  %v5999_v57 = vunpack.i.h.bf16 %v5997_v17  ;;  %v5998_v10 = vunpack.i.l.bf16 %v5997_v17  ;;  %v6014_v1 = vunpack.i.h.bf16 %v6012_v25  ;;  %vm11497_vm3 = vmmov %vm11464_vm2 }
 0x42b   : > { %v1133_v12 = vsel %vm11464_vm2, %v5999_v57, %v6003_v53  ;;  %v1132_v33 = vsel %vm11484_vm11, %v5979_v3, %v5998_v10  ;;  %v1169_v2 = vsel %vm11486_vm13, %v6013_v31, %v5978_v59  ;;  %v1210_v3 = vsel %vm7924_vm9, %v1134_v14, %v1050_v60  ;;  %vm11500_vm13 = vmmov %vm11497_vm3 }
 0x42c   : > { %v6022_v13 = vpop.permute.xlu0 %6021  ;;  %v6007_v28 = vpop.permute.xlu1 %6006  ;;  %v1207_v17 = vsel %vm7924_vm9, %v1132_v33, %v1049_v15  ;;  %v8468_v29 = vsel %vm7908_vm7, %v1133_v12, %v990_v51  ;;  %v1185_v18 = vsel %vm7896_vm4, %v990_v51, %v1133_v12  ;;  %v1183_v24 = vsel %vm7900_vm5, %v1049_v15, %v1132_v33 }
 0x42d   : > { %11485 = vst [vmem:[#allocation14_spill] sm:$0xff] %v8468_v29  ;;  %v6009_v53 = vunpack.i.h.bf16 %v6007_v28  ;;  %v6008_v50 = vunpack.i.l.bf16 %v6007_v28  ;;  %v8478_v25 = vpack.i.bf16 %v1207_v17, %v8459_v9  ;;  %v8481_v10 = vpack.i.bf16 %v1210_v3, %v8468_v29 }
 0x42e   : > { %v1754_v20 = vpack.c.bf16 %v1185_v18, %v1182_v21  ;;  %v1170_v48 = vsel %vm11489_vm14, %v6014_v1, %v5999_v57  ;;  %v6023_v12 = vunpack.i.l.bf16 %v6022_v13  ;;  %v6024_v59 = vunpack.i.h.bf16 %v6022_v13  ;;  %vm11501_vm14 = vmmov %vm11497_vm3 }
 0x42f   : > { %11487 = vst [vmem:[#allocation15_spill] sm:$0xff] %v8478_v25  ;;  %11488 = vst [vmem:[#allocation16_spill] sm:$0xff] %v8481_v10  ;;  %v989_v31 = vsel %vm315_vm1, %v6009_v53, %v5988_v8  ;;  %v987_v28 = vsel %vm315_vm1, %v6008_v50, %v5973_v30  ;;  %6186 = vrot.lane.b32.xlu0 %v8478_v25, %s7805_s30  ;;  %6196 = vrot.lane.b32.xlu1 %v8481_v10, %s7805_s30  ;;  %vm11498_vm2 = vcmask 252928  }
 0x430   : > { %v8492_v51 = vpop.permute.xlu0 %6031  ;;  %v6017_v17 = vpop.permute.xlu1 %6016  ;;  %v1186_v15 = vsel %vm7900_vm5, %v1050_v60, %v1134_v14  ;;  %v1181_v1 = vsel %vm7904_vm6, %v987_v28, %v1169_v2  ;;  %v1184_v57 = vsel %vm7904_vm6, %v989_v31, %v1170_v48  ;;  %1938 = vmatprep.subr.bf16.mxu0 %v1754_v20  ;;  %v8500_v8 = vpack.i.bf16 %v1183_v24, %v1182_v21  ;;  %vm11499_vm11 = vmmov %vm11498_vm2 }
 0x431   : > { %v6019_v13 = vunpack.i.h.bf16 %v6017_v17  ;;  %v6018_v30 = vunpack.i.l.bf16 %v6017_v17  ;;  %v8504_v33 = vsel %vm7916_vm8, %v1169_v2, %v987_v28  ;;  %v8506_v53 = vpack.i.bf16 %v1186_v15, %v1185_v18 }
 0x432   : > { %11490 = vst [vmem:[#allocation17_spill] sm:$0xff] %v8500_v8  ;;  %11491 = vst [vmem:[#allocation18_spill] sm:$0xff] %v8504_v33  ;;  %v1753_v50 = vpack.c.bf16 %v1184_v57, %v1181_v1  ;;  %v8510_v14 = vsel %vm7916_vm8, %v1170_v48, %v989_v31  ;;  %v1380_v20 = vsel %vm383_vm12, %v5983_v27, %v5984_v45 }
 0x433   : > { %11492 = vst [vmem:[#allocation19_spill] sm:$0xff] %v8506_v53  ;;  %11493 = vst [vmem:[#allocation20_spill] sm:$0xff] %v8510_v14  ;;  %v1382_v3 = vsel %vm383_vm12, %v6018_v30, %v6019_v13  ;;  %v1379_v21 = vsel %vm383_vm12, %v6023_v12, %v5983_v27  ;;  %v1381_v24 = vsel %vm383_vm12, %v6024_v59, %v6018_v30  ;;  %6191 = vrot.lane.b32.xlu0 %v8500_v8, %s7812_s14 }
 0x434   : > { %6206 = vrot.lane.b32.xlu1 %v8506_v53, %s7812_s14  ;;  %v8522_v18 = vpop.permute.xlu0 %6041  ;;  %v8524_v2 = vpop.permute.xlu1 %6026  ;;  %v1786_v48 = vpack.c.bf16 %v1382_v3, %v1380_v20  ;;  %v1785_v31 = vpack.c.bf16 %v1381_v24, %v1379_v21  ;;  %1939 = vmatpush1.bf16.msra.mxu0 %v1753_v50  ;;  %v8530_v27 = vpack.i.bf16 %v8510_v14, %v8504_v33  ;;  %v6034_v13 = vunpack.i.h.bf16 %v8492_v51 }
 0x435   : > { %v8532_v12 = vpack.i.bf16 %v1184_v57, %v1181_v1  ;;  %v6029_v17 = vunpack.i.h.bf16 %v8524_v2  ;;  %v6028_v15 = vunpack.i.l.bf16 %v8524_v2  ;;  %v6033_v30 = vunpack.i.l.bf16 %v8492_v51 }
 0x436   : > { %11494 = vst [vmem:[#allocation21_spill] sm:$0xff] %v8530_v27  ;;  %2011 = vmatprep.subr.bf16.mxu1 %v1786_v48  ;;  %v6044_v50 = vunpack.i.h.bf16 %v8522_v18  ;;  %v6043_v1 = vunpack.i.l.bf16 %v8522_v18 }
 0x437   : > { %11495 = vst [vmem:[#allocation22_spill] sm:$0xff] %v8532_v12  ;;  %2012 = vmatpush1.bf16.msra.mxu1 %v1785_v31  ;;  %6201 = vrot.lane.b32.xlu0 %v8530_v27, %s7805_s30  ;;  %v992_v3 = vsel %vm315_vm1, %v6028_v15, %v6029_v17  ;;  %v1135_v51 = vsel %vm11496_vm15, %v6033_v30, %v6034_v13  ;;  %vm11502_vm15 = vmmov %vm11497_vm3 }
 0x438   : > { %v6057_v28 = vpop.permute.xlu0 %6056  ;;  %v8536_v59 = vpop.permute.xlu1 %6036  ;;  %v994_v60 = vsel %vm315_vm1, %v6043_v1, %v6044_v50  ;;  %v8553_v10 = vsel %vm7908_vm7, %v1135_v51, %v992_v3 }
 0x439   : > { %v6059_v21 = vunpack.i.h.bf16 %v6057_v28  ;;  %v6058_v24 = vunpack.i.l.bf16 %v6057_v28  ;;  %v6039_v48 = vunpack.i.h.bf16 %v8536_v59  ;;  %v6038_v2 = vunpack.i.l.bf16 %v8536_v59 }
 0x43b   : > { %6211 = vrot.lane.b32.xlu0 %v8532_v12, %s7812_s14  ;;  %v1188_v12 = vsel %vm7896_vm4, %v992_v3, %v1135_v51  ;;  %v1138_v59 = vsel %vm11497_vm3, %v6058_v24, %v6059_v21  ;;  %v1384_v14 = vsel %vm383_vm12, %v6038_v2, %v6039_v48 }
 0x43c   : > { %v6067_v57 = vpop.permute.xlu0 %6066  ;;  %v6047_v20 = vpop.permute.xlu1 %6046 }
 0x43d   : > { %v6049_v31 = vunpack.i.h.bf16 %v6047_v20  ;;  %v6048_v45 = vunpack.i.l.bf16 %v6047_v20  ;;  %v6068_v33 = vunpack.i.l.bf16 %v6067_v57 }
 0x43f   : > { %v1052_v20 = vsel %vm11498_vm2, %v6044_v50, %v6049_v31  ;;  %v1051_v9 = vsel %vm11499_vm11, %v6029_v17, %v6048_v45  ;;  %v6069_v17 = vunpack.i.h.bf16 %v6067_v57  ;;  %vm11508_vm2 = vmmov %vm11497_vm3 }
 0x440   : > { %v6072_v18 = vpop.permute.xlu0 %6071  ;;  %v6052_v27 = vpop.permute.xlu1 %6051  ;;  %vm11509_vm11 = vmmov %vm11508_vm2 }
 0x441   : > { %v6074_v28 = vunpack.i.h.bf16 %v6072_v18  ;;  %v6073_v53 = vunpack.i.l.bf16 %v6072_v18  ;;  %v6054_v25 = vunpack.i.h.bf16 %v6052_v27  ;;  %v6053_v8 = vunpack.i.l.bf16 %v6052_v27 }
 0x443   : > { %v1137_v29 = vsel %vm11500_vm13, %v6054_v25, %v6058_v24  ;;  %v1136_v23 = vsel %vm11501_vm14, %v6034_v13, %v6053_v8  ;;  %v1386_v58 = vsel %vm383_vm12, %v6073_v53, %v6074_v28  ;;  %v1216_v8 = vsel %vm7924_vm9, %v1138_v59, %v1052_v20 }
 0x444   : > { %v8564_v3 = vpop.permute.xlu0 %6086  ;;  %v6062_v51 = vpop.permute.xlu1 %6061  ;;  %v1788_v18 = vpack.c.bf16 %v1386_v58, %v1384_v14  ;;  %v8568_v27 = vsel %vm7908_vm7, %v1137_v29, %v994_v60  ;;  %v1213_v50 = vsel %vm7924_vm9, %v1136_v23, %v1051_v9  ;;  %v1191_v45 = vsel %vm7896_vm4, %v994_v60, %v1137_v29 }
 0x445   : > { %v6064_v21 = vunpack.i.h.bf16 %v6062_v51  ;;  %v6063_v24 = vunpack.i.l.bf16 %v6062_v51  ;;  %v1171_v13 = vsel %vm11502_vm15, %v6068_v33, %v6033_v30  ;;  %v8578_v58 = vpack.i.bf16 %v1216_v8, %v8568_v27  ;;  %vm11512_vm15 = vmmov %vm11508_vm2 }
 0x446   : > { %2013 = vmatprep.subr.bf16.mxu1 %v1788_v18  ;;  %v8581_v14 = vpack.i.bf16 %v1213_v50, %v8553_v10  ;;  %v1756_v48 = vpack.c.bf16 %v1191_v45, %v1188_v12  ;;  %v1172_v31 = vsel %vm11497_vm3, %v6069_v17, %v6054_v25  ;;  %v1189_v57 = vsel %vm7900_vm5, %v1051_v9, %v1136_v23  ;;  %vm11513_vm3 = vmmov %vm11508_vm2 }
 0x447   : > { %11503 = vst [vmem:[#allocation23_spill] sm:$0xff] %v8578_v58  ;;  %v993_v29 = vsel %vm315_vm1, %v6064_v21, %v6043_v1  ;;  %v991_v60 = vsel %vm315_vm1, %v6063_v24, %v6028_v15  ;;  %6226 = vrot.lane.b32.xlu0 %v8578_v58, %s7805_s30  ;;  %v1192_v28 = vsel %vm7900_vm5, %v1052_v20, %v1138_v59  ;;  %vm11510_vm13 = vcmask 252928  }
 0x448   : > { %11504 = vst [vmem:[#allocation24_spill] sm:$0xff] %v8581_v14  ;;  %6216 = vrot.lane.b32.xlu1 %v8581_v14, %s7805_s30  ;;  %v8592_v33 = vpop.permute.xlu0 %6091  ;;  %v6077_v30 = vpop.permute.xlu1 %6076  ;;  %v1187_v25 = vsel %vm7904_vm6, %v991_v60, %v1171_v13  ;;  %v1190_v15 = vsel %vm7904_vm6, %v993_v29, %v1172_v31  ;;  %1940 = vmatprep.subr.bf16.mxu0 %v1756_v48  ;;  %vm11511_vm14 = vmmov %vm11510_vm13 }
 0x449   : > { %v6079_v9 = vunpack.i.h.bf16 %v6077_v30  ;;  %v6078_v23 = vunpack.i.l.bf16 %v6077_v30  ;;  %v8600_v1 = vpack.i.bf16 %v1192_v28, %v1191_v45  ;;  %v8602_v51 = vpack.i.bf16 %v1189_v57, %v1188_v12 }
 0x44a   : > { %v1755_v18 = vpack.c.bf16 %v1190_v15, %v1187_v25  ;;  %v8606_v50 = vsel %vm7916_vm8, %v1171_v13, %v991_v60  ;;  %v8610_v59 = vsel %vm7916_vm8, %v1172_v31, %v993_v29  ;;  %v8622_v8 = vpack.i.bf16 %v1190_v15, %v1187_v25 }
 0x44b   : > { %11505 = vst [vmem:[#allocation25_spill] sm:$0xff] %v8600_v1  ;;  %v1383_v20 = vsel %vm383_vm12, %v6078_v23, %v6038_v2  ;;  %v1385_v17 = vsel %vm383_vm12, %v6079_v9, %v6073_v53  ;;  %6236 = vrot.lane.b32.xlu0 %v8600_v1, %s7812_s14  ;;  %v8620_v24 = vpack.i.bf16 %v8610_v59, %v8606_v50  ;;  %v6089_v2 = vunpack.i.h.bf16 %v8564_v3 }
 0x44c   : > { %6221 = vrot.lane.b32.xlu1 %v8602_v51, %s7812_s14  ;;  %v6097_v12 = vpop.permute.xlu0 %6096  ;;  %v6082_v45 = vpop.permute.xlu1 %6081  ;;  %v1787_v21 = vpack.c.bf16 %v1385_v17, %v1383_v20  ;;  %1941 = vmatpush1.bf16.msra.mxu0 %v1755_v18  ;;  %11507 = vst [vmem:[#allocation27_spill] sm:$0xff] %v8622_v8  ;;  %v6088_v53 = vunpack.i.l.bf16 %v8564_v3 }
 0x44d   : > { %11506 = vst [vmem:[#allocation26_spill] sm:$0xff] %v8620_v24  ;;  %v6099_v31 = vunpack.i.h.bf16 %v6097_v12  ;;  %v6084_v29 = vunpack.i.h.bf16 %v6082_v45  ;;  %v6083_v60 = vunpack.i.l.bf16 %v6082_v45  ;;  %v6098_v57 = vunpack.i.l.bf16 %v6097_v12 }
 0x44e   : > { %2014 = vmatpush1.bf16.msra.mxu1 %v1787_v21  ;;  %v1139_v3 = vsel %vm11508_vm2, %v6088_v53, %v6089_v2 }
 0x44f   : > { %v996_v18 = vsel %vm315_vm1, %v6083_v60, %v6084_v29  ;;  %v998_v21 = vsel %vm315_vm1, %v6098_v57, %v6099_v31 }
 0x450   : > { %6231 = vrot.lane.b32.xlu1 %v8620_v24, %s7805_s30  ;;  %v6112_v13 = vpop.permute.xlu0 %6111  ;;  %v6102_v48 = vpop.permute.xlu1 %6101 }
 0x451   : > { %v6114_v30 = vunpack.i.h.bf16 %v6112_v13  ;;  %v6113_v28 = vunpack.i.l.bf16 %v6112_v13  ;;  %v6104_v9 = vunpack.i.h.bf16 %v6102_v48  ;;  %v6103_v23 = vunpack.i.l.bf16 %v6102_v48 }
 0x453   : > { %v8634_v45 = vsel %vm11509_vm11, %v6113_v28, %v6114_v30  ;;  %v8637_v12 = vsel %vm11510_vm13, %v6099_v31, %v6104_v9  ;;  %v1053_v48 = vsel %vm11511_vm14, %v6084_v29, %v6103_v23  ;;  %v1194_v23 = vsel %vm7896_vm4, %v996_v18, %v1139_v3  ;;  %vm11515_vm11 = vmmov %vm11508_vm2 }
 0x454   : > { %6241 = vrot.lane.b32.xlu1 %v8622_v8, %s7812_s14  ;;  %v6127_v25 = vpop.permute.xlu0 %6126  ;;  %v6107_v15 = vpop.permute.xlu1 %6106  ;;  %vm1923_vm13 = vcmask 523264   ;;  %vm11565_vm14 = vmmov %vm11508_vm2 }
 0x455   : > { %v6109_v20 = vunpack.i.h.bf16 %v6107_v15  ;;  %v6108_v17 = vunpack.i.l.bf16 %v6107_v15  ;;  %v6128_v13 = vunpack.i.l.bf16 %v6127_v25  ;;  %v6129_v24 = vunpack.i.h.bf16 %v6127_v25 }
 0x456   : > { %v8646_v15 = vsel %vm7908_vm7, %v1139_v3, %v996_v18 }
 0x457   : > { %v1141_v58 = vsel %vm11512_vm15, %v6109_v20, %v6113_v28  ;;  %v1140_v8 = vsel %vm11513_vm3, %v6089_v2, %v6108_v17  ;;  %v1222_v2 = vsel %vm7924_vm9, %v8634_v45, %v8637_v12  ;;  %v1173_v25 = vsel %vm11508_vm2, %v6128_v13, %v6088_v53  ;;  %vm11566_vm15 = vmmov %vm11508_vm2 }
 0x458   : > { %v8642_v1 = vpop.permute.xlu0 %6131  ;;  %v6117_v14 = vpop.permute.xlu1 %6116  ;;  %v1219_v30 = vsel %vm7924_vm9, %v1140_v8, %v1053_v48  ;;  %v8652_v31 = vsel %vm7908_vm7, %v1141_v58, %v998_v21  ;;  %v1197_v29 = vsel %vm7896_vm4, %v998_v21, %v1141_v58  ;;  %v1174_v58 = vsel %vm11515_vm11, %v6129_v24, %v6109_v20 }
 0x459   : > { %11514 = vst [vmem:[#allocation28_spill] sm:$0xff] %v8642_v1  ;;  %v6119_v28 = vunpack.i.h.bf16 %v6117_v14  ;;  %v6118_v9 = vunpack.i.l.bf16 %v6117_v14  ;;  %v8664_v17 = vpack.i.bf16 %v1219_v30, %v8646_v15  ;;  %v8667_v38 = vpack.i.bf16 %v1222_v2, %v8652_v31 }
 0x45a   : > { %v1758_v1 = vpack.c.bf16 %v1197_v29, %v1194_v23  ;;  %v1195_v47 = vsel %vm7900_vm5, %v1053_v48, %v1140_v8  ;;  %vm11567_vm3 = vcmask 252928  }
 0x45b   : > { %v997_v14 = vsel %vm315_vm1, %v6119_v28, %v6098_v57  ;;  %v995_v21 = vsel %vm315_vm1, %v6118_v9, %v6083_v60  ;;  %6246 = vrot.lane.b32.xlu0 %v8664_v17, %s7805_s30  ;;  %6256 = vrot.lane.b32.xlu1 %v8667_v38, %s7805_s30  ;;  %v8690_v60 = vpack.i.bf16 %v1195_v47, %v1194_v23  ;;  %v6094_v28 = vunpack.i.h.bf16 %v8592_v33  ;;  %vm11568_vm2 = vmmov %vm11567_vm3 }
 0x45c   : > { %v8678_v53 = vpop.permute.xlu0 %6141  ;;  %v8680_v3 = vpop.permute.xlu1 %6121  ;;  %v1193_v24 = vsel %vm7904_vm6, %v995_v21, %v1173_v25  ;;  %v1196_v57 = vsel %vm7904_vm6, %v997_v14, %v1174_v58  ;;  %1942 = vmatprep.subr.bf16.mxu0 %v1758_v1  ;;  %v8688_v8 = vsel %vm7916_vm8, %v1173_v25, %v995_v21  ;;  %v1220_v20 = vsel %vm7916_vm8, %v1174_v58, %v997_v14 }
 0x45d   : > { %v1757_v18 = vpack.c.bf16 %v1196_v57, %v1193_v24  ;;  %v8700_v1 = vpack.i.bf16 %v1196_v57, %v1193_v24  ;;  %v8703_v30 = vpack.i.bf16 %v1220_v20, %v8688_v8  ;;  %v11516_v47 = vpack.c.bf16 %v8155_v42, %v8144_v61  ;;  %v11539_v57 = vld [vmem:[#allocation17_spill] sm:$0xff] }
 0x45e   : > { %v6093_v9 = vunpack.i.l.bf16 %v8592_v33  ;;  %v11517_v25 = vpack.c.bf16 %v8164_v16, %v8147_v0  ;;  %v11518_v42 = vpack.c.bf16 %v8189_v40, %v8195_v41  ;;  %v11519_v40 = vpack.c.bf16 %v8198_v44, %v8206_v49 }
 0x45f   : > { %6251 = vrot.lane.b32.xlu0 %v8690_v60, %s7812_s14  ;;  %6261 = vrot.lane.b32.xlu1 %v8210_v63, %s7812_s14  ;;  %v1198_v41 = vsel %vm7900_vm5, %v8637_v12, %v8634_v45  ;;  %v11520_v21 = vpack.c.bf16 %v8237_v11, %v8233_v7  ;;  %v11521_v44 = vpack.c.bf16 %v8227_v6, %v8240_v39  ;;  %v11525_v6 = vld [vmem:[#allocation8_spill] sm:$0xff]  ;;  %v11526_v39 = vld [vmem:[#allocation10_spill] sm:$0xff]  ;;  %v11536_v45 = vld [vmem:[#allocation7_spill] sm:$0xff] }
 0x460   : > { %v6152_v13 = vpop.permute.xlu0 %6151  ;;  %v8698_v48 = vpop.permute.xlu1 %6136  ;;  %1943 = vmatpush1.bf16.msra.mxu0 %v1757_v18  ;;  %v1388_v33 = vsel %vm383_vm12, %v6093_v9, %v6094_v28  ;;  %v8738_v24 = vpack.i.bf16 %v1198_v41, %v1197_v29  ;;  %v11522_v49 = vpack.c.bf16 %v8262_v56, %v8269_v52  ;;  %v11523_v7 = vpack.c.bf16 %v8266_v46, %v8276_v62  ;;  %v11529_v56 = vld [vmem:[#allocation14_spill] sm:$0xff]  ;;  %v11530_v52 = vld [vmem:[#allocation13_spill] sm:$0xff]  ;;  %v11537_v12 = vld [vmem:[#allocation12_spill] sm:$0xff] }
 0x461   : > { %1944 = vmatprep.subr.bf16.mxu0 %v11516_v47  ;;  %v6153_v2 = vunpack.i.l.bf16 %v6152_v13  ;;  %v6154_v23 = vunpack.i.h.bf16 %v6152_v13  ;;  %v11524_v11 = vpack.c.bf16 %v8384_v26, %v8369_v5  ;;  %v11532_v46 = vld [vmem:[#allocation6_spill] sm:$0xff]  ;;  %v1772_v62 = vpack.c.bf16 %v8568_v27, %v8553_v10  ;;  %v11538_v27 = vld [vmem:[#allocation5_spill] sm:$0xff]  ;;  %v11544_v18 = vld [vmem:[#allocation16_spill] sm:$0xff] }
 0x462   : > { %v1771_v26 = vpack.c.bf16 %v8610_v59, %v8606_v50  ;;  %v1774_v29 = vpack.c.bf16 %v8652_v31, %v8646_v15  ;;  %v1773_v10 = vpack.c.bf16 %v1220_v20, %v8688_v8  ;;  %v7643_v50 = vld [vmem:[%s11352_s2 + $0xc] ss:$20 sps:$4 sm:$0xff]  }
 0x463   : > { %6266 = vrot.lane.b32.xlu0 %v8217_v55, %s7812_s14  ;;  %6271 = vrot.lane.b32.xlu1 %v8243_v36, %s7812_s14  ;;  %v1387_v55 = vsel %vm383_vm12, %v6153_v2, %v6093_v9  ;;  %v11540_v59 = vld [vmem:[#allocation11_spill] sm:$0xff]  ;;  %v11543_v8 = vld [vmem:[#allocation22_spill] sm:$0xff] }
 0x464   : > { %v6147_v63 = vpop.permute.xlu1 %6146  ;;  %1945 = vmatpush1.bf16.msra.mxu0 %v11517_v25  ;;  %2041 = vmatprep.mubr.bf16.mxu1 %v7643_v50  ;;  %v11541_v15 = vld [vmem:[#allocation15_spill] sm:$0xff] }
 0x465   : > { %v6149_v58 = vunpack.i.h.bf16 %v6147_v63  ;;  %v6148_v61 = vunpack.i.l.bf16 %v6147_v63  ;;  %1946 = vmatprep.subr.bf16.mxu0 %v11518_v42  ;;  %v11542_v31 = vld [vmem:[#allocation19_spill] sm:$0xff]  ;;  %v11545_v63 = vld [vmem:[#allocation21_spill] sm:$0xff] }
 0x467   : > { %v1390_v14 = vsel %vm383_vm12, %v6148_v61, %v6149_v58  ;;  %v1389_v36 = vsel %vm383_vm12, %v6154_v23, %v6148_v61  ;;  %6276 = vrot.lane.b32.xlu0 %v8703_v30, %s7805_s30  ;;  %6286 = vrot.lane.b32.xlu1 %v8247_v19, %s7812_s14  ;;  %v11527_v19 = vld [vmem:[#allocation9_spill] sm:$0xff]  ;;  %v11546_v23 = vld [vmem:[#allocation24_spill] sm:$0xff] }
 0x468   : > { %v1790_v0 = vpack.c.bf16 %v1390_v14, %v1388_v33  ;;  %v1789_v16 = vpack.c.bf16 %v1389_v36, %v1387_v55  ;;  %1947 = vmatpush1.bf16.msra.mxu0 %v11519_v40  ;;  %v11548_v33 = vld [vmem:[#allocation27_spill] sm:$0xff] }
 0x469   : > { %1948 = vmatprep.subr.bf16.mxu0 %v11520_v21  ;;  %v11550_v21 = vld [vmem:[#allocation26_spill] sm:$0xff] }
 0x46a   : > { %2015 = vmatprep.subr.bf16.mxu1 %v1790_v0  ;;  %v11549_v0 = vld [vmem:[#allocation23_spill] sm:$0xff] }
 0x46b   : > { %2016 = vmatpush1.bf16.msra.mxu1 %v1789_v16  ;;  %6281 = vrot.lane.b32.xlu0 %v8256_v22, %s7812_s14  ;;  %v11528_v22 = vpack.c.bf16 %v11526_v39, %v11527_v19 }
 0x46c   : > { %6296 = vrot.lane.b32.xlu1 %v8738_v24, %s7812_s14  ;;  %1949 = vmatpush1.bf16.msra.mxu0 %v11521_v44 }
 0x46d   : > { %1950 = vmatprep.subr.bf16.mxu0 %v11522_v49 }
 0x46f   : > { %6291 = vrot.lane.b32.xlu0 %v8281_v54, %s7812_s14  ;;  %v11531_v54 = vpack.c.bf16 %v11529_v56, %v11530_v52 }
 0x470   : > { %6301 = vrot.lane.b32.xlu1 %v8284_v32, %s7812_s14  ;;  %1951 = vmatpush1.bf16.msra.mxu0 %v11523_v7  ;;  %v11533_v32 = vld [vmem:[#allocation20_spill] sm:$0xff] }
 0x471   : > { %1952 = vmatprep.subr.bf16.mxu0 %v11524_v11 }
 0x473   : > { %6306 = vrot.lane.b32.xlu0 %v8290_v4, %s7812_s14  ;;  %v11534_v4 = vld [vmem:[#allocation18_spill] sm:$0xff] }
 0x474   : > { %6311 = vrot.lane.b32.xlu1 %v11525_v6, %s7805_s30  ;;  %1953 = vmatpush1.bf16.msra.mxu0 %v11528_v22  ;;  %v11535_v5 = vpack.c.bf16 %v11533_v32, %v11534_v4 }
 0x475   : > { %1954 = vmatprep.subr.bf16.mxu0 %v11531_v54 }
 0x477   : > { %6316 = vrot.lane.b32.xlu0 %v8700_v1, %s7812_s14 }
 0x478   : > { %6326 = vrot.lane.b32.xlu1 %v11532_v46, %s7812_s14  ;;  %1955 = vmatpush1.bf16.msra.mxu0 %v11535_v5 }
 0x479   : > { %1956 = vmatprep.subr.bf16.mxu0 %v1772_v62 }
 0x47b   : > { %6321 = vrot.lane.b32.xlu0 %v11536_v45, %s7805_s30 }
 0x47c   : > { %6336 = vrot.lane.b32.xlu1 %v11537_v12, %s7805_s30  ;;  %1957 = vmatpush1.bf16.msra.mxu0 %v1771_v26 }
 0x47d   : > { %1958 = vmatprep.subr.bf16.mxu0 %v1774_v29 }
 0x47f   : > { %6331 = vrot.lane.b32.xlu0 %v11538_v27, %s7812_s14 }
 0x480   : > { %6346 = vrot.lane.b32.xlu1 %v11539_v57, %s7805_s30  ;;  %1959 = vmatpush1.bf16.msra.mxu0 %v1773_v10 }
 0x483   : > { %6341 = vrot.lane.b32.xlu0 %v11540_v59, %s7812_s14 }
 0x484   : > { %6356 = vrot.lane.b32.xlu1 %v11541_v15, %s7812_s14 }
 0x487   : > { %6351 = vrot.lane.b32.xlu0 %v11542_v31, %s7805_s30 }
 0x488   : > { %6366 = vrot.lane.b32.xlu1 %v11543_v8, %s7805_s30 }
 0x48b   : > { %6361 = vrot.lane.b32.xlu0 %v11544_v18, %s7812_s14 }
 0x48c   : > { %6376 = vrot.lane.b32.xlu1 %v8602_v51, %s7805_s30  ;;  %v11547_v51 = vld [vmem:[#allocation25_spill] sm:$0xff] }
 0x48d   : > { %v6167_v20 = vpop.permute.xlu0 %6166 }
 0x48e   : > { %v6157_v13 = vpop.permute.xlu1 %6156  ;;  %v6169_v47 = vunpack.i.h.bf16 %v6167_v20  ;;  %v6168_v28 = vunpack.i.l.bf16 %v6167_v20 }
 0x48f   : > { %v6159_v9 = vunpack.i.h.bf16 %v6157_v13  ;;  %v6158_v2 = vunpack.i.l.bf16 %v6157_v13  ;;  %6371 = vrot.lane.b32.xlu0 %v11545_v63, %s7812_s14 }
 0x490   : > { %6386 = vrot.lane.b32.xlu1 %v11546_v23, %s7812_s14  ;;  %v1482_v58 = vsel %vm383_vm12, %v6168_v28, %v6169_v47 }
 0x491   : > { %v1480_v25 = vsel %vm383_vm12, %v6158_v2, %v6159_v9  ;;  %v8829_v44 = vpop.permute.xlu0 %6176 }
 0x492   : > { %v8813_v61 = vpop.permute.xlu1 %6161  ;;  %v1792_v42 = vpack.c.bf16 %v1482_v58, %v1480_v25 }
 0x493   : > { %6381 = vrot.lane.b32.xlu0 %v11547_v51, %s7805_s30 }
 0x494   : > { %2017 = vmatprep.subr.bf16.mxu1 %v1792_v42  ;;  %6396 = vrot.lane.b32.xlu1 %v11548_v33, %s7805_s30 }
 0x496   : > { %v6172_v14 = vpop.permute.xlu1 %6171 }
 0x497   : > { %v6174_v55 = vunpack.i.h.bf16 %v6172_v14  ;;  %v6173_v36 = vunpack.i.l.bf16 %v6172_v14  ;;  %6391 = vrot.lane.b32.xlu0 %v11549_v0, %s7812_s14  ;;  %v6178_v0 = vunpack.i.l.bf16 %v8829_v44 }
 0x498   : > { %6406 = vrot.lane.b32.xlu1 %v8690_v60, %s7805_s30  ;;  %v7655_v60 = vld [vmem:[%s11352_s2 + $0x4] ss:$20 sps:$4 sm:$0xff]  }
 0x499   : > { %v1479_v16 = vsel %vm383_vm12, %v6173_v36, %v6158_v2  ;;  %v1481_v40 = vsel %vm383_vm12, %v6174_v55, %v6168_v28  ;;  %1968 = vmatprep.mubr.bf16.mxu0 %v7655_v60  ;;  %v6179_v36 = vunpack.i.h.bf16 %v8829_v44 }
 0x49a   : > { %v1791_v41 = vpack.c.bf16 %v1481_v40, %v1479_v16  ;;  %v8831_v49 = vpop.permute.xlu1 %6181  ;;  %v6164_v16 = vunpack.i.h.bf16 %v8813_v61  ;;  %v6163_v40 = vunpack.i.l.bf16 %v8813_v61 }
 0x49b   : > { %6401 = vrot.lane.b32.xlu0 %v11550_v21, %s7812_s14 }
 0x49c   : > { %2018 = vmatpush1.bf16.msra.mxu1 %v1791_v41  ;;  %6411 = vrot.lane.b32.xlu1 %v8664_v17, %s7812_s14  ;;  %v1560_v60 = vsel %vm424_vm10, %v6163_v40, %v6164_v16 }
 0x49f   : > { %6416 = vrot.lane.b32.xlu0 %v8738_v24, %s7805_s30 }
 0x4a0   : > { %6426 = vrot.lane.b32.xlu1 %v8700_v1, %s7805_s30 }
 0x4a1   : > { %v6187_v7 = vpop.permute.xlu0 %6186  ;;  %v6197_v11 = vpop.permute.xlu1 %6196 }
 0x4a2   : > { %v6189_v6 = vunpack.i.h.bf16 %v6187_v7  ;;  %v6188_v39 = vunpack.i.l.bf16 %v6187_v7  ;;  %v6199_v17 = vunpack.i.h.bf16 %v6197_v11  ;;  %v6198_v19 = vunpack.i.l.bf16 %v6197_v11 }
 0x4a3   : > { %6421 = vrot.lane.b32.xlu0 %v8667_v38, %s7812_s14  ;;  %v1562_v7 = vsel %vm424_vm10, %v6178_v0, %v6179_v36  ;;  %v6184_v11 = vunpack.i.h.bf16 %v8831_v49 }
 0x4a4   : > { %v1484_v22 = vsel %vm383_vm12, %v6188_v39, %v6189_v6  ;;  %v1486_v56 = vsel %vm383_vm12, %v6198_v19, %v6199_v17  ;;  %v6183_v6 = vunpack.i.l.bf16 %v8831_v49 }
 0x4a5   : > { %v8844_v52 = vpop.permute.xlu0 %6191  ;;  %v1794_v24 = vpack.c.bf16 %v1486_v56, %v1484_v22 }
 0x4a6   : > { %v8850_v38 = vpop.permute.xlu1 %6206  ;;  %v6193_v44 = vunpack.i.l.bf16 %v8844_v52 }
 0x4a7   : > { %6431 = vrot.lane.b32.xlu0 %v8703_v30, %s7812_s14  ;;  %2019 = vmatprep.subr.bf16.mxu1 %v1794_v24  ;;  %v6209_v61 = vunpack.i.h.bf16 %v8850_v38  ;;  %v6208_v22 = vunpack.i.l.bf16 %v8850_v38 }
 0x4a9   : > { %v6202_v1 = vpop.permute.xlu0 %6201 }
 0x4aa   : > { %v6204_v54 = vunpack.i.h.bf16 %v6202_v1  ;;  %v6203_v46 = vunpack.i.l.bf16 %v6202_v1 }
 0x4ac   : > { %v1483_v62 = vsel %vm383_vm12, %v6203_v46, %v6188_v39  ;;  %v1485_v32 = vsel %vm383_vm12, %v6204_v54, %v6198_v19  ;;  %v6194_v39 = vunpack.i.h.bf16 %v8844_v52  ;;  %v1559_v52 = vsel %vm424_vm10, %v6183_v6, %v6163_v40 }
 0x4ad   : > { %v1793_v4 = vpack.c.bf16 %v1485_v32, %v1483_v62  ;;  %v8852_v5 = vpop.permute.xlu0 %6211  ;;  %v1800_v32 = vpack.c.bf16 %v1562_v7, %v1560_v60  ;;  %v6143_v60 = vunpack.i.l.bf16 %v8678_v53 }
 0x4ae   : > { %v6213_v38 = vunpack.i.l.bf16 %v8852_v5 }
 0x4af   : > { %2020 = vmatpush1.bf16.msra.mxu1 %v1793_v4  ;;  %v1561_v4 = vsel %vm424_vm10, %v6184_v11, %v6178_v0 }
 0x4b9   : > { %v6227_v26 = vpop.permute.xlu0 %6226 }
 0x4ba   : > { %v6217_v45 = vpop.permute.xlu1 %6216  ;;  %v6229_v12 = vunpack.i.h.bf16 %v6227_v26  ;;  %v6228_v29 = vunpack.i.l.bf16 %v6227_v26  ;;  %v6214_v26 = vunpack.i.h.bf16 %v8852_v5 }
 0x4bb   : > { %v6219_v10 = vunpack.i.h.bf16 %v6217_v45  ;;  %v6218_v30 = vunpack.i.l.bf16 %v6217_v45  ;;  %v1564_v45 = vsel %vm424_vm10, %v6193_v44, %v6194_v39 }
 0x4bc   : > { %v1490_v57 = vsel %vm383_vm12, %v6228_v29, %v6229_v12  ;;  %v1566_v12 = vsel %vm424_vm10, %v6208_v22, %v6209_v61 }
 0x4bd   : > { %v1488_v27 = vsel %vm383_vm12, %v6218_v30, %v6219_v10  ;;  %v8860_v47 = vpop.permute.xlu0 %6236 }
 0x4be   : > { %v8856_v50 = vpop.permute.xlu1 %6221  ;;  %v1796_v59 = vpack.c.bf16 %v1490_v57, %v1488_v27  ;;  %v6238_v10 = vunpack.i.l.bf16 %v8860_v47  ;;  %v11551_v57 = vld [vmem:[#allocation28_spill] sm:$0xff] }
 0x4bf   : > { %v6223_v27 = vunpack.i.l.bf16 %v8856_v50 }
 0x4c0   : > { %2021 = vmatprep.subr.bf16.mxu1 %v1796_v59  ;;  %v6134_v59 = vunpack.i.h.bf16 %v11551_v57 }
 0x4c2   : > { %v6232_v15 = vpop.permute.xlu1 %6231 }
 0x4c3   : > { %v6234_v31 = vunpack.i.h.bf16 %v6232_v15  ;;  %v6233_v8 = vunpack.i.l.bf16 %v6232_v15  ;;  %v6133_v15 = vunpack.i.l.bf16 %v11551_v57 }
 0x4c5   : > { %v1487_v18 = vsel %vm383_vm12, %v6233_v8, %v6218_v30  ;;  %v1489_v20 = vsel %vm383_vm12, %v6234_v31, %v6228_v29  ;;  %v6239_v29 = vunpack.i.h.bf16 %v8860_v47  ;;  %v6224_v30 = vunpack.i.h.bf16 %v8856_v50 }
 0x4c6   : > { %v1795_v13 = vpack.c.bf16 %v1489_v20, %v1487_v18  ;;  %v8862_v28 = vpop.permute.xlu1 %6241  ;;  %v1799_v8 = vpack.c.bf16 %v1561_v4, %v1559_v52  ;;  %v1802_v18 = vpack.c.bf16 %v1566_v12, %v1564_v45  ;;  %v1563_v47 = vsel %vm424_vm10, %v6213_v38, %v6193_v44 }
 0x4c7   : > { %v6244_v20 = vunpack.i.h.bf16 %v8862_v28  ;;  %v1565_v50 = vsel %vm424_vm10, %v6214_v26, %v6208_v22  ;;  %v1642_v44 = vsel %vm424_vm10, %v6133_v15, %v6134_v59 }
 0x4c8   : > { %2022 = vmatpush1.bf16.msra.mxu1 %v1795_v13  ;;  %v6243_v13 = vunpack.i.l.bf16 %v8862_v28  ;;  %v6138_v28 = vunpack.i.l.bf16 %v8698_v48  ;;  %v1801_v40 = vpack.c.bf16 %v1565_v50, %v1563_v47 }
 0x4c9   : > { %v1569_v11 = vsel %vm424_vm10, %v6244_v20, %v6238_v10 }
 0x4cd   : > { %v6247_v9 = vpop.permute.xlu0 %6246  ;;  %v6257_v2 = vpop.permute.xlu1 %6256 }
 0x4ce   : > { %v6249_v63 = vunpack.i.h.bf16 %v6247_v9  ;;  %v6248_v23 = vunpack.i.l.bf16 %v6247_v9  ;;  %v6259_v25 = vunpack.i.h.bf16 %v6257_v2  ;;  %v6258_v58 = vunpack.i.l.bf16 %v6257_v2 }
 0x4d0   : > { %v1492_v42 = vsel %vm383_vm12, %v6248_v23, %v6249_v63  ;;  %v1494_v51 = vsel %vm383_vm12, %v6258_v58, %v6259_v25  ;;  %v1568_v63 = vsel %vm424_vm10, %v6223_v27, %v6224_v30  ;;  %v6124_v25 = vunpack.i.h.bf16 %v8680_v3 }
 0x4d1   : > { %v8866_v33 = vpop.permute.xlu0 %6251  ;;  %v8868_v14 = vpop.permute.xlu1 %6261  ;;  %v1798_v55 = vpack.c.bf16 %v1494_v51, %v1492_v42  ;;  %v6139_v42 = vunpack.i.h.bf16 %v8698_v48  ;;  %v6144_v51 = vunpack.i.h.bf16 %v8678_v53 }
 0x4d2   : > { %v6253_v36 = vunpack.i.l.bf16 %v8866_v33  ;;  %v6264_v48 = vunpack.i.h.bf16 %v8868_v14  ;;  %v6263_v6 = vunpack.i.l.bf16 %v8868_v14 }
 0x4d3   : > { %2023 = vmatprep.subr.bf16.mxu1 %v1798_v55  ;;  %v6254_v55 = vunpack.i.h.bf16 %v8866_v33  ;;  %v1641_v53 = vsel %vm424_vm10, %v6139_v42, %v6133_v15 }
 0x4d4   : > { %v1646_v38 = vsel %vm424_vm10, %v6263_v6, %v6264_v48 }
 0x4d5   : > { %v8874_v41 = vpop.permute.xlu0 %6266  ;;  %v8876_v21 = vpop.permute.xlu1 %6271 }
 0x4d6   : > { %v6269_v61 = vunpack.i.h.bf16 %v8874_v41  ;;  %v6268_v22 = vunpack.i.l.bf16 %v8874_v41  ;;  %v6274_v52 = vunpack.i.h.bf16 %v8876_v21 }
 0x4d8   : > { %v1643_v59 = vsel %vm424_vm10, %v6268_v22, %v6143_v60  ;;  %v1645_v15 = vsel %vm424_vm10, %v6269_v61, %v6263_v6 }
 0x4d9   : > { %v6277_v17 = vpop.permute.xlu0 %6276  ;;  %v8884_v19 = vpop.permute.xlu1 %6286 }
 0x4da   : > { %v6279_v56 = vunpack.i.h.bf16 %v6277_v17  ;;  %v6278_v24 = vunpack.i.l.bf16 %v6277_v17 }
 0x4dc   : > { %v1491_v1 = vsel %vm383_vm12, %v6278_v24, %v6248_v23  ;;  %v1493_v54 = vsel %vm383_vm12, %v6279_v56, %v6258_v58  ;;  %v1570_v23 = vsel %vm424_vm10, %v6238_v10, %v6239_v29  ;;  %v6123_v58 = vunpack.i.l.bf16 %v8680_v3 }
 0x4dd   : > { %v8890_v46 = vpop.permute.xlu0 %6281  ;;  %v1797_v62 = vpack.c.bf16 %v1493_v54, %v1491_v1  ;;  %v1804_v7 = vpack.c.bf16 %v1570_v23, %v1568_v63  ;;  %v1567_v3 = vsel %vm424_vm10, %v6243_v13, %v6223_v27  ;;  %v1572_v1 = vsel %vm424_vm10, %v6253_v36, %v6254_v55 }
 0x4de   : > { %v8892_v49 = vpop.permute.xlu1 %6296  ;;  %v1640_v33 = vsel %vm424_vm10, %v6123_v58, %v6124_v25  ;;  %v1639_v17 = vsel %vm424_vm10, %v6138_v28, %v6123_v58  ;;  %v1803_v14 = vpack.c.bf16 %v1569_v11, %v1567_v3  ;;  %v6273_v10 = vunpack.i.l.bf16 %v8876_v21 }
 0x4df   : > { %2024 = vmatpush1.bf16.msra.mxu1 %v1797_v62  ;;  %v6299_v9 = vunpack.i.h.bf16 %v8892_v49  ;;  %v6298_v2 = vunpack.i.l.bf16 %v8892_v49  ;;  %v1808_v4 = vpack.c.bf16 %v1642_v44, %v1640_v33  ;;  %v1807_v26 = vpack.c.bf16 %v1641_v53, %v1639_v17 }
 0x4e0   : > { %2025 = vmatprep.subr.bf16.mxu1 %v1800_v32  ;;  %v1644_v32 = vsel %vm424_vm10, %v6143_v60, %v6144_v51  ;;  %v6284_v47 = vunpack.i.h.bf16 %v8890_v46  ;;  %v6283_v50 = vunpack.i.l.bf16 %v8890_v46 }
 0x4e1   : > { %v8906_v31 = vpop.permute.xlu0 %6291  ;;  %v1574_v39 = vsel %vm424_vm10, %v6298_v2, %v6299_v9 }
 0x4e2   : > { %v8908_v5 = vpop.permute.xlu1 %6301  ;;  %v1806_v62 = vpack.c.bf16 %v1574_v39, %v1572_v1  ;;  %v6294_v9 = vunpack.i.h.bf16 %v8906_v31  ;;  %v1650_v60 = vsel %vm424_vm10, %v6283_v50, %v6284_v47 }
 0x4e3   : > { %2026 = vmatpush1.bf16.msra.mxu1 %v1799_v8  ;;  %v6304_v58 = vunpack.i.h.bf16 %v8908_v5  ;;  %v6303_v42 = vunpack.i.l.bf16 %v8908_v5  ;;  %v1809_v5 = vpack.c.bf16 %v1645_v15, %v1643_v59 }
 0x4e4   : > { %2027 = vmatprep.subr.bf16.mxu1 %v1802_v18 }
 0x4e5   : > { %v8925_v0 = vpop.permute.xlu0 %6306  ;;  %v1654_v44 = vsel %vm424_vm10, %v6303_v42, %v6304_v58 }
 0x4e6   : > { %v6312_v16 = vpop.permute.xlu1 %6311  ;;  %v6309_v48 = vunpack.i.h.bf16 %v8925_v0 }
 0x4e7   : > { %2028 = vmatpush1.bf16.msra.mxu1 %v1801_v40  ;;  %v6314_v45 = vunpack.i.h.bf16 %v6312_v16  ;;  %v6313_v41 = vunpack.i.l.bf16 %v6312_v16  ;;  %v1810_v16 = vpack.c.bf16 %v1646_v38, %v1644_v32  ;;  %v1648_v40 = vsel %vm424_vm10, %v6273_v10, %v6274_v52 }
 0x4e8   : > { %2029 = vmatprep.subr.bf16.mxu1 %v1804_v7  ;;  %v6308_v7 = vunpack.i.l.bf16 %v8925_v0  ;;  %v1812_v17 = vpack.c.bf16 %v1650_v60, %v1648_v40 }
 0x4e9   : > { %v6317_v56 = vpop.permute.xlu0 %6316  ;;  %v1296_v23 = vsel %vm383_vm12, %v6313_v41, %v6314_v45 }
 0x4ea   : > { %v8939_v24 = vpop.permute.xlu1 %6326  ;;  %v6319_v54 = vunpack.i.h.bf16 %v6317_v56  ;;  %v6318_v49 = vunpack.i.l.bf16 %v6317_v56 }
 0x4eb   : > { %2030 = vmatpush1.bf16.msra.mxu1 %v1803_v14  ;;  %v6329_v61 = vunpack.i.h.bf16 %v8939_v24  ;;  %v6328_v22 = vunpack.i.l.bf16 %v8939_v24 }
 0x4ec   : > { %2031 = vmatprep.subr.bf16.mxu1 %v1806_v62  ;;  %v1571_v12 = vsel %vm424_vm10, %v6318_v49, %v6253_v36  ;;  %v1573_v29 = vsel %vm424_vm10, %v6319_v54, %v6298_v2  ;;  %v6293_v2 = vunpack.i.l.bf16 %v8906_v31  ;;  %v6289_v31 = vunpack.i.h.bf16 %v8884_v19 }
 0x4ed   : > { %v6322_v30 = vpop.permute.xlu0 %6321  ;;  %v1805_v57 = vpack.c.bf16 %v1573_v29, %v1571_v12  ;;  %v6288_v36 = vunpack.i.l.bf16 %v8884_v19 }
 0x4ee   : > { %v6337_v27 = vpop.permute.xlu1 %6336  ;;  %v6324_v8 = vunpack.i.h.bf16 %v6322_v30  ;;  %v6323_v18 = vunpack.i.l.bf16 %v6322_v30  ;;  %v1649_v3 = vsel %vm424_vm10, %v6289_v31, %v6283_v50  ;;  %v1652_v11 = vsel %vm424_vm10, %v6293_v2, %v6294_v9 }
 0x4ef   : > { %v6339_v20 = vunpack.i.h.bf16 %v6337_v27  ;;  %v6338_v13 = vunpack.i.l.bf16 %v6337_v27  ;;  %2032 = vmatpush1.bf16.msra.mxu1 %v1805_v57  ;;  %v1647_v53 = vsel %vm424_vm10, %v6288_v36, %v6273_v10  ;;  %v1814_v0 = vpack.c.bf16 %v1654_v44, %v1652_v11 }
 0x4f0   : > { %2033 = vmatprep.subr.bf16.mxu1 %v1808_v4  ;;  %v1298_v25 = vsel %vm383_vm12, %v6323_v18, %v6324_v8  ;;  %v1811_v1 = vpack.c.bf16 %v1649_v3, %v1647_v53  ;;  %v1651_v54 = vsel %vm424_vm10, %v6308_v7, %v6293_v2  ;;  %v1653_v4 = vsel %vm424_vm10, %v6309_v48, %v6303_v42 }
 0x4f1   : > { %v1297_v21 = vsel %vm383_vm12, %v6339_v20, %v6323_v18  ;;  %v1295_v63 = vsel %vm383_vm12, %v6338_v13, %v6313_v41  ;;  %v6332_v28 = vpop.permute.xlu0 %6331  ;;  %v1776_v51 = vpack.c.bf16 %v1298_v25, %v1296_v23  ;;  %v1720_v10 = vsel %vm424_vm10, %v6328_v22, %v6329_v61  ;;  %v7644_v23 = vld [vmem:[%s11352_s2 + $0x34] ss:$20 sps:$4 sm:$0xff]  }
 0x4f2   : > { %v6347_v46 = vpop.permute.xlu1 %6346  ;;  %v1775_v55 = vpack.c.bf16 %v1297_v21, %v1295_v63  ;;  %v6334_v6 = vunpack.i.h.bf16 %v6332_v28  ;;  %v6333_v19 = vunpack.i.l.bf16 %v6332_v28  ;;  %v1813_v20 = vpack.c.bf16 %v1653_v4, %v1651_v54  ;;  %v7641_v63 = vld [vmem:[%s11352_s2 + $0x8] ss:$20 sps:$4 sm:$0xff]  }
 0x4f3   : > { %1960 = vmatprep.subr.bf16.mxu0 %v1776_v51  ;;  %2034 = vmatpush1.bf16.msra.mxu1 %v1807_v26  ;;  %v6349_v56 = vunpack.i.h.bf16 %v6347_v46  ;;  %v6348_v14 = vunpack.i.l.bf16 %v6347_v46 }
 0x4f4   : > { %1961 = vmatpush1.bf16.msra.mxu0 %v1775_v55  ;;  %2035 = vmatprep.subr.bf16.mxu1 %v1810_v16  ;;  %v1722_v26 = vsel %vm424_vm10, %v6333_v19, %v6334_v6  ;;  %v7646_v6 = vld [vmem:[%s11352_s2 + $0x30] ss:$20 sps:$4 sm:$0xff]  }
 0x4f5   : > { %v6342_v39 = vpop.permute.xlu0 %6341  ;;  %v1300_v29 = vsel %vm383_vm12, %v6348_v14, %v6349_v56  ;;  %v1816_v47 = vpack.c.bf16 %v1722_v26, %v1720_v10 }
 0x4f6   : > { %v8968_v33 = vpop.permute.xlu1 %6356  ;;  %v6344_v49 = vunpack.i.h.bf16 %v6342_v39  ;;  %v6343_v62 = vunpack.i.l.bf16 %v6342_v39 }
 0x4f7   : > { %2036 = vmatpush1.bf16.msra.mxu1 %v1809_v5  ;;  %v6359_v12 = vunpack.i.h.bf16 %v8968_v33  ;;  %v6358_v30 = vunpack.i.l.bf16 %v8968_v33  ;;  %v7647_v33 = vld [vmem:[%s11352_s2 + $0x5c] ss:$20 sps:$4 sm:$0xff]  }
 0x4f8   : > { %2037 = vmatprep.subr.bf16.mxu1 %v1812_v17  ;;  %v1721_v50 = vsel %vm424_vm10, %v6344_v49, %v6333_v19  ;;  %v1719_v9 = vsel %vm424_vm10, %v6343_v62, %v6328_v22 }
 0x4f9   : > { %v6352_v32 = vpop.permute.xlu0 %6351  ;;  %v1724_v25 = vsel %vm424_vm10, %v6358_v30, %v6359_v12  ;;  %v1815_v46 = vpack.c.bf16 %v1721_v50, %v1719_v9  ;;  %v7650_v12 = vld [vmem:[%s11352_s2 + $0x84] ss:$20 sps:$4 sm:$0xff]  }
 0x4fa   : > { %v6367_v52 = vpop.permute.xlu1 %6366  ;;  %v6354_v38 = vunpack.i.h.bf16 %v6352_v32  ;;  %v6353_v45 = vunpack.i.l.bf16 %v6352_v32 }
 0x4fb   : > { %v6369_v41 = vunpack.i.h.bf16 %v6367_v52  ;;  %v6368_v24 = vunpack.i.l.bf16 %v6367_v52  ;;  %2038 = vmatpush1.bf16.msra.mxu1 %v1811_v1 }
 0x4fc   : > { %2039 = vmatprep.subr.bf16.mxu1 %v1814_v0  ;;  %v1302_v59 = vsel %vm383_vm12, %v6353_v45, %v6354_v38 }
 0x4fd   : > { %v1301_v27 = vsel %vm383_vm12, %v6369_v41, %v6353_v45  ;;  %v1299_v57 = vsel %vm383_vm12, %v6368_v24, %v6348_v14  ;;  %v6362_v15 = vpop.permute.xlu0 %6361  ;;  %v1778_v18 = vpack.c.bf16 %v1302_v59, %v1300_v29  ;;  %v7649_v24 = vld [vmem:[%s11352_s2 + $0x58] ss:$20 sps:$4 sm:$0xff]  }
 0x4fe   : > { %v6377_v8 = vpop.permute.xlu1 %6376  ;;  %v1777_v13 = vpack.c.bf16 %v1301_v27, %v1299_v57  ;;  %v6364_v2 = vunpack.i.h.bf16 %v6362_v15  ;;  %v6363_v21 = vunpack.i.l.bf16 %v6362_v15 }
 0x4ff   : > { %1962 = vmatprep.subr.bf16.mxu0 %v1778_v18  ;;  %2040 = vmatpush1.bf16.msra.mxu1 %v1813_v20  ;;  %v6379_v36 = vunpack.i.h.bf16 %v6377_v8  ;;  %v6378_v16 = vunpack.i.l.bf16 %v6377_v8 }
 0x500   : > { %1963 = vmatpush1.bf16.msra.mxu0 %v1777_v13  ;;  %2082 = vmatprep.subr.bf16.mxu1 %v1816_v47  ;;  %v1726_v58 = vsel %vm424_vm10, %v6363_v21, %v6364_v2 }
 0x501   : > { %v6372_v42 = vpop.permute.xlu0 %6371  ;;  %v1818_v51 = vpack.c.bf16 %v1726_v58, %v1724_v25  ;;  %v1304_v53 = vsel %vm383_vm12, %v6378_v16, %v6379_v36  ;;  %v7657_v36 = vld [vmem:[%s11352_s2 + $0x2c] ss:$20 sps:$4 sm:$0xff]  }
 0x502   : > { %v6387_v28 = vpop.permute.xlu1 %6386  ;;  %v6374_v55 = vunpack.i.h.bf16 %v6372_v42  ;;  %v6373_v31 = vunpack.i.l.bf16 %v6372_v42  ;;  %2042 = vmatmul.mubr.bf16.vlgmr.msra.gmra.mrb[0].mxu1 %v7641_v63 }
 0x503   : > { %2083 = vmatpush1.bf16.msra.mxu1 %v1815_v46  ;;  %2051 = vmatprep.mubr.bf16.mxu1 %v7644_v23  ;;  %v6389_v44 = vunpack.i.h.bf16 %v6387_v28  ;;  %v6388_v17 = vunpack.i.l.bf16 %v6387_v28  ;;  %v7652_v46 = vld [vmem:[%s11352_s2 + $0x80] ss:$20 sps:$4 sm:$0xff]  }
 0x504   : > { %v1723_v40 = vsel %vm424_vm10, %v6373_v31, %v6358_v30  ;;  %v1725_v60 = vsel %vm424_vm10, %v6374_v55, %v6363_v21  ;;  %2084 = vmatprep.subr.bf16.mxu1 %v1818_v51  ;;  %v7653_v51 = vld [vmem:[%s11352_s2] ss:$20 sps:$4 sm:$0xff]  }
 0x505   : > { %v6382_v7 = vpop.permute.xlu0 %6381  ;;  %v1817_v5 = vpack.c.bf16 %v1725_v60, %v1723_v40  ;;  %v1728_v32 = vsel %vm424_vm10, %v6388_v17, %v6389_v44  ;;  %v7663_v44 = vld [vmem:[%s11352_s2 + $0x50] ss:$20 sps:$4 sm:$0xff]  }
 0x506   : > { %v6384_v3 = vunpack.i.h.bf16 %v6382_v7  ;;  %v6383_v11 = vunpack.i.l.bf16 %v6382_v7  ;;  %v6397_v48 = vpop.permute.xlu1 %6396 }
 0x507   : > { %v6399_v19 = vunpack.i.h.bf16 %v6397_v48  ;;  %v6398_v39 = vunpack.i.l.bf16 %v6397_v48  ;;  %2085 = vmatpush1.bf16.msra.mxu1 %v1817_v5 }
 0x508   : > { %v1306_v61 = vsel %vm383_vm12, %v6383_v11, %v6384_v3 }
 0x509   : > { %v1305_v22 = vsel %vm383_vm12, %v6399_v19, %v6383_v11  ;;  %v1303_v56 = vsel %vm383_vm12, %v6398_v39, %v6378_v16  ;;  %v6392_v14 = vpop.permute.xlu0 %6391  ;;  %v1780_v1 = vpack.c.bf16 %v1306_v61, %v1304_v53  ;;  %v11552_v11 = vmov 0   ;;  %v7659_v19 = vld [vmem:[%s11352_s2 + $0x28] ss:$20 sps:$4 sm:$0xff]   ;;  %v7664_v53 = vld [vmem:[%s11352_s2 + $0x60] ss:$20 sps:$4 sm:$0xff]  }
 0x50a   : > { %v6394_v0 = vunpack.i.h.bf16 %v6392_v14  ;;  %v6393_v54 = vunpack.i.l.bf16 %v6392_v14  ;;  %v6407_v49 = vpop.permute.xlu1 %6406  ;;  %2052 = vmatmul.mubr.bf16.gmra.mrb[4].mxu1 %v7646_v6  ;;  %v1779_v62 = vpack.c.bf16 %v1305_v22, %v1303_v56  ;;  %v7656_v6 = vld [vmem:[%s11352_s2 + $0x10] ss:$20 sps:$4 sm:$0xff]   ;;  %v7661_v39 = vld [vmem:[%s11352_s2 + $0x54] ss:$20 sps:$4 sm:$0xff]   ;;  %v7667_v61 = vld [vmem:[%s11352_s2 + $0x78] ss:$20 sps:$4 sm:$0xff]  }
 0x50b   : > { %1964 = vmatprep.subr.bf16.mxu0 %v1780_v1  ;;  %2061 = vmatprep.mubr.bf16.mxu1 %v7647_v33  ;;  %v6409_v29 = vunpack.i.h.bf16 %v6407_v49  ;;  %v6408_v10 = vunpack.i.l.bf16 %v6407_v49  ;;  %v7660_v33 = vld [vmem:[%s11352_s2 + $0x38] ss:$20 sps:$4 sm:$0xff]   ;;  %v7668_v22 = vld [vmem:[%s11352_s2 + $0x88] ss:$20 sps:$4 sm:$0xff]  }
 0x50c   : > { %1965 = vmatpush1.bf16.msra.mxu0 %v1779_v62  ;;  %v1730_v52 = vsel %vm424_vm10, %v6393_v54, %v6394_v0 }
 0x50d   : > { %v6402_v4 = vpop.permute.xlu0 %6401  ;;  %v1820_v26 = vpack.c.bf16 %v1730_v52, %v1728_v32  ;;  %v1308_v9 = vsel %vm383_vm12, %v6408_v10, %v6409_v29 }
 0x50e   : > { %v6404_v38 = vunpack.i.h.bf16 %v6402_v4  ;;  %v6403_v45 = vunpack.i.l.bf16 %v6402_v4  ;;  %v6412_v41 = vpop.permute.xlu1 %6411 }
 0x50f   : > { %2086 = vmatprep.subr.bf16.mxu1 %v1820_v26  ;;  %v6414_v47 = vunpack.i.h.bf16 %v6412_v41  ;;  %v6413_v50 = vunpack.i.l.bf16 %v6412_v41 }
 0x510   : > { %v1727_v30 = vsel %vm424_vm10, %v6403_v45, %v6388_v17  ;;  %v1729_v27 = vsel %vm424_vm10, %v6404_v38, %v6393_v54  ;;  %v7665_v17 = vld [vmem:[%s11352_s2 + $0x7c] ss:$20 sps:$4 sm:$0xff]  }
 0x511   : > { %v6417_v57 = vpop.permute.xlu0 %6416  ;;  %v1819_v59 = vpack.c.bf16 %v1729_v27, %v1727_v30  ;;  %v1732_v55 = vsel %vm424_vm10, %v6413_v50, %v6414_v47 }
 0x512   : > { %v6419_v15 = vunpack.i.h.bf16 %v6417_v57  ;;  %v6418_v8 = vunpack.i.l.bf16 %v6417_v57  ;;  %v6427_v18 = vpop.permute.xlu1 %6426  ;;  %2062 = vmatmul.mubr.bf16.gmra.mrb[8].mxu1 %v7649_v24 }
 0x513   : > { %v6429_v20 = vunpack.i.h.bf16 %v6427_v18  ;;  %v6428_v13 = vunpack.i.l.bf16 %v6427_v18  ;;  %2087 = vmatpush1.bf16.msra.mxu1 %v1819_v59  ;;  %2071 = vmatprep.mubr.bf16.mxu1 %v7650_v12 }
 0x514   : > { %v1310_v2 = vsel %vm383_vm12, %v6418_v8, %v6419_v15 }
 0x515   : > { %v1309_v21 = vsel %vm383_vm12, %v6429_v20, %v6418_v8  ;;  %v1307_v63 = vsel %vm383_vm12, %v6428_v13, %v6408_v10  ;;  %v6422_v23 = vpop.permute.xlu0 %6421  ;;  %v1782_v25 = vpack.c.bf16 %v1310_v2, %v1308_v9 }
 0x516   : > { %v6424_v58 = vunpack.i.h.bf16 %v6422_v23  ;;  %v6423_v42 = vunpack.i.l.bf16 %v6422_v23  ;;  %v1781_v28 = vpack.c.bf16 %v1309_v21, %v1307_v63 }
 0x517   : > { %1966 = vmatprep.subr.bf16.mxu0 %v1782_v25 }
 0x518   : > { %1967 = vmatpush1.bf16.msra.mxu0 %v1781_v28  ;;  %v1734_v31 = vsel %vm424_vm10, %v6423_v42, %v6424_v58 }
 0x519   : > { %v6432_v16 = vpop.permute.xlu0 %6431  ;;  %v1822_v40 = vpack.c.bf16 %v1734_v31, %v1732_v55 }
 0x51a   : > { %v6434_v60 = vunpack.i.h.bf16 %v6432_v16  ;;  %v6433_v7 = vunpack.i.l.bf16 %v6432_v16  ;;  %2072 = vmatmul.mubr.bf16.gmra.mrb[12].mxu1 %v7652_v46 }
 0x51b   : > { %2088 = vmatprep.subr.bf16.mxu1 %v1822_v40  ;;  %1969 = vmatmul.mubr.bf16.vlgmr.msra.gmra.mrb[16].mxu0 %v7653_v51 }
 0x51c   : > { %v1731_v5 = vsel %vm424_vm10, %v6433_v7, %v6413_v50  ;;  %v1733_v3 = vsel %vm424_vm10, %v6434_v60, %v6423_v42  ;;  %2114 = vmatprep.mubr.bf16.mxu1 %v11552_v11  ;;  %1978 = vmatprep.mubr.bf16.mxu0 %v7657_v36 }
 0x51d   : > { %v1821_v48 = vpack.c.bf16 %v1733_v3, %v1731_v5 }
 0x51f   : > { %2089 = vmatpush1.bf16.msra.mxu1 %v1821_v48 }
 0x522   : > { %5609 = vmatmul.mubr.msk.bf16.vlgmr.msra.gmra.mrb[0].mxu1 %vm1923_vm13, %v7656_v6 }
 0x523   : > { %2124 = vmatprep.mubr.bf16.mxu1 %v11552_v11  ;;  %1979 = vmatmul.mubr.bf16.gmra.mrb[20].mxu0 %v7659_v19 }
 0x524   : > { %1988 = vmatprep.mubr.bf16.mxu0 %v7661_v39 }
 0x52a   : > { %5610 = vmatmul.mubr.msk.bf16.gmra.mrb[4].mxu1 %vm1923_vm13, %v7660_v33 }
 0x52b   : > { %2134 = vmatprep.mubr.bf16.mxu1 %v11552_v11  ;;  %1989 = vmatmul.mubr.bf16.gmra.mrb[24].mxu0 %v7663_v44 }
 0x52c   : > { %1998 = vmatprep.mubr.bf16.mxu0 %v7665_v17 }
 0x532   : > { %5611 = vmatmul.mubr.msk.bf16.gmra.mrb[8].mxu1 %vm1923_vm13, %v7664_v53 }
 0x533   : > { %2144 = vmatprep.mubr.bf16.mxu1 %v11552_v11  ;;  %1999 = vmatmul.mubr.bf16.gmra.mrb[28].mxu0 %v7667_v61 }
 0x53a   : > { %5612 = vmatmul.mubr.msk.bf16.gmra.mrb[12].mxu1 %vm1923_vm13, %v7668_v22 }
 0x5ee   : > { %v1970_v56 = vpop.f32.mrb[16].mxu0 }
 0x5ef   : > { %v1972_v14 = vpop.f32.mrb[17].mxu0 }
 0x5f0   : > { %v1974_v1 = vpop.f32.mrb[18].mxu0 }
 0x5f1   : > { %v1976_v0 = vpop.f32.mrb[19].mxu0 }
 0x5f5   : > { %v2116_v54 = vpop.f32.mrb[0].mxu1 }
 0x5f6   : > { %v9068_v49 = vadd.f32 %v2116_v54, %v1970_v56  ;;  %v2118_v62 = vpop.f32.mrb[1].mxu1  ;;  %v1980_v32 = vpop.f32.mrb[20].mxu0 }
 0x5f7   : > { %v9070_v52 = vadd.f32 %v2118_v62, %v1972_v14  ;;  %v2120_v4 = vpop.f32.mrb[2].mxu1  ;;  %v1982_v26 = vpop.f32.mrb[21].mxu0 }
 0x5f8   : > { %v9072_v38 = vadd.f32 %v2120_v4, %v1974_v1  ;;  %v2122_v45 = vpop.f32.mrb[3].mxu1  ;;  %v1984_v41 = vpop.f32.mrb[22].mxu0  ;;  %v2187_v30 = vmul.f32 %v9068_v49, %v9068_v49 }
 0x5f9   : > { %v9074_v24 = vadd.f32 %v2122_v45, %v1976_v0  ;;  %v2155_v12 = vadd.f32 %v9070_v52, %v9068_v49  ;;  %v1986_v29 = vpop.f32.mrb[23].mxu0  ;;  %v2188_v27 = vmul.f32 %v9070_v52, %v9070_v52 }
 0x5fa   : > { %v2189_v10 = vmul.f32 %v9072_v38, %v9072_v38 }
 0x5fb   : > { %v2190_v57 = vmul.f32 %v9074_v24, %v9074_v24  ;;  %2156 = vadd.xlane.f32.xlu1 %v2155_v12  ;;  %v2158_v59 = vadd.f32 %v9074_v24, %v9072_v38  ;;  %v2203_v9 = vadd.f32 %v2188_v27, %v2187_v30 }
 0x5fd   : > { %v2126_v15 = vpop.f32.mrb[4].mxu1  ;;  %2159 = vadd.xlane.f32.xlu0 %v2158_v59  ;;  %v2206_v8 = vadd.f32 %v2190_v57, %v2189_v10 }
 0x5fe   : > { %v9088_v18 = vadd.f32 %v2126_v15, %v1980_v32  ;;  %v2128_v20 = vpop.f32.mrb[5].mxu1  ;;  %v1990_v13 = vpop.f32.mrb[24].mxu0 }
 0x5ff   : > { %v9090_v47 = vadd.f32 %v2128_v20, %v1982_v26  ;;  %v2130_v50 = vpop.f32.mrb[6].mxu1  ;;  %2207 = vadd.xlane.f32.xlu1 %v2206_v8  ;;  %v1992_v2 = vpop.f32.mrb[25].mxu0 }
 0x600   : > { %v9092_v21 = vadd.f32 %v2130_v50, %v1984_v41  ;;  %v2132_v63 = vpop.f32.mrb[7].mxu1  ;;  %v1994_v23 = vpop.f32.mrb[26].mxu0  ;;  %v2191_v42 = vmul.f32 %v9088_v18, %v9088_v18 }
 0x601   : > { %v9094_v25 = vadd.f32 %v2132_v63, %v1986_v29  ;;  %2204 = vadd.xlane.f32.xlu0 %v2203_v9  ;;  %v1996_v58 = vpop.f32.mrb[27].mxu0  ;;  %v2192_v28 = vmul.f32 %v9090_v47, %v9090_v47  ;;  %v2161_v55 = vadd.f32 %v9090_v47, %v9088_v18 }
 0x602   : > { %v2193_v46 = vmul.f32 %v9092_v21, %v9092_v21 }
 0x603   : > { %v2194_v51 = vmul.f32 %v9094_v25, %v9094_v25  ;;  %v2164_v31 = vadd.f32 %v9094_v25, %v9092_v21  ;;  %v2209_v3 = vadd.f32 %v2192_v28, %v2191_v42 }
 0x605   : > { %v2136_v36 = vpop.f32.mrb[8].mxu1  ;;  %2162 = vadd.xlane.f32.xlu0 %v2161_v55  ;;  %2165 = vadd.xlane.f32.xlu1 %v2164_v31  ;;  %v2212_v48 = vadd.f32 %v2194_v51, %v2193_v46 }
 0x606   : > { %v9108_v16 = vadd.f32 %v2136_v36, %v1990_v13  ;;  %v2138_v40 = vpop.f32.mrb[9].mxu1  ;;  %v2000_v60 = vpop.f32.mrb[28].mxu0 }
 0x607   : > { %v9110_v7 = vadd.f32 %v2138_v40, %v1992_v2  ;;  %v2140_v5 = vpop.f32.mrb[10].mxu1  ;;  %v2002_v6 = vpop.f32.mrb[29].mxu0 }
 0x608   : > { %v9112_v19 = vadd.f32 %v2140_v5, %v1994_v23  ;;  %v2142_v39 = vpop.f32.mrb[11].mxu1  ;;  %v2004_v33 = vpop.f32.mrb[30].mxu0  ;;  %v2195_v53 = vmul.f32 %v9108_v16, %v9108_v16 }
 0x609   : > { %v9114_v44 = vadd.f32 %v2142_v39, %v1996_v58  ;;  %2210 = vadd.xlane.f32.xlu0 %v2209_v3  ;;  %2213 = vadd.xlane.f32.xlu1 %v2212_v48  ;;  %v2006_v17 = vpop.f32.mrb[31].mxu0  ;;  %v2196_v61 = vmul.f32 %v9110_v7, %v9110_v7  ;;  %v2167_v14 = vadd.f32 %v9110_v7, %v9108_v16 }
 0x60a   : > { %v2197_v22 = vmul.f32 %v9112_v19, %v9112_v19 }
 0x60b   : > { %v2198_v56 = vmul.f32 %v9114_v44, %v9114_v44  ;;  %v2170_v1 = vadd.f32 %v9114_v44, %v9112_v19  ;;  %v2215_v26 = vadd.f32 %v2196_v61, %v2195_v53 }
 0x60d   : > { %v2146_v0 = vpop.f32.mrb[12].mxu1  ;;  %2168 = vadd.xlane.f32.xlu0 %v2167_v14  ;;  %2171 = vadd.xlane.f32.xlu1 %v2170_v1  ;;  %v2218_v45 = vadd.f32 %v2198_v56, %v2197_v22 }
 0x60e   : > { %v9128_v54 = vadd.f32 %v2146_v0, %v2000_v60  ;;  %v2148_v62 = vpop.f32.mrb[13].mxu1 }
 0x60f   : > { %v9130_v32 = vadd.f32 %v2148_v62, %v2002_v6  ;;  %v2150_v4 = vpop.f32.mrb[14].mxu1 }
 0x610   : > { %v9132_v41 = vadd.f32 %v2150_v4, %v2004_v33  ;;  %v2152_v12 = vpop.f32.mrb[15].mxu1  ;;  %v2199_v10 = vmul.f32 %v9128_v54, %v9128_v54 }
 0x611   : > { %v9134_v29 = vadd.f32 %v2152_v12, %v2006_v17  ;;  %2216 = vadd.xlane.f32.xlu0 %v2215_v26  ;;  %2219 = vadd.xlane.f32.xlu1 %v2218_v45  ;;  %v2200_v30 = vmul.f32 %v9130_v32, %v9130_v32  ;;  %v2173_v59 = vadd.f32 %v9130_v32, %v9128_v54 }
 0x612   : > { %v2201_v27 = vmul.f32 %v9132_v41, %v9132_v41 }
 0x613   : > { %v2202_v57 = vmul.f32 %v9134_v29, %v9134_v29  ;;  %v2176_v15 = vadd.f32 %v9134_v29, %v9132_v41  ;;  %v2221_v8 = vadd.f32 %v2200_v30, %v2199_v10 }
 0x615   : > { %2174 = vadd.xlane.f32.xlu0 %v2173_v59  ;;  %2177 = vadd.xlane.f32.xlu1 %v2176_v15  ;;  %v2224_v20 = vadd.f32 %v2202_v57, %v2201_v27 }
 0x619   : > { %2222 = vadd.xlane.f32.xlu0 %v2221_v8  ;;  %2225 = vadd.xlane.f32.xlu1 %v2224_v20 }
 0x688   : > { %v2157_v13 = vpop.xlane.xlu1 %2156 }
 0x689   : > { %v2179_v9 = vmul.f32 0.00390625, %v2157_v13 }
 0x68a   : > { %v2160_v50 = vpop.xlane.xlu0 %2159 }
 0x68b   : > { %v2180_v2 = vmul.f32 0.00390625, %v2160_v50  ;;  %v2235_v46 = vmul.f32 %v2179_v9, %v2179_v9  ;;  %v2251_v45 = vsub.f32 %v9068_v49, %v2179_v9  ;;  %v2252_v10 = vsub.f32 %v9070_v52, %v2179_v9 }
 0x68c   : > { %v2208_v63 = vpop.xlane.xlu1 %2207 }
 0x68d   : > { %v2228_v23 = vmul.f32 0.00390625, %v2208_v63  ;;  %v2236_v58 = vmul.f32 %v2180_v2, %v2180_v2  ;;  %v2253_v12 = vsub.f32 %v9072_v38, %v2180_v2  ;;  %v2254_v30 = vsub.f32 %v9074_v24, %v2180_v2 }
 0x68e   : > { %v2205_v42 = vpop.xlane.xlu0 %2204 }
 0x68f   : > { %v2244_v28 = vsub.f32 %v2228_v23, %v2236_v58  ;;  %v2227_v51 = vmul.f32 0.00390625, %v2205_v42 }
 0x691   : > { %v2268_v55 = vadd.f32 1e-05, %v2244_v28  ;;  %v2243_v31 = vsub.f32 %v2227_v51, %v2235_v46 }
 0x692   : > { %v2163_v36 = vpop.xlane.xlu0 %2162  ;;  %v2166_v40 = vpop.xlane.xlu1 %2165 }
 0x693   : > { %7741 = vrsqrt.f32 %v2268_v55  ;;  %v2267_v60 = vadd.f32 1e-05, %v2243_v31  ;;  %v9148_v5 = vmul.f32 0.00390625, %v2163_v36  ;;  %v9150_v3 = vmul.f32 0.00390625, %v2166_v40 }
 0x695   : > { %7743 = vrsqrt.f32 %v2267_v60  ;;  %v2237_v39 = vmul.f32 %v9148_v5, %v9148_v5  ;;  %v2238_v17 = vmul.f32 %v9150_v3, %v9150_v3  ;;  %v2255_v60 = vsub.f32 %v9088_v18, %v9148_v5 }
 0x696   : > { %v2211_v48 = vpop.xlane.xlu0 %2210  ;;  %v2214_v6 = vpop.xlane.xlu1 %2213 }
 0x697   : > { %v2229_v33 = vmul.f32 0.00390625, %v2211_v48  ;;  %v2230_v53 = vmul.f32 0.00390625, %v2214_v6  ;;  %v2256_v48 = vsub.f32 %v9090_v47, %v9148_v5  ;;  %v2257_v6 = vsub.f32 %v9092_v21, %v9150_v3 }
 0x699   : > { %v2245_v61 = vsub.f32 %v2229_v33, %v2237_v39  ;;  %v2246_v22 = vsub.f32 %v2230_v53, %v2238_v17  ;;  %v2258_v39 = vsub.f32 %v9094_v25, %v9150_v3 }
 0x69a   : > { %v2169_v56 = vpop.xlane.xlu0 %2168  ;;  %v2172_v14 = vpop.xlane.xlu1 %2171 }
 0x69b   : > { %v2269_v1 = vadd.f32 1e-05, %v2245_v61  ;;  %v2270_v0 = vadd.f32 1e-05, %v2246_v22  ;;  %v9156_v62 = vmul.f32 0.00390625, %v2169_v56  ;;  %v9158_v4 = vmul.f32 0.00390625, %v2172_v14 }
 0x69d   : > { %v7742_v26 = vpop.eup %7741  ;;  %7745 = vrsqrt.f32 %v2269_v1  ;;  %v2239_v27 = vmul.f32 %v9156_v62, %v9156_v62  ;;  %v2240_v20 = vmul.f32 %v9158_v4, %v9158_v4 }
 0x69e   : > { %7747 = vrsqrt.f32 %v2270_v0  ;;  %v2217_v57 = vpop.xlane.xlu0 %2216  ;;  %v2220_v59 = vpop.xlane.xlu1 %2219  ;;  %v2285_v49 = vmul.f32 %v7742_v26, %v2253_v12  ;;  %v2286_v63 = vmul.f32 %v7742_v26, %v2254_v30 }
 0x69f   : > { %v7744_v15 = vpop.eup %7743  ;;  %v2231_v8 = vmul.f32 0.00390625, %v2217_v57  ;;  %v2232_v13 = vmul.f32 0.00390625, %v2220_v59 }
 0x6a0   : > { %v2283_v50 = vmul.f32 %v7744_v15, %v2251_v45  ;;  %v2284_v38 = vmul.f32 %v7744_v15, %v2252_v10  ;;  %v2301_v58 = vmax.f32 %v2285_v49, 0.0  ;;  %v2302_v40 = vmax.f32 %v2286_v63, 0.0 }
 0x6a1   : > { %v2247_v23 = vsub.f32 %v2231_v8, %v2239_v27  ;;  %v2248_v52 = vsub.f32 %v2232_v13, %v2240_v20  ;;  %v2259_v8 = vsub.f32 %v9108_v16, %v9156_v62  ;;  %v2260_v20 = vsub.f32 %v9110_v7, %v9156_v62 }
 0x6a2   : > { %v2175_v9 = vpop.xlane.xlu0 %2174  ;;  %v2178_v24 = vpop.xlane.xlu1 %2177  ;;  %v2299_v2 = vmax.f32 %v2283_v50, 0.0  ;;  %v2300_v42 = vmax.f32 %v2284_v38, 0.0  ;;  %v6445_v56 = vpack.i.bf16 %v2302_v40, %v2301_v58  ;;  %v2261_v49 = vsub.f32 %v9112_v19, %v9158_v4 }
 0x6a3   : > { %v2271_v28 = vadd.f32 1e-05, %v2247_v23  ;;  %v2272_v46 = vadd.f32 1e-05, %v2248_v52  ;;  %v9168_v51 = vmul.f32 0.00390625, %v2175_v9  ;;  %v9170_v55 = vmul.f32 0.00390625, %v2178_v24 }
 0x6a4   : > { %v6440_v31 = vpack.i.bf16 %v2301_v58, %v2299_v2  ;;  %v6435_v36 = vpack.i.bf16 %v2300_v42, %v2299_v2  ;;  %v6450_v22 = vpack.i.bf16 %v2302_v40, %v2300_v42  ;;  %v2262_v50 = vsub.f32 %v9114_v44, %v9158_v4 }
 0x6a5   : > { %7749 = vrsqrt.f32 %v2271_v28  ;;  %v2241_v18 = vmul.f32 %v9168_v51, %v9168_v51  ;;  %v2242_v47 = vmul.f32 %v9170_v55, %v9170_v55  ;;  %v2263_v44 = vsub.f32 %v9128_v54, %v9168_v51 }
 0x6a6   : > { %7751 = vrsqrt.f32 %v2272_v46  ;;  %6441 = vrot.lane.b32.xlu0 %v6440_v31, %s7805_s30  ;;  %v2223_v33 = vpop.xlane.xlu0 %2222  ;;  %6436 = vrot.lane.b32.xlu1 %v6435_v36, %s7807_s9  ;;  %v2226_v17 = vpop.xlane.xlu1 %2225  ;;  %v2264_v4 = vsub.f32 %v9130_v32, %v9168_v51  ;;  %v2265_v46 = vsub.f32 %v9132_v41, %v9170_v55  ;;  %v2266_v31 = vsub.f32 %v9134_v29, %v9170_v55 }
 0x6a7   : > { %v7746_v53 = vpop.eup %7745  ;;  %v2233_v61 = vmul.f32 0.00390625, %v2223_v33  ;;  %v2234_v5 = vmul.f32 0.00390625, %v2226_v17 }
 0x6a8   : > { %v7748_v21 = vpop.eup %7747  ;;  %v2287_v25 = vmul.f32 %v7746_v53, %v2255_v60  ;;  %v2288_v3 = vmul.f32 %v7746_v53, %v2256_v48 }
 0x6a9   : > { %v2249_v14 = vsub.f32 %v2233_v61, %v2241_v18  ;;  %v2250_v1 = vsub.f32 %v2234_v5, %v2242_v47  ;;  %v2289_v0 = vmul.f32 %v7748_v21, %v2257_v6  ;;  %v2290_v26 = vmul.f32 %v7748_v21, %v2258_v39 }
 0x6aa   : > { %6451 = vrot.lane.b32.xlu0 %v6450_v22, %s7806_s8  ;;  %6446 = vrot.lane.b32.xlu1 %v6445_v56, %s7807_s9  ;;  %v2303_v45 = vmax.f32 %v2287_v25, 0.0  ;;  %v2304_v12 = vmax.f32 %v2288_v3, 0.0 }
 0x6ab   : > { %v2273_v10 = vadd.f32 1e-05, %v2249_v14  ;;  %v2274_v30 = vadd.f32 1e-05, %v2250_v1  ;;  %v2305_v27 = vmax.f32 %v2289_v0, 0.0  ;;  %v2306_v59 = vmax.f32 %v2290_v26, 0.0 }
 0x6ac   : > { %v6455_v57 = vpack.i.bf16 %v2304_v12, %v2303_v45 }
 0x6ad   : > { %7753 = vrsqrt.f32 %v2273_v10  ;;  %v6460_v15 = vpack.i.bf16 %v2305_v27, %v2303_v45  ;;  %v6470_v63 = vpack.i.bf16 %v2306_v59, %v2304_v12  ;;  %v6465_v16 = vpack.i.bf16 %v2306_v59, %v2305_v27 }
 0x6ae   : > { %7755 = vrsqrt.f32 %v2274_v30  ;;  %6456 = vrot.lane.b32.xlu0 %v6455_v57, %s7807_s9 }
 0x6af   : > { %v7750_v13 = vpop.eup %7749  ;;  %6461 = vrot.lane.b32.xlu1 %v6460_v15, %s7805_s30 }
 0x6b0   : > { %v7752_v38 = vpop.eup %7751  ;;  %v2291_v23 = vmul.f32 %v7750_v13, %v2259_v8  ;;  %v2292_v52 = vmul.f32 %v7750_v13, %v2260_v20 }
 0x6b1   : > { %v2293_v9 = vmul.f32 %v7752_v38, %v2261_v49  ;;  %v2294_v24 = vmul.f32 %v7752_v38, %v2262_v50 }
 0x6b2   : > { %6471 = vrot.lane.b32.xlu0 %v6470_v63, %s7806_s8  ;;  %v2307_v7 = vmax.f32 %v2291_v23, 0.0  ;;  %v2308_v62 = vmax.f32 %v2292_v52, 0.0 }
 0x6b3   : > { %6466 = vrot.lane.b32.xlu1 %v6465_v16, %s7807_s9  ;;  %v2309_v2 = vmax.f32 %v2293_v9, 0.0  ;;  %v2310_v58 = vmax.f32 %v2294_v24, 0.0 }
 0x6b4   : > { %v6475_v19 = vpack.i.bf16 %v2308_v62, %v2307_v7 }
 0x6b5   : > { %v6480_v42 = vpack.i.bf16 %v2309_v2, %v2307_v7  ;;  %v6490_v40 = vpack.i.bf16 %v2310_v58, %v2308_v62  ;;  %v6485_v6 = vpack.i.bf16 %v2310_v58, %v2309_v2 }
 0x6b6   : > { %6476 = vrot.lane.b32.xlu0 %v6475_v19, %s7807_s9 }
 0x6b7   : > { %v7754_v28 = vpop.eup %7753  ;;  %6481 = vrot.lane.b32.xlu1 %v6480_v42, %s7805_s30 }
 0x6b8   : > { %v7756_v36 = vpop.eup %7755  ;;  %v2295_v60 = vmul.f32 %v7754_v28, %v2263_v44  ;;  %v2296_v48 = vmul.f32 %v7754_v28, %v2264_v4 }
 0x6b9   : > { %v2297_v54 = vmul.f32 %v7756_v36, %v2265_v46  ;;  %v2298_v39 = vmul.f32 %v7756_v36, %v2266_v31 }
 0x6ba   : > { %6491 = vrot.lane.b32.xlu0 %v6490_v40, %s7806_s8  ;;  %v2311_v32 = vmax.f32 %v2295_v60, 0.0  ;;  %v2312_v51 = vmax.f32 %v2296_v48, 0.0 }
 0x6bb   : > { %6486 = vrot.lane.b32.xlu1 %v6485_v6, %s7807_s9  ;;  %v2313_v33 = vmax.f32 %v2297_v54, 0.0  ;;  %v2314_v17 = vmax.f32 %v2298_v39, 0.0 }
 0x6bc   : > { %v6495_v41 = vpack.i.bf16 %v2312_v51, %v2311_v32 }
 0x6bd   : > { %v6500_v53 = vpack.i.bf16 %v2313_v33, %v2311_v32  ;;  %v6510_v29 = vpack.i.bf16 %v2314_v17, %v2312_v51  ;;  %v6505_v55 = vpack.i.bf16 %v2314_v17, %v2313_v33 }
 0x6be   : > { %6496 = vrot.lane.b32.xlu0 %v6495_v41, %s7807_s9 }
 0x6bf   : > { %6501 = vrot.lane.b32.xlu1 %v6500_v53, %s7805_s30 }
 0x6c2   : > { %6511 = vrot.lane.b32.xlu0 %v6510_v29, %s7806_s8 }
 0x6c3   : > { %6506 = vrot.lane.b32.xlu1 %v6505_v55, %s7807_s9 }
 0x718   : > { %v6442_v18 = vpop.permute.xlu0 %6441  ;;  %v6437_v61 = vpop.permute.xlu1 %6436 }
 0x719   : > { %v6443_v47 = vunpack.i.l.bf16 %v6442_v18  ;;  %v6439_v5 = vunpack.i.h.bf16 %v6437_v61  ;;  %v6438_v21 = vunpack.i.l.bf16 %v6437_v61  ;;  %v6444_v12 = vunpack.i.h.bf16 %v6442_v18 }
 0x71b   : > { %v9217_v22 = vsel %vm11390_vm0, %v6438_v21, %v6439_v5  ;;  %v9220_v56 = vsel %vm11390_vm0, %v6443_v47, %v6438_v21 }
 0x71c   : > { %v6452_v25 = vpop.permute.xlu0 %6451  ;;  %v6447_v3 = vpop.permute.xlu1 %6446  ;;  %v6520_v14 = vpack.i.bf16 %v9217_v22, %v9220_v56 }
 0x71d   : > { %v6454_v1 = vunpack.i.h.bf16 %v6452_v25  ;;  %v6453_v0 = vunpack.i.l.bf16 %v6452_v25  ;;  %v6449_v26 = vunpack.i.h.bf16 %v6447_v3  ;;  %v6448_v45 = vunpack.i.l.bf16 %v6447_v3 }
 0x71e   : > { %6521 = vrot.lane.b32.xlu0 %v6520_v14, %s7810_s12 }
 0x71f   : > { %v2475_v10 = vsel %vm11390_vm0, %v6439_v5, %v6453_v0  ;;  %v2476_v30 = vsel %vm11390_vm0, %v6449_v26, %v6454_v1  ;;  %v9228_v27 = vsel %vm11390_vm0, %v6448_v45, %v6449_v26  ;;  %v9231_v57 = vsel %vm11390_vm0, %v6444_v12, %v6448_v45 }
 0x720   : > { %v6457_v59 = vpop.permute.xlu0 %6456  ;;  %v9234_v15 = vpack.i.bf16 %v2476_v30, %v9228_v27  ;;  %v9237_v8 = vpack.i.bf16 %v2475_v10, %v9217_v22  ;;  %v9245_v13 = vpack.i.bf16 %v9231_v57, %v9220_v56  ;;  %v6550_v58 = vpack.i.bf16 %v2476_v30, %v2475_v10 }
 0x721   : > { %v6462_v20 = vpop.permute.xlu1 %6461  ;;  %v6459_v63 = vunpack.i.h.bf16 %v6457_v59  ;;  %v6458_v23 = vunpack.i.l.bf16 %v6457_v59  ;;  %v6535_v42 = vpack.i.bf16 %v9231_v57, %v2475_v10 }
 0x722   : > { %11553 = vst [vmem:[#allocation8_spill] sm:$0xff] %v9234_v15  ;;  %11554 = vst [vmem:[#allocation10_spill] sm:$0xff] %v9237_v8  ;;  %6526 = vrot.lane.b32.xlu0 %v9234_v15, %s7809_s11  ;;  %6516 = vrot.lane.b32.xlu1 %v9237_v8, %s7809_s11  ;;  %v6463_v52 = vunpack.i.l.bf16 %v6462_v20  ;;  %v6464_v2 = vunpack.i.h.bf16 %v6462_v20 }
 0x723   : > { %11555 = vst [vmem:[#allocation9_spill] sm:$0xff] %v9245_v13  ;;  %v9257_v44 = vsel %vm11390_vm0, %v6458_v23, %v6459_v63 }
 0x724   : > { %v6472_v50 = vpop.permute.xlu0 %6471  ;;  %v9260_v4 = vsel %vm11390_vm0, %v6463_v52, %v6458_v23 }
 0x725   : > { %v6467_v16 = vpop.permute.xlu1 %6466  ;;  %v6474_v7 = vunpack.i.h.bf16 %v6472_v50  ;;  %v6473_v62 = vunpack.i.l.bf16 %v6472_v50  ;;  %v6560_v48 = vpack.i.bf16 %v9257_v44, %v9260_v4 }
 0x726   : > { %v6469_v9 = vunpack.i.h.bf16 %v6467_v16  ;;  %v6468_v24 = vunpack.i.l.bf16 %v6467_v16  ;;  %6541 = vrot.lane.b32.xlu0 %v9234_v15, %s7810_s12  ;;  %6531 = vrot.lane.b32.xlu1 %v9245_v13, %s7808_s10 }
 0x727   : > { %v2477_v36 = vsel %vm11390_vm0, %v6459_v63, %v6473_v62 }
 0x728   : > { %v6477_v19 = vpop.permute.xlu0 %6476  ;;  %v9263_v28 = vsel %vm11390_vm0, %v6468_v24, %v6469_v9  ;;  %v9266_v31 = vsel %vm11390_vm0, %v6464_v2, %v6468_v24  ;;  %v2478_v40 = vsel %vm11390_vm0, %v6469_v9, %v6474_v7  ;;  %v9282_v17 = vpack.i.bf16 %v2477_v36, %v9257_v44 }
 0x729   : > { %v6482_v46 = vpop.permute.xlu1 %6481  ;;  %v6479_v54 = vunpack.i.h.bf16 %v6477_v19  ;;  %v6478_v39 = vunpack.i.l.bf16 %v6477_v19  ;;  %v9285_v53 = vpack.i.bf16 %v2478_v40, %v9263_v28  ;;  %v9289_v61 = vpack.i.bf16 %v9266_v31, %v9260_v4 }
 0x72a   : > { %6551 = vrot.lane.b32.xlu0 %v6550_v58, %s7811_s13  ;;  %6536 = vrot.lane.b32.xlu1 %v6535_v42, %s7810_s12  ;;  %11556 = vst [vmem:[#allocation14_spill] sm:$0xff] %v9282_v17  ;;  %v6483_v29 = vunpack.i.l.bf16 %v6482_v46  ;;  %v6484_v47 = vunpack.i.h.bf16 %v6482_v46  ;;  %v6590_v58 = vpack.i.bf16 %v2478_v40, %v2477_v36  ;;  %v6575_v42 = vpack.i.bf16 %v9266_v31, %v2477_v36 }
 0x72b   : > { %11557 = vst [vmem:[#allocation13_spill] sm:$0xff] %v9285_v53  ;;  %11558 = vst [vmem:[#allocation6_spill] sm:$0xff] %v9289_v61  ;;  %v9302_v14 = vsel %vm11390_vm0, %v6478_v39, %v6479_v54 }
 0x72c   : > { %v6492_v60 = vpop.permute.xlu0 %6491  ;;  %v9305_v1 = vsel %vm11390_vm0, %v6483_v29, %v6478_v39 }
 0x72d   : > { %v6487_v32 = vpop.permute.xlu1 %6486  ;;  %v6494_v55 = vunpack.i.h.bf16 %v6492_v60  ;;  %v6493_v18 = vunpack.i.l.bf16 %v6492_v60  ;;  %v6600_v40 = vpack.i.bf16 %v9302_v14, %v9305_v1 }
 0x72e   : > { %v6489_v33 = vunpack.i.h.bf16 %v6487_v32  ;;  %v6488_v41 = vunpack.i.l.bf16 %v6487_v32  ;;  %6561 = vrot.lane.b32.xlu0 %v6560_v48, %s7810_s12  ;;  %6546 = vrot.lane.b32.xlu1 %v9245_v13, %s7809_s11 }
 0x72f   : > { %v2479_v0 = vsel %vm11390_vm0, %v6479_v54, %v6493_v18 }
 0x730   : > { %v6497_v5 = vpop.permute.xlu0 %6496  ;;  %v9292_v21 = vsel %vm11390_vm0, %v6488_v41, %v6489_v33  ;;  %v9295_v3 = vsel %vm11390_vm0, %v6484_v47, %v6488_v41  ;;  %v2480_v26 = vsel %vm11390_vm0, %v6489_v33, %v6494_v55  ;;  %v9318_v24 = vpack.i.bf16 %v2479_v0, %v9302_v14 }
 0x731   : > { %v6502_v25 = vpop.permute.xlu1 %6501  ;;  %v6499_v45 = vunpack.i.h.bf16 %v6497_v5  ;;  %v6498_v12 = vunpack.i.l.bf16 %v6497_v5  ;;  %v9321_v7 = vpack.i.bf16 %v2480_v26, %v9292_v21  ;;  %v9325_v62 = vpack.i.bf16 %v9295_v3, %v9305_v1 }
 0x732   : > { %6566 = vrot.lane.b32.xlu0 %v9285_v53, %s7809_s11  ;;  %6556 = vrot.lane.b32.xlu1 %v9282_v17, %s7809_s11  ;;  %v6504_v10 = vunpack.i.h.bf16 %v6502_v25  ;;  %v6503_v20 = vunpack.i.l.bf16 %v6502_v25  ;;  %11559 = vst [vmem:[#allocation20_spill] sm:$0xff] %v9318_v24  ;;  %v6630_v29 = vpack.i.bf16 %v2480_v26, %v2479_v0  ;;  %v6615_v55 = vpack.i.bf16 %v9295_v3, %v2479_v0 }
 0x733   : > { %11560 = vst [vmem:[#allocation18_spill] sm:$0xff] %v9321_v7  ;;  %11561 = vst [vmem:[#allocation7_spill] sm:$0xff] %v9325_v62  ;;  %v9337_v48 = vsel %vm11390_vm0, %v6498_v12, %v6499_v45 }
 0x734   : > { %v6512_v30 = vpop.permute.xlu0 %6511  ;;  %v9340_v54 = vsel %vm11390_vm0, %v6503_v20, %v6498_v12 }
 0x735   : > { %v6514_v50 = vunpack.i.h.bf16 %v6512_v30  ;;  %v6513_v63 = vunpack.i.l.bf16 %v6512_v30  ;;  %v6507_v23 = vpop.permute.xlu1 %6506  ;;  %v6640_v18 = vpack.i.bf16 %v9337_v48, %v9340_v54 }
 0x736   : > { %v6509_v16 = vunpack.i.h.bf16 %v6507_v23  ;;  %v6508_v9 = vunpack.i.l.bf16 %v6507_v23  ;;  %6581 = vrot.lane.b32.xlu0 %v9285_v53, %s7810_s12  ;;  %6571 = vrot.lane.b32.xlu1 %v9289_v61, %s7808_s10 }
 0x737   : > { %v2481_v46 = vsel %vm11390_vm0, %v6499_v45, %v6513_v63 }
 0x738   : > { %v9328_v2 = vsel %vm11390_vm0, %v6508_v9, %v6509_v16  ;;  %v9331_v19 = vsel %vm11390_vm0, %v6504_v10, %v6508_v9  ;;  %v2482_v60 = vsel %vm11390_vm0, %v6509_v16, %v6514_v50  ;;  %v9351_v32 = vpack.i.bf16 %v2481_v46, %v9337_v48  ;;  %vm11569_vm0 = vmmov %vm11515_vm11 }
 0x739   : > { %v9354_v33 = vpack.i.bf16 %v2482_v60, %v9328_v2  ;;  %v9358_v41 = vpack.i.bf16 %v9331_v19, %v9340_v54  ;;  %v6670_v47 = vpack.i.bf16 %v2482_v60, %v2481_v46  ;;  %v6655_v5 = vpack.i.bf16 %v9331_v19, %v2481_v46 }
 0x73a   : > { %6591 = vrot.lane.b32.xlu0 %v6590_v58, %s7811_s13  ;;  %6576 = vrot.lane.b32.xlu1 %v6575_v42, %s7810_s12  ;;  %11562 = vst [vmem:[#allocation12_spill] sm:$0xff] %v9351_v32 }
 0x73b   : > { %11563 = vst [vmem:[#allocation5_spill] sm:$0xff] %v9354_v33  ;;  %11564 = vst [vmem:[#allocation17_spill] sm:$0xff] %v9358_v41 }
 0x73e   : > { %6601 = vrot.lane.b32.xlu0 %v6600_v40, %s7810_s12  ;;  %6586 = vrot.lane.b32.xlu1 %v9289_v61, %s7809_s11 }
 0x742   : > { %6606 = vrot.lane.b32.xlu0 %v9321_v7, %s7809_s11  ;;  %6596 = vrot.lane.b32.xlu1 %v9318_v24, %s7809_s11 }
 0x746   : > { %6621 = vrot.lane.b32.xlu0 %v9321_v7, %s7810_s12  ;;  %6611 = vrot.lane.b32.xlu1 %v9325_v62, %s7808_s10 }
 0x74a   : > { %6631 = vrot.lane.b32.xlu0 %v6630_v29, %s7811_s13  ;;  %6616 = vrot.lane.b32.xlu1 %v6615_v55, %s7810_s12 }
 0x74e   : > { %6641 = vrot.lane.b32.xlu0 %v6640_v18, %s7810_s12  ;;  %6626 = vrot.lane.b32.xlu1 %v9325_v62, %s7809_s11 }
 0x752   : > { %6646 = vrot.lane.b32.xlu0 %v9354_v33, %s7809_s11  ;;  %6636 = vrot.lane.b32.xlu1 %v9351_v32, %s7809_s11 }
 0x756   : > { %6661 = vrot.lane.b32.xlu0 %v9354_v33, %s7810_s12  ;;  %6651 = vrot.lane.b32.xlu1 %v9358_v41, %s7808_s10 }
 0x75a   : > { %6671 = vrot.lane.b32.xlu0 %v6670_v47, %s7811_s13  ;;  %6656 = vrot.lane.b32.xlu1 %v6655_v5, %s7810_s12 }
 0x75e   : > { %6681 = vrot.lane.b32.xlu0 %v9234_v15, %s7805_s30  ;;  %6666 = vrot.lane.b32.xlu1 %v9358_v41, %s7809_s11 }
 0x762   : > { %6691 = vrot.lane.b32.xlu0 %v9282_v17, %s7805_s30  ;;  %6676 = vrot.lane.b32.xlu1 %v9237_v8, %s7805_s30 }
 0x766   : > { %6701 = vrot.lane.b32.xlu0 %v9289_v61, %s7805_s30  ;;  %6686 = vrot.lane.b32.xlu1 %v9245_v13, %s7805_s30 }
 0x76a   : > { %6711 = vrot.lane.b32.xlu0 %v9321_v7, %s7805_s30  ;;  %6696 = vrot.lane.b32.xlu1 %v9285_v53, %s7805_s30 }
 0x76e   : > { %6721 = vrot.lane.b32.xlu0 %v9351_v32, %s7805_s30  ;;  %6706 = vrot.lane.b32.xlu1 %v9318_v24, %s7805_s30 }
 0x772   : > { %6731 = vrot.lane.b32.xlu0 %v9358_v41, %s7805_s30  ;;  %6716 = vrot.lane.b32.xlu1 %v9325_v62, %s7805_s30 }
 0x776   : > { %6726 = vrot.lane.b32.xlu1 %v9354_v33, %s7805_s30 }
 0x790   : > { %v6522_v25 = vpop.permute.xlu0 %6521 }
 0x791   : > { %v6524_v10 = vunpack.i.h.bf16 %v6522_v25  ;;  %v6523_v50 = vunpack.i.l.bf16 %v6522_v25 }
 0x793   : > { %v2691_v47 = vsel %vm11565_vm14, %v6523_v50, %v6524_v10  ;;  %vm11570_vm14 = vmmov %vm11569_vm0 }
 0x794   : > { %v6527_v0 = vpop.permute.xlu0 %6526  ;;  %v6517_v26 = vpop.permute.xlu1 %6516 }
 0x795   : > { %v6519_v30 = vunpack.i.h.bf16 %v6517_v26  ;;  %v6518_v20 = vunpack.i.l.bf16 %v6517_v26  ;;  %v6529_v9 = vunpack.i.h.bf16 %v6527_v0  ;;  %v6528_v58 = vunpack.i.l.bf16 %v6527_v0 }
 0x797   : > { %v2548_v40 = vsel %vm315_vm1, %v6518_v20, %v6519_v30 }
 0x798   : > { %v6542_v45 = vpop.permute.xlu0 %6541  ;;  %v6532_v12 = vpop.permute.xlu1 %6531 }
 0x799   : > { %v6544_v63 = vunpack.i.h.bf16 %v6542_v45  ;;  %v6543_v23 = vunpack.i.l.bf16 %v6542_v45  ;;  %v6534_v16 = vunpack.i.h.bf16 %v6532_v12  ;;  %v6533_v42 = vunpack.i.l.bf16 %v6532_v12 }
 0x79a   : > { %v2550_v45 = vsel %vm315_vm1, %v6528_v58, %v6529_v9 }
 0x79b   : > { %v2694_v5 = vsel %vm11566_vm15, %v6543_v23, %v6544_v63  ;;  %v2612_v26 = vsel %vm11567_vm3, %v6529_v9, %v6534_v16  ;;  %v2611_v36 = vsel %vm11568_vm2, %v6519_v30, %v6533_v42  ;;  %v2740_v63 = vsel %vm7896_vm4, %v2548_v40, %v2691_v47  ;;  %vm11576_vm15 = vmmov %vm11569_vm0 }
 0x79c   : > { %v6552_v46 = vpop.permute.xlu0 %6551  ;;  %v6537_v60 = vpop.permute.xlu1 %6536  ;;  %vm11577_vm3 = vmmov %vm11568_vm2 }
 0x79d   : > { %v6553_v29 = vunpack.i.l.bf16 %v6552_v46  ;;  %v6539_v55 = vunpack.i.h.bf16 %v6537_v60  ;;  %v6538_v18 = vunpack.i.l.bf16 %v6537_v60  ;;  %v6554_v25 = vunpack.i.h.bf16 %v6552_v46 }
 0x79f   : > { %v2693_v0 = vsel %vm11515_vm11, %v6539_v55, %v6543_v23  ;;  %v2692_v12 = vsel %vm11569_vm0, %v6524_v10, %v6538_v18  ;;  %v2731_v9 = vsel %vm11570_vm14, %v6553_v29, %v6523_v50  ;;  %v2744_v23 = vsel %vm7900_vm5, %v2612_v26, %v2694_v5  ;;  %vm11578_vm11 = vmmov %vm11569_vm0 }
 0x7a0   : > { %v9424_v39 = vpop.permute.xlu0 %6561  ;;  %v6547_v52 = vpop.permute.xlu1 %6546  ;;  %v2743_v60 = vsel %vm7896_vm4, %v2550_v45, %v2693_v0  ;;  %v2741_v16 = vsel %vm7900_vm5, %v2611_v36, %v2692_v12  ;;  %v2732_v10 = vsel %vm11569_vm0, %v6554_v25, %v6539_v55  ;;  %v9444_v49 = vsel %vm7908_vm7, %v2693_v0, %v2550_v45  ;;  %vm11579_vm14 = vmmov %vm11569_vm0 }
 0x7a1   : > { %v6549_v46 = vunpack.i.h.bf16 %v6547_v52  ;;  %v6548_v30 = vunpack.i.l.bf16 %v6547_v52  ;;  %v9436_v42 = vpack.i.bf16 %v2744_v23, %v2743_v60  ;;  %v9438_v18 = vpack.i.bf16 %v2741_v16, %v2740_v63 }
 0x7a2   : > { %v3316_v59 = vpack.c.bf16 %v2743_v60, %v2740_v63  ;;  %v2765_v52 = vsel %vm7924_vm9, %v2692_v12, %v2611_v36  ;;  %v2768_v25 = vsel %vm7924_vm9, %v2694_v5, %v2612_v26  ;;  %v9460_v36 = vsel %vm7908_vm7, %v2691_v47, %v2548_v40 }
 0x7a3   : > { %v2549_v51 = vsel %vm315_vm1, %v6549_v46, %v6528_v58  ;;  %v2547_v6 = vsel %vm315_vm1, %v6548_v30, %v6518_v20  ;;  %6746 = vrot.lane.b32.xlu0 %v9436_v42, %s7805_s30  ;;  %6736 = vrot.lane.b32.xlu1 %v9438_v18, %s7805_s30  ;;  %v9463_v45 = vpack.i.bf16 %v2768_v25, %v9444_v49  ;;  %v6564_v25 = vunpack.i.h.bf16 %v9424_v39 }
 0x7a4   : > { %v6567_v29 = vpop.permute.xlu0 %6566  ;;  %v6557_v55 = vpop.permute.xlu1 %6556  ;;  %v2739_v58 = vsel %vm7904_vm6, %v2547_v6, %v2731_v9  ;;  %v2742_v20 = vsel %vm7904_vm6, %v2549_v51, %v2732_v10  ;;  %3499 = vmatprep.subr.bf16.mxu0 %v3316_v59  ;;  %v9466_v0 = vpack.i.bf16 %v2765_v52, %v9460_v36  ;;  %v9470_v60 = vsel %vm7916_vm8, %v2731_v9, %v2547_v6 }
 0x7a5   : > { %11573 = vst [vmem:[#allocation11_spill] sm:$0xff] %v9463_v45  ;;  %v3315_v12 = vpack.c.bf16 %v2742_v20, %v2739_v58  ;;  %v6569_v63 = vunpack.i.h.bf16 %v6567_v29  ;;  %v6568_v59 = vunpack.i.l.bf16 %v6567_v29  ;;  %v6559_v16 = vunpack.i.h.bf16 %v6557_v55 }
 0x7a6   : > { %11574 = vst [vmem:[#allocation15_spill] sm:$0xff] %v9466_v0  ;;  %v9478_v5 = vsel %vm7916_vm8, %v2732_v10, %v2549_v51  ;;  %v6558_v26 = vunpack.i.l.bf16 %v6557_v55  ;;  %v9480_v9 = vpack.i.bf16 %v2742_v20, %v2739_v58  ;;  %v6563_v51 = vunpack.i.l.bf16 %v9424_v39 }
 0x7a7   : > { %6756 = vrot.lane.b32.xlu0 %v9463_v45, %s7805_s30  ;;  %6741 = vrot.lane.b32.xlu1 %v9466_v0, %s7805_s30  ;;  %v9486_v29 = vpack.i.bf16 %v9478_v5, %v9470_v60  ;;  %v2554_v58 = vsel %vm315_vm1, %v6568_v59, %v6569_v63 }
 0x7a8   : > { %v6582_v40 = vpop.permute.xlu0 %6581  ;;  %v6572_v47 = vpop.permute.xlu1 %6571  ;;  %3500 = vmatpush1.bf16.msra.mxu0 %v3315_v12  ;;  %v2552_v20 = vsel %vm315_vm1, %v6558_v26, %v6559_v16  ;;  %v2695_v33 = vsel %vm11569_vm0, %v6563_v51, %v6564_v25 }
 0x7a9   : > { %v6584_v46 = vunpack.i.h.bf16 %v6582_v40  ;;  %v6583_v6 = vunpack.i.l.bf16 %v6582_v40  ;;  %v6574_v30 = vunpack.i.h.bf16 %v6572_v47  ;;  %v6573_v52 = vunpack.i.l.bf16 %v6572_v47  ;;  %11575 = vst [vmem:[#allocation19_spill] sm:$0xff] %v9486_v29 }
 0x7ab   : > { %6751 = vrot.lane.b32.xlu1 %v9480_v9, %s7805_s30  ;;  %v2698_v47 = vsel %vm11576_vm15, %v6583_v6, %v6584_v46  ;;  %v2614_v23 = vsel %vm11577_vm3, %v6569_v63, %v6574_v30  ;;  %v2613_v45 = vsel %vm11568_vm2, %v6559_v16, %v6573_v52  ;;  %vm11580_vm15 = vmmov %vm11569_vm0 }
 0x7ac   : > { %v6592_v10 = vpop.permute.xlu0 %6591  ;;  %v6577_v55 = vpop.permute.xlu1 %6576  ;;  %v2750_v52 = vsel %vm7900_vm5, %v2614_v23, %v2698_v47  ;;  %vm11581_vm3 = vmmov %vm11569_vm0 }
 0x7ad   : > { %v6579_v12 = vunpack.i.h.bf16 %v6577_v55  ;;  %v6578_v40 = vunpack.i.l.bf16 %v6577_v55  ;;  %v6593_v11 = vunpack.i.l.bf16 %v6592_v10  ;;  %v6594_v0 = vunpack.i.h.bf16 %v6592_v10  ;;  %vm11586_vm2 = vmmov %vm11569_vm0 }
 0x7af   : > { %v2697_v39 = vsel %vm11578_vm11, %v6579_v12, %v6583_v6  ;;  %v2696_v41 = vsel %vm11579_vm14, %v6564_v25, %v6578_v40  ;;  %6761 = vrot.lane.b32.xlu1 %v9486_v29, %s7805_s30  ;;  %v2746_v6 = vsel %vm7896_vm4, %v2552_v20, %v2695_v33  ;;  %v2733_v25 = vsel %vm11580_vm15, %v6593_v11, %v6563_v51  ;;  %vm11589_vm15 = vmmov %vm11569_vm0 }
 0x7b0   : > { %v9502_v32 = vpop.permute.xlu0 %6601  ;;  %v6587_v55 = vpop.permute.xlu1 %6586  ;;  %v2747_v46 = vsel %vm7900_vm5, %v2613_v45, %v2696_v41  ;;  %v2749_v63 = vsel %vm7896_vm4, %v2554_v58, %v2697_v39  ;;  %v2734_v62 = vsel %vm11581_vm3, %v6594_v0, %v6579_v12  ;;  %v2774_v12 = vsel %vm7924_vm9, %v2698_v47, %v2614_v23  ;;  %vm11590_vm3 = vmmov %vm11569_vm0 }
 0x7b1   : > { %v6589_v16 = vunpack.i.h.bf16 %v6587_v55  ;;  %v6588_v30 = vunpack.i.l.bf16 %v6587_v55  ;;  %v9513_v10 = vpack.i.bf16 %v2747_v46, %v2746_v6  ;;  %v9515_v40 = vpack.i.bf16 %v2750_v52, %v2749_v63 }
 0x7b2   : > { %v3318_v29 = vpack.c.bf16 %v2749_v63, %v2746_v6  ;;  %v2771_v55 = vsel %vm7924_vm9, %v2696_v41, %v2613_v45  ;;  %vm11587_vm11 = vcmask 252928  }
 0x7b3   : > { %v2553_v7 = vsel %vm315_vm1, %v6589_v16, %v6568_v59  ;;  %v2551_v24 = vsel %vm315_vm1, %v6588_v30, %v6558_v26  ;;  %6766 = vrot.lane.b32.xlu0 %v9513_v10, %s7805_s30  ;;  %6776 = vrot.lane.b32.xlu1 %v9515_v40, %s7805_s30  ;;  %v9532_v59 = vsel %vm7908_vm7, %v2695_v33, %v2552_v20  ;;  %vm11588_vm14 = vmmov %vm11587_vm11 }
 0x7b4   : > { %v6607_v11 = vpop.permute.xlu0 %6606  ;;  %v6597_v51 = vpop.permute.xlu1 %6596  ;;  %v2745_v46 = vsel %vm7904_vm6, %v2551_v24, %v2733_v25  ;;  %v2748_v0 = vsel %vm7904_vm6, %v2553_v7, %v2734_v62  ;;  %3501 = vmatprep.subr.bf16.mxu0 %v3318_v29  ;;  %v9535_v41 = vpack.i.bf16 %v2771_v55, %v9532_v59  ;;  %v9539_v26 = vsel %vm7908_vm7, %v2697_v39, %v2554_v58 }
 0x7b5   : > { %v3317_v45 = vpack.c.bf16 %v2748_v0, %v2745_v46  ;;  %v9545_v63 = vsel %vm7916_vm8, %v2733_v25, %v2551_v24  ;;  %v6609_v29 = vunpack.i.h.bf16 %v6607_v11  ;;  %v6608_v16 = vunpack.i.l.bf16 %v6607_v11 }
 0x7b6   : > { %11582 = vst [vmem:[#allocation22_spill] sm:$0xff] %v9535_v41  ;;  %11583 = vst [vmem:[#allocation16_spill] sm:$0xff] %v9545_v63  ;;  %v6599_v30 = vunpack.i.h.bf16 %v6597_v51  ;;  %v9551_v58 = vsel %vm7916_vm8, %v2734_v62, %v2553_v7  ;;  %v6598_v39 = vunpack.i.l.bf16 %v6597_v51  ;;  %v9553_v47 = vpack.i.bf16 %v2748_v0, %v2745_v46 }
 0x7b7   : > { %6771 = vrot.lane.b32.xlu0 %v9535_v41, %s7805_s30  ;;  %3502 = vmatpush1.bf16.msra.mxu0 %v3317_v45  ;;  %11584 = vst [vmem:[#allocation21_spill] sm:$0xff] %v9551_v58  ;;  %v9556_v25 = vpack.i.bf16 %v2774_v12, %v9539_v26  ;;  %v9560_v55 = vpack.i.bf16 %v9551_v58, %v9545_v63  ;;  %v6604_v11 = vunpack.i.h.bf16 %v9502_v32  ;;  %v6603_v45 = vunpack.i.l.bf16 %v9502_v32 }
 0x7b8   : > { %v6622_v33 = vpop.permute.xlu0 %6621  ;;  %v6612_v20 = vpop.permute.xlu1 %6611  ;;  %11585 = vst [vmem:[#allocation24_spill] sm:$0xff] %v9553_v47  ;;  %v2558_v51 = vsel %vm315_vm1, %v6608_v16, %v6609_v29  ;;  %v2556_v12 = vsel %vm315_vm1, %v6598_v39, %v6599_v30 }
 0x7b9   : > { %v6624_v6 = vunpack.i.h.bf16 %v6622_v33  ;;  %v6623_v23 = vunpack.i.l.bf16 %v6622_v33  ;;  %v6614_v24 = vunpack.i.h.bf16 %v6612_v20  ;;  %v6613_v52 = vunpack.i.l.bf16 %v6612_v20 }
 0x7ba   : > { %v2699_v13 = vsel %vm11590_vm3, %v6603_v45, %v6604_v11 }
 0x7bb   : > { %6781 = vrot.lane.b32.xlu0 %v9553_v47, %s7805_s30  ;;  %v2702_v33 = vsel %vm11586_vm2, %v6623_v23, %v6624_v6  ;;  %v2616_v20 = vsel %vm11587_vm11, %v6609_v29, %v6614_v24  ;;  %v2615_v41 = vsel %vm11588_vm14, %v6599_v30, %v6613_v52  ;;  %vm11593_vm2 = vmmov %vm11569_vm0 }
 0x7bc   : > { %v6632_v7 = vpop.permute.xlu0 %6631  ;;  %v6617_v62 = vpop.permute.xlu1 %6616  ;;  %v2756_v30 = vsel %vm7900_vm5, %v2616_v20, %v2702_v33  ;;  %vm11594_vm11 = vmmov %vm11569_vm0 }
 0x7bd   : > { %v6619_v46 = vunpack.i.h.bf16 %v6617_v62  ;;  %v6618_v0 = vunpack.i.l.bf16 %v6617_v62  ;;  %v6634_v61 = vunpack.i.h.bf16 %v6632_v7  ;;  %v6633_v53 = vunpack.i.l.bf16 %v6632_v7  ;;  %vm11600_vm14 = vmmov %vm11569_vm0 }
 0x7be   : > { %vm11603_vm3 = vmmov %vm11593_vm2 }
 0x7bf   : > { %v2701_v32 = vsel %vm11569_vm0, %v6619_v46, %v6623_v23  ;;  %v2700_v17 = vsel %vm11589_vm15, %v6604_v11, %v6618_v0  ;;  %v2752_v23 = vsel %vm7896_vm4, %v2556_v12, %v2699_v13  ;;  %v2735_v0 = vsel %vm11593_vm2, %v6633_v53, %v6603_v45 }
 0x7c0   : > { %v9574_v15 = vpop.permute.xlu0 %6641  ;;  %v6627_v8 = vpop.permute.xlu1 %6626  ;;  %v2755_v62 = vsel %vm7896_vm4, %v2558_v51, %v2701_v32  ;;  %v2753_v6 = vsel %vm7900_vm5, %v2615_v41, %v2700_v17  ;;  %v2736_v47 = vsel %vm11594_vm11, %v6634_v61, %v6619_v46  ;;  %v2777_v45 = vsel %vm7924_vm9, %v2700_v17, %v2615_v41  ;;  %vm11604_vm11 = vmmov %vm11593_vm2 }
 0x7c1   : > { %v6629_v29 = vunpack.i.h.bf16 %v6627_v8  ;;  %v6628_v24 = vunpack.i.l.bf16 %v6627_v8  ;;  %v9584_v52 = vpack.i.bf16 %v2756_v30, %v2755_v62  ;;  %v9586_v11 = vpack.i.bf16 %v2753_v6, %v2752_v23 }
 0x7c2   : > { %v3320_v7 = vpack.c.bf16 %v2755_v62, %v2752_v23  ;;  %v9610_v46 = vsel %vm7908_vm7, %v2701_v32, %v2558_v51  ;;  %v2780_v62 = vsel %vm7924_vm9, %v2702_v33, %v2616_v20  ;;  %vm11601_vm0 = vcmask 252928  }
 0x7c3   : > { %11591 = vst [vmem:[#allocation25_spill] sm:$0xff] %v9584_v52  ;;  %11592 = vst [vmem:[#allocation27_spill] sm:$0xff] %v9586_v11  ;;  %v2557_v58 = vsel %vm315_vm1, %v6629_v29, %v6608_v16  ;;  %v2555_v63 = vsel %vm315_vm1, %v6628_v24, %v6598_v39  ;;  %6791 = vrot.lane.b32.xlu0 %v9584_v52, %s7805_s30  ;;  %6786 = vrot.lane.b32.xlu1 %v9586_v11, %s7805_s30 }
 0x7c4   : > { %v6647_v8 = vpop.permute.xlu0 %6646  ;;  %v6637_v30 = vpop.permute.xlu1 %6636  ;;  %v2751_v6 = vsel %vm7904_vm6, %v2555_v63, %v2735_v0  ;;  %v2754_v53 = vsel %vm7904_vm6, %v2557_v58, %v2736_v47  ;;  %3503 = vmatprep.subr.bf16.mxu0 %v3320_v7  ;;  %v9604_v39 = vsel %vm7908_vm7, %v2699_v13, %v2556_v12  ;;  %11597 = vst [vmem:[#allocation28_spill] sm:$0xff] %v9610_v46  ;;  %vm11602_vm15 = vmmov %vm11601_vm0 }
 0x7c5   : > { %v9600_v61 = vpack.i.bf16 %v2754_v53, %v2751_v6  ;;  %v3319_v16 = vpack.c.bf16 %v2754_v53, %v2751_v6  ;;  %11596 = vst [vmem:[#allocation26_spill] sm:$0xff] %v9604_v39  ;;  %v6649_v29 = vunpack.i.h.bf16 %v6647_v8  ;;  %v6648_v24 = vunpack.i.l.bf16 %v6647_v8 }
 0x7c6   : > { %v9618_v13 = vsel %vm7916_vm8, %v2735_v0, %v2555_v63  ;;  %v9622_v17 = vsel %vm7916_vm8, %v2736_v47, %v2557_v58  ;;  %v6639_v41 = vunpack.i.h.bf16 %v6637_v30  ;;  %v6638_v51 = vunpack.i.l.bf16 %v6637_v30 }
 0x7c7   : > { %11595 = vst [vmem:[#allocation23_spill] sm:$0xff] %v9600_v61  ;;  %6796 = vrot.lane.b32.xlu1 %v9600_v61, %s7805_s30  ;;  %3504 = vmatpush1.bf16.msra.mxu0 %v3319_v16  ;;  %11598 = vst [vmem:[#allocation2_spill] sm:$0xff] %v9618_v13  ;;  %v9625_v8 = vpack.i.bf16 %v2777_v45, %v9604_v39  ;;  %v9628_v6 = vpack.i.bf16 %v2780_v62, %v9610_v46  ;;  %v6644_v0 = vunpack.i.h.bf16 %v9574_v15 }
 0x7c8   : > { %v6662_v23 = vpop.permute.xlu0 %6661  ;;  %v6652_v7 = vpop.permute.xlu1 %6651  ;;  %11599 = vst [vmem:[#allocation4_spill] sm:$0xff] %v9622_v17  ;;  %v9632_v63 = vpack.i.bf16 %v9622_v17, %v9618_v13  ;;  %v6643_v58 = vunpack.i.l.bf16 %v9574_v15  ;;  %v9637_v53 = vsel %vm315_vm1, %v6648_v24, %v6649_v29  ;;  %v2560_v45 = vsel %vm315_vm1, %v6638_v51, %v6639_v41 }
 0x7c9   : > { %v6664_v12 = vunpack.i.h.bf16 %v6662_v23  ;;  %v6663_v33 = vunpack.i.l.bf16 %v6662_v23  ;;  %v6654_v20 = vunpack.i.h.bf16 %v6652_v7  ;;  %v6653_v32 = vunpack.i.l.bf16 %v6652_v7 }
 0x7ca   : > { %v2703_v13 = vsel %vm11604_vm11, %v6643_v58, %v6644_v0 }
 0x7cb   : > { %v9641_v62 = vsel %vm11600_vm14, %v6663_v33, %v6664_v12  ;;  %v9644_v7 = vsel %vm11601_vm0, %v6649_v29, %v6654_v20  ;;  %v2617_v61 = vsel %vm11602_vm15, %v6639_v41, %v6653_v32  ;;  %v2758_v41 = vsel %vm7896_vm4, %v2560_v45, %v2703_v13  ;;  %vm11605_vm14 = vmmov %vm11593_vm2 }
 0x7cc   : > { %v6672_v47 = vpop.permute.xlu0 %6671  ;;  %v6657_v30 = vpop.permute.xlu1 %6656  ;;  %vm11606_vm0 = vmmov %vm11593_vm2  ;;  %vm11644_vm15 = vcmask 130048  }
 0x7cd   : > { %v6659_v16 = vunpack.i.h.bf16 %v6657_v30  ;;  %v6658_v23 = vunpack.i.l.bf16 %v6657_v30  ;;  %v6674_v52 = vunpack.i.h.bf16 %v6672_v47  ;;  %v6673_v43 = vunpack.i.l.bf16 %v6672_v47 }
 0x7cf   : > { %v2705_v15 = vsel %vm11603_vm3, %v6659_v16, %v6663_v33  ;;  %v2704_v17 = vsel %vm11593_vm2, %v6644_v0, %v6658_v23  ;;  %v2762_v33 = vsel %vm7900_vm5, %v9644_v7, %v9641_v62  ;;  %v2737_v23 = vsel %vm11605_vm14, %v6673_v43, %v6643_v58  ;;  %vm11645_vm3 = vmmov %vm11644_vm15 }
 0x7d0   : > { %v6667_v46 = vpop.permute.xlu1 %6666  ;;  %v2759_v30 = vsel %vm7900_vm5, %v2617_v61, %v2704_v17  ;;  %v2761_v12 = vsel %vm7896_vm4, %v9637_v53, %v2705_v15  ;;  %v2738_v39 = vsel %vm11606_vm0, %v6674_v52, %v6659_v16  ;;  %v2783_v43 = vsel %vm7924_vm9, %v2704_v17, %v2617_v61  ;;  %v7671_v52 = vld [vmem:[%s11353_s3 + $0x4] ss:$20 sps:$4 sm:$0xff]   ;;  %vm11646_vm2 = vmmov %vm11645_vm3 }
 0x7d1   : > { %v6669_v29 = vunpack.i.h.bf16 %v6667_v46  ;;  %v6668_v20 = vunpack.i.l.bf16 %v6667_v46  ;;  %v9661_v32 = vpack.i.bf16 %v2759_v30, %v2758_v41  ;;  %v9663_v0 = vpack.i.bf16 %v2762_v33, %v2761_v12  ;;  %3531 = vmatprep.mubr.bf16.mxu0 %v7671_v52  ;;  %v11628_v33 = vld [vmem:[#allocation8_spill] sm:$0xff]  ;;  %v11632_v52 = vld [vmem:[#allocation6_spill] sm:$0xff]  ;;  %vm11647_vm11 = vmmov %vm11646_vm2 }
 0x7d2   : > { %v3322_v47 = vpack.c.bf16 %v2761_v12, %v2758_v41  ;;  %v2782_v58 = vsel %vm7908_vm7, %v2703_v13, %v2560_v45  ;;  %v11607_v61 = vpack.c.bf16 %v9228_v27, %v9217_v22  ;;  %v11608_v13 = vpack.c.bf16 %v9231_v57, %v9220_v56  ;;  %vm11648_vm14 = vmmov %vm11646_vm2 }
 0x7d3   : > { %v2561_v11 = vsel %vm315_vm1, %v6669_v29, %v6648_v24  ;;  %v2559_v46 = vsel %vm315_vm1, %v6668_v20, %v6638_v51  ;;  %6801 = vrot.lane.b32.xlu0 %v9661_v32, %s7805_s30  ;;  %6806 = vrot.lane.b32.xlu1 %v9663_v0, %s7805_s30  ;;  %v9690_v16 = vpack.i.bf16 %v2783_v43, %v2782_v58  ;;  %v11627_v29 = vld [vmem:[#allocation10_spill] sm:$0xff]  ;;  %vm11649_vm0 = vmmov %vm11646_vm2 }
 0x7d4   : > { %v2757_v30 = vsel %vm7904_vm6, %v2559_v46, %v2737_v23  ;;  %v2760_v12 = vsel %vm7904_vm6, %v2561_v11, %v2738_v39  ;;  %3505 = vmatprep.subr.bf16.mxu0 %v3322_v47  ;;  %v11609_v17 = vpack.c.bf16 %v9263_v28, %v9257_v44  ;;  %v11610_v22 = vpack.c.bf16 %v9266_v31, %v9260_v4  ;;  %v11629_v47 = vld [vmem:[#allocation9_spill] sm:$0xff] }
 0x7d5   : > { %v9682_v24 = vpack.i.bf16 %v2760_v12, %v2757_v30  ;;  %v3321_v51 = vpack.c.bf16 %v2760_v12, %v2757_v30  ;;  %v11611_v27 = vpack.c.bf16 %v9292_v21, %v9302_v14  ;;  %v11612_v56 = vpack.c.bf16 %v9295_v3, %v9305_v1  ;;  %v11616_v21 = vld [vmem:[#allocation16_spill] sm:$0xff]  ;;  %v11617_v3 = vld [vmem:[#allocation21_spill] sm:$0xff] }
 0x7d6   : > { %v11613_v57 = vpack.c.bf16 %v9328_v2, %v9337_v48  ;;  %v11614_v44 = vpack.c.bf16 %v9331_v19, %v9340_v54  ;;  %v11615_v4 = vpack.c.bf16 %v9444_v49, %v9460_v36  ;;  %v3331_v28 = vpack.c.bf16 %v9478_v5, %v9470_v60  ;;  %v11618_v1 = vld [vmem:[#allocation24_spill] sm:$0xff]  ;;  %v11619_v2 = vld [vmem:[#allocation27_spill] sm:$0xff]  ;;  %v11620_v19 = vld [vmem:[#allocation26_spill] sm:$0xff] }
 0x7d7   : > { %6816 = vrot.lane.b32.xlu0 %v9682_v24, %s7805_s30  ;;  %6811 = vrot.lane.b32.xlu1 %v9556_v25, %s7805_s30  ;;  %v3334_v31 = vpack.c.bf16 %v9539_v26, %v9532_v59  ;;  %v3333_v14 = vpack.c.bf16 %v11617_v3, %v11616_v21  ;;  %v2785_v49 = vsel %vm7908_vm7, %v2705_v15, %v9637_v53  ;;  %v11621_v48 = vld [vmem:[#allocation28_spill] sm:$0xff]  ;;  %v11622_v36 = vld [vmem:[#allocation2_spill] sm:$0xff]  ;;  %v9766_v59 = vpop.permute.xlu0 %6681  ;;  %v9768_v26 = vpop.permute.xlu1 %6676  ;;  %v11625_v53 = vld [vmem:[#allocation25_spill] sm:$0xff] }
 0x7d8   : > { %3506 = vmatpush1.bf16.msra.mxu0 %v3321_v51  ;;  %v3336_v54 = vpack.c.bf16 %v11621_v48, %v11620_v19  ;;  %v11623_v60 = vld [vmem:[#allocation4_spill] sm:$0xff]  ;;  %v3338_v45 = vpack.c.bf16 %v2785_v49, %v2782_v58  ;;  %v11631_v30 = vld [vmem:[#allocation13_spill] sm:$0xff]  ;;  %v11635_v58 = vld [vmem:[#allocation7_spill] sm:$0xff] }
 0x7d9   : > { %3507 = vmatprep.subr.bf16.mxu0 %v11607_v61  ;;  %v3335_v5 = vpack.c.bf16 %v11623_v60, %v11622_v36  ;;  %v11633_v51 = vld [vmem:[#allocation20_spill] sm:$0xff] }
 0x7db   : > { %6821 = vrot.lane.b32.xlu0 %v9560_v55, %s7805_s30  ;;  %6826 = vrot.lane.b32.xlu1 %v9625_v8, %s7805_s30  ;;  %v9782_v15 = vpop.permute.xlu1 %6686 }
 0x7dc   : > { %3508 = vmatpush1.bf16.msra.mxu0 %v11608_v13  ;;  %v11636_v13 = vld [vmem:[#allocation12_spill] sm:$0xff] }
 0x7dd   : > { %3509 = vmatprep.subr.bf16.mxu0 %v11609_v17  ;;  %v11637_v17 = vld [vmem:[#allocation5_spill] sm:$0xff] }
 0x7df   : > { %6831 = vrot.lane.b32.xlu0 %v9628_v6, %s7805_s30  ;;  %6836 = vrot.lane.b32.xlu1 %v9632_v63, %s7805_s30  ;;  %v9790_v41 = vpop.permute.xlu1 %6696 }
 0x7e0   : > { %3510 = vmatpush1.bf16.msra.mxu0 %v11610_v22 }
 0x7e1   : > { %3511 = vmatprep.subr.bf16.mxu0 %v11611_v27 }
 0x7e3   : > { %6841 = vrot.lane.b32.xlu0 %v9690_v16, %s7805_s30  ;;  %6846 = vrot.lane.b32.xlu1 %v9438_v18, %s7812_s14 }
 0x7e4   : > { %3512 = vmatpush1.bf16.msra.mxu0 %v11612_v56 }
 0x7e5   : > { %3513 = vmatprep.subr.bf16.mxu0 %v11613_v57 }
 0x7e7   : > { %6851 = vrot.lane.b32.xlu0 %v9436_v42, %s7812_s14  ;;  %6856 = vrot.lane.b32.xlu1 %v9480_v9, %s7812_s14  ;;  %v2786_v42 = vsel %vm7924_vm9, %v9641_v62, %v9644_v7 }
 0x7e8   : > { %3514 = vmatpush1.bf16.msra.mxu0 %v11614_v44  ;;  %v9758_v18 = vpack.i.bf16 %v2786_v42, %v2785_v49  ;;  %v11642_v42 = vld [vmem:[#allocation22_spill] sm:$0xff] }
 0x7e9   : > { %3515 = vmatprep.subr.bf16.mxu0 %v11615_v4 }
 0x7eb   : > { %6861 = vrot.lane.b32.xlu0 %v9513_v10, %s7812_s14  ;;  %6866 = vrot.lane.b32.xlu1 %v9515_v40, %s7812_s14  ;;  %v2781_v10 = vsel %vm7916_vm8, %v2737_v23, %v2559_v46  ;;  %v2784_v40 = vsel %vm7916_vm8, %v2738_v39, %v2561_v11  ;;  %v11626_v11 = vld [vmem:[#allocation23_spill] sm:$0xff]  ;;  %v9780_v39 = vpop.permute.xlu0 %6691  ;;  %v11630_v23 = vld [vmem:[#allocation14_spill] sm:$0xff]  ;;  %v9802_v46 = vpop.permute.xlu1 %6706 }
 0x7ec   : > { %3516 = vmatpush1.bf16.msra.mxu0 %v3331_v28  ;;  %v9774_v62 = vpack.i.bf16 %v2784_v40, %v2781_v10  ;;  %v3337_v7 = vpack.c.bf16 %v2784_v40, %v2781_v10  ;;  %v11638_v28 = vld [vmem:[#allocation17_spill] sm:$0xff] }
 0x7ed   : > { %3517 = vmatprep.subr.bf16.mxu0 %v3334_v31  ;;  %v11639_v31 = vld [vmem:[#allocation15_spill] sm:$0xff] }
 0x7ef   : > { %6871 = vrot.lane.b32.xlu0 %v11618_v1, %s7812_s14  ;;  %6876 = vrot.lane.b32.xlu1 %v11619_v2, %s7812_s14  ;;  %v9788_v20 = vpop.permute.xlu0 %6701  ;;  %v9810_v43 = vpop.permute.xlu1 %6716  ;;  %v11640_v1 = vld [vmem:[#allocation11_spill] sm:$0xff] }
 0x7f0   : > { %3518 = vmatpush1.bf16.msra.mxu0 %v3333_v14  ;;  %v11641_v2 = vld [vmem:[#allocation19_spill] sm:$0xff] }
 0x7f1   : > { %3519 = vmatprep.subr.bf16.mxu0 %v3336_v54 }
 0x7f3   : > { %6881 = vrot.lane.b32.xlu0 %v11625_v53, %s7812_s14  ;;  %6886 = vrot.lane.b32.xlu1 %v9758_v18, %s7805_s30  ;;  %v9822_v61 = vpop.permute.xlu1 %6726 }
 0x7f4   : > { %3520 = vmatpush1.bf16.msra.mxu0 %v3335_v5 }
 0x7f5   : > { %3521 = vmatprep.subr.bf16.mxu0 %v3338_v45 }
 0x7f7   : > { %6896 = vrot.lane.b32.xlu0 %v9774_v62, %s7805_s30  ;;  %6891 = vrot.lane.b32.xlu1 %v11626_v11, %s7812_s14 }
 0x7f8   : > { %3522 = vmatpush1.bf16.msra.mxu0 %v3337_v7 }
 0x7fb   : > { %6901 = vrot.lane.b32.xlu0 %v9661_v32, %s7812_s14  ;;  %6906 = vrot.lane.b32.xlu1 %v11627_v29, %s7812_s14  ;;  %v9800_v32 = vpop.permute.xlu0 %6711 }
 0x7ff   : > { %6911 = vrot.lane.b32.xlu0 %v11628_v33, %s7812_s14  ;;  %6916 = vrot.lane.b32.xlu1 %v11629_v47, %s7812_s14  ;;  %v9808_v12 = vpop.permute.xlu0 %6721 }
 0x803   : > { %6921 = vrot.lane.b32.xlu0 %v11630_v23, %s7812_s14  ;;  %6926 = vrot.lane.b32.xlu1 %v9663_v0, %s7812_s14  ;;  %v11634_v0 = vld [vmem:[#allocation18_spill] sm:$0xff] }
 0x807   : > { %6936 = vrot.lane.b32.xlu0 %v9682_v24, %s7812_s14  ;;  %6931 = vrot.lane.b32.xlu1 %v11631_v30, %s7812_s14  ;;  %v9820_v24 = vpop.permute.xlu0 %6731 }
 0x80b   : > { %6941 = vrot.lane.b32.xlu0 %v11632_v52, %s7812_s14  ;;  %6946 = vrot.lane.b32.xlu1 %v11633_v51, %s7812_s14 }
 0x80f   : > { %6951 = vrot.lane.b32.xlu0 %v11634_v0, %s7812_s14  ;;  %6956 = vrot.lane.b32.xlu1 %v11635_v58, %s7812_s14 }
 0x813   : > { %6961 = vrot.lane.b32.xlu0 %v11636_v13, %s7812_s14  ;;  %6966 = vrot.lane.b32.xlu1 %v11637_v17, %s7812_s14 }
 0x815   : > { %v6747_v22 = vpop.permute.xlu0 %6746  ;;  %v6737_v27 = vpop.permute.xlu1 %6736 }
 0x816   : > { %v6749_v56 = vunpack.i.h.bf16 %v6747_v22  ;;  %v6748_v57 = vunpack.i.l.bf16 %v6747_v22  ;;  %v6739_v44 = vunpack.i.h.bf16 %v6737_v27  ;;  %v6738_v4 = vunpack.i.l.bf16 %v6737_v27 }
 0x817   : > { %6971 = vrot.lane.b32.xlu0 %v11638_v28, %s7812_s14  ;;  %6976 = vrot.lane.b32.xlu1 %v11639_v31, %s7812_s14 }
 0x818   : > { %v2860_v21 = vsel %vm383_vm12, %v6738_v4, %v6739_v44  ;;  %v2862_v3 = vsel %vm383_vm12, %v6748_v57, %v6749_v56 }
 0x819   : > { %v9834_v14 = vpop.permute.xlu1 %6741  ;;  %v3340_v49 = vpack.c.bf16 %v2862_v3, %v2860_v21  ;;  %v9846_v5 = vpop.permute.xlu0 %6756 }
 0x81b   : > { %6981 = vrot.lane.b32.xlu0 %v11640_v1, %s7812_s14  ;;  %6986 = vrot.lane.b32.xlu1 %v11641_v2, %s7812_s14 }
 0x81c   : > { %3523 = vmatprep.subr.bf16.mxu0 %v3340_v49 }
 0x81d   : > { %v6752_v19 = vpop.permute.xlu1 %6751 }
 0x81e   : > { %v6754_v48 = vunpack.i.h.bf16 %v6752_v19  ;;  %v6753_v54 = vunpack.i.l.bf16 %v6752_v19 }
 0x81f   : > { %6991 = vrot.lane.b32.xlu0 %v11642_v42, %s7812_s14  ;;  %6996 = vrot.lane.b32.xlu1 %v9556_v25, %s7812_s14 }
 0x820   : > { %v2861_v36 = vsel %vm383_vm12, %v6754_v48, %v6748_v57  ;;  %v2859_v60 = vsel %vm383_vm12, %v6753_v54, %v6738_v4  ;;  %v6679_v48 = vunpack.i.h.bf16 %v9768_v26  ;;  %v6678_v54 = vunpack.i.l.bf16 %v9768_v26 }
 0x821   : > { %v9848_v10 = vpop.permute.xlu1 %6761  ;;  %v3339_v40 = vpack.c.bf16 %v2861_v36, %v2859_v60  ;;  %v6684_v60 = vunpack.i.h.bf16 %v9766_v59  ;;  %v6694_v26 = vunpack.i.h.bf16 %v9780_v39 }
 0x823   : > { %7001 = vrot.lane.b32.xlu0 %v9560_v55, %s7812_s14  ;;  %7006 = vrot.lane.b32.xlu1 %v9625_v8, %s7812_s14 }
 0x824   : > { %3524 = vmatpush1.bf16.msra.mxu0 %v3339_v40  ;;  %v6683_v40 = vunpack.i.l.bf16 %v9766_v59  ;;  %v6693_v59 = vunpack.i.l.bf16 %v9780_v39  ;;  %v6714_v39 = vunpack.i.h.bf16 %v9800_v32 }
 0x825   : > { %v6767_v53 = vpop.permute.xlu0 %6766  ;;  %v6777_v45 = vpop.permute.xlu1 %6776 }
 0x826   : > { %v6769_v7 = vunpack.i.h.bf16 %v6767_v53  ;;  %v6768_v25 = vunpack.i.l.bf16 %v6767_v53  ;;  %v6779_v11 = vunpack.i.h.bf16 %v6777_v45  ;;  %v6778_v29 = vunpack.i.l.bf16 %v6777_v45 }
 0x827   : > { %7011 = vrot.lane.b32.xlu0 %v9628_v6, %s7812_s14  ;;  %7016 = vrot.lane.b32.xlu1 %v9632_v63, %s7812_s14  ;;  %v6689_v53 = vunpack.i.h.bf16 %v9782_v15 }
 0x828   : > { %v2864_v33 = vsel %vm383_vm12, %v6768_v25, %v6769_v7  ;;  %v2866_v55 = vsel %vm383_vm12, %v6778_v29, %v6779_v11  ;;  %v6688_v11 = vunpack.i.l.bf16 %v9782_v15  ;;  %v6703_v15 = vunpack.i.l.bf16 %v9788_v20 }
 0x829   : > { %v9860_v47 = vpop.permute.xlu0 %6771  ;;  %v3342_v8 = vpack.c.bf16 %v2866_v55, %v2864_v33  ;;  %v6699_v55 = vunpack.i.h.bf16 %v9790_v41 }
 0x82b   : > { %7021 = vrot.lane.b32.xlu0 %v9690_v16, %s7812_s14  ;;  %7026 = vrot.lane.b32.xlu1 %v9758_v18, %s7812_s14 }
 0x82c   : > { %3525 = vmatprep.subr.bf16.mxu0 %v3342_v8  ;;  %v6698_v8 = vunpack.i.l.bf16 %v9790_v41 }
 0x82d   : > { %v6782_v23 = vpop.permute.xlu0 %6781 }
 0x82e   : > { %v6784_v30 = vunpack.i.h.bf16 %v6782_v23  ;;  %v6783_v6 = vunpack.i.l.bf16 %v6782_v23  ;;  %v2940_v23 = vsel %vm383_vm12, %v6678_v54, %v6679_v48  ;;  %v6723_v48 = vunpack.i.l.bf16 %v9808_v12 }
 0x82f   : > { %7031 = vrot.lane.b32.xlu0 %v9774_v62, %s7812_s14 }
 0x830   : > { %v2863_v63 = vsel %vm383_vm12, %v6783_v6, %v6768_v25  ;;  %v2865_v52 = vsel %vm383_vm12, %v6784_v30, %v6778_v29  ;;  %v6704_v30 = vunpack.i.h.bf16 %v9788_v20  ;;  %v7669_v20 = vld [vmem:[%s11353_s3] ss:$20 sps:$4 sm:$0xff]  }
 0x831   : > { %v3341_v51 = vpack.c.bf16 %v2865_v52, %v2863_v63  ;;  %v2941_v52 = vsel %vm383_vm12, %v6689_v53, %v6683_v40 }
 0x833   : > { %3526 = vmatpush1.bf16.msra.mxu0 %v3341_v51 }
 0x835   : > { %v6792_v0 = vpop.permute.xlu0 %6791  ;;  %v6787_v58 = vpop.permute.xlu1 %6786 }
 0x836   : > { %v6794_v13 = vunpack.i.h.bf16 %v6792_v0  ;;  %v6793_v16 = vunpack.i.l.bf16 %v6792_v0  ;;  %v6789_v17 = vunpack.i.h.bf16 %v6787_v58  ;;  %v6788_v22 = vunpack.i.l.bf16 %v6787_v58 }
 0x837   : > { %v2942_v58 = vsel %vm383_vm12, %v6683_v40, %v6684_v60  ;;  %v6758_v60 = vunpack.i.l.bf16 %v9846_v5  ;;  %v6743_v40 = vunpack.i.l.bf16 %v9834_v14 }
 0x838   : > { %v2868_v18 = vsel %vm383_vm12, %v6788_v22, %v6789_v17  ;;  %v2870_v27 = vsel %vm383_vm12, %v6793_v16, %v6794_v13  ;;  %v2939_v13 = vsel %vm383_vm12, %v6688_v11, %v6678_v54  ;;  %v3348_v17 = vpack.c.bf16 %v2942_v58, %v2940_v23  ;;  %v7674_v11 = vld [vmem:[%s11353_s3 + $0x28] ss:$20 sps:$4 sm:$0xff]  }
 0x839   : > { %v6797_v56 = vpop.permute.xlu1 %6796  ;;  %v3344_v57 = vpack.c.bf16 %v2870_v27, %v2868_v18  ;;  %v6708_v18 = vunpack.i.l.bf16 %v9802_v46  ;;  %v2946_v27 = vsel %vm383_vm12, %v6698_v8, %v6699_v55  ;;  %v6763_v23 = vunpack.i.l.bf16 %v9848_v10 }
 0x83a   : > { %v6799_v44 = vunpack.i.h.bf16 %v6797_v56  ;;  %v6798_v62 = vunpack.i.l.bf16 %v6797_v56  ;;  %v7672_v56 = vld [vmem:[%s11353_s3 + $0x2c] ss:$20 sps:$4 sm:$0xff]  }
 0x83b   : > { %3527 = vmatprep.subr.bf16.mxu0 %v3344_v57  ;;  %v2945_v57 = vsel %vm383_vm12, %v6704_v30, %v6698_v8  ;;  %v6764_v8 = vunpack.i.h.bf16 %v9848_v10 }
 0x83c   : > { %v2869_v4 = vsel %vm383_vm12, %v6799_v44, %v6793_v16  ;;  %v2867_v28 = vsel %vm383_vm12, %v6798_v62, %v6788_v22  ;;  %v6713_v16 = vunpack.i.l.bf16 %v9800_v32  ;;  %v6709_v22 = vunpack.i.h.bf16 %v9802_v46 }
 0x83d   : > { %v3343_v31 = vpack.c.bf16 %v2869_v4, %v2867_v28  ;;  %v6719_v32 = vunpack.i.h.bf16 %v9810_v43  ;;  %v6718_v44 = vunpack.i.l.bf16 %v9810_v43  ;;  %v3347_v28 = vpack.c.bf16 %v2941_v52, %v2939_v13 }
 0x83e   : > { %v2944_v46 = vsel %vm383_vm12, %v6693_v59, %v6694_v26  ;;  %v3045_v13 = vsel %vm383_vm12, %v6764_v8, %v6758_v60 }
 0x83f   : > { %3528 = vmatpush1.bf16.msra.mxu0 %v3343_v31  ;;  %v2943_v31 = vsel %vm383_vm12, %v6703_v15, %v6693_v59  ;;  %v2949_v54 = vsel %vm383_vm12, %v6719_v32, %v6713_v16 }
 0x840   : > { %v3349_v43 = vpack.c.bf16 %v2945_v57, %v2943_v31  ;;  %v7677_v57 = vld [vmem:[%s11353_s3 + $0x50] ss:$20 sps:$4 sm:$0xff]  }
 0x845   : > { %v6802_v21 = vpop.permute.xlu0 %6801  ;;  %v6807_v3 = vpop.permute.xlu1 %6806 }
 0x846   : > { %v6804_v49 = vunpack.i.h.bf16 %v6802_v21  ;;  %v6803_v1 = vunpack.i.l.bf16 %v6802_v21  ;;  %v6809_v2 = vunpack.i.h.bf16 %v6807_v3  ;;  %v6808_v19 = vunpack.i.l.bf16 %v6807_v3 }
 0x847   : > { %v3350_v21 = vpack.c.bf16 %v2946_v27, %v2944_v46  ;;  %v2950_v3 = vsel %vm383_vm12, %v6713_v16, %v6714_v39  ;;  %v3043_v39 = vsel %vm383_vm12, %v6763_v23, %v6743_v40  ;;  %v6774_v16 = vunpack.i.h.bf16 %v9860_v47 }
 0x848   : > { %v2872_v42 = vsel %vm383_vm12, %v6803_v1, %v6804_v49  ;;  %v2874_v36 = vsel %vm383_vm12, %v6808_v19, %v6809_v2  ;;  %v6729_v49 = vunpack.i.h.bf16 %v9822_v61  ;;  %v2948_v2 = vsel %vm383_vm12, %v6708_v18, %v6709_v22 }
 0x849   : > { %v6817_v45 = vpop.permute.xlu0 %6816  ;;  %v9881_v7 = vpop.permute.xlu1 %6811  ;;  %v3346_v25 = vpack.c.bf16 %v2874_v36, %v2872_v42  ;;  %v2947_v42 = vsel %vm383_vm12, %v6718_v44, %v6708_v18  ;;  %v6759_v36 = vunpack.i.h.bf16 %v9846_v5 }
 0x84a   : > { %v6819_v29 = vunpack.i.h.bf16 %v6817_v45  ;;  %v6818_v33 = vunpack.i.l.bf16 %v6817_v45  ;;  %v3351_v26 = vpack.c.bf16 %v2949_v54, %v2947_v42  ;;  %v6814_v52 = vunpack.i.h.bf16 %v9881_v7 }
 0x84b   : > { %3529 = vmatprep.subr.bf16.mxu0 %v3346_v25  ;;  %v6734_v25 = vunpack.i.h.bf16 %v9820_v24 }
 0x84c   : > { %v2871_v6 = vsel %vm383_vm12, %v6818_v33, %v6803_v1  ;;  %v2873_v63 = vsel %vm383_vm12, %v6819_v29, %v6808_v19  ;;  %v6728_v1 = vunpack.i.l.bf16 %v9822_v61  ;;  %v6724_v19 = vunpack.i.h.bf16 %v9808_v12 }
 0x84d   : > { %v9894_v51 = vpop.permute.xlu0 %6821  ;;  %v9896_v0 = vpop.permute.xlu1 %6826  ;;  %v3345_v41 = vpack.c.bf16 %v2873_v63, %v2871_v6  ;;  %v6744_v61 = vunpack.i.h.bf16 %v9834_v14  ;;  %v3352_v12 = vpack.c.bf16 %v2950_v3, %v2948_v2  ;;  %v6733_v29 = vunpack.i.l.bf16 %v9820_v24  ;;  %v7675_v14 = vld [vmem:[%s11353_s3 + $0x54] ss:$20 sps:$4 sm:$0xff]  }
 0x84e   : > { %v2954_v5 = vsel %vm383_vm12, %v6728_v1, %v6729_v49  ;;  %v2953_v33 = vsel %vm383_vm12, %v6734_v25, %v6728_v1  ;;  %v2952_v55 = vsel %vm383_vm12, %v6723_v48, %v6724_v19  ;;  %v3046_v6 = vsel %vm383_vm12, %v6758_v60, %v6759_v36 }
 0x84f   : > { %3530 = vmatpush1.bf16.msra.mxu0 %v3345_v41  ;;  %v3044_v30 = vsel %vm383_vm12, %v6743_v40, %v6744_v61  ;;  %v3354_v63 = vpack.c.bf16 %v2954_v5, %v2952_v55  ;;  %v2951_v15 = vsel %vm383_vm12, %v6733_v29, %v6723_v48  ;;  %v6813_v41 = vunpack.i.l.bf16 %v9881_v7  ;;  %v7683_v29 = vld [vmem:[%s11353_s3 + $0xc] ss:$20 sps:$4 sm:$0xff]  }
 0x850   : > { %3572 = vmatprep.subr.bf16.mxu0 %v3348_v17  ;;  %v3353_v10 = vpack.c.bf16 %v2953_v33, %v2951_v15  ;;  %v3356_v58 = vpack.c.bf16 %v3046_v6, %v3044_v30  ;;  %v6773_v17 = vunpack.i.l.bf16 %v9860_v47  ;;  %v6824_v18 = vunpack.i.h.bf16 %v9894_v51  ;;  %v7678_v47 = vld [vmem:[%s11353_s3 + $0x7c] ss:$20 sps:$4 sm:$0xff]  }
 0x851   : > { %v9914_v62 = vpop.permute.xlu0 %6831  ;;  %v9916_v4 = vpop.permute.xlu1 %6836  ;;  %v6823_v7 = vunpack.i.l.bf16 %v9894_v51  ;;  %v3050_v32 = vsel %vm383_vm12, %v6813_v41, %v6814_v52  ;;  %v6829_v44 = vunpack.i.h.bf16 %v9896_v0 }
 0x852   : > { %3532 = vmatmul.mubr.bf16.vlgmr.msra.gmra.mrb[32].mxu0 %v7669_v20  ;;  %v6834_v27 = vunpack.i.h.bf16 %v9914_v62  ;;  %v6839_v51 = vunpack.i.h.bf16 %v9916_v4  ;;  %v3048_v3 = vsel %vm383_vm12, %v6773_v17, %v6774_v16  ;;  %v3049_v1 = vsel %vm383_vm12, %v6824_v18, %v6813_v41 }
 0x853   : > { %3573 = vmatpush1.bf16.msra.mxu0 %v3347_v28  ;;  %3541 = vmatprep.mubr.bf16.mxu0 %v7672_v56  ;;  %v6833_v56 = vunpack.i.l.bf16 %v9914_v62  ;;  %v6828_v28 = vunpack.i.l.bf16 %v9896_v0  ;;  %v6838_v62 = vunpack.i.l.bf16 %v9916_v4  ;;  %v3047_v49 = vsel %vm383_vm12, %v6823_v7, %v6773_v17 }
 0x854   : > { %3574 = vmatprep.subr.bf16.mxu0 %v3350_v21  ;;  %v3355_v21 = vpack.c.bf16 %v3045_v13, %v3043_v39  ;;  %v3357_v60 = vpack.c.bf16 %v3049_v1, %v3047_v49 }
 0x855   : > { %v9932_v53 = vpop.permute.xlu0 %6841  ;;  %v9934_v45 = vpop.permute.xlu1 %6846  ;;  %v3054_v2 = vsel %vm383_vm12, %v6833_v56, %v6834_v27  ;;  %v3052_v19 = vsel %vm383_vm12, %v6828_v28, %v6829_v44  ;;  %v3053_v48 = vsel %vm383_vm12, %v6839_v51, %v6833_v56  ;;  %v3051_v54 = vsel %vm383_vm12, %v6838_v62, %v6828_v28 }
 0x856   : > { %v6844_v0 = vunpack.i.h.bf16 %v9932_v53  ;;  %v6843_v4 = vunpack.i.l.bf16 %v9932_v53  ;;  %v3360_v61 = vpack.c.bf16 %v3054_v2, %v3052_v19  ;;  %v7680_v53 = vld [vmem:[%s11353_s3 + $0x78] ss:$20 sps:$4 sm:$0xff]   ;;  %v6849_v5 = vunpack.i.h.bf16 %v9934_v45 }
 0x857   : > { %3575 = vmatpush1.bf16.msra.mxu0 %v3349_v43  ;;  %v3358_v43 = vpack.c.bf16 %v3050_v32, %v3048_v3  ;;  %v6848_v55 = vunpack.i.l.bf16 %v9934_v45 }
 0x858   : > { %3576 = vmatprep.subr.bf16.mxu0 %v3352_v12  ;;  %v3056_v33 = vsel %vm383_vm12, %v6843_v4, %v6844_v0 }
 0x859   : > { %v9949_v59 = vpop.permute.xlu0 %6851  ;;  %v9951_v24 = vpop.permute.xlu1 %6856 }
 0x85a   : > { %3542 = vmatmul.mubr.bf16.gmra.mrb[36].mxu0 %v7674_v11  ;;  %v6854_v40 = vunpack.i.h.bf16 %v9949_v59  ;;  %v6853_v25 = vunpack.i.l.bf16 %v9949_v59  ;;  %v6859_v8 = vunpack.i.h.bf16 %v9951_v24  ;;  %v6858_v23 = vunpack.i.l.bf16 %v9951_v24 }
 0x85b   : > { %3577 = vmatpush1.bf16.msra.mxu0 %v3351_v26  ;;  %3551 = vmatprep.mubr.bf16.mxu0 %v7675_v14  ;;  %v3359_v14 = vpack.c.bf16 %v3053_v48, %v3051_v54 }
 0x85c   : > { %3578 = vmatprep.subr.bf16.mxu0 %v3354_v63  ;;  %v3126_v52 = vsel %vm424_vm10, %v6853_v25, %v6854_v40  ;;  %v3125_v39 = vsel %vm424_vm10, %v6859_v8, %v6853_v25  ;;  %v3123_v16 = vsel %vm424_vm10, %v6858_v23, %v6848_v55 }
 0x85d   : > { %v9962_v20 = vpop.permute.xlu0 %6861  ;;  %v9964_v22 = vpop.permute.xlu1 %6866  ;;  %v3363_v28 = vpack.c.bf16 %v3125_v39, %v3123_v16 }
 0x85e   : > { %v6864_v41 = vunpack.i.h.bf16 %v9962_v20  ;;  %v6868_v45 = vunpack.i.l.bf16 %v9964_v22 }
 0x85f   : > { %3579 = vmatpush1.bf16.msra.mxu0 %v3353_v10  ;;  %v6863_v10 = vunpack.i.l.bf16 %v9962_v20  ;;  %v3124_v20 = vsel %vm424_vm10, %v6848_v55, %v6849_v5 }
 0x860   : > { %3580 = vmatprep.subr.bf16.mxu0 %v3356_v58  ;;  %v6869_v58 = vunpack.i.h.bf16 %v9964_v22  ;;  %v3364_v56 = vpack.c.bf16 %v3126_v52, %v3124_v20 }
 0x861   : > { %v9981_v46 = vpop.permute.xlu0 %6871  ;;  %v9983_v31 = vpop.permute.xlu1 %6876 }
 0x862   : > { %3552 = vmatmul.mubr.bf16.gmra.mrb[40].mxu0 %v7677_v57  ;;  %v6874_v27 = vunpack.i.h.bf16 %v9981_v46  ;;  %v6873_v22 = vunpack.i.l.bf16 %v9981_v46  ;;  %v3130_v44 = vsel %vm424_vm10, %v6868_v45, %v6869_v58  ;;  %v6879_v51 = vunpack.i.h.bf16 %v9983_v31 }
 0x863   : > { %3581 = vmatpush1.bf16.msra.mxu0 %v3355_v21  ;;  %3561 = vmatprep.mubr.bf16.mxu0 %v7678_v47  ;;  %v3128_v47 = vsel %vm424_vm10, %v6863_v10, %v6864_v41  ;;  %v6878_v62 = vunpack.i.l.bf16 %v9983_v31 }
 0x864   : > { %3582 = vmatprep.subr.bf16.mxu0 %v3358_v43  ;;  %v3127_v1 = vsel %vm424_vm10, %v6873_v22, %v6863_v10  ;;  %v3129_v43 = vsel %vm424_vm10, %v6874_v27, %v6868_v45  ;;  %v3366_v2 = vpack.c.bf16 %v3130_v44, %v3128_v47 }
 0x865   : > { %v9994_v42 = vpop.permute.xlu0 %6881  ;;  %v6887_v36 = vpop.permute.xlu1 %6886 }
 0x866   : > { %v6889_v12 = vunpack.i.h.bf16 %v6887_v36  ;;  %v6888_v11 = vunpack.i.l.bf16 %v6887_v36  ;;  %v6884_v57 = vunpack.i.h.bf16 %v9994_v42  ;;  %v6883_v32 = vunpack.i.l.bf16 %v9994_v42 }
 0x867   : > { %3583 = vmatpush1.bf16.msra.mxu0 %v3357_v60  ;;  %v3365_v36 = vpack.c.bf16 %v3129_v43, %v3127_v1  ;;  %v3132_v60 = vsel %vm424_vm10, %v6878_v62, %v6879_v51 }
 0x868   : > { %3584 = vmatprep.subr.bf16.mxu0 %v3360_v61  ;;  %v3058_v26 = vsel %vm383_vm12, %v6888_v11, %v6889_v12  ;;  %v3134_v0 = vsel %vm424_vm10, %v6883_v32, %v6884_v57 }
 0x869   : > { %v6897_v59 = vpop.permute.xlu0 %6896  ;;  %v6892_v30 = vpop.permute.xlu1 %6891  ;;  %v3362_v6 = vpack.c.bf16 %v3058_v26, %v3056_v33  ;;  %v3368_v25 = vpack.c.bf16 %v3134_v0, %v3132_v60 }
 0x86a   : > { %v6899_v63 = vunpack.i.h.bf16 %v6897_v59  ;;  %v6898_v15 = vunpack.i.l.bf16 %v6897_v59  ;;  %3562 = vmatmul.mubr.bf16.gmra.mrb[44].mxu0 %v7680_v53  ;;  %v6894_v21 = vunpack.i.h.bf16 %v6892_v30  ;;  %v6893_v3 = vunpack.i.l.bf16 %v6892_v30 }
 0x86b   : > { %3585 = vmatpush1.bf16.msra.mxu0 %v3359_v14  ;;  %3604 = vmatprep.mubr.bf16.mxu0 %v7683_v29 }
 0x86c   : > { %v3055_v24 = vsel %vm383_vm12, %v6898_v15, %v6843_v4  ;;  %v3057_v13 = vsel %vm383_vm12, %v6899_v63, %v6888_v11  ;;  %3586 = vmatprep.subr.bf16.mxu0 %v3362_v6  ;;  %v3133_v48 = vsel %vm424_vm10, %v6894_v21, %v6883_v32  ;;  %v3131_v54 = vsel %vm424_vm10, %v6893_v3, %v6878_v62 }
 0x86d   : > { %v6902_v17 = vpop.permute.xlu0 %6901  ;;  %v10019_v18 = vpop.permute.xlu1 %6906  ;;  %v3361_v7 = vpack.c.bf16 %v3057_v13, %v3055_v24  ;;  %v3367_v29 = vpack.c.bf16 %v3133_v48, %v3131_v54 }
 0x86e   : > { %v6904_v4 = vunpack.i.h.bf16 %v6902_v17  ;;  %v6903_v19 = vunpack.i.l.bf16 %v6902_v17  ;;  %v6909_v53 = vunpack.i.h.bf16 %v10019_v18  ;;  %v6908_v33 = vunpack.i.l.bf16 %v10019_v18 }
 0x86f   : > { %3587 = vmatpush1.bf16.msra.mxu0 %v3361_v7 }
 0x870   : > { %3588 = vmatprep.subr.bf16.mxu0 %v3364_v56  ;;  %v3136_v5 = vsel %vm424_vm10, %v6903_v19, %v6904_v4  ;;  %v3204_v18 = vsel %vm424_vm10, %v6908_v33, %v6909_v53 }
 0x871   : > { %v6912_v49 = vpop.permute.xlu0 %6911  ;;  %v6917_v46 = vpop.permute.xlu1 %6916 }
 0x872   : > { %v6914_v12 = vunpack.i.h.bf16 %v6912_v49  ;;  %v6913_v11 = vunpack.i.l.bf16 %v6912_v49  ;;  %v6919_v26 = vunpack.i.h.bf16 %v6917_v46  ;;  %v6918_v55 = vunpack.i.l.bf16 %v6917_v46 }
 0x873   : > { %3589 = vmatpush1.bf16.msra.mxu0 %v3363_v28 }
 0x874   : > { %3590 = vmatprep.subr.bf16.mxu0 %v3366_v2  ;;  %v3206_v52 = vsel %vm424_vm10, %v6913_v11, %v6914_v12  ;;  %v3205_v24 = vsel %vm424_vm10, %v6919_v26, %v6913_v11  ;;  %v3203_v13 = vsel %vm424_vm10, %v6918_v55, %v6908_v33 }
 0x875   : > { %v6922_v31 = vpop.permute.xlu0 %6921  ;;  %v6927_v42 = vpop.permute.xlu1 %6926  ;;  %v3372_v27 = vpack.c.bf16 %v3206_v52, %v3204_v18  ;;  %v3371_v62 = vpack.c.bf16 %v3205_v24, %v3203_v13 }
 0x876   : > { %v6929_v61 = vunpack.i.h.bf16 %v6927_v42  ;;  %v6928_v40 = vunpack.i.l.bf16 %v6927_v42  ;;  %v6924_v41 = vunpack.i.h.bf16 %v6922_v31  ;;  %v6923_v10 = vunpack.i.l.bf16 %v6922_v31 }
 0x877   : > { %3591 = vmatpush1.bf16.msra.mxu0 %v3365_v36 }
 0x878   : > { %3592 = vmatprep.subr.bf16.mxu0 %v3368_v25  ;;  %v3138_v14 = vsel %vm424_vm10, %v6928_v40, %v6929_v61  ;;  %v3208_v32 = vsel %vm424_vm10, %v6923_v10, %v6924_v41  ;;  %v7681_v41 = vld [vmem:[%s11353_s3 + $0x8] ss:$20 sps:$4 sm:$0xff]  }
 0x879   : > { %v6937_v8 = vpop.permute.xlu0 %6936  ;;  %v6932_v23 = vpop.permute.xlu1 %6931  ;;  %v3370_v59 = vpack.c.bf16 %v3138_v14, %v3136_v5 }
 0x87a   : > { %v6939_v30 = vunpack.i.h.bf16 %v6937_v8  ;;  %v6938_v6 = vunpack.i.l.bf16 %v6937_v8  ;;  %v6934_v63 = vunpack.i.h.bf16 %v6932_v23  ;;  %v6933_v15 = vunpack.i.l.bf16 %v6932_v23 }
 0x87b   : > { %3593 = vmatpush1.bf16.msra.mxu0 %v3367_v29 }
 0x87c   : > { %v3135_v58 = vsel %vm424_vm10, %v6938_v6, %v6903_v19  ;;  %v3137_v45 = vsel %vm424_vm10, %v6939_v30, %v6928_v40  ;;  %3594 = vmatprep.subr.bf16.mxu0 %v3370_v59  ;;  %v3210_v22 = vsel %vm424_vm10, %v6933_v15, %v6934_v63 }
 0x87d   : > { %v6942_v39 = vpop.permute.xlu0 %6941  ;;  %v6947_v16 = vpop.permute.xlu1 %6946  ;;  %v3369_v17 = vpack.c.bf16 %v3137_v45, %v3135_v58  ;;  %v3374_v21 = vpack.c.bf16 %v3210_v22, %v3208_v32 }
 0x87e   : > { %v6944_v7 = vunpack.i.h.bf16 %v6942_v39  ;;  %v6943_v20 = vunpack.i.l.bf16 %v6942_v39  ;;  %v6949_v56 = vunpack.i.h.bf16 %v6947_v16  ;;  %v6948_v57 = vunpack.i.l.bf16 %v6947_v16 }
 0x87f   : > { %3595 = vmatpush1.bf16.msra.mxu0 %v3369_v17 }
 0x880   : > { %3596 = vmatprep.subr.bf16.mxu0 %v3372_v27  ;;  %v3207_v47 = vsel %vm424_vm10, %v6943_v20, %v6923_v10  ;;  %v3209_v44 = vsel %vm424_vm10, %v6944_v7, %v6933_v15  ;;  %v3212_v43 = vsel %vm424_vm10, %v6948_v57, %v6949_v56  ;;  %v7684_v10 = vld [vmem:[%s11353_s3 + $0x34] ss:$20 sps:$4 sm:$0xff]  }
 0x881   : > { %v6952_v28 = vpop.permute.xlu0 %6951  ;;  %v6957_v51 = vpop.permute.xlu1 %6956  ;;  %v3373_v54 = vpack.c.bf16 %v3209_v44, %v3207_v47 }
 0x882   : > { %v6954_v3 = vunpack.i.h.bf16 %v6952_v28  ;;  %v6953_v49 = vunpack.i.l.bf16 %v6952_v28  ;;  %v6959_v46 = vunpack.i.h.bf16 %v6957_v51  ;;  %v6958_v1 = vunpack.i.l.bf16 %v6957_v51 }
 0x883   : > { %3597 = vmatpush1.bf16.msra.mxu0 %v3371_v62  ;;  %v7686_v62 = vld [vmem:[%s11353_s3 + $0x30] ss:$20 sps:$4 sm:$0xff]  }
 0x884   : > { %3598 = vmatprep.subr.bf16.mxu0 %v3374_v21  ;;  %v3214_v2 = vsel %vm424_vm10, %v6953_v49, %v6954_v3  ;;  %v3213_v0 = vsel %vm424_vm10, %v6959_v46, %v6953_v49  ;;  %v3211_v4 = vsel %vm424_vm10, %v6958_v1, %v6948_v57  ;;  %v7687_v21 = vld [vmem:[%s11353_s3 + $0x5c] ss:$20 sps:$4 sm:$0xff]  }
 0x885   : > { %v6962_v19 = vpop.permute.xlu0 %6961  ;;  %v6967_v48 = vpop.permute.xlu1 %6966  ;;  %v3376_v31 = vpack.c.bf16 %v3214_v2, %v3212_v43  ;;  %v3375_v53 = vpack.c.bf16 %v3213_v0, %v3211_v4 }
 0x886   : > { %v6964_v42 = vunpack.i.h.bf16 %v6962_v19  ;;  %v6963_v36 = vunpack.i.l.bf16 %v6962_v19  ;;  %v6969_v60 = vunpack.i.h.bf16 %v6967_v48  ;;  %v6968_v61 = vunpack.i.l.bf16 %v6967_v48 }
 0x887   : > { %3599 = vmatpush1.bf16.msra.mxu0 %v3373_v54 }
 0x888   : > { %3600 = vmatprep.subr.bf16.mxu0 %v3376_v31  ;;  %v3216_v40 = vsel %vm424_vm10, %v6963_v36, %v6964_v42  ;;  %v3218_v25 = vsel %vm424_vm10, %v6968_v61, %v6969_v60 }
 0x889   : > { %v6972_v12 = vpop.permute.xlu0 %6971  ;;  %v6977_v11 = vpop.permute.xlu1 %6976  ;;  %v3378_v29 = vpack.c.bf16 %v3218_v25, %v3216_v40 }
 0x88a   : > { %v6974_v5 = vunpack.i.h.bf16 %v6972_v12  ;;  %v6973_v14 = vunpack.i.l.bf16 %v6972_v12  ;;  %v6979_v55 = vunpack.i.h.bf16 %v6977_v11  ;;  %v6978_v8 = vunpack.i.l.bf16 %v6977_v11 }
 0x88b   : > { %3601 = vmatpush1.bf16.msra.mxu0 %v3375_v53 }
 0x88c   : > { %v3215_v33 = vsel %vm424_vm10, %v6973_v14, %v6963_v36  ;;  %v3217_v26 = vsel %vm424_vm10, %v6974_v5, %v6968_v61  ;;  %3602 = vmatprep.subr.bf16.mxu0 %v3378_v29  ;;  %v3284_v24 = vsel %vm424_vm10, %v6978_v8, %v6979_v55  ;;  %v7689_v14 = vld [vmem:[%s11353_s3 + $0x58] ss:$20 sps:$4 sm:$0xff]  }
 0x88d   : > { %v6982_v23 = vpop.permute.xlu0 %6981  ;;  %v6987_v59 = vpop.permute.xlu1 %6986  ;;  %v3377_v30 = vpack.c.bf16 %v3217_v26, %v3215_v33  ;;  %v7690_v33 = vld [vmem:[%s11353_s3 + $0x84] ss:$20 sps:$4 sm:$0xff]  }
 0x88e   : > { %v6984_v6 = vunpack.i.h.bf16 %v6982_v23  ;;  %v6983_v63 = vunpack.i.l.bf16 %v6982_v23  ;;  %v6989_v15 = vunpack.i.h.bf16 %v6987_v59  ;;  %v6988_v52 = vunpack.i.l.bf16 %v6987_v59 }
 0x88f   : > { %3603 = vmatpush1.bf16.msra.mxu0 %v3377_v30 }
 0x890   : > { %v3285_v58 = vsel %vm424_vm10, %v6989_v15, %v6983_v63  ;;  %v3283_v45 = vsel %vm424_vm10, %v6988_v52, %v6978_v8  ;;  %v3286_v13 = vsel %vm424_vm10, %v6983_v63, %v6984_v6  ;;  %v7692_v52 = vld [vmem:[%s11353_s3 + $0x80] ss:$20 sps:$4 sm:$0xff]  }
 0x891   : > { %v6992_v39 = vpop.permute.xlu0 %6991  ;;  %v6997_v16 = vpop.permute.xlu1 %6996  ;;  %v3380_v17 = vpack.c.bf16 %v3286_v13, %v3284_v24  ;;  %v3379_v18 = vpack.c.bf16 %v3285_v58, %v3283_v45  ;;  %v7694_v58 = vld [vmem:[%s11353_s3 + $0x38] ss:$20 sps:$4 sm:$0xff]   ;;  %v7695_v45 = vld [vmem:[%s11353_s3 + $0x60] ss:$20 sps:$4 sm:$0xff]   ;;  %v7696_v24 = vld [vmem:[%s11353_s3 + $0x88] ss:$20 sps:$4 sm:$0xff]  }
 0x892   : > { %v6994_v7 = vunpack.i.h.bf16 %v6992_v39  ;;  %v6993_v20 = vunpack.i.l.bf16 %v6992_v39  ;;  %v6999_v27 = vunpack.i.h.bf16 %v6997_v16  ;;  %v6998_v22 = vunpack.i.l.bf16 %v6997_v16  ;;  %3605 = vmatmul.mubr.bf16.vlgmr.msra.gmra.mrb[32].mxu0 %v7681_v41 }
 0x893   : > { %3645 = vmatprep.subr.bf16.mxu0 %v3380_v17  ;;  %3614 = vmatprep.mubr.bf16.mxu0 %v7684_v10  ;;  %v11643_v41 = vmov 0   ;;  %v7693_v10 = vld [vmem:[%s11353_s3 + $0x10] ss:$20 sps:$4 sm:$0xff]  }
 0x894   : > { %3646 = vmatpush1.bf16.msra.mxu0 %v3379_v18  ;;  %v3288_v56 = vsel %vm424_vm10, %v6993_v20, %v6994_v7  ;;  %v3290_v57 = vsel %vm424_vm10, %v6998_v22, %v6999_v27 }
 0x895   : > { %v7002_v32 = vpop.permute.xlu0 %7001  ;;  %v7007_v47 = vpop.permute.xlu1 %7006  ;;  %v3382_v44 = vpack.c.bf16 %v3290_v57, %v3288_v56 }
 0x896   : > { %v7004_v28 = vunpack.i.h.bf16 %v7002_v32  ;;  %v7003_v51 = vunpack.i.l.bf16 %v7002_v32  ;;  %v7009_v46 = vunpack.i.h.bf16 %v7007_v47  ;;  %v7008_v1 = vunpack.i.l.bf16 %v7007_v47 }
 0x897   : > { %3647 = vmatprep.subr.bf16.mxu0 %v3382_v44 }
 0x898   : > { %v3287_v3 = vsel %vm424_vm10, %v7003_v51, %v6993_v20  ;;  %v3289_v49 = vsel %vm424_vm10, %v7004_v28, %v6998_v22  ;;  %v3292_v36 = vsel %vm424_vm10, %v7008_v1, %v7009_v46 }
 0x899   : > { %v7012_v43 = vpop.permute.xlu0 %7011  ;;  %v7017_v2 = vpop.permute.xlu1 %7016  ;;  %v3381_v0 = vpack.c.bf16 %v3289_v49, %v3287_v3 }
 0x89a   : > { %v7014_v4 = vunpack.i.h.bf16 %v7012_v43  ;;  %v7013_v19 = vunpack.i.l.bf16 %v7012_v43  ;;  %v7019_v48 = vunpack.i.h.bf16 %v7017_v2  ;;  %v7018_v54 = vunpack.i.l.bf16 %v7017_v2  ;;  %3615 = vmatmul.mubr.bf16.gmra.mrb[36].mxu0 %v7686_v62 }
 0x89b   : > { %3648 = vmatpush1.bf16.msra.mxu0 %v3381_v0  ;;  %3624 = vmatprep.mubr.bf16.mxu0 %v7687_v21 }
 0x89c   : > { %v3293_v31 = vsel %vm424_vm10, %v7019_v48, %v7013_v19  ;;  %v3291_v42 = vsel %vm424_vm10, %v7018_v54, %v7008_v1  ;;  %v3294_v60 = vsel %vm424_vm10, %v7013_v19, %v7014_v4 }
 0x89d   : > { %v7022_v61 = vpop.permute.xlu0 %7021  ;;  %v7027_v40 = vpop.permute.xlu1 %7026  ;;  %v3384_v25 = vpack.c.bf16 %v3294_v60, %v3292_v36  ;;  %v3383_v12 = vpack.c.bf16 %v3293_v31, %v3291_v42 }
 0x89e   : > { %v7024_v11 = vunpack.i.h.bf16 %v7022_v61  ;;  %v7023_v53 = vunpack.i.l.bf16 %v7022_v61  ;;  %v7029_v29 = vunpack.i.h.bf16 %v7027_v40  ;;  %v7028_v5 = vunpack.i.l.bf16 %v7027_v40 }
 0x89f   : > { %3649 = vmatprep.subr.bf16.mxu0 %v3384_v25 }
 0x8a0   : > { %3650 = vmatpush1.bf16.msra.mxu0 %v3383_v12  ;;  %v3296_v26 = vsel %vm424_vm10, %v7023_v53, %v7024_v11  ;;  %v3298_v55 = vsel %vm424_vm10, %v7028_v5, %v7029_v29 }
 0x8a1   : > { %v7032_v8 = vpop.permute.xlu0 %7031  ;;  %v3386_v23 = vpack.c.bf16 %v3298_v55, %v3296_v26 }
 0x8a2   : > { %v7034_v59 = vunpack.i.h.bf16 %v7032_v8  ;;  %v7033_v30 = vunpack.i.l.bf16 %v7032_v8  ;;  %3625 = vmatmul.mubr.bf16.gmra.mrb[40].mxu0 %v7689_v14 }
 0x8a3   : > { %3651 = vmatprep.subr.bf16.mxu0 %v3386_v23  ;;  %3634 = vmatprep.mubr.bf16.mxu0 %v7690_v33 }
 0x8a4   : > { %v3295_v6 = vsel %vm424_vm10, %v7033_v30, %v7023_v53  ;;  %v3297_v63 = vsel %vm424_vm10, %v7034_v59, %v7028_v5 }
 0x8a5   : > { %v3385_v15 = vpack.c.bf16 %v3297_v63, %v3295_v6 }
 0x8a7   : > { %3652 = vmatpush1.bf16.msra.mxu0 %v3385_v15 }
 0x8aa   : > { %3635 = vmatmul.mubr.bf16.gmra.mrb[44].mxu0 %v7692_v52 }
 0x8ab   : > { %3677 = vmatprep.mubr.bf16.mxu0 %v11643_v41 }
 0x8b2   : > { %5633 = vmatmul.mubr.msk.bf16.vlgmr.msra.gmra.mrb[32].mxu0 %vm1923_vm13, %v7693_v10 }
 0x8b3   : > { %3687 = vmatprep.mubr.bf16.mxu0 %v11643_v41 }
 0x8ba   : > { %5634 = vmatmul.mubr.msk.bf16.gmra.mrb[36].mxu0 %vm1923_vm13, %v7694_v58 }
 0x8bb   : > { %3697 = vmatprep.mubr.bf16.mxu0 %v11643_v41 }
 0x8c2   : > { %5635 = vmatmul.mubr.msk.bf16.gmra.mrb[40].mxu0 %vm1923_vm13, %v7695_v45 }
 0x8c3   : > { %3707 = vmatprep.mubr.bf16.mxu0 %v11643_v41 }
 0x8ca   : > { %5636 = vmatmul.mubr.msk.bf16.gmra.mrb[44].mxu0 %vm1923_vm13, %v7696_v24 }
 0x8cb   : > { %5491 = vmatprep.mubr.bf16.mxu0 %v11643_v41 }
 0x985   : > { %v10116_v13 = vpop.f32.mrb[32].mxu0 }
 0x986   : > { %v3750_v39 = vmul.f32 %v10116_v13, %v10116_v13  ;;  %v10120_v16 = vpop.f32.mrb[33].mxu0 }
 0x987   : > { %v3718_v17 = vadd.f32 %v10120_v16, %v10116_v13  ;;  %v3751_v18 = vmul.f32 %v10120_v16, %v10120_v16  ;;  %v10126_v7 = vpop.f32.mrb[34].mxu0 }
 0x988   : > { %v3752_v20 = vmul.f32 %v10126_v7, %v10126_v7  ;;  %v10130_v27 = vpop.f32.mrb[35].mxu0 }
 0x989   : > { %v3721_v22 = vadd.f32 %v10130_v27, %v10126_v7  ;;  %v3753_v56 = vmul.f32 %v10130_v27, %v10130_v27  ;;  %3719 = vadd.xlane.f32.xlu1 %v3718_v17  ;;  %v3766_v57 = vadd.f32 %v3751_v18, %v3750_v39 }
 0x98b   : > { %3722 = vadd.xlane.f32.xlu0 %v3721_v22  ;;  %v3769_v32 = vadd.f32 %v3753_v56, %v3752_v20 }
 0x98d   : > { %3770 = vadd.xlane.f32.xlu1 %v3769_v32  ;;  %v10136_v47 = vpop.f32.mrb[36].mxu0 }
 0x98e   : > { %v3754_v44 = vmul.f32 %v10136_v47, %v10136_v47  ;;  %v10140_v28 = vpop.f32.mrb[37].mxu0 }
 0x98f   : > { %v3724_v51 = vadd.f32 %v10140_v28, %v10136_v47  ;;  %v3755_v62 = vmul.f32 %v10140_v28, %v10140_v28  ;;  %3767 = vadd.xlane.f32.xlu0 %v3766_v57  ;;  %v10146_v21 = vpop.f32.mrb[38].mxu0 }
 0x990   : > { %v3756_v3 = vmul.f32 %v10146_v21, %v10146_v21  ;;  %v10150_v49 = vpop.f32.mrb[39].mxu0 }
 0x991   : > { %v3727_v46 = vadd.f32 %v10150_v49, %v10146_v21  ;;  %v3757_v1 = vmul.f32 %v10150_v49, %v10150_v49  ;;  %v3772_v43 = vadd.f32 %v3755_v62, %v3754_v44 }
 0x993   : > { %3725 = vadd.xlane.f32.xlu0 %v3724_v51  ;;  %3728 = vadd.xlane.f32.xlu1 %v3727_v46  ;;  %v3775_v2 = vadd.f32 %v3757_v1, %v3756_v3 }
 0x995   : > { %v10156_v0 = vpop.f32.mrb[40].mxu0 }
 0x996   : > { %v3758_v4 = vmul.f32 %v10156_v0, %v10156_v0  ;;  %v10160_v19 = vpop.f32.mrb[41].mxu0 }
 0x997   : > { %v3730_v48 = vadd.f32 %v10160_v19, %v10156_v0  ;;  %v3759_v54 = vmul.f32 %v10160_v19, %v10160_v19  ;;  %3773 = vadd.xlane.f32.xlu0 %v3772_v43  ;;  %3776 = vadd.xlane.f32.xlu1 %v3775_v2  ;;  %v10166_v31 = vpop.f32.mrb[42].mxu0 }
 0x998   : > { %v3760_v42 = vmul.f32 %v10166_v31, %v10166_v31  ;;  %v10170_v36 = vpop.f32.mrb[43].mxu0 }
 0x999   : > { %v3733_v60 = vadd.f32 %v10170_v36, %v10166_v31  ;;  %v3761_v61 = vmul.f32 %v10170_v36, %v10170_v36  ;;  %v3778_v40 = vadd.f32 %v3759_v54, %v3758_v4 }
 0x99b   : > { %3731 = vadd.xlane.f32.xlu0 %v3730_v48  ;;  %3734 = vadd.xlane.f32.xlu1 %v3733_v60  ;;  %v3781_v25 = vadd.f32 %v3761_v61, %v3760_v42 }
 0x99d   : > { %v10176_v12 = vpop.f32.mrb[44].mxu0 }
 0x99e   : > { %v3762_v11 = vmul.f32 %v10176_v12, %v10176_v12  ;;  %v10180_v53 = vpop.f32.mrb[45].mxu0 }
 0x99f   : > { %v3736_v29 = vadd.f32 %v10180_v53, %v10176_v12  ;;  %v3763_v5 = vmul.f32 %v10180_v53, %v10180_v53  ;;  %3779 = vadd.xlane.f32.xlu0 %v3778_v40  ;;  %3782 = vadd.xlane.f32.xlu1 %v3781_v25  ;;  %v10186_v14 = vpop.f32.mrb[46].mxu0 }
 0x9a0   : > { %v3764_v33 = vmul.f32 %v10186_v14, %v10186_v14  ;;  %v10190_v26 = vpop.f32.mrb[47].mxu0 }
 0x9a1   : > { %v3739_v55 = vadd.f32 %v10190_v26, %v10186_v14  ;;  %v3765_v8 = vmul.f32 %v10190_v26, %v10190_v26  ;;  %v3784_v23 = vadd.f32 %v3763_v5, %v3762_v11 }
 0x9a3   : > { %3737 = vadd.xlane.f32.xlu0 %v3736_v29  ;;  %3740 = vadd.xlane.f32.xlu1 %v3739_v55  ;;  %v3787_v59 = vadd.f32 %v3765_v8, %v3764_v33 }
 0x9a7   : > { %3785 = vadd.xlane.f32.xlu0 %v3784_v23  ;;  %3788 = vadd.xlane.f32.xlu1 %v3787_v59 }
 0xa16   : > { %v3720_v30 = vpop.xlane.xlu1 %3719 }
 0xa17   : > { %v3742_v63 = vmul.f32 0.00390625, %v3720_v30 }
 0xa18   : > { %v3723_v6 = vpop.xlane.xlu0 %3722 }
 0xa19   : > { %v3743_v15 = vmul.f32 0.00390625, %v3723_v6  ;;  %v3798_v39 = vmul.f32 %v3742_v63, %v3742_v63  ;;  %v3814_v11 = vsub.f32 %v10116_v13, %v3742_v63  ;;  %v3815_v33 = vsub.f32 %v10120_v16, %v3742_v63 }
 0xa1a   : > { %v3771_v52 = vpop.xlane.xlu1 %3770 }
 0xa1b   : > { %v3791_v10 = vmul.f32 0.00390625, %v3771_v52  ;;  %v3799_v58 = vmul.f32 %v3743_v15, %v3743_v15  ;;  %v3816_v29 = vsub.f32 %v10126_v7, %v3743_v15  ;;  %v3817_v5 = vsub.f32 %v10130_v27, %v3743_v15 }
 0xa1c   : > { %v3768_v45 = vpop.xlane.xlu0 %3767 }
 0xa1d   : > { %v3807_v24 = vsub.f32 %v3791_v10, %v3799_v58  ;;  %v3790_v17 = vmul.f32 0.00390625, %v3768_v45 }
 0xa1f   : > { %v3831_v18 = vadd.f32 1e-05, %v3807_v24  ;;  %v3806_v20 = vsub.f32 %v3790_v17, %v3798_v39 }
 0xa20   : > { %v3726_v22 = vpop.xlane.xlu0 %3725  ;;  %v3729_v56 = vpop.xlane.xlu1 %3728 }
 0xa21   : > { %7757 = vrsqrt.f32 %v3831_v18  ;;  %v3830_v57 = vadd.f32 1e-05, %v3806_v20  ;;  %v10196_v32 = vmul.f32 0.00390625, %v3726_v22  ;;  %v10198_v44 = vmul.f32 0.00390625, %v3729_v56 }
 0xa23   : > { %7759 = vrsqrt.f32 %v3830_v57  ;;  %v3800_v3 = vmul.f32 %v10196_v32, %v10196_v32  ;;  %v3801_v1 = vmul.f32 %v10198_v44, %v10198_v44 }
 0xa24   : > { %v3774_v51 = vpop.xlane.xlu0 %3773  ;;  %v3777_v62 = vpop.xlane.xlu1 %3776 }
 0xa25   : > { %v3792_v46 = vmul.f32 0.00390625, %v3774_v51  ;;  %v3793_v43 = vmul.f32 0.00390625, %v3777_v62 }
 0xa27   : > { %v3808_v2 = vsub.f32 %v3792_v46, %v3800_v3  ;;  %v3809_v4 = vsub.f32 %v3793_v43, %v3801_v1  ;;  %v3818_v46 = vsub.f32 %v10136_v47, %v10196_v32  ;;  %v3819_v1 = vsub.f32 %v10140_v28, %v10196_v32 }
 0xa28   : > { %v3732_v48 = vpop.xlane.xlu0 %3731  ;;  %v3735_v54 = vpop.xlane.xlu1 %3734  ;;  %v3820_v43 = vsub.f32 %v10146_v21, %v10198_v44 }
 0xa29   : > { %v3832_v42 = vadd.f32 1e-05, %v3808_v2  ;;  %v3833_v60 = vadd.f32 1e-05, %v3809_v4  ;;  %v10204_v61 = vmul.f32 0.00390625, %v3732_v48  ;;  %v10206_v40 = vmul.f32 0.00390625, %v3735_v54 }
 0xa2a   : > { %v3821_v2 = vsub.f32 %v10150_v49, %v10198_v44 }
 0xa2b   : > { %v7758_v25 = vpop.eup %7757  ;;  %7761 = vrsqrt.f32 %v3832_v42  ;;  %v3802_v55 = vmul.f32 %v10204_v61, %v10204_v61  ;;  %v3803_v23 = vmul.f32 %v10206_v40, %v10206_v40 }
 0xa2c   : > { %7763 = vrsqrt.f32 %v3833_v60  ;;  %v3780_v8 = vpop.xlane.xlu0 %3779  ;;  %v3783_v59 = vpop.xlane.xlu1 %3782  ;;  %v3848_v13 = vmul.f32 %v7758_v25, %v3816_v29  ;;  %v3849_v10 = vmul.f32 %v7758_v25, %v3817_v5 }
 0xa2d   : > { %v7760_v30 = vpop.eup %7759  ;;  %v3794_v6 = vmul.f32 0.00390625, %v3780_v8  ;;  %v3795_v52 = vmul.f32 0.00390625, %v3783_v59 }
 0xa2e   : > { %v3846_v7 = vmul.f32 %v7760_v30, %v3814_v11  ;;  %v3847_v58 = vmul.f32 %v7760_v30, %v3815_v33  ;;  %v3864_v45 = vmax.f32 %v3848_v13, 0.0  ;;  %v3865_v16 = vmax.f32 %v3849_v10, 0.0 }
 0xa2f   : > { %v3810_v27 = vsub.f32 %v3794_v6, %v3802_v55  ;;  %v3811_v15 = vsub.f32 %v3795_v52, %v3803_v23  ;;  %v3822_v10 = vsub.f32 %v10156_v0, %v10204_v61 }
 0xa30   : > { %v3738_v63 = vpop.xlane.xlu0 %3737  ;;  %v3741_v24 = vpop.xlane.xlu1 %3740  ;;  %v3862_v39 = vmax.f32 %v3846_v7, 0.0  ;;  %v3863_v17 = vmax.f32 %v3847_v58, 0.0  ;;  %v7045_v3 = vpack.i.bf16 %v3865_v16, %v3864_v45  ;;  %v3823_v7 = vsub.f32 %v10160_v19, %v10204_v61 }
 0xa31   : > { %v3834_v18 = vadd.f32 1e-05, %v3810_v27  ;;  %v3835_v20 = vadd.f32 1e-05, %v3811_v15  ;;  %v10216_v22 = vmul.f32 0.00390625, %v3738_v63  ;;  %v10218_v56 = vmul.f32 0.00390625, %v3741_v24 }
 0xa32   : > { %v7040_v57 = vpack.i.bf16 %v3864_v45, %v3862_v39  ;;  %v7035_v51 = vpack.i.bf16 %v3863_v17, %v3862_v39  ;;  %v7050_v62 = vpack.i.bf16 %v3865_v16, %v3863_v17  ;;  %v3824_v27 = vsub.f32 %v10166_v31, %v10206_v40 }
 0xa33   : > { %7765 = vrsqrt.f32 %v3834_v18  ;;  %v3804_v47 = vmul.f32 %v10216_v22, %v10216_v22  ;;  %v3805_v28 = vmul.f32 %v10218_v56, %v10218_v56  ;;  %v3825_v15 = vsub.f32 %v10170_v36, %v10206_v40 }
 0xa34   : > { %7767 = vrsqrt.f32 %v3835_v20  ;;  %7041 = vrot.lane.b32.xlu0 %v7040_v57, %s7805_s30  ;;  %v3786_v4 = vpop.xlane.xlu0 %3785  ;;  %7036 = vrot.lane.b32.xlu1 %v7035_v51, %s7807_s9  ;;  %v3789_v48 = vpop.xlane.xlu1 %3788  ;;  %v3826_v36 = vsub.f32 %v10176_v12, %v10216_v22  ;;  %v3827_v40 = vsub.f32 %v10180_v53, %v10216_v22 }
 0xa35   : > { %v7762_v54 = vpop.eup %7761  ;;  %v3796_v42 = vmul.f32 0.00390625, %v3786_v4  ;;  %v3797_v32 = vmul.f32 0.00390625, %v3789_v48 }
 0xa36   : > { %v7764_v21 = vpop.eup %7763  ;;  %v3850_v60 = vmul.f32 %v7762_v54, %v3818_v46  ;;  %v3851_v25 = vmul.f32 %v7762_v54, %v3819_v1 }
 0xa37   : > { %v3812_v49 = vsub.f32 %v3796_v42, %v3804_v47  ;;  %v3813_v44 = vsub.f32 %v3797_v32, %v3805_v28  ;;  %v3852_v11 = vmul.f32 %v7764_v21, %v3820_v43  ;;  %v3853_v29 = vmul.f32 %v7764_v21, %v3821_v2 }
 0xa38   : > { %7051 = vrot.lane.b32.xlu0 %v7050_v62, %s7806_s8  ;;  %7046 = vrot.lane.b32.xlu1 %v7045_v3, %s7807_s9  ;;  %v3866_v5 = vmax.f32 %v3850_v60, 0.0  ;;  %v3867_v33 = vmax.f32 %v3851_v25, 0.0  ;;  %v3828_v62 = vsub.f32 %v10186_v14, %v10218_v56  ;;  %v3829_v3 = vsub.f32 %v10190_v26, %v10218_v56 }
 0xa39   : > { %v3836_v55 = vadd.f32 1e-05, %v3812_v49  ;;  %v3837_v8 = vadd.f32 1e-05, %v3813_v44  ;;  %v3868_v23 = vmax.f32 %v3852_v11, 0.0  ;;  %v3869_v59 = vmax.f32 %v3853_v29, 0.0 }
 0xa3a   : > { %v7055_v30 = vpack.i.bf16 %v3867_v33, %v3866_v5 }
 0xa3b   : > { %7769 = vrsqrt.f32 %v3836_v55  ;;  %v7060_v6 = vpack.i.bf16 %v3868_v23, %v3866_v5  ;;  %v7070_v52 = vpack.i.bf16 %v3869_v59, %v3867_v33  ;;  %v7065_v13 = vpack.i.bf16 %v3869_v59, %v3868_v23 }
 0xa3c   : > { %7771 = vrsqrt.f32 %v3837_v8  ;;  %7056 = vrot.lane.b32.xlu0 %v7055_v30, %s7807_s9 }
 0xa3d   : > { %v7766_v58 = vpop.eup %7765  ;;  %7061 = vrot.lane.b32.xlu1 %v7060_v6, %s7805_s30 }
 0xa3e   : > { %v7768_v45 = vpop.eup %7767  ;;  %v3854_v16 = vmul.f32 %v7766_v58, %v3822_v10  ;;  %v3855_v63 = vmul.f32 %v7766_v58, %v3823_v7 }
 0xa3f   : > { %v3856_v24 = vmul.f32 %v7768_v45, %v3824_v27  ;;  %v3857_v0 = vmul.f32 %v7768_v45, %v3825_v15 }
 0xa40   : > { %7071 = vrot.lane.b32.xlu0 %v7070_v52, %s7806_s8  ;;  %v3870_v19 = vmax.f32 %v3854_v16, 0.0  ;;  %v3871_v61 = vmax.f32 %v3855_v63, 0.0 }
 0xa41   : > { %7066 = vrot.lane.b32.xlu1 %v7065_v13, %s7807_s9  ;;  %v3872_v39 = vmax.f32 %v3856_v24, 0.0  ;;  %v3873_v17 = vmax.f32 %v3857_v0, 0.0 }
 0xa42   : > { %v7075_v18 = vpack.i.bf16 %v3871_v61, %v3870_v19 }
 0xa43   : > { %v7080_v31 = vpack.i.bf16 %v3872_v39, %v3870_v19  ;;  %v7090_v20 = vpack.i.bf16 %v3873_v17, %v3871_v61  ;;  %v7085_v57 = vpack.i.bf16 %v3873_v17, %v3872_v39 }
 0xa44   : > { %7076 = vrot.lane.b32.xlu0 %v7075_v18, %s7807_s9 }
 0xa45   : > { %v7770_v51 = vpop.eup %7769  ;;  %7081 = vrot.lane.b32.xlu1 %v7080_v31, %s7805_s30 }
 0xa46   : > { %v7772_v46 = vpop.eup %7771  ;;  %v3858_v1 = vmul.f32 %v7770_v51, %v3826_v36  ;;  %v3859_v43 = vmul.f32 %v7770_v51, %v3827_v40 }
 0xa47   : > { %v3860_v2 = vmul.f32 %v7772_v46, %v3828_v62  ;;  %v3861_v4 = vmul.f32 %v7772_v46, %v3829_v3 }
 0xa48   : > { %7091 = vrot.lane.b32.xlu0 %v7090_v20, %s7806_s8  ;;  %v3874_v12 = vmax.f32 %v3858_v1, 0.0  ;;  %v3875_v53 = vmax.f32 %v3859_v43, 0.0 }
 0xa49   : > { %7086 = vrot.lane.b32.xlu1 %v7085_v57, %s7807_s9  ;;  %v3876_v22 = vmax.f32 %v3860_v2, 0.0  ;;  %v3877_v48 = vmax.f32 %v3861_v4, 0.0 }
 0xa4a   : > { %v7095_v54 = vpack.i.bf16 %v3875_v53, %v3874_v12 }
 0xa4b   : > { %v7100_v14 = vpack.i.bf16 %v3876_v22, %v3874_v12  ;;  %v7110_v47 = vpack.i.bf16 %v3877_v48, %v3875_v53  ;;  %v7105_v42 = vpack.i.bf16 %v3877_v48, %v3876_v22 }
 0xa4c   : > { %7096 = vrot.lane.b32.xlu0 %v7095_v54, %s7807_s9 }
 0xa4d   : > { %7101 = vrot.lane.b32.xlu1 %v7100_v14, %s7805_s30 }
 0xa50   : > { %7111 = vrot.lane.b32.xlu0 %v7110_v47, %s7806_s8 }
 0xa51   : > { %7106 = vrot.lane.b32.xlu1 %v7105_v42, %s7807_s9 }
 0xaa6   : > { %v7042_v26 = vpop.permute.xlu0 %7041  ;;  %v7037_v56 = vpop.permute.xlu1 %7036 }
 0xaa7   : > { %v7043_v28 = vunpack.i.l.bf16 %v7042_v26  ;;  %v7039_v32 = vunpack.i.h.bf16 %v7037_v56  ;;  %v7038_v21 = vunpack.i.l.bf16 %v7037_v56  ;;  %v7044_v8 = vunpack.i.h.bf16 %v7042_v26 }
 0xaa9   : > { %v10265_v60 = vsel %vm11644_vm15, %v7038_v21, %v7039_v32  ;;  %v10268_v25 = vsel %vm11645_vm3, %v7043_v28, %v7038_v21  ;;  %vm11653_vm15 = vmmov %vm11649_vm0 }
 0xaaa   : > { %v7052_v49 = vpop.permute.xlu0 %7051  ;;  %v7047_v44 = vpop.permute.xlu1 %7046  ;;  %v7120_v11 = vpack.i.bf16 %v10265_v60, %v10268_v25  ;;  %vm11654_vm3 = vmmov %vm11649_vm0 }
 0xaab   : > { %v7054_v29 = vunpack.i.h.bf16 %v7052_v49  ;;  %v7053_v5 = vunpack.i.l.bf16 %v7052_v49  ;;  %v7049_v33 = vunpack.i.h.bf16 %v7047_v44  ;;  %v7048_v55 = vunpack.i.l.bf16 %v7047_v44 }
 0xaac   : > { %7121 = vrot.lane.b32.xlu0 %v7120_v11, %s7810_s12 }
 0xaad   : > { %v4038_v23 = vsel %vm11646_vm2, %v7039_v32, %v7053_v5  ;;  %v4039_v59 = vsel %vm11647_vm11, %v7049_v33, %v7054_v29  ;;  %v10276_v30 = vsel %vm11648_vm14, %v7048_v55, %v7049_v33  ;;  %v10279_v6 = vsel %vm11649_vm0, %v7044_v8, %v7048_v55  ;;  %vm11655_vm2 = vmmov %vm11649_vm0 }
 0xaae   : > { %v7057_v52 = vpop.permute.xlu0 %7056  ;;  %v10282_v13 = vpack.i.bf16 %v4039_v59, %v10276_v30  ;;  %v10285_v10 = vpack.i.bf16 %v4038_v23, %v10265_v60  ;;  %v10293_v58 = vpack.i.bf16 %v10279_v6, %v10268_v25  ;;  %v7150_v20 = vpack.i.bf16 %v4039_v59, %v4038_v23  ;;  %vm11656_vm11 = vmmov %vm11649_vm0 }
 0xaaf   : > { %v7062_v7 = vpop.permute.xlu1 %7061  ;;  %v7059_v16 = vunpack.i.h.bf16 %v7057_v52  ;;  %v7058_v63 = vunpack.i.l.bf16 %v7057_v52  ;;  %v7135_v57 = vpack.i.bf16 %v10279_v6, %v4038_v23  ;;  %vm11657_vm14 = vmmov %vm11649_vm0 }
 0xab0   : > { %11650 = vst [vmem:[#allocation16_spill] sm:$0xff] %v10282_v13  ;;  %11651 = vst [vmem:[#allocation21_spill] sm:$0xff] %v10285_v10  ;;  %7126 = vrot.lane.b32.xlu0 %v10282_v13, %s7809_s11  ;;  %7116 = vrot.lane.b32.xlu1 %v10285_v10, %s7809_s11  ;;  %v7063_v24 = vunpack.i.l.bf16 %v7062_v7  ;;  %v7064_v18 = vunpack.i.h.bf16 %v7062_v7 }
 0xab1   : > { %11652 = vst [vmem:[#allocation24_spill] sm:$0xff] %v10293_v58  ;;  %v10305_v36 = vsel %vm11653_vm15, %v7058_v63, %v7059_v16  ;;  %vm11661_vm15 = vmmov %vm11649_vm0 }
 0xab2   : > { %v7072_v15 = vpop.permute.xlu0 %7071  ;;  %v10308_v40 = vsel %vm11654_vm3, %v7063_v24, %v7058_v63  ;;  %vm11662_vm3 = vmmov %vm11649_vm0 }
 0xab3   : > { %v7067_v0 = vpop.permute.xlu1 %7066  ;;  %v7074_v39 = vunpack.i.h.bf16 %v7072_v15  ;;  %v7073_v17 = vunpack.i.l.bf16 %v7072_v15  ;;  %v7160_v2 = vpack.i.bf16 %v10305_v36, %v10308_v40 }
 0xab4   : > { %v7069_v19 = vunpack.i.h.bf16 %v7067_v0  ;;  %v7068_v61 = vunpack.i.l.bf16 %v7067_v0  ;;  %7141 = vrot.lane.b32.xlu0 %v10282_v13, %s7810_s12  ;;  %7131 = vrot.lane.b32.xlu1 %v10293_v58, %s7808_s10 }
 0xab5   : > { %v4040_v46 = vsel %vm11657_vm14, %v7059_v16, %v7073_v17  ;;  %vm11665_vm14 = vmmov %vm11649_vm0 }
 0xab6   : > { %v7077_v31 = vpop.permute.xlu0 %7076  ;;  %v10311_v51 = vsel %vm11655_vm2, %v7068_v61, %v7069_v19  ;;  %v10314_v3 = vsel %vm11656_vm11, %v7064_v18, %v7068_v61  ;;  %v4041_v1 = vsel %vm11649_vm0, %v7069_v19, %v7074_v39  ;;  %v10330_v47 = vpack.i.bf16 %v4040_v46, %v10305_v36  ;;  %vm11663_vm2 = vmmov %vm11649_vm0 }
 0xab7   : > { %v7082_v62 = vpop.permute.xlu1 %7081  ;;  %v7079_v12 = vunpack.i.h.bf16 %v7077_v31  ;;  %v7078_v53 = vunpack.i.l.bf16 %v7077_v31  ;;  %v10333_v42 = vpack.i.bf16 %v4041_v1, %v10311_v51  ;;  %v10337_v32 = vpack.i.bf16 %v10314_v3, %v10308_v40  ;;  %vm11664_vm11 = vmmov %vm11649_vm0 }
 0xab8   : > { %7151 = vrot.lane.b32.xlu0 %v7150_v20, %s7811_s13  ;;  %7136 = vrot.lane.b32.xlu1 %v7135_v57, %s7810_s12  ;;  %11658 = vst [vmem:[#allocation27_spill] sm:$0xff] %v10330_v47  ;;  %v7083_v26 = vunpack.i.l.bf16 %v7082_v62  ;;  %v7084_v21 = vunpack.i.h.bf16 %v7082_v62  ;;  %v7190_v62 = vpack.i.bf16 %v4041_v1, %v4040_v46 }
 0xab9   : > { %11659 = vst [vmem:[#allocation26_spill] sm:$0xff] %v10333_v42  ;;  %11660 = vst [vmem:[#allocation28_spill] sm:$0xff] %v10337_v32  ;;  %v10350_v5 = vsel %vm11663_vm2, %v7078_v53, %v7079_v12 }
 0xaba   : > { %v7092_v43 = vpop.permute.xlu0 %7091  ;;  %v10353_v33 = vsel %vm11664_vm11, %v7083_v26, %v7078_v53  ;;  %vm11671_vm2 = vmmov %vm11649_vm0 }
 0xabb   : > { %v7087_v22 = vpop.permute.xlu1 %7086  ;;  %v7094_v56 = vunpack.i.h.bf16 %v7092_v43  ;;  %v7093_v28 = vunpack.i.l.bf16 %v7092_v43  ;;  %v7175_v43 = vpack.i.bf16 %v10314_v3, %v4040_v46  ;;  %vm11672_vm11 = vmmov %vm11649_vm0  ;;  %v7200_v1 = vpack.i.bf16 %v10350_v5, %v10353_v33 }
 0xabc   : > { %v7089_v54 = vunpack.i.h.bf16 %v7087_v22  ;;  %v7088_v14 = vunpack.i.l.bf16 %v7087_v22  ;;  %7161 = vrot.lane.b32.xlu0 %v7160_v2, %s7810_s12  ;;  %7146 = vrot.lane.b32.xlu1 %v10293_v58, %s7809_s11 }
 0xabd   : > { %v4042_v55 = vsel %vm11665_vm14, %v7079_v12, %v7093_v28  ;;  %vm11673_vm14 = vmmov %vm11649_vm0 }
 0xabe   : > { %v7097_v49 = vpop.permute.xlu0 %7096  ;;  %v10340_v44 = vsel %vm11661_vm15, %v7088_v14, %v7089_v54  ;;  %v10343_v29 = vsel %vm11662_vm3, %v7084_v21, %v7088_v14  ;;  %v4043_v8 = vsel %vm11649_vm0, %v7089_v54, %v7094_v56  ;;  %v10366_v17 = vpack.i.bf16 %v4042_v55, %v10350_v5  ;;  %vm11669_vm15 = vmmov %vm11649_vm0 }
 0xabf   : > { %v7102_v11 = vpop.permute.xlu1 %7101  ;;  %v7099_v23 = vunpack.i.h.bf16 %v7097_v49  ;;  %v7098_v59 = vunpack.i.l.bf16 %v7097_v49  ;;  %v10369_v18 = vpack.i.bf16 %v4043_v8, %v10340_v44  ;;  %v10373_v31 = vpack.i.bf16 %v10343_v29, %v10353_v33  ;;  %vm11670_vm3 = vmmov %vm11649_vm0 }
 0xac0   : > { %7166 = vrot.lane.b32.xlu0 %v10333_v42, %s7809_s11  ;;  %7156 = vrot.lane.b32.xlu1 %v10330_v47, %s7809_s11  ;;  %v7104_v52 = vunpack.i.h.bf16 %v7102_v11  ;;  %v7103_v16 = vunpack.i.l.bf16 %v7102_v11  ;;  %11666 = vst [vmem:[#allocation2_spill] sm:$0xff] %v10366_v17  ;;  %v7230_v28 = vpack.i.bf16 %v4043_v8, %v4042_v55  ;;  %v7215_v21 = vpack.i.bf16 %v10343_v29, %v4042_v55 }
 0xac1   : > { %11667 = vst [vmem:[#allocation4_spill] sm:$0xff] %v10369_v18  ;;  %11668 = vst [vmem:[#allocation25_spill] sm:$0xff] %v10373_v31  ;;  %v10385_v53 = vsel %vm11673_vm14, %v7098_v59, %v7099_v23 }
 0xac2   : > { %v7112_v7 = vpop.permute.xlu0 %7111  ;;  %v10388_v22 = vsel %vm11649_vm0, %v7103_v16, %v7098_v59 }
 0xac3   : > { %v7114_v63 = vunpack.i.h.bf16 %v7112_v7  ;;  %v7113_v24 = vunpack.i.l.bf16 %v7112_v7  ;;  %v7107_v0 = vpop.permute.xlu1 %7106  ;;  %v7240_v49 = vpack.i.bf16 %v10385_v53, %v10388_v22 }
 0xac4   : > { %v7109_v61 = vunpack.i.h.bf16 %v7107_v0  ;;  %v7108_v39 = vunpack.i.l.bf16 %v7107_v0  ;;  %7181 = vrot.lane.b32.xlu0 %v10333_v42, %s7810_s12  ;;  %7171 = vrot.lane.b32.xlu1 %v10337_v32, %s7808_s10 }
 0xac5   : > { %v4044_v2 = vsel %vm11671_vm2, %v7099_v23, %v7113_v24  ;;  %vm11679_vm2 = vcmask 252928  }
 0xac6   : > { %v10376_v20 = vsel %vm11669_vm15, %v7108_v39, %v7109_v61  ;;  %v10379_v57 = vsel %vm11670_vm3, %v7104_v52, %v7108_v39  ;;  %v4045_v12 = vsel %vm11672_vm11, %v7109_v61, %v7114_v63  ;;  %v10399_v14 = vpack.i.bf16 %v4044_v2, %v10385_v53  ;;  %vm11680_vm11 = vmmov %vm11679_vm2 }
 0xac7   : > { %v10402_v26 = vpack.i.bf16 %v4045_v12, %v10376_v20  ;;  %v10406_v56 = vpack.i.bf16 %v10379_v57, %v10388_v22  ;;  %v7270_v11 = vpack.i.bf16 %v4045_v12, %v4044_v2  ;;  %v7255_v55 = vpack.i.bf16 %v10379_v57, %v4044_v2 }
 0xac8   : > { %7191 = vrot.lane.b32.xlu0 %v7190_v62, %s7811_s13  ;;  %7176 = vrot.lane.b32.xlu1 %v7175_v43, %s7810_s12  ;;  %11674 = vst [vmem:[#allocation23_spill] sm:$0xff] %v10399_v14  ;;  %vm11677_vm15 = vcmask 7168  }
 0xac9   : > { %11675 = vst [vmem:[#allocation10_spill] sm:$0xff] %v10402_v26  ;;  %11676 = vst [vmem:[#allocation8_spill] sm:$0xff] %v10406_v56 }
 0xaca   : > { %vm11678_vm3 = vmmov %vm11677_vm15 }
 0xacb   : > { %vm11681_vm14 = vmmov %vm11678_vm3 }
 0xacc   : > { %7201 = vrot.lane.b32.xlu0 %v7200_v1, %s7810_s12  ;;  %7186 = vrot.lane.b32.xlu1 %v10337_v32, %s7809_s11  ;;  %vm11682_vm0 = vmmov %vm11678_vm3 }
 0xad0   : > { %7206 = vrot.lane.b32.xlu0 %v10369_v18, %s7809_s11  ;;  %7196 = vrot.lane.b32.xlu1 %v10366_v17, %s7809_s11 }
 0xad4   : > { %7221 = vrot.lane.b32.xlu0 %v10369_v18, %s7810_s12  ;;  %7211 = vrot.lane.b32.xlu1 %v10373_v31, %s7808_s10 }
 0xad8   : > { %7231 = vrot.lane.b32.xlu0 %v7230_v28, %s7811_s13  ;;  %7216 = vrot.lane.b32.xlu1 %v7215_v21, %s7810_s12 }
 0xadc   : > { %7241 = vrot.lane.b32.xlu0 %v7240_v49, %s7810_s12  ;;  %7226 = vrot.lane.b32.xlu1 %v10373_v31, %s7809_s11 }
 0xae0   : > { %7246 = vrot.lane.b32.xlu0 %v10402_v26, %s7809_s11  ;;  %7236 = vrot.lane.b32.xlu1 %v10399_v14, %s7809_s11 }
 0xae4   : > { %7261 = vrot.lane.b32.xlu0 %v10402_v26, %s7810_s12  ;;  %7251 = vrot.lane.b32.xlu1 %v10406_v56, %s7808_s10 }
 0xae8   : > { %7271 = vrot.lane.b32.xlu0 %v7270_v11, %s7811_s13  ;;  %7256 = vrot.lane.b32.xlu1 %v7255_v55, %s7810_s12  ;;  %s278_s13 = scalar_lea.vmem %s11357_s7, %s5664_s26 }
 0xaec   : > { %7281 = vrot.lane.b32.xlu0 %v10282_v13, %s7805_s30  ;;  %7266 = vrot.lane.b32.xlu1 %v10406_v56, %s7809_s11 }
 0xaf0   : > { %7291 = vrot.lane.b32.xlu0 %v10330_v47, %s7805_s30  ;;  %7276 = vrot.lane.b32.xlu1 %v10285_v10, %s7805_s30 }
 0xaf4   : > { %7301 = vrot.lane.b32.xlu0 %v10337_v32, %s7805_s30  ;;  %7286 = vrot.lane.b32.xlu1 %v10293_v58, %s7805_s30 }
 0xaf8   : > { %7311 = vrot.lane.b32.xlu0 %v10369_v18, %s7805_s30  ;;  %7296 = vrot.lane.b32.xlu1 %v10333_v42, %s7805_s30 }
 0xafc   : > { %7321 = vrot.lane.b32.xlu0 %v10399_v14, %s7805_s30  ;;  %7306 = vrot.lane.b32.xlu1 %v10366_v17, %s7805_s30 }
 0xb00   : > { %7331 = vrot.lane.b32.xlu0 %v10406_v56, %s7805_s30  ;;  %7316 = vrot.lane.b32.xlu1 %v10373_v31, %s7805_s30 }
 0xb04   : > { %7326 = vrot.lane.b32.xlu1 %v10402_v26, %s7805_s30 }
 0xb1e   : > { %v7122_v8 = vpop.permute.xlu0 %7121 }
 0xb1f   : > { %v7124_v16 = vunpack.i.h.bf16 %v7122_v8  ;;  %v7123_v0 = vunpack.i.l.bf16 %v7122_v8 }
 0xb21   : > { %v4254_v46 = vsel %vm11677_vm15, %v7123_v0, %v7124_v16  ;;  %vm11683_vm15 = vmmov %vm11682_vm0 }
 0xb22   : > { %v7127_v23 = vpop.permute.xlu0 %7126  ;;  %v7117_v59 = vpop.permute.xlu1 %7116 }
 0xb23   : > { %v7119_v63 = vunpack.i.h.bf16 %v7117_v59  ;;  %v7118_v24 = vunpack.i.l.bf16 %v7117_v59  ;;  %v7129_v43 = vunpack.i.h.bf16 %v7127_v23  ;;  %v7128_v2 = vunpack.i.l.bf16 %v7127_v23 }
 0xb25   : > { %v4111_v21 = vsel %vm315_vm1, %v7118_v24, %v7119_v63 }
 0xb26   : > { %v7142_v52 = vpop.permute.xlu0 %7141  ;;  %v7132_v7 = vpop.permute.xlu1 %7131 }
 0xb27   : > { %v7144_v61 = vunpack.i.h.bf16 %v7142_v52  ;;  %v7143_v39 = vunpack.i.l.bf16 %v7142_v52  ;;  %v7134_v62 = vunpack.i.h.bf16 %v7132_v7  ;;  %v7133_v12 = vunpack.i.l.bf16 %v7132_v7 }
 0xb28   : > { %v4113_v52 = vsel %vm315_vm1, %v7128_v2, %v7129_v43 }
 0xb29   : > { %v4257_v54 = vsel %vm11678_vm3, %v7143_v39, %v7144_v61  ;;  %v4175_v59 = vsel %vm11679_vm2, %v7129_v43, %v7134_v62  ;;  %v4174_v19 = vsel %vm11680_vm11, %v7119_v63, %v7133_v12  ;;  %v4303_v61 = vsel %vm7896_vm4, %v4111_v21, %v4254_v46  ;;  %vm11684_vm3 = vmmov %vm11682_vm0 }
 0xb2a   : > { %v7152_v1 = vpop.permute.xlu0 %7151  ;;  %v7137_v28 = vpop.permute.xlu1 %7136  ;;  %vm11688_vm2 = vmmov %vm11682_vm0 }
 0xb2b   : > { %v7153_v49 = vunpack.i.l.bf16 %v7152_v1  ;;  %v7139_v11 = vunpack.i.h.bf16 %v7137_v28  ;;  %v7138_v55 = vunpack.i.l.bf16 %v7137_v28  ;;  %v7154_v8 = vunpack.i.h.bf16 %v7152_v1 }
 0xb2d   : > { %v4256_v23 = vsel %vm11681_vm14, %v7139_v11, %v7143_v39  ;;  %v4255_v7 = vsel %vm11682_vm0, %v7124_v16, %v7138_v55  ;;  %v4294_v43 = vsel %vm11683_vm15, %v7153_v49, %v7123_v0  ;;  %v4307_v39 = vsel %vm7900_vm5, %v4175_v59, %v4257_v54  ;;  %vm11689_vm14 = vmmov %vm11680_vm11 }
 0xb2e   : > { %v10472_v15 = vpop.permute.xlu0 %7161  ;;  %v7147_v48 = vpop.permute.xlu1 %7146  ;;  %v4306_v28 = vsel %vm7896_vm4, %v4113_v52, %v4256_v23  ;;  %v4304_v62 = vsel %vm7900_vm5, %v4174_v19, %v4255_v7  ;;  %v4295_v16 = vsel %vm11684_vm3, %v7154_v8, %v7139_v11  ;;  %v10492_v41 = vsel %vm7908_vm7, %v4256_v23, %v4113_v52  ;;  %vm11690_vm15 = vmmov %vm11682_vm0 }
 0xb2f   : > { %v7149_v1 = vunpack.i.h.bf16 %v7147_v48  ;;  %v7148_v63 = vunpack.i.l.bf16 %v7147_v48  ;;  %v10484_v12 = vpack.i.bf16 %v4307_v39, %v4306_v28  ;;  %v10486_v55 = vpack.i.bf16 %v4304_v62, %v4303_v61  ;;  %vm11691_vm3 = vmmov %vm11682_vm0 }
 0xb30   : > { %v4879_v4 = vpack.c.bf16 %v4306_v28, %v4303_v61  ;;  %v4328_v48 = vsel %vm7924_vm9, %v4255_v7, %v4174_v19  ;;  %v4331_v11 = vsel %vm7924_vm9, %v4257_v54, %v4175_v59  ;;  %v10508_v19 = vsel %vm7908_vm7, %v4254_v46, %v4111_v21 }
 0xb31   : > { %v4112_v45 = vsel %vm315_vm1, %v7149_v1, %v7128_v2  ;;  %v4110_v27 = vsel %vm315_vm1, %v7148_v63, %v7118_v24  ;;  %7346 = vrot.lane.b32.xlu0 %v10484_v12, %s7805_s30  ;;  %7336 = vrot.lane.b32.xlu1 %v10486_v55, %s7805_s30  ;;  %v10511_v8 = vpack.i.bf16 %v4331_v11, %v10492_v41 }
 0xb32   : > { %v7167_v0 = vpop.permute.xlu0 %7166  ;;  %v7157_v49 = vpop.permute.xlu1 %7156  ;;  %v4302_v2 = vsel %vm7904_vm6, %v4110_v27, %v4294_v43  ;;  %v4305_v24 = vsel %vm7904_vm6, %v4112_v45, %v4295_v16  ;;  %5062 = vmatprep.subr.bf16.mxu1 %v4879_v4  ;;  %v10514_v52 = vpack.i.bf16 %v4328_v48, %v10508_v19  ;;  %v10518_v28 = vsel %vm7916_vm8, %v4294_v43, %v4110_v27 }
 0xb33   : > { %11685 = vst [vmem:[#allocation9_spill] sm:$0xff] %v10511_v8  ;;  %v4878_v23 = vpack.c.bf16 %v4305_v24, %v4302_v2  ;;  %v7169_v7 = vunpack.i.h.bf16 %v7167_v0  ;;  %v7168_v4 = vunpack.i.l.bf16 %v7167_v0  ;;  %v7159_v61 = vunpack.i.h.bf16 %v7157_v49 }
 0xb34   : > { %11686 = vst [vmem:[#allocation14_spill] sm:$0xff] %v10514_v52  ;;  %v10526_v21 = vsel %vm7916_vm8, %v4295_v16, %v4112_v45  ;;  %v10528_v59 = vpack.i.bf16 %v4305_v24, %v4302_v2  ;;  %v7158_v62 = vunpack.i.l.bf16 %v7157_v49  ;;  %v7164_v0 = vunpack.i.h.bf16 %v10472_v15 }
 0xb35   : > { %7356 = vrot.lane.b32.xlu0 %v10511_v8, %s7805_s30  ;;  %7341 = vrot.lane.b32.xlu1 %v10514_v52, %s7805_s30  ;;  %v10534_v48 = vpack.i.bf16 %v10526_v21, %v10518_v28  ;;  %v7163_v45 = vunpack.i.l.bf16 %v10472_v15  ;;  %v4117_v2 = vsel %vm315_vm1, %v7168_v4, %v7169_v7 }
 0xb36   : > { %v7182_v54 = vpop.permute.xlu0 %7181  ;;  %v7172_v46 = vpop.permute.xlu1 %7171  ;;  %5063 = vmatpush1.bf16.msra.mxu1 %v4878_v23  ;;  %v4115_v24 = vsel %vm315_vm1, %v7158_v62, %v7159_v61 }
 0xb37   : > { %v7184_v27 = vunpack.i.h.bf16 %v7182_v54  ;;  %v7183_v43 = vunpack.i.l.bf16 %v7182_v54  ;;  %v7174_v1 = vunpack.i.h.bf16 %v7172_v46  ;;  %v7173_v39 = vunpack.i.l.bf16 %v7172_v46  ;;  %11687 = vst [vmem:[#allocation13_spill] sm:$0xff] %v10534_v48 }
 0xb38   : > { %v4258_v26 = vsel %vm11691_vm3, %v7163_v45, %v7164_v0 }
 0xb39   : > { %7351 = vrot.lane.b32.xlu1 %v10528_v59, %s7805_s30  ;;  %v4261_v54 = vsel %vm11688_vm2, %v7183_v43, %v7184_v27  ;;  %v4177_v46 = vsel %vm11680_vm11, %v7169_v7, %v7174_v1  ;;  %v4176_v8 = vsel %vm11689_vm14, %v7159_v61, %v7173_v39  ;;  %vm11692_vm2 = vmmov %vm11682_vm0 }
 0xb3a   : > { %v7192_v16 = vpop.permute.xlu0 %7191  ;;  %v7177_v49 = vpop.permute.xlu1 %7176  ;;  %v4313_v39 = vsel %vm7900_vm5, %v4177_v46, %v4261_v54  ;;  %vm11694_vm11 = vmmov %vm11682_vm0 }
 0xb3b   : > { %v7179_v11 = vunpack.i.h.bf16 %v7177_v49  ;;  %v7178_v23 = vunpack.i.l.bf16 %v7177_v49  ;;  %v7193_v63 = vunpack.i.l.bf16 %v7192_v16  ;;  %v7194_v52 = vunpack.i.h.bf16 %v7192_v16  ;;  %vm11700_vm14 = vmmov %vm11682_vm0 }
 0xb3c   : > { %vm11703_vm3 = vmmov %vm11692_vm2 }
 0xb3d   : > { %v4260_v15 = vsel %vm11682_vm0, %v7179_v11, %v7183_v43  ;;  %v4259_v56 = vsel %vm11690_vm15, %v7164_v0, %v7178_v23  ;;  %7361 = vrot.lane.b32.xlu1 %v10534_v48, %s7805_s30  ;;  %v4309_v43 = vsel %vm7896_vm4, %v4115_v24, %v4258_v26  ;;  %v4296_v0 = vsel %vm11692_vm2, %v7193_v63, %v7163_v45 }
 0xb3e   : > { %v10550_v14 = vpop.permute.xlu0 %7201  ;;  %v7187_v49 = vpop.permute.xlu1 %7186  ;;  %v4310_v27 = vsel %vm7900_vm5, %v4176_v8, %v4259_v56  ;;  %v4312_v7 = vsel %vm7896_vm4, %v4117_v2, %v4260_v15  ;;  %v4297_v31 = vsel %vm11694_vm11, %v7194_v52, %v7179_v11  ;;  %v4337_v11 = vsel %vm7924_vm9, %v4261_v54, %v4177_v46  ;;  %vm11704_vm11 = vmmov %vm11692_vm2 }
 0xb3f   : > { %v7189_v61 = vunpack.i.h.bf16 %v7187_v49  ;;  %v7188_v1 = vunpack.i.l.bf16 %v7187_v49  ;;  %v10561_v16 = vpack.i.bf16 %v4310_v27, %v4309_v43  ;;  %v10563_v23 = vpack.i.bf16 %v4313_v39, %v4312_v7 }
 0xb40   : > { %v4881_v48 = vpack.c.bf16 %v4312_v7, %v4309_v43  ;;  %v4334_v49 = vsel %vm7924_vm9, %v4259_v56, %v4176_v8  ;;  %vm11701_vm0 = vcmask 252928  }
 0xb41   : > { %11693 = vst [vmem:[#allocation6_spill] sm:$0xff] %v10563_v23  ;;  %v4116_v18 = vsel %vm315_vm1, %v7189_v61, %v7168_v4  ;;  %v4114_v17 = vsel %vm315_vm1, %v7188_v1, %v7158_v62  ;;  %7366 = vrot.lane.b32.xlu0 %v10561_v16, %s7805_s30  ;;  %7376 = vrot.lane.b32.xlu1 %v10563_v23, %s7805_s30  ;;  %vm11702_vm15 = vmmov %vm11701_vm0 }
 0xb42   : > { %v7207_v63 = vpop.permute.xlu0 %7206  ;;  %v7197_v45 = vpop.permute.xlu1 %7196  ;;  %v4308_v27 = vsel %vm7904_vm6, %v4114_v17, %v4296_v0  ;;  %v4311_v52 = vsel %vm7904_vm6, %v4116_v18, %v4297_v31  ;;  %5064 = vmatprep.subr.bf16.mxu1 %v4881_v48  ;;  %v10580_v4 = vsel %vm7908_vm7, %v4258_v26, %v4115_v24  ;;  %v10587_v62 = vsel %vm7908_vm7, %v4260_v15, %v4117_v2 }
 0xb43   : > { %v10583_v56 = vpack.i.bf16 %v4334_v49, %v10580_v4  ;;  %v4880_v8 = vpack.c.bf16 %v4311_v52, %v4308_v27  ;;  %v10593_v7 = vsel %vm7916_vm8, %v4296_v0, %v4114_v17  ;;  %v7209_v48 = vunpack.i.h.bf16 %v7207_v63 }
 0xb44   : > { %11696 = vst [vmem:[#allocation18_spill] sm:$0xff] %v10593_v7  ;;  %v7208_v61 = vunpack.i.l.bf16 %v7207_v63  ;;  %v7199_v1 = vunpack.i.h.bf16 %v7197_v45  ;;  %v10599_v2 = vsel %vm7916_vm8, %v4297_v31, %v4116_v18  ;;  %v7198_v15 = vunpack.i.l.bf16 %v7197_v45 }
 0xb45   : > { %11695 = vst [vmem:[#allocation20_spill] sm:$0xff] %v10583_v56  ;;  %7371 = vrot.lane.b32.xlu0 %v10583_v56, %s7805_s30  ;;  %5065 = vmatpush1.bf16.msra.mxu1 %v4880_v8  ;;  %11697 = vst [vmem:[#allocation7_spill] sm:$0xff] %v10599_v2  ;;  %v10601_v46 = vpack.i.bf16 %v4311_v52, %v4308_v27  ;;  %v10604_v0 = vpack.i.bf16 %v4337_v11, %v10587_v62  ;;  %v7204_v63 = vunpack.i.h.bf16 %v10550_v14 }
 0xb46   : > { %v7222_v26 = vpop.permute.xlu0 %7221  ;;  %v7212_v24 = vpop.permute.xlu1 %7211  ;;  %v10608_v49 = vpack.i.bf16 %v10599_v2, %v10593_v7  ;;  %v7203_v8 = vunpack.i.l.bf16 %v10550_v14  ;;  %v4121_v45 = vsel %vm315_vm1, %v7208_v61, %v7209_v48  ;;  %v4119_v11 = vsel %vm315_vm1, %v7198_v15, %v7199_v1 }
 0xb47   : > { %v7224_v43 = vunpack.i.h.bf16 %v7222_v26  ;;  %v7223_v54 = vunpack.i.l.bf16 %v7222_v26  ;;  %11698 = vst [vmem:[#allocation12_spill] sm:$0xff] %v10601_v46  ;;  %v7214_v17 = vunpack.i.h.bf16 %v7212_v24  ;;  %v7213_v39 = vunpack.i.l.bf16 %v7212_v24  ;;  %11699 = vst [vmem:[#allocation5_spill] sm:$0xff] %v10604_v0 }
 0xb48   : > { %v4262_v58 = vsel %vm11704_vm11, %v7203_v8, %v7204_v63 }
 0xb49   : > { %7381 = vrot.lane.b32.xlu0 %v10601_v46, %s7805_s30  ;;  %v4265_v26 = vsel %vm11700_vm14, %v7223_v54, %v7224_v43  ;;  %v4179_v24 = vsel %vm11701_vm0, %v7209_v48, %v7214_v17  ;;  %v4178_v56 = vsel %vm11702_vm15, %v7199_v1, %v7213_v39  ;;  %vm11707_vm14 = vmmov %vm11692_vm2 }
 0xb4a   : > { %v7232_v18 = vpop.permute.xlu0 %7231  ;;  %v7217_v31 = vpop.permute.xlu1 %7216  ;;  %v4319_v1 = vsel %vm7900_vm5, %v4179_v24, %v4265_v26  ;;  %vm11708_vm0 = vmmov %vm11692_vm2 }
 0xb4b   : > { %v7219_v27 = vunpack.i.h.bf16 %v7217_v31  ;;  %v7218_v52 = vunpack.i.l.bf16 %v7217_v31  ;;  %v7234_v32 = vunpack.i.h.bf16 %v7232_v18  ;;  %v7233_v42 = vunpack.i.l.bf16 %v7232_v18  ;;  %vm11712_vm15 = vmmov %vm11708_vm0 }
 0xb4c   : > { %vm11715_vm11 = vmmov %vm11708_vm0 }
 0xb4d   : > { %v4264_v14 = vsel %vm11703_vm3, %v7219_v27, %v7223_v54  ;;  %v4263_v47 = vsel %vm11692_vm2, %v7204_v63, %v7218_v52  ;;  %v4315_v54 = vsel %vm7896_vm4, %v4119_v11, %v4262_v58  ;;  %v4298_v52 = vsel %vm11707_vm14, %v7233_v42, %v7203_v8  ;;  %vm11717_vm14 = vmmov %vm11708_vm0 }
 0xb4e   : > { %v10622_v13 = vpop.permute.xlu0 %7241  ;;  %v7227_v10 = vpop.permute.xlu1 %7226  ;;  %v4318_v31 = vsel %vm7896_vm4, %v4121_v45, %v4264_v14  ;;  %v4316_v43 = vsel %vm7900_vm5, %v4178_v56, %v4263_v47  ;;  %v4299_v46 = vsel %vm11708_vm0, %v7234_v32, %v7219_v27  ;;  %v4340_v27 = vsel %vm7924_vm9, %v4263_v47, %v4178_v56 }
 0xb4f   : > { %v7229_v48 = vunpack.i.h.bf16 %v7227_v10  ;;  %v7228_v17 = vunpack.i.l.bf16 %v7227_v10  ;;  %v10632_v39 = vpack.i.bf16 %v4319_v1, %v4318_v31  ;;  %v10634_v63 = vpack.i.bf16 %v4316_v43, %v4315_v54 }
 0xb50   : > { %v4883_v18 = vpack.c.bf16 %v4318_v31, %v4315_v54  ;;  %v10666_v31 = vsel %vm7908_vm7, %v4264_v14, %v4121_v45  ;;  %vm11713_vm3 = vcmask 252928  }
 0xb51   : > { %11705 = vst [vmem:[#allocation17_spill] sm:$0xff] %v10632_v39  ;;  %11706 = vst [vmem:[#allocation15_spill] sm:$0xff] %v10634_v63  ;;  %v4120_v2 = vsel %vm315_vm1, %v7229_v48, %v7208_v61  ;;  %v4118_v7 = vsel %vm315_vm1, %v7228_v17, %v7198_v15  ;;  %7391 = vrot.lane.b32.xlu0 %v10632_v39, %s7805_s30  ;;  %7386 = vrot.lane.b32.xlu1 %v10634_v63, %s7805_s30 }
 0xb52   : > { %v4314_v10 = vsel %vm7904_vm6, %v4118_v7, %v4298_v52  ;;  %v4317_v23 = vsel %vm7904_vm6, %v4120_v2, %v4299_v46  ;;  %v7247_v43 = vpop.permute.xlu0 %7246  ;;  %v7237_v1 = vpop.permute.xlu1 %7236  ;;  %5066 = vmatprep.subr.bf16.mxu1 %v4883_v18  ;;  %v10652_v61 = vsel %vm7908_vm7, %v4262_v58, %v4119_v11  ;;  %v10656_v15 = vsel %vm7916_vm8, %v4298_v52, %v4118_v7  ;;  %vm11714_vm2 = vmmov %vm11713_vm3 }
 0xb53   : > { %v10648_v42 = vpack.i.bf16 %v4317_v23, %v4314_v10  ;;  %v4882_v32 = vpack.c.bf16 %v4317_v23, %v4314_v10  ;;  %11710 = vst [vmem:[#allocation19_spill] sm:$0xff] %v10656_v15  ;;  %v10660_v8 = vsel %vm7916_vm8, %v4299_v46, %v4120_v2  ;;  %v7249_v23 = vunpack.i.h.bf16 %v7247_v43 }
 0xb54   : > { %11711 = vst [vmem:[#allocation22_spill] sm:$0xff] %v10660_v8  ;;  %v7248_v48 = vunpack.i.l.bf16 %v7247_v43  ;;  %v7239_v17 = vunpack.i.h.bf16 %v7237_v1  ;;  %v4343_v7 = vsel %vm7924_vm9, %v4265_v26, %v4179_v24  ;;  %v7238_v54 = vunpack.i.l.bf16 %v7237_v1 }
 0xb55   : > { %11709 = vst [vmem:[#allocation11_spill] sm:$0xff] %v10648_v42  ;;  %5067 = vmatpush1.bf16.msra.mxu1 %v4882_v32  ;;  %7396 = vrot.lane.b32.xlu1 %v10648_v42, %s7805_s30  ;;  %v10673_v45 = vpack.i.bf16 %v4340_v27, %v10652_v61  ;;  %v10676_v14 = vpack.i.bf16 %v4343_v7, %v10666_v31  ;;  %v7244_v26 = vunpack.i.h.bf16 %v10622_v13  ;;  %v7243_v24 = vunpack.i.l.bf16 %v10622_v13 }
 0xb56   : > { %v7262_v58 = vpop.permute.xlu0 %7261  ;;  %v7252_v11 = vpop.permute.xlu1 %7251  ;;  %v10680_v18 = vpack.i.bf16 %v10660_v8, %v10656_v15  ;;  %v10685_v43 = vsel %vm315_vm1, %v7248_v48, %v7249_v23  ;;  %v4123_v27 = vsel %vm315_vm1, %v7238_v54, %v7239_v17 }
 0xb57   : > { %v7264_v2 = vunpack.i.h.bf16 %v7262_v58  ;;  %v7263_v46 = vunpack.i.l.bf16 %v7262_v58  ;;  %v7254_v47 = vunpack.i.h.bf16 %v7252_v11  ;;  %v7253_v56 = vunpack.i.l.bf16 %v7252_v11 }
 0xb58   : > { %v4266_v8 = vsel %vm11708_vm0, %v7243_v24, %v7244_v26  ;;  %v11738_v50 = vld [vmem:[#allocation17_spill] sm:$0xff] }
 0xb59   : > { %v10689_v58 = vsel %vm11712_vm15, %v7263_v46, %v7264_v2  ;;  %v10692_v11 = vsel %vm11713_vm3, %v7249_v23, %v7254_v47  ;;  %v4180_v7 = vsel %vm11714_vm2, %v7239_v17, %v7253_v56  ;;  %v4321_v17 = vsel %vm7896_vm4, %v4123_v27, %v4266_v8  ;;  %vm11718_vm15 = vmmov %vm11708_vm0 }
 0xb5a   : > { %v7272_v52 = vpop.permute.xlu0 %7271  ;;  %v7257_v10 = vpop.permute.xlu1 %7256  ;;  %v4325_v56 = vsel %vm7900_vm5, %v10692_v11, %v10689_v58  ;;  %vm11719_vm3 = vmmov %vm11708_vm0 }
 0xb5b   : > { %v7259_v1 = vunpack.i.h.bf16 %v7257_v10  ;;  %v7258_v32 = vunpack.i.l.bf16 %v7257_v10  ;;  %v7274_v42 = vunpack.i.h.bf16 %v7272_v52  ;;  %v7273_v39 = vunpack.i.l.bf16 %v7272_v52 }
 0xb5d   : > { %v10696_v13 = vsel %vm11715_vm11, %v7259_v1, %v7263_v46  ;;  %v4267_v9 = vsel %vm11717_vm14, %v7244_v26, %v7258_v32  ;;  %v10717_v63 = vsel %vm11718_vm15, %v7273_v39, %v7243_v24 }
 0xb5e   : > { %11716 = vst [vmem:[#allocation29_spill] sm:$0xff] %v10696_v13  ;;  %v4324_v2 = vsel %vm7896_vm4, %v10685_v43, %v10696_v13  ;;  %v7282_v10 = vpop.permute.xlu0 %7281  ;;  %v7267_v15 = vpop.permute.xlu1 %7266  ;;  %v4322_v23 = vsel %vm7900_vm5, %v4180_v7, %v4267_v9  ;;  %v10720_v13 = vsel %vm11719_vm3, %v7274_v42, %v7259_v1 }
 0xb5f   : > { %v7269_v47 = vunpack.i.h.bf16 %v7267_v15  ;;  %v7268_v46 = vunpack.i.l.bf16 %v7267_v15  ;;  %v10712_v26 = vpack.i.bf16 %v4322_v23, %v4321_v17  ;;  %v10714_v52 = vpack.i.bf16 %v4325_v56, %v4324_v2 }
 0xb60   : > { %v4885_v32 = vpack.c.bf16 %v4324_v2, %v4321_v17  ;;  %v7284_v37 = vunpack.i.h.bf16 %v7282_v10  ;;  %v7283_v23 = vunpack.i.l.bf16 %v7282_v10 }
 0xb61   : > { %v10723_v34 = vsel %vm315_vm1, %v7269_v47, %v7248_v48  ;;  %v10726_v15 = vsel %vm315_vm1, %v7268_v46, %v7238_v54  ;;  %7401 = vrot.lane.b32.xlu0 %v10712_v26, %s7805_s30  ;;  %v4346_v48 = vsel %vm7924_vm9, %v4267_v9, %v4180_v7  ;;  %v10742_v54 = vsel %vm7908_vm7, %v4266_v8, %v4123_v27  ;;  %v7699_v9 = vld [vmem:[%s11354_s4 + $0x4] ss:$20 sps:$4 sm:$0xff]  }
 0xb62   : > { %v4320_v35 = vsel %vm7904_vm6, %v10726_v15, %v10717_v63  ;;  %v4323_v39 = vsel %vm7904_vm6, %v10723_v34, %v10720_v13  ;;  %v7292_v42 = vpop.permute.xlu0 %7291  ;;  %v7277_v24 = vpop.permute.xlu1 %7276  ;;  %7406 = vrot.lane.b32.xlu1 %v10714_v52, %s7805_s30  ;;  %5068 = vmatprep.subr.bf16.mxu1 %v4885_v32  ;;  %v10749_v46 = vpack.i.bf16 %v4346_v48, %v10742_v54 }
 0xb63   : > { %v7279_v1 = vunpack.i.h.bf16 %v7277_v24  ;;  %v7278_v2 = vunpack.i.l.bf16 %v7277_v24  ;;  %v10746_v17 = vpack.i.bf16 %v4323_v39, %v4320_v35  ;;  %v4884_v47 = vpack.c.bf16 %v4323_v39, %v4320_v35  ;;  %5094 = vmatprep.mubr.bf16.mxu1 %v7699_v9 }
 0xb64   : > { %v7293_v10 = vunpack.i.l.bf16 %v7292_v42  ;;  %v11720_v39 = vpack.c.bf16 %v10276_v30, %v10265_v60  ;;  %v7294_v24 = vunpack.i.h.bf16 %v7292_v42  ;;  %v10765_v48 = vsel %vm383_vm12, %v7283_v23, %v7284_v37 }
 0xb65   : > { %7416 = vrot.lane.b32.xlu0 %v10746_v17, %s7805_s30  ;;  %5069 = vmatpush1.bf16.msra.mxu1 %v4884_v47  ;;  %v10757_v7 = vsel %vm383_vm12, %v7278_v2, %v7279_v1  ;;  %v11721_v30 = vpack.c.bf16 %v10279_v6, %v10268_v25 }
 0xb66   : > { %v7302_v8 = vpop.permute.xlu0 %7301  ;;  %v7287_v27 = vpop.permute.xlu1 %7286  ;;  %7411 = vrot.lane.b32.xlu1 %v10604_v0, %s7805_s30  ;;  %5070 = vmatprep.subr.bf16.mxu1 %v11720_v39 }
 0xb67   : > { %v7303_v56 = vunpack.i.l.bf16 %v7302_v8  ;;  %v7289_v32 = vunpack.i.h.bf16 %v7287_v27  ;;  %v7288_v35 = vunpack.i.l.bf16 %v7287_v27  ;;  %v4911_v27 = vpack.c.bf16 %v10765_v48, %v10757_v7  ;;  %v7702_v7 = vld [vmem:[%s11354_s4 + $0x28] ss:$20 sps:$4 sm:$0xff]  }
 0xb69   : > { %v10768_v47 = vsel %vm383_vm12, %v7303_v56, %v7293_v10  ;;  %v10771_v1 = vsel %vm383_vm12, %v7289_v32, %v7283_v23  ;;  %v10774_v0 = vsel %vm383_vm12, %v7288_v35, %v7278_v2  ;;  %7421 = vrot.lane.b32.xlu0 %v10608_v49, %s7805_s30  ;;  %5071 = vmatpush1.bf16.msra.mxu1 %v11721_v30  ;;  %v7304_v23 = vunpack.i.h.bf16 %v7302_v8 }
 0xb6a   : > { %v4910_v60 = vpack.c.bf16 %v10771_v1, %v10774_v0  ;;  %v7312_v42 = vpop.permute.xlu0 %7311  ;;  %v7297_v37 = vpop.permute.xlu1 %7296  ;;  %7426 = vrot.lane.b32.xlu1 %v10673_v45, %s7805_s30  ;;  %v11722_v56 = vpack.c.bf16 %v10311_v51, %v10305_v36  ;;  %v10791_v32 = vsel %vm383_vm12, %v7293_v10, %v7294_v24  ;;  %v11723_v36 = vpack.c.bf16 %v10314_v3, %v10308_v40 }
 0xb6b   : > { %v7299_v2 = vunpack.i.h.bf16 %v7297_v37  ;;  %v7298_v9 = vunpack.i.l.bf16 %v7297_v37  ;;  %v7314_v35 = vunpack.i.h.bf16 %v7312_v42  ;;  %v7313_v39 = vunpack.i.l.bf16 %v7312_v42 }
 0xb6c   : > { %5072 = vmatprep.subr.bf16.mxu1 %v11722_v56  ;;  %v11724_v37 = vpack.c.bf16 %v10340_v44, %v10350_v5  ;;  %v11725_v3 = vpack.c.bf16 %v10343_v29, %v10353_v33 }
 0xb6d   : > { %v10794_v25 = vsel %vm383_vm12, %v7304_v23, %v7298_v9  ;;  %v10797_v6 = vsel %vm383_vm12, %v7298_v9, %v7299_v2  ;;  %7431 = vrot.lane.b32.xlu0 %v10676_v14, %s7805_s30  ;;  %5073 = vmatpush1.bf16.msra.mxu1 %v11723_v36  ;;  %v10817_v40 = vsel %vm383_vm12, %v7313_v39, %v7314_v35 }
 0xb6e   : > { %v4912_v8 = vpack.c.bf16 %v10794_v25, %v10768_v47  ;;  %v7322_v51 = vpop.permute.xlu0 %7321  ;;  %v7307_v10 = vpop.permute.xlu1 %7306  ;;  %v4913_v24 = vpack.c.bf16 %v10797_v6, %v10791_v32  ;;  %7436 = vrot.lane.b32.xlu1 %v10680_v18, %s7805_s30  ;;  %5074 = vmatprep.subr.bf16.mxu1 %v11724_v37 }
 0xb6f   : > { %v7309_v30 = vunpack.i.h.bf16 %v7307_v10  ;;  %v7308_v42 = vunpack.i.l.bf16 %v7307_v10  ;;  %v7323_v44 = vunpack.i.l.bf16 %v7322_v51  ;;  %v11726_v10 = vpack.c.bf16 %v10376_v20, %v10385_v53 }
 0xb70   : > { %v11727_v20 = vpack.c.bf16 %v10379_v57, %v10388_v22  ;;  %v4897_v57 = vpack.c.bf16 %v10587_v62, %v10580_v4  ;;  %v4899_v62 = vpack.c.bf16 %v10666_v31, %v10652_v61  ;;  %v11736_v61 = vld [vmem:[#allocation22_spill] sm:$0xff] }
 0xb71   : > { %v10814_v23 = vsel %vm383_vm12, %v7308_v42, %v7309_v30  ;;  %7441 = vrot.lane.b32.xlu0 %v10749_v46, %s7805_s30  ;;  %5075 = vmatpush1.bf16.msra.mxu1 %v11725_v3  ;;  %v7324_v30 = vunpack.i.h.bf16 %v7322_v51 }
 0xb72   : > { %v7332_v2 = vpop.permute.xlu0 %7331  ;;  %v7317_v9 = vpop.permute.xlu1 %7316  ;;  %v4915_v56 = vpack.c.bf16 %v10817_v40, %v10814_v23  ;;  %7446 = vrot.lane.b32.xlu1 %v10486_v55, %s7812_s14  ;;  %5076 = vmatprep.subr.bf16.mxu1 %v11726_v10  ;;  %v11735_v10 = vld [vmem:[#allocation19_spill] sm:$0xff] }
 0xb73   : > { %v7333_v5 = vunpack.i.l.bf16 %v7332_v2  ;;  %v7319_v36 = vunpack.i.h.bf16 %v7317_v9  ;;  %v7318_v35 = vunpack.i.l.bf16 %v7317_v9  ;;  %v7334_v51 = vunpack.i.h.bf16 %v7332_v2 }
 0xb74   : > { %v4894_v9 = vpack.c.bf16 %v10526_v21, %v10518_v28  ;;  %v10860_v22 = vsel %vm383_vm12, %v7323_v44, %v7324_v30  ;;  %v11730_v28 = vld [vmem:[#allocation18_spill] sm:$0xff]  ;;  %v11731_v21 = vld [vmem:[#allocation7_spill] sm:$0xff]  ;;  %v4898_v31 = vpack.c.bf16 %v11736_v61, %v11735_v10  ;;  %v4347_v30 = vsel %vm7916_vm8, %v10720_v13, %v10723_v34  ;;  %v11740_v13 = vld [vmem:[#allocation21_spill] sm:$0xff] }
 0xb75   : > { %v10832_v29 = vsel %vm383_vm12, %v7333_v5, %v7323_v44  ;;  %v10835_v33 = vsel %vm383_vm12, %v7319_v36, %v7313_v39  ;;  %v10838_v37 = vsel %vm383_vm12, %v7318_v35, %v7308_v42  ;;  %7451 = vrot.lane.b32.xlu0 %v10484_v12, %s7812_s14  ;;  %5077 = vmatpush1.bf16.msra.mxu1 %v11727_v20  ;;  %v11732_v44 = vld [vmem:[#allocation29_spill] sm:$0xff]  ;;  %v11734_v36 = vld [vmem:[#allocation15_spill] sm:$0xff]  ;;  %v11741_v34 = vld [vmem:[#allocation16_spill] sm:$0xff] }
 0xb76   : > { %v4914_v55 = vpack.c.bf16 %v10835_v33, %v10838_v37  ;;  %v7327_v53 = vpop.permute.xlu1 %7326  ;;  %7456 = vrot.lane.b32.xlu1 %v10528_v59, %s7812_s14  ;;  %v11728_v42 = vpack.c.bf16 %v10492_v41, %v10508_v19  ;;  %v11729_v19 = vld [vmem:[#allocation6_spill] sm:$0xff]  ;;  %v4896_v4 = vpack.c.bf16 %v11731_v21, %v11730_v28  ;;  %v4348_v5 = vsel %vm7908_vm7, %v11732_v44, %v10685_v43  ;;  %v11753_v10 = vld [vmem:[#allocation9_spill] sm:$0xff] }
 0xb77   : > { %v7329_v39 = vunpack.i.h.bf16 %v7327_v53  ;;  %v7328_v3 = vunpack.i.l.bf16 %v7327_v53  ;;  %v4349_v35 = vsel %vm7924_vm9, %v10689_v58, %v10692_v11  ;;  %v4344_v43 = vsel %vm7916_vm8, %v10717_v63, %v10726_v15  ;;  %v11739_v11 = vld [vmem:[#allocation11_spill] sm:$0xff]  ;;  %v11742_v15 = vld [vmem:[#allocation24_spill] sm:$0xff]  ;;  %v11752_v44 = vld [vmem:[#allocation14_spill] sm:$0xff] }
 0xb78   : > { %5078 = vmatprep.subr.bf16.mxu1 %v11728_v42  ;;  %v10899_v20 = vpack.i.bf16 %v4349_v35, %v4348_v5  ;;  %v4901_v53 = vpack.c.bf16 %v4348_v5, %v10742_v54  ;;  %v10906_v58 = vpack.i.bf16 %v4347_v30, %v4344_v43  ;;  %v4900_v63 = vpack.c.bf16 %v4347_v30, %v4344_v43  ;;  %v11743_v54 = vld [vmem:[#allocation27_spill] sm:$0xff]  ;;  %v11748_v42 = vld [vmem:[#allocation25_spill] sm:$0xff]  ;;  %v11755_v30 = vld [vmem:[#allocation20_spill] sm:$0xff] }
 0xb79   : > { %v10855_v12 = vsel %vm383_vm12, %v7334_v51, %v7328_v3  ;;  %v10863_v59 = vsel %vm383_vm12, %v7328_v3, %v7329_v39  ;;  %7461 = vrot.lane.b32.xlu0 %v10561_v16, %s7812_s14  ;;  %5079 = vmatpush1.bf16.msra.mxu1 %v4894_v9  ;;  %v11733_v16 = vld [vmem:[#allocation12_spill] sm:$0xff]  ;;  %v11746_v39 = vld [vmem:[#allocation2_spill] sm:$0xff]  ;;  %v11754_v61 = vld [vmem:[#allocation13_spill] sm:$0xff] }
 0xb7a   : > { %v4916_v2 = vpack.c.bf16 %v10855_v12, %v10832_v29  ;;  %v4917_v41 = vpack.c.bf16 %v10863_v59, %v10860_v22  ;;  %7466 = vrot.lane.b32.xlu1 %v11729_v19, %s7812_s14  ;;  %5080 = vmatprep.subr.bf16.mxu1 %v4897_v57  ;;  %v11745_v51 = vld [vmem:[#allocation28_spill] sm:$0xff] }
 0xb7b   : > { %v11747_v3 = vld [vmem:[#allocation4_spill] sm:$0xff] }
 0xb7d   : > { %7471 = vrot.lane.b32.xlu0 %v11733_v16, %s7812_s14  ;;  %5081 = vmatpush1.bf16.msra.mxu1 %v4896_v4 }
 0xb7e   : > { %7476 = vrot.lane.b32.xlu1 %v11734_v36, %s7812_s14  ;;  %5082 = vmatprep.subr.bf16.mxu1 %v4899_v62  ;;  %v11751_v62 = vld [vmem:[#allocation8_spill] sm:$0xff] }
 0xb81   : > { %7481 = vrot.lane.b32.xlu0 %v11738_v50, %s7812_s14  ;;  %5083 = vmatpush1.bf16.msra.mxu1 %v4898_v31 }
 0xb82   : > { %7486 = vrot.lane.b32.xlu1 %v10899_v20, %s7805_s30  ;;  %5084 = vmatprep.subr.bf16.mxu1 %v4901_v53 }
 0xb85   : > { %7496 = vrot.lane.b32.xlu0 %v10906_v58, %s7805_s30  ;;  %5085 = vmatpush1.bf16.msra.mxu1 %v4900_v63  ;;  %v11756_v63 = vld [vmem:[#allocation5_spill] sm:$0xff] }
 0xb86   : > { %7491 = vrot.lane.b32.xlu1 %v11739_v11, %s7812_s14 }
 0xb89   : > { %7501 = vrot.lane.b32.xlu0 %v10712_v26, %s7812_s14  ;;  %v11744_v26 = vld [vmem:[#allocation26_spill] sm:$0xff] }
 0xb8a   : > { %7506 = vrot.lane.b32.xlu1 %v11740_v13, %s7812_s14 }
 0xb8d   : > { %7511 = vrot.lane.b32.xlu0 %v11741_v34, %s7812_s14 }
 0xb8e   : > { %7516 = vrot.lane.b32.xlu1 %v11742_v15, %s7812_s14 }
 0xb91   : > { %7521 = vrot.lane.b32.xlu0 %v11743_v54, %s7812_s14 }
 0xb92   : > { %7526 = vrot.lane.b32.xlu1 %v10714_v52, %s7812_s14  ;;  %v11749_v52 = vld [vmem:[#allocation23_spill] sm:$0xff] }
 0xb95   : > { %7536 = vrot.lane.b32.xlu0 %v10746_v17, %s7812_s14  ;;  %v11750_v17 = vld [vmem:[#allocation10_spill] sm:$0xff] }
 0xb96   : > { %7531 = vrot.lane.b32.xlu1 %v11744_v26, %s7812_s14 }
 0xb99   : > { %7541 = vrot.lane.b32.xlu0 %v11745_v51, %s7812_s14 }
 0xb9a   : > { %7546 = vrot.lane.b32.xlu1 %v11746_v39, %s7812_s14 }
 0xb9d   : > { %7551 = vrot.lane.b32.xlu0 %v11747_v3, %s7812_s14 }
 0xb9e   : > { %7556 = vrot.lane.b32.xlu1 %v11748_v42, %s7812_s14 }
 0xba1   : > { %7561 = vrot.lane.b32.xlu0 %v11749_v52, %s7812_s14 }
 0xba2   : > { %7566 = vrot.lane.b32.xlu1 %v11750_v17, %s7812_s14 }
 0xba3   : > { %v7347_v9 = vpop.permute.xlu0 %7346  ;;  %v7337_v57 = vpop.permute.xlu1 %7336 }
 0xba4   : > { %v7349_v19 = vunpack.i.h.bf16 %v7347_v9  ;;  %v7348_v28 = vunpack.i.l.bf16 %v7347_v9  ;;  %v7339_v21 = vunpack.i.h.bf16 %v7337_v57  ;;  %v7338_v4 = vunpack.i.l.bf16 %v7337_v57 }
 0xba5   : > { %7571 = vrot.lane.b32.xlu0 %v11751_v62, %s7812_s14 }
 0xba6   : > { %7576 = vrot.lane.b32.xlu1 %v11752_v44, %s7812_s14  ;;  %v4423_v5 = vsel %vm383_vm12, %v7338_v4, %v7339_v21  ;;  %v4425_v16 = vsel %vm383_vm12, %v7348_v28, %v7349_v19 }
 0xba7   : > { %v10946_v36 = vpop.permute.xlu1 %7341  ;;  %v4903_v35 = vpack.c.bf16 %v4425_v16, %v4423_v5  ;;  %v10958_v11 = vpop.permute.xlu0 %7356 }
 0xba8   : > { %v7359_v48 = vunpack.i.h.bf16 %v10958_v11  ;;  %v7344_v0 = vunpack.i.h.bf16 %v10946_v36  ;;  %v7343_v1 = vunpack.i.l.bf16 %v10946_v36 }
 0xba9   : > { %7581 = vrot.lane.b32.xlu0 %v11753_v10, %s7812_s14  ;;  %5086 = vmatprep.subr.bf16.mxu1 %v4903_v35 }
 0xbaa   : > { %7586 = vrot.lane.b32.xlu1 %v11754_v61, %s7812_s14  ;;  %v4607_v25 = vsel %vm383_vm12, %v7343_v1, %v7344_v0 }
 0xbab   : > { %v7352_v31 = vpop.permute.xlu1 %7351 }
 0xbac   : > { %v7354_v38 = vunpack.i.h.bf16 %v7352_v31  ;;  %v7353_v43 = vunpack.i.l.bf16 %v7352_v31 }
 0xbad   : > { %7591 = vrot.lane.b32.xlu0 %v11755_v30, %s7812_s14 }
 0xbae   : > { %v4424_v53 = vsel %vm383_vm12, %v7354_v38, %v7348_v28  ;;  %v4422_v50 = vsel %vm383_vm12, %v7353_v43, %v7338_v4  ;;  %7596 = vrot.lane.b32.xlu1 %v11756_v63, %s7812_s14 }
 0xbaf   : > { %v4902_v13 = vpack.c.bf16 %v4424_v53, %v4422_v50  ;;  %v10960_v34 = vpop.permute.xlu1 %7361 }
 0xbb0   : > { %v7364_v32 = vunpack.i.h.bf16 %v10960_v34  ;;  %v7363_v6 = vunpack.i.l.bf16 %v10960_v34 }
 0xbb1   : > { %7601 = vrot.lane.b32.xlu0 %v10608_v49, %s7812_s14  ;;  %5087 = vmatpush1.bf16.msra.mxu1 %v4902_v13 }
 0xbb2   : > { %7606 = vrot.lane.b32.xlu1 %v10673_v45, %s7812_s14  ;;  %v4606_v34 = vsel %vm383_vm12, %v7363_v6, %v7343_v1 }
 0xbb3   : > { %v7367_v15 = vpop.permute.xlu0 %7366  ;;  %v7377_v54 = vpop.permute.xlu1 %7376 }
 0xbb4   : > { %v7369_v26 = vunpack.i.h.bf16 %v7367_v15  ;;  %v7368_v51 = vunpack.i.l.bf16 %v7367_v15  ;;  %v7379_v39 = vunpack.i.h.bf16 %v7377_v54  ;;  %v7378_v3 = vunpack.i.l.bf16 %v7377_v54 }
 0xbb5   : > { %7611 = vrot.lane.b32.xlu0 %v10676_v14, %s7812_s14 }
 0xbb6   : > { %7616 = vrot.lane.b32.xlu1 %v10680_v18, %s7812_s14  ;;  %v4427_v42 = vsel %vm383_vm12, %v7368_v51, %v7369_v26  ;;  %v4429_v49 = vsel %vm383_vm12, %v7378_v3, %v7379_v39 }
 0xbb7   : > { %v10972_v52 = vpop.permute.xlu0 %7371  ;;  %v4905_v17 = vpack.c.bf16 %v4429_v49, %v4427_v42 }
 0xbb8   : > { %v7374_v23 = vunpack.i.h.bf16 %v10972_v52  ;;  %v7373_v40 = vunpack.i.l.bf16 %v10972_v52 }
 0xbb9   : > { %7621 = vrot.lane.b32.xlu0 %v10749_v46, %s7812_s14  ;;  %5088 = vmatprep.subr.bf16.mxu1 %v4905_v17 }
 0xbba   : > { %7626 = vrot.lane.b32.xlu1 %v10899_v20, %s7812_s14 }
 0xbbb   : > { %v7382_v45 = vpop.permute.xlu0 %7381 }
 0xbbc   : > { %v7384_v9 = vunpack.i.h.bf16 %v7382_v45  ;;  %v7383_v14 = vunpack.i.l.bf16 %v7382_v45 }
 0xbbd   : > { %7631 = vrot.lane.b32.xlu0 %v10906_v58, %s7812_s14 }
 0xbbe   : > { %v4426_v18 = vsel %vm383_vm12, %v7383_v14, %v7368_v51  ;;  %v4428_v57 = vsel %vm383_vm12, %v7384_v9, %v7378_v3 }
 0xbbf   : > { %v4904_v19 = vpack.c.bf16 %v4428_v57, %v4426_v18  ;;  %v7697_v18 = vld [vmem:[%s11354_s4] ss:$20 sps:$4 sm:$0xff]  }
 0xbc0   : > { %v7700_v57 = vld [vmem:[%s11354_s4 + $0x2c] ss:$20 sps:$4 sm:$0xff]  }
 0xbc1   : > { %5089 = vmatpush1.bf16.msra.mxu1 %v4904_v19 }
 0xbc3   : > { %v7392_v28 = vpop.permute.xlu0 %7391  ;;  %v7387_v46 = vpop.permute.xlu1 %7386 }
 0xbc4   : > { %v7394_v21 = vunpack.i.h.bf16 %v7392_v28  ;;  %v7393_v4 = vunpack.i.l.bf16 %v7392_v28  ;;  %v7389_v62 = vunpack.i.h.bf16 %v7387_v46  ;;  %v7388_v44 = vunpack.i.l.bf16 %v7387_v46 }
 0xbc6   : > { %v4433_v20 = vsel %vm383_vm12, %v7393_v4, %v7394_v21  ;;  %v4431_v5 = vsel %vm383_vm12, %v7388_v44, %v7389_v62 }
 0xbc7   : > { %v7397_v16 = vpop.permute.xlu1 %7396  ;;  %v4907_v35 = vpack.c.bf16 %v4433_v20, %v4431_v5 }
 0xbc8   : > { %v7399_v10 = vunpack.i.h.bf16 %v7397_v16  ;;  %v7398_v58 = vunpack.i.l.bf16 %v7397_v16  ;;  %v4611_v16 = vsel %vm383_vm12, %v7373_v40, %v7374_v23 }
 0xbc9   : > { %5090 = vmatprep.subr.bf16.mxu1 %v4907_v35 }
 0xbca   : > { %v4432_v61 = vsel %vm383_vm12, %v7399_v10, %v7393_v4  ;;  %v4430_v31 = vsel %vm383_vm12, %v7398_v58, %v7388_v44  ;;  %v7705_v44 = vld [vmem:[%s11354_s4 + $0x50] ss:$20 sps:$4 sm:$0xff]  }
 0xbcb   : > { %v4906_v38 = vpack.c.bf16 %v4432_v61, %v4430_v31 }
 0xbcd   : > { %5091 = vmatpush1.bf16.msra.mxu1 %v4906_v38 }
 0xbd3   : > { %v7402_v43 = vpop.permute.xlu0 %7401 }
 0xbd4   : > { %v7404_v30 = vunpack.i.h.bf16 %v7402_v43  ;;  %v7403_v53 = vunpack.i.l.bf16 %v7402_v43  ;;  %v7407_v50 = vpop.permute.xlu1 %7406 }
 0xbd5   : > { %v7409_v63 = vunpack.i.h.bf16 %v7407_v50  ;;  %v7408_v13 = vunpack.i.l.bf16 %v7407_v50 }
 0xbd6   : > { %v4435_v15 = vsel %vm383_vm12, %v7403_v53, %v7404_v30 }
 0xbd7   : > { %v7417_v54 = vpop.permute.xlu0 %7416  ;;  %v4437_v26 = vsel %vm383_vm12, %v7408_v13, %v7409_v63 }
 0xbd8   : > { %v7419_v51 = vunpack.i.h.bf16 %v7417_v54  ;;  %v7418_v39 = vunpack.i.l.bf16 %v7417_v54  ;;  %v7412_v3 = vpop.permute.xlu1 %7411  ;;  %v4909_v42 = vpack.c.bf16 %v4437_v26, %v4435_v15 }
 0xbd9   : > { %v7414_v36 = vunpack.i.h.bf16 %v7412_v3  ;;  %v7413_v47 = vunpack.i.l.bf16 %v7412_v3  ;;  %v7708_v3 = vld [vmem:[%s11354_s4 + $0x78] ss:$20 sps:$4 sm:$0xff]  }
 0xbda   : > { %v4434_v49 = vsel %vm383_vm12, %v7418_v39, %v7403_v53  ;;  %v4436_v17 = vsel %vm383_vm12, %v7419_v51, %v7408_v13  ;;  %5092 = vmatprep.subr.bf16.mxu1 %v4909_v42 }
 0xbdb   : > { %v4908_v45 = vpack.c.bf16 %v4436_v17, %v4434_v49  ;;  %v7422_v9 = vpop.permute.xlu0 %7421  ;;  %v4613_v59 = vsel %vm383_vm12, %v7413_v47, %v7414_v36  ;;  %v7711_v17 = vld [vmem:[%s11354_s4 + $0xc] ss:$20 sps:$4 sm:$0xff]  }
 0xbdc   : > { %v10990_v14 = vpop.permute.xlu1 %7426  ;;  %v7424_v46 = vunpack.i.h.bf16 %v7422_v9  ;;  %v7423_v33 = vunpack.i.l.bf16 %v7422_v9  ;;  %v4921_v31 = vpack.c.bf16 %v4613_v59, %v4611_v16 }
 0xbdd   : > { %5093 = vmatpush1.bf16.msra.mxu1 %v4908_v45  ;;  %v7429_v5 = vunpack.i.h.bf16 %v10990_v14  ;;  %v7428_v58 = vunpack.i.l.bf16 %v10990_v14 }
 0xbde   : > { %5135 = vmatprep.subr.bf16.mxu1 %v4911_v27  ;;  %v7358_v27 = vunpack.i.l.bf16 %v10958_v11  ;;  %v4610_v35 = vsel %vm383_vm12, %v7423_v33, %v7373_v40  ;;  %v4612_v10 = vsel %vm383_vm12, %v7424_v46, %v7413_v47 }
 0xbdf   : > { %v11001_v19 = vpop.permute.xlu0 %7431  ;;  %v4920_v43 = vpack.c.bf16 %v4612_v10, %v4610_v35  ;;  %v4615_v13 = vsel %vm383_vm12, %v7428_v58, %v7429_v5 }
 0xbe0   : > { %v11003_v28 = vpop.permute.xlu1 %7436  ;;  %5095 = vmatmul.mubr.bf16.vlgmr.msra.gmra.mrb[16].mxu1 %v7697_v18  ;;  %v7434_v52 = vunpack.i.h.bf16 %v11001_v19  ;;  %v7433_v22 = vunpack.i.l.bf16 %v11001_v19 }
 0xbe1   : > { %5136 = vmatpush1.bf16.msra.mxu1 %v4910_v60  ;;  %5104 = vmatprep.mubr.bf16.mxu1 %v7700_v57  ;;  %v7703_v60 = vld [vmem:[%s11354_s4 + $0x54] ss:$20 sps:$4 sm:$0xff]   ;;  %v7439_v29 = vunpack.i.h.bf16 %v11003_v28 }
 0xbe2   : > { %5137 = vmatprep.subr.bf16.mxu1 %v4913_v24  ;;  %v4617_v38 = vsel %vm383_vm12, %v7433_v22, %v7434_v52 }
 0xbe3   : > { %v11011_v21 = vpop.permute.xlu0 %7441  ;;  %v4616_v30 = vsel %vm383_vm12, %v7439_v29, %v7433_v22  ;;  %v4923_v39 = vpack.c.bf16 %v4617_v38, %v4615_v13 }
 0xbe4   : > { %v11013_v4 = vpop.permute.xlu1 %7446  ;;  %v7444_v53 = vunpack.i.h.bf16 %v11011_v21  ;;  %v7443_v50 = vunpack.i.l.bf16 %v11011_v21 }
 0xbe5   : > { %5138 = vmatpush1.bf16.msra.mxu1 %v4912_v8  ;;  %v4609_v8 = vsel %vm383_vm12, %v7358_v27, %v7359_v48  ;;  %v7449_v45 = vunpack.i.h.bf16 %v11013_v4  ;;  %v7448_v9 = vunpack.i.l.bf16 %v11013_v4 }
 0xbe6   : > { %5139 = vmatprep.subr.bf16.mxu1 %v4915_v56  ;;  %v4608_v56 = vsel %vm383_vm12, %v7364_v32, %v7358_v27  ;;  %v4919_v62 = vpack.c.bf16 %v4609_v8, %v4607_v25 }
 0xbe7   : > { %v11033_v24 = vpop.permute.xlu0 %7451  ;;  %v4918_v20 = vpack.c.bf16 %v4608_v56, %v4606_v34  ;;  %v4687_v47 = vsel %vm424_vm10, %v7448_v9, %v7449_v45 }
 0xbe8   : > { %v11035_v11 = vpop.permute.xlu1 %7456  ;;  %5105 = vmatmul.mubr.bf16.gmra.mrb[20].mxu1 %v7702_v7  ;;  %v7454_v54 = vunpack.i.h.bf16 %v11033_v24  ;;  %v7453_v26 = vunpack.i.l.bf16 %v11033_v24 }
 0xbe9   : > { %5140 = vmatpush1.bf16.msra.mxu1 %v4914_v55  ;;  %5114 = vmatprep.mubr.bf16.mxu1 %v7703_v60  ;;  %v7459_v14 = vunpack.i.h.bf16 %v11035_v11  ;;  %v7458_v57 = vunpack.i.l.bf16 %v11035_v11 }
 0xbea   : > { %5141 = vmatprep.subr.bf16.mxu1 %v4917_v41  ;;  %v7706_v41 = vld [vmem:[%s11354_s4 + $0x7c] ss:$20 sps:$4 sm:$0xff]   ;;  %v4689_v1 = vsel %vm424_vm10, %v7453_v26, %v7454_v54 }
 0xbeb   : > { %v11049_v37 = vpop.permute.xlu0 %7461  ;;  %v4688_v24 = vsel %vm424_vm10, %v7459_v14, %v7453_v26  ;;  %v4686_v25 = vsel %vm424_vm10, %v7458_v57, %v7448_v9  ;;  %v4927_v46 = vpack.c.bf16 %v4689_v1, %v4687_v47 }
 0xbec   : > { %v11051_v55 = vpop.permute.xlu1 %7466  ;;  %v7464_v4 = vunpack.i.h.bf16 %v11049_v37  ;;  %v7463_v60 = vunpack.i.l.bf16 %v11049_v37 }
 0xbed   : > { %5142 = vmatpush1.bf16.msra.mxu1 %v4916_v2  ;;  %v7438_v2 = vunpack.i.l.bf16 %v11003_v28  ;;  %v4619_v28 = vsel %vm383_vm12, %v7443_v50, %v7444_v53  ;;  %v7469_v32 = vunpack.i.h.bf16 %v11051_v55  ;;  %v7468_v6 = vunpack.i.l.bf16 %v11051_v55 }
 0xbee   : > { %5143 = vmatprep.subr.bf16.mxu1 %v4919_v62  ;;  %v4691_v55 = vsel %vm424_vm10, %v7463_v60, %v7464_v4 }
 0xbef   : > { %v11071_v12 = vpop.permute.xlu0 %7471  ;;  %v4614_v15 = vsel %vm383_vm12, %v7438_v2, %v7428_v58  ;;  %v4693_v62 = vsel %vm424_vm10, %v7468_v6, %v7469_v32 }
 0xbf0   : > { %v11074_v61 = vpop.permute.xlu1 %7476  ;;  %5115 = vmatmul.mubr.bf16.gmra.mrb[24].mxu1 %v7705_v44  ;;  %v4922_v18 = vpack.c.bf16 %v4616_v30, %v4614_v15  ;;  %v7474_v8 = vunpack.i.h.bf16 %v11071_v12  ;;  %v7473_v23 = vunpack.i.l.bf16 %v11071_v12  ;;  %v4926_v44 = vpack.c.bf16 %v4688_v24, %v4686_v25 }
 0xbf1   : > { %5144 = vmatpush1.bf16.msra.mxu1 %v4918_v20  ;;  %5124 = vmatprep.mubr.bf16.mxu1 %v7706_v41  ;;  %v7479_v52 = vunpack.i.h.bf16 %v11074_v61  ;;  %v7478_v22 = vunpack.i.l.bf16 %v11074_v61  ;;  %v4929_v10 = vpack.c.bf16 %v4693_v62, %v4691_v55 }
 0xbf2   : > { %5145 = vmatprep.subr.bf16.mxu1 %v4921_v31  ;;  %v4690_v59 = vsel %vm424_vm10, %v7473_v23, %v7463_v60  ;;  %v4692_v41 = vsel %vm424_vm10, %v7474_v8, %v7468_v6 }
 0xbf3   : > { %v11080_v63 = vpop.permute.xlu0 %7481  ;;  %v4928_v29 = vpack.c.bf16 %v4692_v41, %v4690_v59  ;;  %v4695_v12 = vsel %vm424_vm10, %v7478_v22, %v7479_v52 }
 0xbf4   : > { %v7487_v51 = vpop.permute.xlu1 %7486  ;;  %v7484_v33 = vunpack.i.h.bf16 %v11080_v63  ;;  %v7483_v37 = vunpack.i.l.bf16 %v11080_v63 }
 0xbf5   : > { %v7489_v42 = vunpack.i.h.bf16 %v7487_v51  ;;  %v7488_v49 = vunpack.i.l.bf16 %v7487_v51  ;;  %5146 = vmatpush1.bf16.msra.mxu1 %v4920_v43 }
 0xbf6   : > { %5147 = vmatprep.subr.bf16.mxu1 %v4923_v39  ;;  %v4697_v58 = vsel %vm424_vm10, %v7483_v37, %v7484_v33 }
 0xbf7   : > { %v7497_v19 = vpop.permute.xlu0 %7496  ;;  %v4621_v21 = vsel %vm383_vm12, %v7488_v49, %v7489_v42  ;;  %v4931_v53 = vpack.c.bf16 %v4697_v58, %v4695_v12 }
 0xbf8   : > { %v7499_v7 = vunpack.i.h.bf16 %v7497_v19  ;;  %v7498_v48 = vunpack.i.l.bf16 %v7497_v19  ;;  %v7492_v27 = vpop.permute.xlu1 %7491  ;;  %v4925_v0 = vpack.c.bf16 %v4621_v21, %v4619_v28  ;;  %5125 = vmatmul.mubr.bf16.gmra.mrb[28].mxu1 %v7708_v3 }
 0xbf9   : > { %5148 = vmatpush1.bf16.msra.mxu1 %v4922_v18  ;;  %5167 = vmatprep.mubr.bf16.mxu1 %v7711_v17  ;;  %v7494_v20 = vunpack.i.h.bf16 %v7492_v27  ;;  %v7493_v5 = vunpack.i.l.bf16 %v7492_v27 }
 0xbfa   : > { %v4618_v11 = vsel %vm383_vm12, %v7498_v48, %v7443_v50  ;;  %v4620_v36 = vsel %vm383_vm12, %v7499_v7, %v7488_v49  ;;  %5149 = vmatprep.subr.bf16.mxu1 %v4925_v0 }
 0xbfb   : > { %v4924_v40 = vpack.c.bf16 %v4620_v36, %v4618_v11  ;;  %v7502_v56 = vpop.permute.xlu0 %7501  ;;  %v4696_v2 = vsel %vm424_vm10, %v7494_v20, %v7483_v37  ;;  %v4694_v61 = vsel %vm424_vm10, %v7493_v5, %v7478_v22 }
 0xbfc   : > { %v11110_v34 = vpop.permute.xlu1 %7506  ;;  %v7504_v31 = vunpack.i.h.bf16 %v7502_v56  ;;  %v7503_v38 = vunpack.i.l.bf16 %v7502_v56  ;;  %v4930_v54 = vpack.c.bf16 %v4696_v2, %v4694_v61 }
 0xbfd   : > { %5150 = vmatpush1.bf16.msra.mxu1 %v4924_v40  ;;  %v7509_v26 = vunpack.i.h.bf16 %v11110_v34  ;;  %v7508_v51 = vunpack.i.l.bf16 %v11110_v34 }
 0xbfe   : > { %5151 = vmatprep.subr.bf16.mxu1 %v4927_v46  ;;  %v4699_v49 = vsel %vm424_vm10, %v7503_v38, %v7504_v31 }
 0xbff   : > { %v7512_v16 = vpop.permute.xlu0 %7511  ;;  %v4767_v32 = vsel %vm424_vm10, %v7508_v51, %v7509_v26 }
 0xc00   : > { %v7517_v35 = vpop.permute.xlu1 %7516  ;;  %v7514_v50 = vunpack.i.h.bf16 %v7512_v16  ;;  %v7513_v63 = vunpack.i.l.bf16 %v7512_v16 }
 0xc01   : > { %5152 = vmatpush1.bf16.msra.mxu1 %v4926_v44  ;;  %v7519_v39 = vunpack.i.h.bf16 %v7517_v35  ;;  %v7518_v3 = vunpack.i.l.bf16 %v7517_v35 }
 0xc02   : > { %5153 = vmatprep.subr.bf16.mxu1 %v4929_v10  ;;  %v4769_v28 = vsel %vm424_vm10, %v7513_v63, %v7514_v50 }
 0xc03   : > { %v7522_v43 = vpop.permute.xlu0 %7521  ;;  %v4768_v0 = vsel %vm424_vm10, %v7519_v39, %v7513_v63  ;;  %v4766_v1 = vsel %vm424_vm10, %v7518_v3, %v7508_v51  ;;  %v4935_v36 = vpack.c.bf16 %v4769_v28, %v4767_v32 }
 0xc04   : > { %v7527_v30 = vpop.permute.xlu1 %7526  ;;  %v7524_v21 = vunpack.i.h.bf16 %v7522_v43  ;;  %v7523_v7 = vunpack.i.l.bf16 %v7522_v43  ;;  %v4934_v40 = vpack.c.bf16 %v4768_v0, %v4766_v1 }
 0xc05   : > { %v7529_v13 = vunpack.i.h.bf16 %v7527_v30  ;;  %v7528_v15 = vunpack.i.l.bf16 %v7527_v30  ;;  %5154 = vmatpush1.bf16.msra.mxu1 %v4928_v29 }
 0xc06   : > { %5155 = vmatprep.subr.bf16.mxu1 %v4931_v53  ;;  %v4771_v23 = vsel %vm424_vm10, %v7523_v7, %v7524_v21 }
 0xc07   : > { %v7537_v42 = vpop.permute.xlu0 %7536  ;;  %v4701_v17 = vsel %vm424_vm10, %v7528_v15, %v7529_v13 }
 0xc08   : > { %v7539_v45 = vunpack.i.h.bf16 %v7537_v42  ;;  %v7538_v9 = vunpack.i.l.bf16 %v7537_v42  ;;  %v7532_v14 = vpop.permute.xlu1 %7531  ;;  %v4933_v18 = vpack.c.bf16 %v4701_v17, %v4699_v49  ;;  %v7709_v17 = vld [vmem:[%s11354_s4 + $0x8] ss:$20 sps:$4 sm:$0xff]  }
 0xc09   : > { %v7534_v57 = vunpack.i.h.bf16 %v7532_v14  ;;  %v7533_v19 = vunpack.i.l.bf16 %v7532_v14  ;;  %5156 = vmatpush1.bf16.msra.mxu1 %v4930_v54  ;;  %v7712_v14 = vld [vmem:[%s11354_s4 + $0x34] ss:$20 sps:$4 sm:$0xff]  }
 0xc0a   : > { %v4698_v48 = vsel %vm424_vm10, %v7538_v9, %v7503_v38  ;;  %v4700_v27 = vsel %vm424_vm10, %v7539_v45, %v7528_v15  ;;  %5157 = vmatprep.subr.bf16.mxu1 %v4933_v18 }
 0xc0b   : > { %v4932_v4 = vpack.c.bf16 %v4700_v27, %v4698_v48  ;;  %v7542_v60 = vpop.permute.xlu0 %7541  ;;  %v4773_v47 = vsel %vm424_vm10, %v7533_v19, %v7534_v57 }
 0xc0c   : > { %v7544_v6 = vunpack.i.h.bf16 %v7542_v60  ;;  %v7543_v24 = vunpack.i.l.bf16 %v7542_v60  ;;  %v7547_v11 = vpop.permute.xlu1 %7546  ;;  %v4937_v34 = vpack.c.bf16 %v4773_v47, %v4771_v23  ;;  %v7715_v23 = vld [vmem:[%s11354_s4 + $0x5c] ss:$20 sps:$4 sm:$0xff]  }
 0xc0d   : > { %5158 = vmatpush1.bf16.msra.mxu1 %v4932_v4  ;;  %v7549_v25 = vunpack.i.h.bf16 %v7547_v11  ;;  %v7548_v8 = vunpack.i.l.bf16 %v7547_v11 }
 0xc0e   : > { %5159 = vmatprep.subr.bf16.mxu1 %v4935_v36  ;;  %v4770_v46 = vsel %vm424_vm10, %v7543_v24, %v7523_v7  ;;  %v4772_v33 = vsel %vm424_vm10, %v7544_v6, %v7533_v19 }
 0xc0f   : > { %v7552_v56 = vpop.permute.xlu0 %7551  ;;  %v4775_v22 = vsel %vm424_vm10, %v7548_v8, %v7549_v25  ;;  %v4936_v41 = vpack.c.bf16 %v4772_v33, %v4770_v46 }
 0xc10   : > { %v7554_v37 = vunpack.i.h.bf16 %v7552_v56  ;;  %v7553_v55 = vunpack.i.l.bf16 %v7552_v56  ;;  %v7557_v62 = vpop.permute.xlu1 %7556 }
 0xc11   : > { %v7559_v44 = vunpack.i.h.bf16 %v7557_v62  ;;  %v7558_v52 = vunpack.i.l.bf16 %v7557_v62  ;;  %5160 = vmatpush1.bf16.msra.mxu1 %v4934_v40 }
 0xc12   : > { %5161 = vmatprep.subr.bf16.mxu1 %v4937_v34  ;;  %v4777_v59 = vsel %vm424_vm10, %v7553_v55, %v7554_v37 }
 0xc13   : > { %v7562_v20 = vpop.permute.xlu0 %7561  ;;  %v4939_v5 = vpack.c.bf16 %v4777_v59, %v4775_v22  ;;  %v4776_v16 = vsel %vm424_vm10, %v7559_v44, %v7553_v55  ;;  %v4774_v35 = vsel %vm424_vm10, %v7558_v52, %v7548_v8  ;;  %v7714_v8 = vld [vmem:[%s11354_s4 + $0x30] ss:$20 sps:$4 sm:$0xff]  }
 0xc14   : > { %v7564_v10 = vunpack.i.h.bf16 %v7562_v20  ;;  %v7563_v58 = vunpack.i.l.bf16 %v7562_v20  ;;  %v7567_v29 = vpop.permute.xlu1 %7566  ;;  %v4938_v31 = vpack.c.bf16 %v4776_v16, %v4774_v35 }
 0xc15   : > { %v7569_v12 = vunpack.i.h.bf16 %v7567_v29  ;;  %v7568_v2 = vunpack.i.l.bf16 %v7567_v29  ;;  %5162 = vmatpush1.bf16.msra.mxu1 %v4936_v41 }
 0xc16   : > { %5163 = vmatprep.subr.bf16.mxu1 %v4939_v5  ;;  %v4779_v61 = vsel %vm424_vm10, %v7563_v58, %v7564_v10 }
 0xc17   : > { %v7572_v38 = vpop.permute.xlu0 %7571  ;;  %v4781_v43 = vsel %vm424_vm10, %v7568_v2, %v7569_v12 }
 0xc18   : > { %v7574_v30 = vunpack.i.h.bf16 %v7572_v38  ;;  %v7573_v53 = vunpack.i.l.bf16 %v7572_v38  ;;  %v7577_v50 = vpop.permute.xlu1 %7576  ;;  %v4941_v63 = vpack.c.bf16 %v4781_v43, %v4779_v61  ;;  %v7718_v38 = vld [vmem:[%s11354_s4 + $0x84] ss:$20 sps:$4 sm:$0xff]  }
 0xc19   : > { %5164 = vmatpush1.bf16.msra.mxu1 %v4938_v31  ;;  %v7579_v54 = vunpack.i.h.bf16 %v7577_v50  ;;  %v7578_v26 = vunpack.i.l.bf16 %v7577_v50 }
 0xc1a   : > { %v4778_v13 = vsel %vm424_vm10, %v7573_v53, %v7563_v58  ;;  %v4780_v15 = vsel %vm424_vm10, %v7574_v30, %v7568_v2  ;;  %5165 = vmatprep.subr.bf16.mxu1 %v4941_v63  ;;  %v7717_v2 = vld [vmem:[%s11354_s4 + $0x58] ss:$20 sps:$4 sm:$0xff]  }
 0xc1b   : > { %v4940_v51 = vpack.c.bf16 %v4780_v15, %v4778_v13  ;;  %v7582_v39 = vpop.permute.xlu0 %7581  ;;  %v4847_v18 = vsel %vm424_vm10, %v7578_v26, %v7579_v54 }
 0xc1c   : > { %v7584_v3 = vunpack.i.h.bf16 %v7582_v39  ;;  %v7583_v42 = vunpack.i.l.bf16 %v7582_v39  ;;  %v7587_v49 = vpop.permute.xlu1 %7586  ;;  %v11757_v39 = vmov 0  }
 0xc1d   : > { %v7589_v45 = vunpack.i.h.bf16 %v7587_v49  ;;  %v7588_v9 = vunpack.i.l.bf16 %v7587_v49  ;;  %5166 = vmatpush1.bf16.msra.mxu1 %v4940_v51  ;;  %v7720_v51 = vld [vmem:[%s11354_s4 + $0x80] ss:$20 sps:$4 sm:$0xff]  }
 0xc1e   : > { %v4849_v57 = vsel %vm424_vm10, %v7583_v42, %v7584_v3  ;;  %v7721_v3 = vld [vmem:[%s11354_s4 + $0x10] ss:$20 sps:$4 sm:$0xff]   ;;  %v7723_v49 = vld [vmem:[%s11354_s4 + $0x60] ss:$20 sps:$4 sm:$0xff]  }
 0xc1f   : > { %v4848_v19 = vsel %vm424_vm10, %v7589_v45, %v7583_v42  ;;  %v4846_v28 = vsel %vm424_vm10, %v7588_v9, %v7578_v26  ;;  %v7592_v21 = vpop.permute.xlu0 %7591  ;;  %v4943_v7 = vpack.c.bf16 %v4849_v57, %v4847_v18  ;;  %v7722_v42 = vld [vmem:[%s11354_s4 + $0x38] ss:$20 sps:$4 sm:$0xff]  }
 0xc20   : > { %v4942_v48 = vpack.c.bf16 %v4848_v19, %v4846_v28  ;;  %v7594_v27 = vunpack.i.h.bf16 %v7592_v21  ;;  %v7593_v0 = vunpack.i.l.bf16 %v7592_v21  ;;  %v7597_v1 = vpop.permute.xlu1 %7596  ;;  %5168 = vmatmul.mubr.bf16.vlgmr.msra.gmra.mrb[16].mxu1 %v7709_v17  ;;  %v7724_v17 = vld [vmem:[%s11354_s4 + $0x88] ss:$20 sps:$4 sm:$0xff]  }
 0xc21   : > { %v7599_v4 = vunpack.i.h.bf16 %v7597_v1  ;;  %v7598_v60 = vunpack.i.l.bf16 %v7597_v1  ;;  %5208 = vmatprep.subr.bf16.mxu1 %v4943_v7  ;;  %5177 = vmatprep.mubr.bf16.mxu1 %v7712_v14 }
 0xc22   : > { %5209 = vmatpush1.bf16.msra.mxu1 %v4942_v48  ;;  %v4851_v32 = vsel %vm424_vm10, %v7593_v0, %v7594_v27 }
 0xc23   : > { %v7602_v6 = vpop.permute.xlu0 %7601  ;;  %v4853_v24 = vsel %vm424_vm10, %v7598_v60, %v7599_v4 }
 0xc24   : > { %v7604_v11 = vunpack.i.h.bf16 %v7602_v6  ;;  %v7603_v36 = vunpack.i.l.bf16 %v7602_v6  ;;  %v7607_v47 = vpop.permute.xlu1 %7606  ;;  %v4945_v25 = vpack.c.bf16 %v4853_v24, %v4851_v32 }
 0xc25   : > { %v7609_v34 = vunpack.i.h.bf16 %v7607_v47  ;;  %v7608_v46 = vunpack.i.l.bf16 %v7607_v47 }
 0xc26   : > { %v4850_v40 = vsel %vm424_vm10, %v7603_v36, %v7593_v0  ;;  %v4852_v56 = vsel %vm424_vm10, %v7604_v11, %v7598_v60  ;;  %5210 = vmatprep.subr.bf16.mxu1 %v4945_v25 }
 0xc27   : > { %v4944_v33 = vpack.c.bf16 %v4852_v56, %v4850_v40  ;;  %v7612_v37 = vpop.permute.xlu0 %7611  ;;  %v4855_v59 = vsel %vm424_vm10, %v7608_v46, %v7609_v34 }
 0xc28   : > { %v7614_v55 = vunpack.i.h.bf16 %v7612_v37  ;;  %v7613_v62 = vunpack.i.l.bf16 %v7612_v37  ;;  %v7617_v44 = vpop.permute.xlu1 %7616  ;;  %5178 = vmatmul.mubr.bf16.gmra.mrb[20].mxu1 %v7714_v8 }
 0xc29   : > { %v7619_v52 = vunpack.i.h.bf16 %v7617_v44  ;;  %v7618_v22 = vunpack.i.l.bf16 %v7617_v44  ;;  %5211 = vmatpush1.bf16.msra.mxu1 %v4944_v33  ;;  %5187 = vmatprep.mubr.bf16.mxu1 %v7715_v23 }
 0xc2a   : > { %v4857_v41 = vsel %vm424_vm10, %v7613_v62, %v7614_v55 }
 0xc2b   : > { %v4856_v20 = vsel %vm424_vm10, %v7619_v52, %v7613_v62  ;;  %v4854_v5 = vsel %vm424_vm10, %v7618_v22, %v7608_v46  ;;  %v7622_v16 = vpop.permute.xlu0 %7621  ;;  %v4947_v35 = vpack.c.bf16 %v4857_v41, %v4855_v59 }
 0xc2c   : > { %v4946_v10 = vpack.c.bf16 %v4856_v20, %v4854_v5  ;;  %v7624_v58 = vunpack.i.h.bf16 %v7622_v16  ;;  %v7623_v29 = vunpack.i.l.bf16 %v7622_v16  ;;  %v7627_v12 = vpop.permute.xlu1 %7626 }
 0xc2d   : > { %v7629_v61 = vunpack.i.h.bf16 %v7627_v12  ;;  %v7628_v31 = vunpack.i.l.bf16 %v7627_v12  ;;  %5212 = vmatprep.subr.bf16.mxu1 %v4947_v35 }
 0xc2e   : > { %5213 = vmatpush1.bf16.msra.mxu1 %v4946_v10  ;;  %v4859_v43 = vsel %vm424_vm10, %v7623_v29, %v7624_v58 }
 0xc2f   : > { %v7632_v30 = vpop.permute.xlu0 %7631  ;;  %v4861_v53 = vsel %vm424_vm10, %v7628_v31, %v7629_v61 }
 0xc30   : > { %v7634_v50 = vunpack.i.h.bf16 %v7632_v30  ;;  %v7633_v63 = vunpack.i.l.bf16 %v7632_v30  ;;  %5188 = vmatmul.mubr.bf16.gmra.mrb[24].mxu1 %v7717_v2  ;;  %v4949_v13 = vpack.c.bf16 %v4861_v53, %v4859_v43 }
 0xc31   : > { %5197 = vmatprep.mubr.bf16.mxu1 %v7718_v38  ;;  %v5450_v38 = vld [vmem:[%s11356_s6] sm:$0x7] }
 0xc32   : > { %v4858_v15 = vsel %vm424_vm10, %v7633_v63, %v7623_v29  ;;  %v4860_v54 = vsel %vm424_vm10, %v7634_v50, %v7628_v31  ;;  %5214 = vmatprep.subr.bf16.mxu1 %v4949_v13 }
 0xc33   : > { %v4948_v26 = vpack.c.bf16 %v4860_v54, %v4858_v15 }
 0xc35   : > { %5215 = vmatpush1.bf16.msra.mxu1 %v4948_v26 }
 0xc38   : > { %5198 = vmatmul.mubr.bf16.gmra.mrb[28].mxu1 %v7720_v51 }
 0xc39   : > { %5240 = vmatprep.mubr.bf16.mxu1 %v11757_v39 }
 0xc40   : > { %5657 = vmatmul.mubr.msk.bf16.vlgmr.msra.gmra.mrb[16].mxu1 %vm1923_vm13, %v7721_v3 }
 0xc41   : > { %5250 = vmatprep.mubr.bf16.mxu1 %v11757_v39 }
 0xc48   : > { %5658 = vmatmul.mubr.msk.bf16.gmra.mrb[20].mxu1 %vm1923_vm13, %v7722_v42 }
 0xc49   : > { %5260 = vmatprep.mubr.bf16.mxu1 %v11757_v39 }
 0xc50   : > { %5659 = vmatmul.mubr.msk.bf16.gmra.mrb[24].mxu1 %vm1923_vm13, %v7723_v49 }
 0xc51   : > { %5270 = vmatprep.mubr.bf16.mxu1 %v11757_v39 }
 0xc58   : > { %5660 = vmatmul.mubr.msk.bf16.gmra.mrb[28].mxu1 %vm1923_vm13, %v7724_v17 }
 0xd13   : > { %v11203_v45 = vpop.f32.mrb[16].mxu1 }
 0xd14   : > { %v5313_v9 = vmul.f32 %v11203_v45, %v11203_v45  ;;  %v11207_v14 = vpop.f32.mrb[17].mxu1 }
 0xd15   : > { %v5281_v18 = vadd.f32 %v11207_v14, %v11203_v45  ;;  %v5314_v57 = vmul.f32 %v11207_v14, %v11207_v14  ;;  %v11213_v19 = vpop.f32.mrb[18].mxu1 }
 0xd16   : > { %v5315_v28 = vmul.f32 %v11213_v19, %v11213_v19  ;;  %v11217_v21 = vpop.f32.mrb[19].mxu1 }
 0xd17   : > { %v5284_v7 = vadd.f32 %v11217_v21, %v11213_v19  ;;  %v5316_v48 = vmul.f32 %v11217_v21, %v11217_v21  ;;  %5282 = vadd.xlane.f32.xlu1 %v5281_v18  ;;  %v5329_v27 = vadd.f32 %v5314_v57, %v5313_v9 }
 0xd19   : > { %5285 = vadd.xlane.f32.xlu0 %v5284_v7  ;;  %v5332_v0 = vadd.f32 %v5316_v48, %v5315_v28 }
 0xd1b   : > { %5333 = vadd.xlane.f32.xlu1 %v5332_v0  ;;  %v11223_v1 = vpop.f32.mrb[20].mxu1 }
 0xd1c   : > { %v5317_v4 = vmul.f32 %v11223_v1, %v11223_v1  ;;  %v11227_v60 = vpop.f32.mrb[21].mxu1 }
 0xd1d   : > { %v5287_v32 = vadd.f32 %v11227_v60, %v11223_v1  ;;  %v5318_v6 = vmul.f32 %v11227_v60, %v11227_v60  ;;  %5330 = vadd.xlane.f32.xlu0 %v5329_v27  ;;  %v11233_v24 = vpop.f32.mrb[22].mxu1 }
 0xd1e   : > { %v5319_v11 = vmul.f32 %v11233_v24, %v11233_v24  ;;  %v11237_v36 = vpop.f32.mrb[23].mxu1 }
 0xd1f   : > { %v5290_v47 = vadd.f32 %v11237_v36, %v11233_v24  ;;  %v5320_v25 = vmul.f32 %v11237_v36, %v11237_v36  ;;  %v5335_v8 = vadd.f32 %v5318_v6, %v5317_v4 }
 0xd21   : > { %5288 = vadd.xlane.f32.xlu0 %v5287_v32  ;;  %5291 = vadd.xlane.f32.xlu1 %v5290_v47  ;;  %v5338_v23 = vadd.f32 %v5320_v25, %v5319_v11 }
 0xd23   : > { %v11243_v40 = vpop.f32.mrb[24].mxu1 }
 0xd24   : > { %v5321_v56 = vmul.f32 %v11243_v40, %v11243_v40  ;;  %v11247_v34 = vpop.f32.mrb[25].mxu1 }
 0xd25   : > { %v5293_v46 = vadd.f32 %v11247_v34, %v11243_v40  ;;  %v5322_v33 = vmul.f32 %v11247_v34, %v11247_v34  ;;  %5336 = vadd.xlane.f32.xlu0 %v5335_v8  ;;  %5339 = vadd.xlane.f32.xlu1 %v5338_v23  ;;  %v11253_v37 = vpop.f32.mrb[26].mxu1 }
 0xd26   : > { %v5323_v55 = vmul.f32 %v11253_v37, %v11253_v37  ;;  %v11257_v62 = vpop.f32.mrb[27].mxu1 }
 0xd27   : > { %v5296_v44 = vadd.f32 %v11257_v62, %v11253_v37  ;;  %v5324_v52 = vmul.f32 %v11257_v62, %v11257_v62  ;;  %v5341_v22 = vadd.f32 %v5322_v33, %v5321_v56 }
 0xd29   : > { %5294 = vadd.xlane.f32.xlu0 %v5293_v46  ;;  %5297 = vadd.xlane.f32.xlu1 %v5296_v44  ;;  %v5344_v59 = vadd.f32 %v5324_v52, %v5323_v55 }
 0xd2b   : > { %v11263_v41 = vpop.f32.mrb[28].mxu1 }
 0xd2c   : > { %v5325_v20 = vmul.f32 %v11263_v41, %v11263_v41  ;;  %v11267_v5 = vpop.f32.mrb[29].mxu1 }
 0xd2d   : > { %v5299_v16 = vadd.f32 %v11267_v5, %v11263_v41  ;;  %v5326_v35 = vmul.f32 %v11267_v5, %v11267_v5  ;;  %5342 = vadd.xlane.f32.xlu0 %v5341_v22  ;;  %5345 = vadd.xlane.f32.xlu1 %v5344_v59  ;;  %v11273_v10 = vpop.f32.mrb[30].mxu1 }
 0xd2e   : > { %v5327_v58 = vmul.f32 %v11273_v10, %v11273_v10  ;;  %v11277_v29 = vpop.f32.mrb[31].mxu1 }
 0xd2f   : > { %v5302_v12 = vadd.f32 %v11277_v29, %v11273_v10  ;;  %v5328_v2 = vmul.f32 %v11277_v29, %v11277_v29  ;;  %v5347_v61 = vadd.f32 %v5326_v35, %v5325_v20 }
 0xd31   : > { %v5350_v31 = vadd.f32 %v5328_v2, %v5327_v58  ;;  %5300 = vadd.xlane.f32.xlu0 %v5299_v16  ;;  %5303 = vadd.xlane.f32.xlu1 %v5302_v12 }
 0xd35   : > { %5348 = vadd.xlane.f32.xlu0 %v5347_v61  ;;  %5351 = vadd.xlane.f32.xlu1 %v5350_v31 }
 0xd4b   : > { %5453 = vperm.xlu0 %7635, %v5450_v38  }
 0xda4   : > { %v5283_v43 = vpop.xlane.xlu1 %5282 }
 0xda5   : > { %v5305_v53 = vmul.f32 0.00390625, %v5283_v43 }
 0xda6   : > { %v5286_v30 = vpop.xlane.xlu0 %5285 }
 0xda7   : > { %v5306_v50 = vmul.f32 0.00390625, %v5286_v30  ;;  %v5361_v51 = vmul.f32 %v5305_v53, %v5305_v53  ;;  %v5377_v33 = vsub.f32 %v11203_v45, %v5305_v53  ;;  %v5378_v52 = vsub.f32 %v11207_v14, %v5305_v53 }
 0xda8   : > { %v5334_v63 = vpop.xlane.xlu1 %5333 }
 0xda9   : > { %v5354_v13 = vmul.f32 0.00390625, %v5334_v63  ;;  %v5362_v15 = vmul.f32 %v5306_v50, %v5306_v50  ;;  %v5379_v55 = vsub.f32 %v11213_v19, %v5306_v50  ;;  %v5380_v44 = vsub.f32 %v11217_v21, %v5306_v50 }
 0xdaa   : > { %v5331_v54 = vpop.xlane.xlu0 %5330 }
 0xdab   : > { %v5370_v26 = vsub.f32 %v5354_v13, %v5362_v15  ;;  %v5353_v39 = vmul.f32 0.00390625, %v5331_v54 }
 0xdad   : > { %v5394_v3 = vadd.f32 1e-05, %v5370_v26  ;;  %v5369_v42 = vsub.f32 %v5353_v39, %v5361_v51 }
 0xdae   : > { %v5289_v49 = vpop.xlane.xlu0 %5288  ;;  %v5292_v17 = vpop.xlane.xlu1 %5291 }
 0xdaf   : > { %7773 = vrsqrt.f32 %v5394_v3  ;;  %v5393_v9 = vadd.f32 1e-05, %v5369_v42  ;;  %v11286_v18 = vmul.f32 0.00390625, %v5289_v49  ;;  %v11288_v57 = vmul.f32 0.00390625, %v5292_v17 }
 0xdb1   : > { %7775 = vrsqrt.f32 %v5393_v9  ;;  %v5363_v48 = vmul.f32 %v11286_v18, %v11286_v18  ;;  %v5364_v0 = vmul.f32 %v11288_v57, %v11288_v57  ;;  %v5381_v39 = vsub.f32 %v11223_v1, %v11286_v18 }
 0xdb2   : > { %v5337_v28 = vpop.xlane.xlu0 %5336  ;;  %v5340_v7 = vpop.xlane.xlu1 %5339  ;;  %v5382_v3 = vsub.f32 %v11227_v60, %v11286_v18  ;;  %v5383_v42 = vsub.f32 %v11233_v24, %v11288_v57  ;;  %v5384_v49 = vsub.f32 %v11237_v36, %v11288_v57 }
 0xdb3   : > { %v5355_v27 = vmul.f32 0.00390625, %v5337_v28  ;;  %v5356_v4 = vmul.f32 0.00390625, %v5340_v7 }
 0xdb5   : > { %v5371_v32 = vsub.f32 %v5355_v27, %v5363_v48  ;;  %v5372_v6 = vsub.f32 %v5356_v4, %v5364_v0 }
 0xdb6   : > { %v5295_v11 = vpop.xlane.xlu0 %5294  ;;  %v5298_v47 = vpop.xlane.xlu1 %5297 }
 0xdb7   : > { %v5395_v25 = vadd.f32 1e-05, %v5371_v32  ;;  %v5396_v8 = vadd.f32 1e-05, %v5372_v6  ;;  %v11294_v23 = vmul.f32 0.00390625, %v5295_v11  ;;  %v11296_v56 = vmul.f32 0.00390625, %v5298_v47 }
 0xdb9   : > { %v7774_v46 = vpop.eup %7773  ;;  %7777 = vrsqrt.f32 %v5395_v25  ;;  %v5365_v22 = vmul.f32 %v11294_v23, %v11294_v23  ;;  %v5366_v20 = vmul.f32 %v11296_v56, %v11296_v56 }
 0xdba   : > { %7779 = vrsqrt.f32 %v5396_v8  ;;  %v5343_v59 = vpop.xlane.xlu0 %5342  ;;  %v5346_v16 = vpop.xlane.xlu1 %5345  ;;  %v5412_v45 = vmul.f32 %v7774_v46, %v5380_v44  ;;  %v5411_v2 = vmul.f32 %v7774_v46, %v5379_v55  ;;  %v5385_v55 = vsub.f32 %v11243_v40, %v11294_v23 }
 0xdbb   : > { %v7776_v35 = vpop.eup %7775  ;;  %v5357_v58 = vmul.f32 0.00390625, %v5343_v59  ;;  %v5358_v12 = vmul.f32 0.00390625, %v5346_v16  ;;  %v5386_v44 = vsub.f32 %v11247_v34, %v11294_v23  ;;  %v5388_v59 = vsub.f32 %v11257_v62, %v11296_v56 }
 0xdbc   : > { %v5410_v19 = vmul.f32 %v7776_v35, %v5378_v52  ;;  %v5409_v61 = vmul.f32 %v7776_v35, %v5377_v33  ;;  %v5428_v30 = vmax.f32 %v5412_v45, 0.0  ;;  %v5427_v50 = vmax.f32 %v5411_v2, 0.0 }
 0xdbd   : > { %v5373_v21 = vsub.f32 %v5357_v58, %v5365_v22  ;;  %v5374_v31 = vsub.f32 %v5358_v12, %v5366_v20  ;;  %v5387_v22 = vsub.f32 %v11253_v37, %v11296_v56 }
 0xdbe   : > { %v5301_v38 = vpop.xlane.xlu0 %5300  ;;  %v5304_v14 = vpop.xlane.xlu1 %5303  ;;  %v5426_v43 = vmax.f32 %v5410_v19, 0.0  ;;  %v5425_v53 = vmax.f32 %v5409_v61, 0.0 }
 0xdbf   : > { %v5397_v63 = vadd.f32 1e-05, %v5373_v21  ;;  %v5398_v13 = vadd.f32 1e-05, %v5374_v31  ;;  %v11306_v15 = vmul.f32 0.00390625, %v5301_v38  ;;  %v11308_v54 = vmul.f32 0.00390625, %v5304_v14 }
 0xdc0   : > { %v5443_v26 = vpack.c.bf16 %v5428_v30, %v5426_v43  ;;  %v5442_v51 = vpack.c.bf16 %v5427_v50, %v5425_v53 }
 0xdc1   : > { %7781 = vrsqrt.f32 %v5397_v63  ;;  %v5367_v7 = vmul.f32 %v11306_v15, %v11306_v15  ;;  %v5368_v1 = vmul.f32 %v11308_v54, %v11308_v54  ;;  %v5389_v61 = vsub.f32 %v11263_v41, %v11306_v15 }
 0xdc2   : > { %7783 = vrsqrt.f32 %v5398_v13  ;;  %5459 = vmatprep.subr.bf16.mxu0 %v5443_v26  ;;  %v5349_v17 = vpop.xlane.xlu0 %5348  ;;  %v5352_v9 = vpop.xlane.xlu1 %5351  ;;  %v5390_v37 = vsub.f32 %v11267_v5, %v11306_v15  ;;  %v5391_v56 = vsub.f32 %v11273_v10, %v11308_v54  ;;  %v5392_v21 = vsub.f32 %v11277_v29, %v11308_v54  ;;  %v5441_v10 = vld [vmem:[%s11355_s5] sm:$0x3] }
 0xdc3   : > { %v7778_v28 = vpop.eup %7777  ;;  %v5359_v48 = vmul.f32 0.00390625, %v5349_v17  ;;  %v5360_v27 = vmul.f32 0.00390625, %v5352_v9  ;;  %5460 = vmatpush1.bf16.msra.mxu0 %v5442_v51 }
 0xdc4   : > { %v7780_v60 = vpop.eup %7779  ;;  %v5414_v18 = vmul.f32 %v7778_v28, %v5382_v3  ;;  %v5413_v24 = vmul.f32 %v7778_v28, %v5381_v39 }
 0xdc5   : > { %v5375_v0 = vsub.f32 %v5359_v48, %v5367_v7  ;;  %v5376_v4 = vsub.f32 %v5360_v27, %v5368_v1  ;;  %v5416_v36 = vmul.f32 %v7780_v60, %v5384_v49  ;;  %v5415_v57 = vmul.f32 %v7780_v60, %v5383_v42 }
 0xdc6   : > { %v5430_v32 = vmax.f32 %v5414_v18, 0.0  ;;  %v5429_v6 = vmax.f32 %v5413_v24, 0.0 }
 0xdc7   : > { %v5399_v11 = vadd.f32 1e-05, %v5375_v0  ;;  %v5400_v47 = vadd.f32 1e-05, %v5376_v4  ;;  %v5432_v25 = vmax.f32 %v5416_v36, 0.0  ;;  %v5431_v8 = vmax.f32 %v5415_v57, 0.0 }
 0xdc9   : > { %7785 = vrsqrt.f32 %v5399_v11  ;;  %v5445_v46 = vpack.c.bf16 %v5432_v25, %v5430_v32  ;;  %v5444_v33 = vpack.c.bf16 %v5431_v8, %v5429_v6 }
 0xdca   : > { %7787 = vrsqrt.f32 %v5400_v47  ;;  %v5454_v29 = vpop.permute.xlu0 %5453 }
 0xdcb   : > { %v7782_v52 = vpop.eup %7781  ;;  %5461 = vmatprep.subr.bf16.mxu0 %v5445_v46 }
 0xdcc   : > { %v7784_v20 = vpop.eup %7783  ;;  %5462 = vmatpush1.bf16.msra.mxu0 %v5444_v33  ;;  %v5418_v16 = vmul.f32 %v7782_v52, %v5386_v44  ;;  %v5417_v35 = vmul.f32 %v7782_v52, %v5385_v55 }
 0xdcd   : > { %v5420_v58 = vmul.f32 %v7784_v20, %v5388_v59  ;;  %v5419_v12 = vmul.f32 %v7784_v20, %v5387_v22 }
 0xdce   : > { %v5434_v45 = vmax.f32 %v5418_v16, 0.0  ;;  %v5433_v40 = vmax.f32 %v5417_v35, 0.0 }
 0xdcf   : > { %v5436_v2 = vmax.f32 %v5420_v58, 0.0  ;;  %v5435_v19 = vmax.f32 %v5419_v12, 0.0 }
 0xdd1   : > { %v5447_v34 = vpack.c.bf16 %v5436_v2, %v5434_v45  ;;  %v5446_v23 = vpack.c.bf16 %v5435_v19, %v5433_v40 }
 0xdd3   : > { %v7786_v62 = vpop.eup %7785  ;;  %5463 = vmatprep.subr.bf16.mxu0 %v5447_v34 }
 0xdd4   : > { %v7788_v31 = vpop.eup %7787  ;;  %5464 = vmatpush1.bf16.msra.mxu0 %v5446_v23  ;;  %v5422_v38 = vmul.f32 %v7786_v62, %v5390_v37  ;;  %v5421_v14 = vmul.f32 %v7786_v62, %v5389_v61 }
 0xdd5   : > { %v5424_v43 = vmul.f32 %v7788_v31, %v5392_v21  ;;  %v5423_v30 = vmul.f32 %v7788_v31, %v5391_v56 }
 0xdd6   : > { %v5438_v53 = vmax.f32 %v5422_v38, 0.0  ;;  %v5437_v50 = vmax.f32 %v5421_v14, 0.0 }
 0xdd7   : > { %v5440_v41 = vmax.f32 %v5424_v43, 0.0  ;;  %v5439_v63 = vmax.f32 %v5423_v30, 0.0 }
 0xdd9   : > { %v5449_v13 = vpack.c.bf16 %v5440_v41, %v5438_v53  ;;  %v5448_v5 = vpack.c.bf16 %v5439_v63, %v5437_v50 }
 0xddb   : > { %5465 = vmatprep.subr.bf16.mxu0 %v5449_v13 }
 0xddc   : > { %5466 = vmatpush1.bf16.msra.mxu0 %v5448_v5 }
 0xddf   : > { %5661 = vmatmul.mubr.msk.bf16.vlgmr.msra.gmra.mrb[48].mxu0 %vm1923_vm13, %v5441_v10 }
 0xeb2   : > { %v5493_v15 = vpop.f32.mrb[48].mxu0 }
 0xeb3   : > { %v5495_v54 = vpop.f32.mrb[49].mxu0  ;;  %v5494_v26 = vadd.f32 %v5493_v15, %v5454_v29 }
 0xeb4   : > { %v5497_v51 = vpop.f32.mrb[50].mxu0  ;;  %v5496_v39 = vadd.f32 %v5495_v54, %v5454_v29 }
 0xeb5   : > { %v5500_v3 = vsub.f32 0.0, %v5494_v26  ;;  %v5498_v42 = vpop.f32.mrb[51].mxu0 }
 0xeb6   : > { %v5501_v49 = vsub.f32 0.0, %v5496_v39 }
 0xeb7   : > { %v5502_v17 = vmul.f32 1.442695, %v5500_v3 }
 0xeb8   : > { %v5504_v9 = vmul.f32 1.442695, %v5501_v49 }
 0xeb9   : > { %7789 = vpow2.f32 %v5502_v17 }
 0xeba   : > { %7791 = vpow2.f32 %v5504_v9 }
 0xec3   : > { %v7790_v28 = vpop.eup %7789 }
 0xec4   : > { %v7792_v7 = vpop.eup %7791  ;;  %v5506_v48 = vadd.f32 1.0, %v7790_v28 }
 0xec5   : > { %v5507_v1 = vadd.f32 1.0, %v7792_v7 }
 0xec6   : > { %7793 = vrcp.f32 %v5506_v48 }
 0xec7   : > { %7795 = vrcp.f32 %v5507_v1 }
 0xed0   : > { %v7794_v27 = vpop.eup %7793 }
 0xed1   : > { %v7796_v60 = vpop.eup %7795 }
 0xed2   : > { %v5514_v18 = vcombine.low %v7794_v27, %v7796_v60 }
 0xed4   : > { %5516 = vst [vmem:[%s278_s13] sm:$0x77] %v5514_v18 }
 0xed5 PF: > { %s17_s24 = sadd.s32 1, %s7803_s24  }
 0xed6   : > { %p14_p4 = scmp.ge.s32.totalorder %s17_s24, 4  }
 0xed8   :  { %16 = sbr.rel (!%p14_p4) target bundleno = 1 (0x1), region = 78 }

</bundles_post_ra>
